<compile_context>
chip_gen: v5e
topology: v5e:2x2
jax: 0.10.0
libtpu: 0.0.40
codegen_flags: <defaults>
</compile_context>

<pallas_src>
import jax
import jax.numpy as jnp
from jax.experimental import pallas as pl
from jax.experimental.pallas import tpu as pltpu

EPS = 1e-5
LANE = 128
VMEM_LIMIT = 32 * 1024 * 1024  # safe on v5e/v6e (128 MiB phys) and v7x (64 MiB phys)


def _round_up(x, m):
    return ((x + m - 1) // m) * m


# -----------------------------------------------------------------------------
# Pass A: 3x3 conv on one padded, row-flattened image + BN partial statistics.
# -----------------------------------------------------------------------------
def _make_conv_stats_kernel(H, W, Wp):
    HWp = H * Wp

    def kernel(x_ref, w_ref, y_ref, sum_ref, ssq_ref, xs_ref, acc_ref):
        # x_ref : (Mp, Cin_p)        bf16  flattened replicate-padded image (+ pad rows)
        # w_ref : (9, Cin_p, Cout_p) bf16  conv taps, k = kh*3 + kw
        # y_ref : (HWp, Cout_p)      bf16  conv output (columns w >= W are garbage)
        # sum_ref, ssq_ref : (1, Cout_p) f32 per-image channel sums over valid columns
        # xs_ref : VMEM (Mp, Cin_p) f32, acc_ref : VMEM (HWp, Cout_p) f32
        xs_ref[...] = x_ref[...].astype(jnp.float32)       # stage once as 32-bit layout
        acc_ref[...] = jnp.zeros_like(acc_ref)
        for k in range(9):                                  # statically unrolled
            kh, kw = divmod(k, 3)
            start = kh * Wp + kw                            # static row offset
            acc_ref[...] += jnp.dot(
                xs_ref[start:start + HWp, :],
                w_ref[k].astype(jnp.float32),
                preferred_element_type=jnp.float32)
        y = acc_ref[...]
        # Flat row r corresponds to (h, w') with w' = r % Wp; only w' < W is valid.
        col = jax.lax.broadcasted_iota(jnp.int32, y.shape, 0) % Wp
        yv = jnp.where(col < W, y, 0.0)
        y_ref[...] = y.astype(y_ref.dtype)
        sum_ref[...] = jnp.sum(yv, axis=0, keepdims=True)
        ssq_ref[...] = jnp.sum(yv * yv, axis=0, keepdims=True)

    return kernel


# -----------------------------------------------------------------------------
# Pass B (stage 2 / final): folded BN + ReLU epilogue.
# -----------------------------------------------------------------------------
def _bn_relu_kernel(y_ref, scale_ref, shift_ref, out_ref):
    y = y_ref[...].astype(jnp.float32)
    out_ref[...] = jnp.maximum(
        y * scale_ref[...] + shift_ref[...], 0.0).astype(out_ref.dtype)


# -----------------------------------------------------------------------------
# Pass B (stage 1): folded BN + ReLU, fused with the replicate pad + flatten that
# produces stage 2's conv input directly (no XLA pad pass between the stages).
# -----------------------------------------------------------------------------
def _make_bn_relu_pad_kernel(H, W, Wp, Mp):
    HWp = H * Wp            # rows of the (H, Wp) conv-output grid
    HpWp = (H + 2) * Wp     # rows of the (Hp, Wp) padded grid for the next conv

    def kernel(y_ref, scale_ref, shift_ref, out_ref):
        # y_ref   : (HWp, C) bf16 conv output on the (H, Wp) grid (cols >= W garbage)
        # out_ref : (Mp,  C) bf16 next-stage input, flat over (Hp, Wp) + zero pad rows
        a = jnp.maximum(
            y_ref[...].astype(jnp.float32) * scale_ref[...] + shift_ref[...], 0.0)

        # Rewrite the two garbage columns so that a single shifted copy of the block
        # realizes the replicate padding of the interior + left/right borders:
        #   col == W   -> right border value  a[h, W-1]   (previous flat row)
        #   col == W+1 -> next row's left border a[h+1, 0] (next flat row)
        col = jax.lax.broadcasted_iota(jnp.int32, a.shape, 0) % Wp
        a_dn = jnp.concatenate([a[:1], a[:-1]], axis=0)     # a_dn[r] = a[r-1]
        a_up = jnp.concatenate([a[1:], a[-1:]], axis=0)     # a_up[r] = a[r+1]
        ap = jnp.where(col == W, a_dn, a)
        ap = jnp.where(col == W + 1, a_up, ap)
        ap = ap.astype(out_ref.dtype)

        # Main shifted copy: padded flat index d = r + Wp + 1 covers rows hp = 1..H
        # (and their left/right borders) exactly.  Drop the last source row (it would
        # land on the bottom border, which is rewritten below).
        out_ref[Wp + 1:(H + 1) * Wp, :] = ap[:HWp - 1]

        # Top border row hp = 0 plus the (1, 0) corner:
        #   [a(0,0), a(0,0..W-1), a(0,W-1), a(0,0)]
        out_ref[0:Wp + 1, :] = jnp.concatenate(
            [ap[0:1], ap[0:Wp - 1], ap[0:1]], axis=0)

        # Bottom border row hp = H+1 (replicate of the last valid row):
        s = (H - 1) * Wp
        out_ref[(H + 1) * Wp:(H + 2) * Wp, :] = jnp.concatenate(
            [ap[s:s + 1], ap[s:s + Wp - 1]], axis=0)

        # Zero the alignment pad rows (read only by the last tap for garbage columns).
        out_ref[HpWp:Mp, :] = jnp.zeros((Mp - HpWp, out_ref.shape[-1]), out_ref.dtype)

    return kernel


def _prep_weight(w, cin_p, cout_p):
    # (C_out, C_in, 3, 3) -> (9, Cin_p, Cout_p) bf16, tap index k = kh*3 + kw.
    c_out, c_in = w.shape[0], w.shape[1]
    w9 = jnp.transpose(w, (2, 3, 1, 0)).reshape(9, c_in, c_out)
    w9 = jnp.pad(w9, ((0, 0), (0, cin_p - c_in), (0, cout_p - c_out)))
    return w9.astype(jnp.bfloat16)


def conv_block_forward(x_nchw, w1, b1, w2, b2, gamma, beta):
    """y = relu(BN(CNN1(x))); return relu(BN(CNN2(y)))  (shared, training-mode BN).

    b1/b2 are accepted for parity with nn.Conv2d but intentionally unused: a
    per-channel bias added before training-mode BatchNorm cancels exactly in the
    mean subtraction and does not change the variance.
    """
    del b1, b2
    N, C_in, H, W = x_nchw.shape
    C_out = w1.shape[0]
    Cin_p = _round_up(C_in, LANE)
    Cout_p = _round_up(C_out, LANE)
    Hp, Wp = H + 2, W + 2
    HWp = H * Wp
    Mp = _round_up(Hp * Wp + 2, 8)          # last tap window needs 2 extra rows

    # ---- Module-boundary prep (stage-1 input only): NCHW -> NHWC, channel pad,
    # replicate spatial pad, flatten, bf16 for HBM traffic.
    x = jnp.transpose(x_nchw, (0, 2, 3, 1))
    x = jnp.pad(x, ((0, 0), (0, 0), (0, 0), (0, Cin_p - C_in)))
    xp = jnp.pad(x, ((0, 0), (1, 1), (1, 1), (0, 0)), mode="edge").astype(jnp.bfloat16)
    xf1 = jnp.pad(xp.reshape(N, Hp * Wp, Cin_p), ((0, 0), (0, Mp - Hp * Wp), (0, 0)))

    w1_9 = _prep_weight(w1, Cin_p, Cout_p)
    w2_9 = _prep_weight(w2, Cout_p, Cout_p)
    gamma_p = jnp.pad(gamma.astype(jnp.float32), (0, Cout_p - C_out))
    beta_p = jnp.pad(beta.astype(jnp.float32), (0, Cout_p - C_out))

    cparams = pltpu.CompilerParams(
        dimension_semantics=("parallel",), vmem_limit_bytes=VMEM_LIMIT)

    def conv_stats(xf, w9, cin_p):
        return pl.pallas_call(
            _make_conv_stats_kernel(H, W, Wp),
            out_shape=(
                jax.ShapeDtypeStruct((N, HWp, Cout_p), jnp.bfloat16),
                jax.ShapeDtypeStruct((N, 1, Cout_p), jnp.float32),
                jax.ShapeDtypeStruct((N, 1, Cout_p), jnp.float32),
            ),
            grid=(N,),
            in_specs=[
                pl.BlockSpec((None, Mp, cin_p), lambda n: (n, 0, 0)),
                pl.BlockSpec((9, cin_p, Cout_p), lambda n: (0, 0, 0)),
            ],
            out_specs=(
                pl.BlockSpec((None, HWp, Cout_p), lambda n: (n, 0, 0)),
                pl.BlockSpec((None, 1, Cout_p), lambda n: (n, 0, 0)),
                pl.BlockSpec((None, 1, Cout_p), lambda n: (n, 0, 0)),
            ),
            scratch_shapes=[
                pltpu.VMEM((Mp, cin_p), jnp.float32),
                pltpu.VMEM((HWp, Cout_p), jnp.float32),
            ],
            compiler_params=cparams,
        )(xf, w9)

    def fold_stats(psum, pssq):
        # Training-mode BatchNorm: batch mean / biased variance, folded scale & shift.
        count = N * H * W
        mean = jnp.sum(psum[:, 0, :], axis=0) / count
        ex2 = jnp.sum(pssq[:, 0, :], axis=0) / count
        var = jnp.maximum(ex2 - mean * mean, 0.0)
        scale = gamma_p * jax.lax.rsqrt(var + EPS)
        shift = beta_p - mean * scale
        return scale.reshape(1, Cout_p), shift.reshape(1, Cout_p)

    # ---- Stage 1: conv + stats, then BN+ReLU fused with stage-2 input padding --------
    y1, s1, q1 = conv_stats(xf1, w1_9, Cin_p)
    scale1, shift1 = fold_stats(s1, q1)
    xf2 = pl.pallas_call(
        _make_bn_relu_pad_kernel(H, W, Wp, Mp),
        out_shape=jax.ShapeDtypeStruct((N, Mp, Cout_p), jnp.bfloat16),
        grid=(N,),
        in_specs=[
            pl.BlockSpec((None, HWp, Cout_p), lambda n: (n, 0, 0)),
            pl.BlockSpec((1, Cout_p), lambda n: (0, 0)),
            pl.BlockSpec((1, Cout_p), lambda n: (0, 0)),
        ],
        out_specs=pl.BlockSpec((None, Mp, Cout_p), lambda n: (n, 0, 0)),
        compiler_params=cparams,
    )(y1, scale1, shift1)

    # ---- Stage 2: conv + stats, then BN+ReLU ----------------------------------------
    y2, s2, q2 = conv_stats(xf2, w2_9, Cout_p)
    scale2, shift2 = fold_stats(s2, q2)
    a2 = pl.pallas_call(
        _bn_relu_kernel,
        out_shape=jax.ShapeDtypeStruct((N, HWp, Cout_p), jnp.float32),
        grid=(N,),
        in_specs=[
            pl.BlockSpec((None, HWp, Cout_p), lambda n: (n, 0, 0)),
            pl.BlockSpec((1, Cout_p), lambda n: (0, 0)),
            pl.BlockSpec((1, Cout_p), lambda n: (0, 0)),
        ],
        out_specs=pl.BlockSpec((None, HWp, Cout_p), lambda n: (n, 0, 0)),
        compiler_params=cparams,
    )(y2, scale2, shift2)

    # Drop garbage columns / channel padding, back to NCHW at the module boundary.
    out = a2.reshape(N, H, Wp, Cout_p)[:, :, :W, :C_out]
    return jnp.transpose(out, (0, 3, 1, 2))


def _reference_forward(x, w1, b1, w2, b2, gamma, beta):
    """Pure-JAX (XLA) reference of the PyTorch module forward, in f32."""
    def conv(x, w, b):
        xp = jnp.pad(x, ((0, 0), (0, 0), (1, 1), (1, 1)), mode="edge")
        y = jax.lax.conv_general_dilated(
            xp, w, window_strides=(1, 1), padding="VALID",
            dimension_numbers=("NCHW", "OIHW", "NCHW"),
            precision=jax.lax.Precision.HIGHEST)
        return y + b.reshape(1, -1, 1, 1)

    def bn_relu(y):
        mean = jnp.mean(y, axis=(0, 2, 3), keepdims=True)
        var = jnp.mean(jnp.square(y - mean), axis=(0, 2, 3), keepdims=True)
        yh = (y - mean) * jax.lax.rsqrt(var + EPS)
        return jnp.maximum(
            yh * gamma.reshape(1, -1, 1, 1) + beta.reshape(1, -1, 1, 1), 0.0)

    return bn_relu(conv(bn_relu(conv(x, w1, b1)), w2, b2))


if __name__ == "__main__":
    key = jax.random.PRNGKey(0)
    N, C_in, C_out, H, W = 2, 4, 8, 16, 16

    k_x, k_w1, k_b1, k_w2, k_b2 = jax.random.split(key, 5)
    x = jax.random.normal(k_x, (N, C_in, H, W), jnp.float32)
    w1 = jax.random.normal(k_w1, (C_out, C_in, 3, 3), jnp.float32) * 0.1
    b1 = jax.random.normal(k_b1, (C_out,), jnp.float32) * 0.1
    w2 = jax.random.normal(k_w2, (C_out, C_out, 3, 3), jnp.float32) * 0.1
    b2 = jax.random.normal(k_b2, (C_out,), jnp.float32) * 0.1
    gamma = jnp.ones((C_out,), jnp.float32)   # fresh BatchNorm2d weight
    beta = jnp.zeros((C_out,), jnp.float32)   # fresh BatchNorm2d bias

    out = jax.jit(conv_block_forward)(x, w1, b1, w2, b2, gamma, beta)
    jax.block_until_ready(out)
    assert out.shape == (N, C_out, H, W)
    assert bool(jnp.all(jnp.isfinite(out)))

    # Loose tolerance: kernel keeps activations in bf16 in HBM (intentional perf choice).
    ref = _reference_forward(x, w1, b1, w2, b2, gamma, beta)
    max_err = float(jnp.max(jnp.abs(out - ref)))
    assert max_err < 0.1, f"max abs error vs reference too large: {max_err}"

    print("KERNEL_OK")
</pallas_src>

<mosaic_0001>
module attributes {stable_mosaic.version = 11 : i64} {
  func.func @kernel(%arg0: i32, %arg1: memref<1x328x128xbf16, #tpu.memory_space<vmem>>, %arg2: memref<9x128x128xbf16, #tpu.memory_space<vmem>>, %arg3: memref<1x288x128xbf16, #tpu.memory_space<vmem>>, %arg4: memref<1x1x128xf32, #tpu.memory_space<vmem>>, %arg5: memref<1x1x128xf32, #tpu.memory_space<vmem>>, %arg6: memref<328x128xf32, #tpu.memory_space<vmem>>, %arg7: memref<288x128xf32, #tpu.memory_space<vmem>>) attributes {dimension_semantics = [#tpu.dimension_semantics<parallel>], iteration_bounds = array<i64: 2>, scalar_prefetch = 0 : i64, scratch_operands = 2 : i64, tpu.core_type = #tpu.core_type<tc>, window_params = [{transform_indices = @transform_0, window_bounds = array<i64: 1, 328, 128>}, {pipeline_mode = #tpu.pipeline_mode<synchronous>, transform_indices = @transform_1, window_bounds = array<i64: 9, 128, 128>}, {transform_indices = @transform_2, window_bounds = array<i64: 1, 288, 128>}, {transform_indices = @transform_3, window_bounds = array<i64: 1, 1, 128>}, {transform_indices = @transform_4, window_bounds = array<i64: 1, 1, 128>}]} {
    %c0 = arith.constant 0 : index
    %c0_0 = arith.constant 0 : index
    %c0_1 = arith.constant 0 : index
    %0 = vector.load %arg1[%c0, %c0_0, %c0_1] : memref<1x328x128xbf16, #tpu.memory_space<vmem>>, vector<1x328x128xbf16>
    %1 = vector.shape_cast %0 : vector<1x328x128xbf16> to vector<328x128xbf16>
    %2 = arith.extf %1 : vector<328x128xbf16> to vector<328x128xf32>
    %c0_2 = arith.constant 0 : index
    %c0_3 = arith.constant 0 : index
    %3 = vector.load %arg6[%c0_2, %c0_3] : memref<328x128xf32, #tpu.memory_space<vmem>>, vector<328x128xf32>
    tpu.vector_store %arg6[%c0_2, %c0_3], %2 {strides = array<i32>} : memref<328x128xf32, #tpu.memory_space<vmem>>, vector<328x128xf32>,
    %cst = arith.constant 0.000000e+00 : f32
    %4 = vector.broadcast %cst : f32 to vector<288x128xf32>
    %c0_4 = arith.constant 0 : index
    %c0_5 = arith.constant 0 : index
    %5 = vector.load %arg7[%c0_4, %c0_5] : memref<288x128xf32, #tpu.memory_space<vmem>>, vector<288x128xf32>
    tpu.vector_store %arg7[%c0_4, %c0_5], %4 {strides = array<i32>} : memref<288x128xf32, #tpu.memory_space<vmem>>, vector<288x128xf32>,
    %c0_6 = arith.constant 0 : index
    %c0_7 = arith.constant 0 : index
    %6 = vector.load %arg7[%c0_6, %c0_7] : memref<288x128xf32, #tpu.memory_space<vmem>>, vector<288x128xf32>
    %c0_8 = arith.constant 0 : index
    %c0_9 = arith.constant 0 : index
    %7 = vector.load %arg6[%c0_8, %c0_9] : memref<328x128xf32, #tpu.memory_space<vmem>>, vector<288x128xf32>
    %c0_10 = arith.constant 0 : index
    %c0_11 = arith.constant 0 : index
    %c0_12 = arith.constant 0 : index
    %8 = vector.load %arg2[%c0_10, %c0_11, %c0_12] : memref<9x128x128xbf16, #tpu.memory_space<vmem>>, vector<1x128x128xbf16>
    %9 = vector.shape_cast %8 : vector<1x128x128xbf16> to vector<128x128xbf16>
    %10 = arith.extf %9 : vector<128x128xbf16> to vector<128x128xf32>
    %cst_13 = arith.constant dense<0.000000e+00> : vector<288x128xf32>
    %11 = tpu.matmul %7, %10, %cst_13 {dimension_numbers = #tpu.dot_dimension_numbers<[1], [0], [0], [1], [0, 0, 1, 1], [], []>} : vector<288x128xf32>, vector<128x128xf32>, vector<288x128xf32> -> vector<288x128xf32>
    %12 = arith.addf %6, %11 : vector<288x128xf32>
    %c0_14 = arith.constant 0 : index
    %c0_15 = arith.constant 0 : index
    %13 = vector.load %arg7[%c0_14, %c0_15] : memref<288x128xf32, #tpu.memory_space<vmem>>, vector<288x128xf32>
    tpu.vector_store %arg7[%c0_14, %c0_15], %12 {strides = array<i32>} : memref<288x128xf32, #tpu.memory_space<vmem>>, vector<288x128xf32>,
    %c0_16 = arith.constant 0 : index
    %c0_17 = arith.constant 0 : index
    %14 = vector.load %arg7[%c0_16, %c0_17] : memref<288x128xf32, #tpu.memory_space<vmem>>, vector<288x128xf32>
    %c1 = arith.constant 1 : index
    %c0_18 = arith.constant 0 : index
    %15 = vector.load %arg6[%c1, %c0_18] : memref<328x128xf32, #tpu.memory_space<vmem>>, vector<288x128xf32>
    %c1_19 = arith.constant 1 : index
    %c0_20 = arith.constant 0 : index
    %c0_21 = arith.constant 0 : index
    %16 = vector.load %arg2[%c1_19, %c0_20, %c0_21] : memref<9x128x128xbf16, #tpu.memory_space<vmem>>, vector<1x128x128xbf16>
    %17 = vector.shape_cast %16 : vector<1x128x128xbf16> to vector<128x128xbf16>
    %18 = arith.extf %17 : vector<128x128xbf16> to vector<128x128xf32>
    %cst_22 = arith.constant dense<0.000000e+00> : vector<288x128xf32>
    %19 = tpu.matmul %15, %18, %cst_22 {dimension_numbers = #tpu.dot_dimension_numbers<[1], [0], [0], [1], [0, 0, 1, 1], [], []>} : vector<288x128xf32>, vector<128x128xf32>, vector<288x128xf32> -> vector<288x128xf32>
    %20 = arith.addf %14, %19 : vector<288x128xf32>
    %c0_23 = arith.constant 0 : index
    %c0_24 = arith.constant 0 : index
    %21 = vector.load %arg7[%c0_23, %c0_24] : memref<288x128xf32, #tpu.memory_space<vmem>>, vector<288x128xf32>
    tpu.vector_store %arg7[%c0_23, %c0_24], %20 {strides = array<i32>} : memref<288x128xf32, #tpu.memory_space<vmem>>, vector<288x128xf32>,
    %c0_25 = arith.constant 0 : index
    %c0_26 = arith.constant 0 : index
    %22 = vector.load %arg7[%c0_25, %c0_26] : memref<288x128xf32, #tpu.memory_space<vmem>>, vector<288x128xf32>
    %c2 = arith.constant 2 : index
    %c0_27 = arith.constant 0 : index
    %23 = vector.load %arg6[%c2, %c0_27] : memref<328x128xf32, #tpu.memory_space<vmem>>, vector<288x128xf32>
    %c2_28 = arith.constant 2 : index
    %c0_29 = arith.constant 0 : index
    %c0_30 = arith.constant 0 : index
    %24 = vector.load %arg2[%c2_28, %c0_29, %c0_30] : memref<9x128x128xbf16, #tpu.memory_space<vmem>>, vector<1x128x128xbf16>
    %25 = vector.shape_cast %24 : vector<1x128x128xbf16> to vector<128x128xbf16>
    %26 = arith.extf %25 : vector<128x128xbf16> to vector<128x128xf32>
    %cst_31 = arith.constant dense<0.000000e+00> : vector<288x128xf32>
    %27 = tpu.matmul %23, %26, %cst_31 {dimension_numbers = #tpu.dot_dimension_numbers<[1], [0], [0], [1], [0, 0, 1, 1], [], []>} : vector<288x128xf32>, vector<128x128xf32>, vector<288x128xf32> -> vector<288x128xf32>
    %28 = arith.addf %22, %27 : vector<288x128xf32>
    %c0_32 = arith.constant 0 : index
    %c0_33 = arith.constant 0 : index
    %29 = vector.load %arg7[%c0_32, %c0_33] : memref<288x128xf32, #tpu.memory_space<vmem>>, vector<288x128xf32>
    tpu.vector_store %arg7[%c0_32, %c0_33], %28 {strides = array<i32>} : memref<288x128xf32, #tpu.memory_space<vmem>>, vector<288x128xf32>,
    %c0_34 = arith.constant 0 : index
    %c0_35 = arith.constant 0 : index
    %30 = vector.load %arg7[%c0_34, %c0_35] : memref<288x128xf32, #tpu.memory_space<vmem>>, vector<288x128xf32>
    %c18 = arith.constant 18 : index
    %c0_36 = arith.constant 0 : index
    %31 = vector.load %arg6[%c18, %c0_36] : memref<328x128xf32, #tpu.memory_space<vmem>>, vector<288x128xf32>
    %c3 = arith.constant 3 : index
    %c0_37 = arith.constant 0 : index
    %c0_38 = arith.constant 0 : index
    %32 = vector.load %arg2[%c3, %c0_37, %c0_38] : memref<9x128x128xbf16, #tpu.memory_space<vmem>>, vector<1x128x128xbf16>
    %33 = vector.shape_cast %32 : vector<1x128x128xbf16> to vector<128x128xbf16>
    %34 = arith.extf %33 : vector<128x128xbf16> to vector<128x128xf32>
    %cst_39 = arith.constant dense<0.000000e+00> : vector<288x128xf32>
    %35 = tpu.matmul %31, %34, %cst_39 {dimension_numbers = #tpu.dot_dimension_numbers<[1], [0], [0], [1], [0, 0, 1, 1], [], []>} : vector<288x128xf32>, vector<128x128xf32>, vector<288x128xf32> -> vector<288x128xf32>
    %36 = arith.addf %30, %35 : vector<288x128xf32>
    %c0_40 = arith.constant 0 : index
    %c0_41 = arith.constant 0 : index
    %37 = vector.load %arg7[%c0_40, %c0_41] : memref<288x128xf32, #tpu.memory_space<vmem>>, vector<288x128xf32>
    tpu.vector_store %arg7[%c0_40, %c0_41], %36 {strides = array<i32>} : memref<288x128xf32, #tpu.memory_space<vmem>>, vector<288x128xf32>,
    %c0_42 = arith.constant 0 : index
    %c0_43 = arith.constant 0 : index
    %38 = vector.load %arg7[%c0_42, %c0_43] : memref<288x128xf32, #tpu.memory_space<vmem>>, vector<288x128xf32>
    %c19 = arith.constant 19 : index
    %c0_44 = arith.constant 0 : index
    %39 = vector.load %arg6[%c19, %c0_44] : memref<328x128xf32, #tpu.memory_space<vmem>>, vector<288x128xf32>
    %c4 = arith.constant 4 : index
    %c0_45 = arith.constant 0 : index
    %c0_46 = arith.constant 0 : index
    %40 = vector.load %arg2[%c4, %c0_45, %c0_46] : memref<9x128x128xbf16, #tpu.memory_space<vmem>>, vector<1x128x128xbf16>
    %41 = vector.shape_cast %40 : vector<1x128x128xbf16> to vector<128x128xbf16>
    %42 = arith.extf %41 : vector<128x128xbf16> to vector<128x128xf32>
    %cst_47 = arith.constant dense<0.000000e+00> : vector<288x128xf32>
    %43 = tpu.matmul %39, %42, %cst_47 {dimension_numbers = #tpu.dot_dimension_numbers<[1], [0], [0], [1], [0, 0, 1, 1], [], []>} : vector<288x128xf32>, vector<128x128xf32>, vector<288x128xf32> -> vector<288x128xf32>
    %44 = arith.addf %38, %43 : vector<288x128xf32>
    %c0_48 = arith.constant 0 : index
    %c0_49 = arith.constant 0 : index
    %45 = vector.load %arg7[%c0_48, %c0_49] : memref<288x128xf32, #tpu.memory_space<vmem>>, vector<288x128xf32>
    tpu.vector_store %arg7[%c0_48, %c0_49], %44 {strides = array<i32>} : memref<288x128xf32, #tpu.memory_space<vmem>>, vector<288x128xf32>,
    %c0_50 = arith.constant 0 : index
    %c0_51 = arith.constant 0 : index
    %46 = vector.load %arg7[%c0_50, %c0_51] : memref<288x128xf32, #tpu.memory_space<vmem>>, vector<288x128xf32>
    %c20 = arith.constant 20 : index
    %c0_52 = arith.constant 0 : index
    %47 = vector.load %arg6[%c20, %c0_52] : memref<328x128xf32, #tpu.memory_space<vmem>>, vector<288x128xf32>
    %c5 = arith.constant 5 : index
    %c0_53 = arith.constant 0 : index
    %c0_54 = arith.constant 0 : index
    %48 = vector.load %arg2[%c5, %c0_53, %c0_54] : memref<9x128x128xbf16, #tpu.memory_space<vmem>>, vector<1x128x128xbf16>
    %49 = vector.shape_cast %48 : vector<1x128x128xbf16> to vector<128x128xbf16>
    %50 = arith.extf %49 : vector<128x128xbf16> to vector<128x128xf32>
    %cst_55 = arith.constant dense<0.000000e+00> : vector<288x128xf32>
    %51 = tpu.matmul %47, %50, %cst_55 {dimension_numbers = #tpu.dot_dimension_numbers<[1], [0], [0], [1], [0, 0, 1, 1], [], []>} : vector<288x128xf32>, vector<128x128xf32>, vector<288x128xf32> -> vector<288x128xf32>
    %52 = arith.addf %46, %51 : vector<288x128xf32>
    %c0_56 = arith.constant 0 : index
    %c0_57 = arith.constant 0 : index
    %53 = vector.load %arg7[%c0_56, %c0_57] : memref<288x128xf32, #tpu.memory_space<vmem>>, vector<288x128xf32>
    tpu.vector_store %arg7[%c0_56, %c0_57], %52 {strides = array<i32>} : memref<288x128xf32, #tpu.memory_space<vmem>>, vector<288x128xf32>,
    %c0_58 = arith.constant 0 : index
    %c0_59 = arith.constant 0 : index
    %54 = vector.load %arg7[%c0_58, %c0_59] : memref<288x128xf32, #tpu.memory_space<vmem>>, vector<288x128xf32>
    %c36 = arith.constant 36 : index
    %c0_60 = arith.constant 0 : index
    %55 = vector.load %arg6[%c36, %c0_60] : memref<328x128xf32, #tpu.memory_space<vmem>>, vector<288x128xf32>
    %c6 = arith.constant 6 : index
    %c0_61 = arith.constant 0 : index
    %c0_62 = arith.constant 0 : index
    %56 = vector.load %arg2[%c6, %c0_61, %c0_62] : memref<9x128x128xbf16, #tpu.memory_space<vmem>>, vector<1x128x128xbf16>
    %57 = vector.shape_cast %56 : vector<1x128x128xbf16> to vector<128x128xbf16>
    %58 = arith.extf %57 : vector<128x128xbf16> to vector<128x128xf32>
    %cst_63 = arith.constant dense<0.000000e+00> : vector<288x128xf32>
    %59 = tpu.matmul %55, %58, %cst_63 {dimension_numbers = #tpu.dot_dimension_numbers<[1], [0], [0], [1], [0, 0, 1, 1], [], []>} : vector<288x128xf32>, vector<128x128xf32>, vector<288x128xf32> -> vector<288x128xf32>
    %60 = arith.addf %54, %59 : vector<288x128xf32>
    %c0_64 = arith.constant 0 : index
    %c0_65 = arith.constant 0 : index
    %61 = vector.load %arg7[%c0_64, %c0_65] : memref<288x128xf32, #tpu.memory_space<vmem>>, vector<288x128xf32>
    tpu.vector_store %arg7[%c0_64, %c0_65], %60 {strides = array<i32>} : memref<288x128xf32, #tpu.memory_space<vmem>>, vector<288x128xf32>,
    %c0_66 = arith.constant 0 : index
    %c0_67 = arith.constant 0 : index
    %62 = vector.load %arg7[%c0_66, %c0_67] : memref<288x128xf32, #tpu.memory_space<vmem>>, vector<288x128xf32>
    %c37 = arith.constant 37 : index
    %c0_68 = arith.constant 0 : index
    %63 = vector.load %arg6[%c37, %c0_68] : memref<328x128xf32, #tpu.memory_space<vmem>>, vector<288x128xf32>
    %c7 = arith.constant 7 : index
    %c0_69 = arith.constant 0 : index
    %c0_70 = arith.constant 0 : index
    %64 = vector.load %arg2[%c7, %c0_69, %c0_70] : memref<9x128x128xbf16, #tpu.memory_space<vmem>>, vector<1x128x128xbf16>
    %65 = vector.shape_cast %64 : vector<1x128x128xbf16> to vector<128x128xbf16>
    %66 = arith.extf %65 : vector<128x128xbf16> to vector<128x128xf32>
    %cst_71 = arith.constant dense<0.000000e+00> : vector<288x128xf32>
    %67 = tpu.matmul %63, %66, %cst_71 {dimension_numbers = #tpu.dot_dimension_numbers<[1], [0], [0], [1], [0, 0, 1, 1], [], []>} : vector<288x128xf32>, vector<128x128xf32>, vector<288x128xf32> -> vector<288x128xf32>
    %68 = arith.addf %62, %67 : vector<288x128xf32>
    %c0_72 = arith.constant 0 : index
    %c0_73 = arith.constant 0 : index
    %69 = vector.load %arg7[%c0_72, %c0_73] : memref<288x128xf32, #tpu.memory_space<vmem>>, vector<288x128xf32>
    tpu.vector_store %arg7[%c0_72, %c0_73], %68 {strides = array<i32>} : memref<288x128xf32, #tpu.memory_space<vmem>>, vector<288x128xf32>,
    %c0_74 = arith.constant 0 : index
    %c0_75 = arith.constant 0 : index
    %70 = vector.load %arg7[%c0_74, %c0_75] : memref<288x128xf32, #tpu.memory_space<vmem>>, vector<288x128xf32>
    %c38 = arith.constant 38 : index
    %c0_76 = arith.constant 0 : index
    %71 = vector.load %arg6[%c38, %c0_76] : memref<328x128xf32, #tpu.memory_space<vmem>>, vector<288x128xf32>
    %c8 = arith.constant 8 : index
    %c0_77 = arith.constant 0 : index
    %c0_78 = arith.constant 0 : index
    %72 = vector.load %arg2[%c8, %c0_77, %c0_78] : memref<9x128x128xbf16, #tpu.memory_space<vmem>>, vector<1x128x128xbf16>
    %73 = vector.shape_cast %72 : vector<1x128x128xbf16> to vector<128x128xbf16>
    %74 = arith.extf %73 : vector<128x128xbf16> to vector<128x128xf32>
    %cst_79 = arith.constant dense<0.000000e+00> : vector<288x128xf32>
    %75 = tpu.matmul %71, %74, %cst_79 {dimension_numbers = #tpu.dot_dimension_numbers<[1], [0], [0], [1], [0, 0, 1, 1], [], []>} : vector<288x128xf32>, vector<128x128xf32>, vector<288x128xf32> -> vector<288x128xf32>
    %76 = arith.addf %70, %75 : vector<288x128xf32>
    %c0_80 = arith.constant 0 : index
    %c0_81 = arith.constant 0 : index
    %77 = vector.load %arg7[%c0_80, %c0_81] : memref<288x128xf32, #tpu.memory_space<vmem>>, vector<288x128xf32>
    tpu.vector_store %arg7[%c0_80, %c0_81], %76 {strides = array<i32>} : memref<288x128xf32, #tpu.memory_space<vmem>>, vector<288x128xf32>,
    %c0_82 = arith.constant 0 : index
    %c0_83 = arith.constant 0 : index
    %78 = vector.load %arg7[%c0_82, %c0_83] : memref<288x128xf32, #tpu.memory_space<vmem>>, vector<288x128xf32>
    %79 = tpu.iota {dimensions = array<i32: 0>} : vector<288x128xi32>
    %c18_i32 = arith.constant 18 : i32
    %c0_i32 = arith.constant 0 : i32
    %80 = arith.cmpi eq, %c18_i32, %c0_i32 : i32
    %c1_i32 = arith.constant 1 : i32
    %81 = arith.select %80, %c1_i32, %c18_i32 : i32
    %82 = vector.broadcast %81 : i32 to vector<288x128xi32>
    %83 = arith.remsi %79, %82 : vector<288x128xi32>
    %c0_i32_84 = arith.constant 0 : i32
    %84 = vector.broadcast %c0_i32_84 : i32 to vector<288x128xi32>
    %85 = arith.cmpi ne, %83, %84 : vector<288x128xi32>
    %c0_i32_85 = arith.constant 0 : i32
    %86 = vector.broadcast %c0_i32_85 : i32 to vector<288x128xi32>
    %87 = arith.cmpi slt, %83, %86 : vector<288x128xi32>
    %c0_i32_86 = arith.constant 0 : i32
    %88 = arith.cmpi slt, %81, %c0_i32_86 : i32
    %89 = vector.broadcast %88 : i1 to vector<288x128xi1>
    %90 = vector.broadcast %89 : vector<288x128xi1> to vector<288x128xi1>
    %91 = arith.xori %87, %90 : vector<288x128xi1>
    %92 = arith.andi %91, %85 : vector<288x128xi1>
    %93 = vector.broadcast %81 : i32 to vector<288x128xi32>
    %94 = arith.addi %83, %93 : vector<288x128xi32>
    %95 = arith.select %92, %94, %83 : vector<288x128xi1>, vector<288x128xi32>
    %c16_i32 = arith.constant 16 : i32
    %96 = vector.broadcast %c16_i32 : i32 to vector<288x128xi32>
    %97 = arith.cmpi slt, %95, %96 : vector<288x128xi32>
    %cst_87 = arith.constant 0.000000e+00 : f32
    %98 = vector.broadcast %cst_87 : f32 to vector<288x128xf32>
    %99 = arith.select %97, %78, %98 : vector<288x128xi1>, vector<288x128xf32>
    %100 = arith.truncf %78 : vector<288x128xf32> to vector<288x128xbf16>
    %c0_88 = arith.constant 0 : index
    %c0_89 = arith.constant 0 : index
    %c0_90 = arith.constant 0 : index
    %101 = vector.load %arg3[%c0_88, %c0_89, %c0_90] : memref<1x288x128xbf16, #tpu.memory_space<vmem>>, vector<1x288x128xbf16>
    %102 = vector.shape_cast %101 : vector<1x288x128xbf16> to vector<288x128xbf16>
    %103 = vector.shape_cast %100 : vector<288x128xbf16> to vector<1x288x128xbf16>
    tpu.vector_store %arg3[%c0_88, %c0_89, %c0_90], %103 {strides = array<i32>} : memref<1x288x128xbf16, #tpu.memory_space<vmem>>, vector<1x288x128xbf16>,
    %cst_91 = arith.constant dense<0.000000e+00> : vector<128xf32>
    %104 = vector.multi_reduction <add>, %99, %cst_91 [0] : vector<288x128xf32> to vector<128xf32>
    %105 = vector.shape_cast %104 : vector<128xf32> to vector<1x128xf32>
    %c0_92 = arith.constant 0 : index
    %c0_93 = arith.constant 0 : index
    %c0_94 = arith.constant 0 : index
    %106 = vector.load %arg4[%c0_92, %c0_93, %c0_94] : memref<1x1x128xf32, #tpu.memory_space<vmem>>, vector<1x1x128xf32>
    %107 = vector.shape_cast %106 : vector<1x1x128xf32> to vector<1x128xf32>
    %108 = vector.shape_cast %105 : vector<1x128xf32> to vector<1x1x128xf32>
    tpu.vector_store %arg4[%c0_92, %c0_93, %c0_94], %108 {strides = array<i32>} : memref<1x1x128xf32, #tpu.memory_space<vmem>>, vector<1x1x128xf32>,
    %109 = arith.mulf %99, %99 : vector<288x128xf32>
    %cst_95 = arith.constant dense<0.000000e+00> : vector<128xf32>
    %110 = vector.multi_reduction <add>, %109, %cst_95 [0] : vector<288x128xf32> to vector<128xf32>
    %111 = vector.shape_cast %110 : vector<128xf32> to vector<1x128xf32>
    %c0_96 = arith.constant 0 : index
    %c0_97 = arith.constant 0 : index
    %c0_98 = arith.constant 0 : index
    %112 = vector.load %arg5[%c0_96, %c0_97, %c0_98] : memref<1x1x128xf32, #tpu.memory_space<vmem>>, vector<1x1x128xf32>
    %113 = vector.shape_cast %112 : vector<1x1x128xf32> to vector<1x128xf32>
    %114 = vector.shape_cast %111 : vector<1x128xf32> to vector<1x1x128xf32>
    tpu.vector_store %arg5[%c0_96, %c0_97, %c0_98], %114 {strides = array<i32>} : memref<1x1x128xf32, #tpu.memory_space<vmem>>, vector<1x1x128xf32>,
    return
  }
  func.func @transform_0(%arg0: i32) -> (i32, i32, i32) {
    %c0_i32 = arith.constant 0 : i32
    %c0_i32_0 = arith.constant 0 : i32
    %c0_i32_1 = arith.constant 0 : i32
    return %arg0, %c0_i32, %c0_i32_0 : i32, i32, i32
  }
  func.func @transform_1(%arg0: i32) -> (i32, i32, i32) {
    %c0_i32 = arith.constant 0 : i32
    %c0_i32_0 = arith.constant 0 : i32
    %c0_i32_1 = arith.constant 0 : i32
    %c0_i32_2 = arith.constant 0 : i32
    return %c0_i32, %c0_i32_0, %c0_i32_1 : i32, i32, i32
  }
  func.func @transform_2(%arg0: i32) -> (i32, i32, i32) {
    %c0_i32 = arith.constant 0 : i32
    %c0_i32_0 = arith.constant 0 : i32
    %c0_i32_1 = arith.constant 0 : i32
    return %arg0, %c0_i32, %c0_i32_0 : i32, i32, i32
  }
  func.func @transform_3(%arg0: i32) -> (i32, i32, i32) {
    %c0_i32 = arith.constant 0 : i32
    %c0_i32_0 = arith.constant 0 : i32
    %c0_i32_1 = arith.constant 0 : i32
    return %arg0, %c0_i32, %c0_i32_0 : i32, i32, i32
  }
  func.func @transform_4(%arg0: i32) -> (i32, i32, i32) {
    %c0_i32 = arith.constant 0 : i32
    %c0_i32_0 = arith.constant 0 : i32
    %c0_i32_1 = arith.constant 0 : i32
    return %arg0, %c0_i32, %c0_i32_0 : i32, i32, i32
  }
}

module attributes {stable_mosaic.version = 11 : i64} {
  func.func @kernel(%arg0: i32, %arg1: memref<1x288x128xbf16, #tpu.memory_space<vmem>>, %arg2: memref<1x128xf32, #tpu.memory_space<vmem>>, %arg3: memref<1x128xf32, #tpu.memory_space<vmem>>, %arg4: memref<1x328x128xbf16, #tpu.memory_space<vmem>>) attributes {dimension_semantics = [#tpu.dimension_semantics<parallel>], iteration_bounds = array<i64: 2>, scalar_prefetch = 0 : i64, scratch_operands = 0 : i64, tpu.core_type = #tpu.core_type<tc>, window_params = [{transform_indices = @transform_0, window_bounds = array<i64: 1, 288, 128>}, {pipeline_mode = #tpu.pipeline_mode<synchronous>, transform_indices = @transform_1, window_bounds = array<i64: 1, 128>}, {pipeline_mode = #tpu.pipeline_mode<synchronous>, transform_indices = @transform_2, window_bounds = array<i64: 1, 128>}, {transform_indices = @transform_3, window_bounds = array<i64: 1, 328, 128>}]} {
    %c0 = arith.constant 0 : index
    %c0_0 = arith.constant 0 : index
    %c0_1 = arith.constant 0 : index
    %0 = vector.load %arg1[%c0, %c0_0, %c0_1] : memref<1x288x128xbf16, #tpu.memory_space<vmem>>, vector<1x288x128xbf16>
    %1 = vector.shape_cast %0 : vector<1x288x128xbf16> to vector<288x128xbf16>
    %2 = arith.extf %1 : vector<288x128xbf16> to vector<288x128xf32>
    %c0_2 = arith.constant 0 : index
    %c0_3 = arith.constant 0 : index
    %3 = vector.load %arg2[%c0_2, %c0_3] : memref<1x128xf32, #tpu.memory_space<vmem>>, vector<1x128xf32>
    %4 = vector.broadcast %3 : vector<1x128xf32> to vector<288x128xf32>
    %5 = arith.mulf %2, %4 : vector<288x128xf32>
    %c0_4 = arith.constant 0 : index
    %c0_5 = arith.constant 0 : index
    %6 = vector.load %arg3[%c0_4, %c0_5] : memref<1x128xf32, #tpu.memory_space<vmem>>, vector<1x128xf32>
    %7 = vector.broadcast %6 : vector<1x128xf32> to vector<288x128xf32>
    %8 = arith.addf %5, %7 : vector<288x128xf32>
    %cst = arith.constant 0.000000e+00 : f32
    %9 = vector.broadcast %cst : f32 to vector<288x128xf32>
    %10 = arith.maximumf %8, %9 : vector<288x128xf32>
    %11 = tpu.iota {dimensions = array<i32: 0>} : vector<288x128xi32>
    %c18_i32 = arith.constant 18 : i32
    %c0_i32 = arith.constant 0 : i32
    %12 = arith.cmpi eq, %c18_i32, %c0_i32 : i32
    %c1_i32 = arith.constant 1 : i32
    %13 = arith.select %12, %c1_i32, %c18_i32 : i32
    %14 = vector.broadcast %13 : i32 to vector<288x128xi32>
    %15 = arith.remsi %11, %14 : vector<288x128xi32>
    %c0_i32_6 = arith.constant 0 : i32
    %16 = vector.broadcast %c0_i32_6 : i32 to vector<288x128xi32>
    %17 = arith.cmpi ne, %15, %16 : vector<288x128xi32>
    %c0_i32_7 = arith.constant 0 : i32
    %18 = vector.broadcast %c0_i32_7 : i32 to vector<288x128xi32>
    %19 = arith.cmpi slt, %15, %18 : vector<288x128xi32>
    %c0_i32_8 = arith.constant 0 : i32
    %20 = arith.cmpi slt, %13, %c0_i32_8 : i32
    %21 = vector.broadcast %20 : i1 to vector<288x128xi1>
    %22 = vector.broadcast %21 : vector<288x128xi1> to vector<288x128xi1>
    %23 = arith.xori %19, %22 : vector<288x128xi1>
    %24 = arith.andi %23, %17 : vector<288x128xi1>
    %25 = vector.broadcast %13 : i32 to vector<288x128xi32>
    %26 = arith.addi %15, %25 : vector<288x128xi32>
    %27 = arith.select %24, %26, %15 : vector<288x128xi1>, vector<288x128xi32>
    %28 = vector.extract_strided_slice %10 {offsets = [0, 0], sizes = [1, 128], strides = [1, 1]} : vector<288x128xf32> to vector<1x128xf32>
    %29 = vector.extract_strided_slice %10 {offsets = [0, 0], sizes = [287, 128], strides = [1, 1]} : vector<288x128xf32> to vector<287x128xf32>
    %30 = tpu.concatenate %28, %29 in 0 : vector<1x128xf32>, vector<287x128xf32> -> vector<288x128xf32>
    %31 = vector.extract_strided_slice %10 {offsets = [1, 0], sizes = [287, 128], strides = [1, 1]} : vector<288x128xf32> to vector<287x128xf32>
    %32 = vector.extract_strided_slice %10 {offsets = [287, 0], sizes = [1, 128], strides = [1, 1]} : vector<288x128xf32> to vector<1x128xf32>
    %33 = tpu.concatenate %31, %32 in 0 : vector<287x128xf32>, vector<1x128xf32> -> vector<288x128xf32>
    %c16_i32 = arith.constant 16 : i32
    %34 = vector.broadcast %c16_i32 : i32 to vector<288x128xi32>
    %35 = arith.cmpi eq, %27, %34 : vector<288x128xi32>
    %36 = arith.select %35, %30, %10 : vector<288x128xi1>, vector<288x128xf32>
    %c17_i32 = arith.constant 17 : i32
    %37 = vector.broadcast %c17_i32 : i32 to vector<288x128xi32>
    %38 = arith.cmpi eq, %27, %37 : vector<288x128xi32>
    %39 = arith.select %38, %33, %36 : vector<288x128xi1>, vector<288x128xf32>
    %40 = arith.truncf %39 : vector<288x128xf32> to vector<288x128xbf16>
    %41 = vector.extract_strided_slice %40 {offsets = [0, 0], sizes = [287, 128], strides = [1, 1]} : vector<288x128xbf16> to vector<287x128xbf16>
    %c0_9 = arith.constant 0 : index
    %c19 = arith.constant 19 : index
    %c0_10 = arith.constant 0 : index
    %42 = vector.load %arg4[%c0_9, %c19, %c0_10] : memref<1x328x128xbf16, #tpu.memory_space<vmem>>, vector<1x287x128xbf16>
    %43 = vector.shape_cast %42 : vector<1x287x128xbf16> to vector<287x128xbf16>
    %44 = vector.shape_cast %41 : vector<287x128xbf16> to vector<1x287x128xbf16>
    tpu.vector_store %arg4[%c0_9, %c19, %c0_10], %44 {strides = array<i32>} : memref<1x328x128xbf16, #tpu.memory_space<vmem>>, vector<1x287x128xbf16>,
    %45 = vector.extract_strided_slice %40 {offsets = [0, 0], sizes = [1, 128], strides = [1, 1]} : vector<288x128xbf16> to vector<1x128xbf16>
    %46 = vector.extract_strided_slice %40 {offsets = [0, 0], sizes = [17, 128], strides = [1, 1]} : vector<288x128xbf16> to vector<17x128xbf16>
    %47 = vector.extract_strided_slice %40 {offsets = [0, 0], sizes = [1, 128], strides = [1, 1]} : vector<288x128xbf16> to vector<1x128xbf16>
    %48 = tpu.concatenate %45, %46, %47 in 0 : vector<1x128xbf16>, vector<17x128xbf16>, vector<1x128xbf16> -> vector<19x128xbf16>
    %c0_11 = arith.constant 0 : index
    %c0_12 = arith.constant 0 : index
    %c0_13 = arith.constant 0 : index
    %49 = vector.load %arg4[%c0_11, %c0_12, %c0_13] : memref<1x328x128xbf16, #tpu.memory_space<vmem>>, vector<1x19x128xbf16>
    %50 = vector.shape_cast %49 : vector<1x19x128xbf16> to vector<19x128xbf16>
    %51 = vector.shape_cast %48 : vector<19x128xbf16> to vector<1x19x128xbf16>
    tpu.vector_store %arg4[%c0_11, %c0_12, %c0_13], %51 {strides = array<i32>} : memref<1x328x128xbf16, #tpu.memory_space<vmem>>, vector<1x19x128xbf16>,
    %52 = vector.extract_strided_slice %40 {offsets = [270, 0], sizes = [1, 128], strides = [1, 1]} : vector<288x128xbf16> to vector<1x128xbf16>
    %53 = vector.extract_strided_slice %40 {offsets = [270, 0], sizes = [17, 128], strides = [1, 1]} : vector<288x128xbf16> to vector<17x128xbf16>
    %54 = tpu.concatenate %52, %53 in 0 : vector<1x128xbf16>, vector<17x128xbf16> -> vector<18x128xbf16>
    %c0_14 = arith.constant 0 : index
    %c306 = arith.constant 306 : index
    %c0_15 = arith.constant 0 : index
    %55 = vector.load %arg4[%c0_14, %c306, %c0_15] : memref<1x328x128xbf16, #tpu.memory_space<vmem>>, vector<1x18x128xbf16>
    %56 = vector.shape_cast %55 : vector<1x18x128xbf16> to vector<18x128xbf16>
    %57 = vector.shape_cast %54 : vector<18x128xbf16> to vector<1x18x128xbf16>
    tpu.vector_store %arg4[%c0_14, %c306, %c0_15], %57 {strides = array<i32>} : memref<1x328x128xbf16, #tpu.memory_space<vmem>>, vector<1x18x128xbf16>,
    %cst_16 = arith.constant 0.000000e+00 : bf16
    %58 = vector.broadcast %cst_16 : bf16 to vector<4x128xbf16>
    %c0_17 = arith.constant 0 : index
    %c324 = arith.constant 324 : index
    %c0_18 = arith.constant 0 : index
    %59 = vector.load %arg4[%c0_17, %c324, %c0_18] : memref<1x328x128xbf16, #tpu.memory_space<vmem>>, vector<1x4x128xbf16>
    %60 = vector.shape_cast %59 : vector<1x4x128xbf16> to vector<4x128xbf16>
    %61 = vector.shape_cast %58 : vector<4x128xbf16> to vector<1x4x128xbf16>
    tpu.vector_store %arg4[%c0_17, %c324, %c0_18], %61 {strides = array<i32>} : memref<1x328x128xbf16, #tpu.memory_space<vmem>>, vector<1x4x128xbf16>,
    return
  }
  func.func @transform_0(%arg0: i32) -> (i32, i32, i32) {
    %c0_i32 = arith.constant 0 : i32
    %c0_i32_0 = arith.constant 0 : i32
    %c0_i32_1 = arith.constant 0 : i32
    return %arg0, %c0_i32, %c0_i32_0 : i32, i32, i32
  }
  func.func @transform_1(%arg0: i32) -> (i32, i32) {
    %c0_i32 = arith.constant 0 : i32
    %c0_i32_0 = arith.constant 0 : i32
    %c0_i32_1 = arith.constant 0 : i32
    return %c0_i32, %c0_i32_0 : i32, i32
  }
  func.func @transform_2(%arg0: i32) -> (i32, i32) {
    %c0_i32 = arith.constant 0 : i32
    %c0_i32_0 = arith.constant 0 : i32
    %c0_i32_1 = arith.constant 0 : i32
    return %c0_i32, %c0_i32_0 : i32, i32
  }
  func.func @transform_3(%arg0: i32) -> (i32, i32, i32) {
    %c0_i32 = arith.constant 0 : i32
    %c0_i32_0 = arith.constant 0 : i32
    %c0_i32_1 = arith.constant 0 : i32
    return %arg0, %c0_i32, %c0_i32_0 : i32, i32, i32
  }
}

module attributes {stable_mosaic.version = 11 : i64} {
  func.func @_bn_relu_kernel(%arg0: i32, %arg1: memref<1x288x128xbf16, #tpu.memory_space<vmem>>, %arg2: memref<1x128xf32, #tpu.memory_space<vmem>>, %arg3: memref<1x128xf32, #tpu.memory_space<vmem>>, %arg4: memref<1x288x128xf32, #tpu.memory_space<vmem>>) attributes {dimension_semantics = [#tpu.dimension_semantics<parallel>], iteration_bounds = array<i64: 2>, scalar_prefetch = 0 : i64, scratch_operands = 0 : i64, tpu.core_type = #tpu.core_type<tc>, window_params = [{transform_indices = @transform_0, window_bounds = array<i64: 1, 288, 128>}, {pipeline_mode = #tpu.pipeline_mode<synchronous>, transform_indices = @transform_1, window_bounds = array<i64: 1, 128>}, {pipeline_mode = #tpu.pipeline_mode<synchronous>, transform_indices = @transform_2, window_bounds = array<i64: 1, 128>}, {transform_indices = @transform_3, window_bounds = array<i64: 1, 288, 128>}]} {
    %c0 = arith.constant 0 : index
    %c0_0 = arith.constant 0 : index
    %c0_1 = arith.constant 0 : index
    %0 = vector.load %arg1[%c0, %c0_0, %c0_1] : memref<1x288x128xbf16, #tpu.memory_space<vmem>>, vector<1x288x128xbf16>
    %1 = vector.shape_cast %0 : vector<1x288x128xbf16> to vector<288x128xbf16>
    %2 = arith.extf %1 : vector<288x128xbf16> to vector<288x128xf32>
    %c0_2 = arith.constant 0 : index
    %c0_3 = arith.constant 0 : index
    %3 = vector.load %arg2[%c0_2, %c0_3] : memref<1x128xf32, #tpu.memory_space<vmem>>, vector<1x128xf32>
    %4 = vector.broadcast %3 : vector<1x128xf32> to vector<288x128xf32>
    %5 = arith.mulf %2, %4 : vector<288x128xf32>
    %c0_4 = arith.constant 0 : index
    %c0_5 = arith.constant 0 : index
    %6 = vector.load %arg3[%c0_4, %c0_5] : memref<1x128xf32, #tpu.memory_space<vmem>>, vector<1x128xf32>
    %7 = vector.broadcast %6 : vector<1x128xf32> to vector<288x128xf32>
    %8 = arith.addf %5, %7 : vector<288x128xf32>
    %cst = arith.constant 0.000000e+00 : f32
    %9 = vector.broadcast %cst : f32 to vector<288x128xf32>
    %10 = arith.maximumf %8, %9 : vector<288x128xf32>
    %c0_6 = arith.constant 0 : index
    %c0_7 = arith.constant 0 : index
    %c0_8 = arith.constant 0 : index
    %11 = vector.load %arg4[%c0_6, %c0_7, %c0_8] : memref<1x288x128xf32, #tpu.memory_space<vmem>>, vector<1x288x128xf32>
    %12 = vector.shape_cast %11 : vector<1x288x128xf32> to vector<288x128xf32>
    %13 = vector.shape_cast %10 : vector<288x128xf32> to vector<1x288x128xf32>
    tpu.vector_store %arg4[%c0_6, %c0_7, %c0_8], %13 {strides = array<i32>} : memref<1x288x128xf32, #tpu.memory_space<vmem>>, vector<1x288x128xf32>,
    return
  }
  func.func @transform_0(%arg0: i32) -> (i32, i32, i32) {
    %c0_i32 = arith.constant 0 : i32
    %c0_i32_0 = arith.constant 0 : i32
    %c0_i32_1 = arith.constant 0 : i32
    return %arg0, %c0_i32, %c0_i32_0 : i32, i32, i32
  }
  func.func @transform_1(%arg0: i32) -> (i32, i32) {
    %c0_i32 = arith.constant 0 : i32
    %c0_i32_0 = arith.constant 0 : i32
    %c0_i32_1 = arith.constant 0 : i32
    return %c0_i32, %c0_i32_0 : i32, i32
  }
  func.func @transform_2(%arg0: i32) -> (i32, i32) {
    %c0_i32 = arith.constant 0 : i32
    %c0_i32_0 = arith.constant 0 : i32
    %c0_i32_1 = arith.constant 0 : i32
    return %c0_i32, %c0_i32_0 : i32, i32
  }
  func.func @transform_3(%arg0: i32) -> (i32, i32, i32) {
    %c0_i32 = arith.constant 0 : i32
    %c0_i32_0 = arith.constant 0 : i32
    %c0_i32_1 = arith.constant 0 : i32
    return %arg0, %c0_i32, %c0_i32_0 : i32, i32, i32
  }
}

</mosaic_0001>

<bundles_post_ra>
// kernel: conv_block_forward.7
= control target key start
LH: loop header
LB: loop body
LE: loop exit
PB: predicated region body
PF: predicated region fallthrough
CT: control target
= control target key end

     0   :  { %s588_s12 = smov 0   ;;  %s749_s0 = inlined_call_operand.vmem [shape: bf16[2,288,128], index: 0, kind: input, shape index: {}]   ;;  %s750_s1 = inlined_call_operand.vmem [shape: f32[1,128], index: 1, kind: input, shape index: {}]   ;;  %s751_s2 = inlined_call_operand.vmem [shape: f32[1,128], index: 2, kind: input, shape index: {}]   ;;  %s752_s3 = inlined_call_operand.vmem [shape: f32[2,288,128], index: 3, kind: output, shape index: {}]  }
   0x1 LB: > { %s450_s13 = sadd.s32 4294967295, %s566_s12   ;;  %p454_p0 = scmp.ge.s32.totalorder %s566_s12, 1  ;;  %s566_s12 = sphi %s588_s12, %s13_s12  }
   0x2   : > { %p137_p1 = scmp.lt.s32.totalorder %s566_s12, 3 }
   0x4   : > { %p138_p2 = pnand %p454_p0, %p137_p1 }
   0x5   : > { %p161_p3 = scmp.lt.s32.totalorder (!%p138_p2), %s450_s13, 1 }
   0x6   : > { %141 = sbr.rel (%p138_p2) target bundleno = 60 (0x3c), region = 32 }
   0xb   : > { %s754_s13 = smov (!%p161_p3, %s450_s13), 1  ;;  %v607_v0 = vld [vmem:[%s750_s1] ss:$0 sm:$0xff] }
   0xc   : > { %s548_s14 = smul.u32 144, %s754_s13  ;;  %v615_v5 = vld [vmem:[%s751_s2] ss:$0 sm:$0xff] }
   0xd   : > { %s549_s22 = smul.u32 288, %s754_s13 }
   0xe   : > { %s602_s17 = scalar_lea.vmem %s749_s0, %s548_s14 }
   0xf   : > { %v460_v1 = vld [vmem:[%s602_s17] sm:$0xff]   ;;  %v531_v2 = vld [vmem:[%s602_s17 + $0x8] sm:$0xff]   ;;  %v532_v3 = vld [vmem:[%s602_s17 + $0x10] sm:$0xff]   ;;  %s634_s25 = scalar_lea.vmem %s752_s3, %s549_s22 }
  0x10   : > { %v461_v4 = vunpack.c.l.bf16 %v460_v1  ;;  %v462_v6 = vunpack.c.h.bf16 %v460_v1  ;;  %v465_v7 = vunpack.c.l.bf16 %v531_v2  ;;  %v466_v8 = vunpack.c.h.bf16 %v531_v2  ;;  %v533_v9 = vld [vmem:[%s602_s17 + $0x18] sm:$0xff]   ;;  %v534_v30 = vld [vmem:[%s602_s17 + $0x20] sm:$0xff]   ;;  %v535_v31 = vld [vmem:[%s602_s17 + $0x28] sm:$0xff]  }
  0x11   : > { %v469_v10 = vunpack.c.l.bf16 %v532_v3  ;;  %v470_v11 = vunpack.c.h.bf16 %v532_v3  ;;  %v473_v12 = vunpack.c.l.bf16 %v533_v9  ;;  %v474_v13 = vunpack.c.h.bf16 %v533_v9  ;;  %v536_v36 = vld [vmem:[%s602_s17 + $0x30] sm:$0xff]   ;;  %v537_v37 = vld [vmem:[%s602_s17 + $0x38] sm:$0xff]   ;;  %v538_v3 = vld [vmem:[%s602_s17 + $0x40] sm:$0xff]  }
  0x12   : > { %v247_v14 = vmul.f32 %v607_v0, %v461_v4  ;;  %v248_v15 = vmul.f32 %v607_v0, %v462_v6  ;;  %v249_v16 = vmul.f32 %v607_v0, %v465_v7  ;;  %v250_v17 = vmul.f32 %v607_v0, %v466_v8  ;;  %v539_v4 = vld [vmem:[%s602_s17 + $0x48] sm:$0xff]   ;;  %v540_v6 = vld [vmem:[%s602_s17 + $0x50] sm:$0xff]  }
  0x13   : > { %v251_v18 = vmul.f32 %v607_v0, %v469_v10  ;;  %v252_v19 = vmul.f32 %v607_v0, %v470_v11  ;;  %v253_v20 = vmul.f32 %v607_v0, %v473_v12  ;;  %v254_v21 = vmul.f32 %v607_v0, %v474_v13  ;;  %v541_v11 = vld [vmem:[%s602_s17 + $0x58] sm:$0xff]  }
  0x14   : > { %v287_v22 = vadd.f32 %v615_v5, %v247_v14  ;;  %v288_v23 = vadd.f32 %v615_v5, %v248_v15  ;;  %v289_v24 = vadd.f32 %v615_v5, %v249_v16  ;;  %v290_v25 = vadd.f32 %v615_v5, %v250_v17 }
  0x15   : > { %v291_v26 = vadd.f32 %v615_v5, %v251_v18  ;;  %v292_v27 = vadd.f32 %v615_v5, %v252_v19  ;;  %v293_v28 = vadd.f32 %v615_v5, %v253_v20  ;;  %v294_v29 = vadd.f32 %v615_v5, %v254_v21 }
  0x16   : > { %v323_v32 = vmax.f32 %v287_v22, 0.0  ;;  %v324_v33 = vmax.f32 %v288_v23, 0.0  ;;  %v325_v34 = vmax.f32 %v289_v24, 0.0  ;;  %v326_v35 = vmax.f32 %v290_v25, 0.0 }
  0x17   : > { %v327_v38 = vmax.f32 %v291_v26, 0.0  ;;  %v328_v39 = vmax.f32 %v292_v27, 0.0  ;;  %v329_v40 = vmax.f32 %v293_v28, 0.0  ;;  %v330_v41 = vmax.f32 %v294_v29, 0.0 }
  0x18   : > { %359 = vst [vmem:[%s634_s25] sm:$0xff] %v323_v32  ;;  %v477_v42 = vunpack.c.l.bf16 %v534_v30  ;;  %v478_v43 = vunpack.c.h.bf16 %v534_v30  ;;  %v481_v44 = vunpack.c.l.bf16 %v535_v31  ;;  %v482_v45 = vunpack.c.h.bf16 %v535_v31 }
  0x19   : > { %360 = vst [vmem:[%s634_s25 + $0x8] sm:$0xff] %v324_v33  ;;  %v485_v46 = vunpack.c.l.bf16 %v536_v36  ;;  %v486_v47 = vunpack.c.h.bf16 %v536_v36  ;;  %v489_v48 = vunpack.c.l.bf16 %v537_v37  ;;  %v490_v49 = vunpack.c.h.bf16 %v537_v37 }
  0x1a   : > { %361 = vst [vmem:[%s634_s25 + $0x10] sm:$0xff] %v325_v34  ;;  %v255_v50 = vmul.f32 %v607_v0, %v477_v42  ;;  %v256_v51 = vmul.f32 %v607_v0, %v478_v43  ;;  %v257_v52 = vmul.f32 %v607_v0, %v481_v44  ;;  %v258_v53 = vmul.f32 %v607_v0, %v482_v45  ;;  %v544_v42 = vld [vmem:[%s602_s17 + $0x70] sm:$0xff]  }
  0x1b   : > { %362 = vst [vmem:[%s634_s25 + $0x18] sm:$0xff] %v326_v35  ;;  %v259_v54 = vmul.f32 %v607_v0, %v485_v46  ;;  %v260_v55 = vmul.f32 %v607_v0, %v486_v47  ;;  %v261_v56 = vmul.f32 %v607_v0, %v489_v48  ;;  %v262_v57 = vmul.f32 %v607_v0, %v490_v49  ;;  %v545_v47 = vld [vmem:[%s602_s17 + $0x78] sm:$0xff]  }
  0x1c   : > { %363 = vst [vmem:[%s634_s25 + $0x20] sm:$0xff] %v327_v38  ;;  %v295_v58 = vadd.f32 %v615_v5, %v255_v50  ;;  %v296_v59 = vadd.f32 %v615_v5, %v256_v51  ;;  %v297_v60 = vadd.f32 %v615_v5, %v257_v52  ;;  %v298_v61 = vadd.f32 %v615_v5, %v258_v53 }
  0x1d   : > { %364 = vst [vmem:[%s634_s25 + $0x28] sm:$0xff] %v328_v39  ;;  %v299_v62 = vadd.f32 %v615_v5, %v259_v54  ;;  %v300_v63 = vadd.f32 %v615_v5, %v260_v55  ;;  %v301_v1 = vadd.f32 %v615_v5, %v261_v56  ;;  %v302_v2 = vadd.f32 %v615_v5, %v262_v57 }
  0x1e   : > { %365 = vst [vmem:[%s634_s25 + $0x30] sm:$0xff] %v329_v40  ;;  %v331_v7 = vmax.f32 %v295_v58, 0.0  ;;  %v332_v8 = vmax.f32 %v296_v59, 0.0  ;;  %v333_v9 = vmax.f32 %v297_v60, 0.0  ;;  %v334_v10 = vmax.f32 %v298_v61, 0.0  ;;  %v542_v40 = vld [vmem:[%s602_s17 + $0x60] sm:$0xff]  }
  0x1f   : > { %366 = vst [vmem:[%s634_s25 + $0x38] sm:$0xff] %v330_v41  ;;  %v335_v12 = vmax.f32 %v299_v62, 0.0  ;;  %v336_v13 = vmax.f32 %v300_v63, 0.0  ;;  %v337_v14 = vmax.f32 %v301_v1, 0.0  ;;  %v338_v15 = vmax.f32 %v302_v2, 0.0  ;;  %v543_v41 = vld [vmem:[%s602_s17 + $0x68] sm:$0xff]  }
  0x20   : > { %367 = vst [vmem:[%s634_s25 + $0x40] sm:$0xff] %v331_v7  ;;  %v493_v16 = vunpack.c.l.bf16 %v538_v3  ;;  %v494_v17 = vunpack.c.h.bf16 %v538_v3  ;;  %v497_v18 = vunpack.c.l.bf16 %v539_v4  ;;  %v498_v19 = vunpack.c.h.bf16 %v539_v4 }
  0x21   : > { %368 = vst [vmem:[%s634_s25 + $0x48] sm:$0xff] %v332_v8  ;;  %v501_v20 = vunpack.c.l.bf16 %v540_v6  ;;  %v502_v21 = vunpack.c.h.bf16 %v540_v6  ;;  %v505_v22 = vunpack.c.l.bf16 %v541_v11  ;;  %v506_v23 = vunpack.c.h.bf16 %v541_v11 }
  0x22   : > { %369 = vst [vmem:[%s634_s25 + $0x50] sm:$0xff] %v333_v9  ;;  %v263_v24 = vmul.f32 %v607_v0, %v493_v16  ;;  %v264_v25 = vmul.f32 %v607_v0, %v494_v17  ;;  %v265_v26 = vmul.f32 %v607_v0, %v497_v18  ;;  %v266_v27 = vmul.f32 %v607_v0, %v498_v19 }
  0x23   : > { %370 = vst [vmem:[%s634_s25 + $0x58] sm:$0xff] %v334_v10  ;;  %v267_v28 = vmul.f32 %v607_v0, %v501_v20  ;;  %v268_v29 = vmul.f32 %v607_v0, %v502_v21  ;;  %v269_v30 = vmul.f32 %v607_v0, %v505_v22  ;;  %v270_v31 = vmul.f32 %v607_v0, %v506_v23 }
  0x24   : > { %371 = vst [vmem:[%s634_s25 + $0x60] sm:$0xff] %v335_v12  ;;  %v303_v32 = vadd.f32 %v615_v5, %v263_v24  ;;  %v304_v33 = vadd.f32 %v615_v5, %v264_v25  ;;  %v305_v34 = vadd.f32 %v615_v5, %v265_v26  ;;  %v306_v35 = vadd.f32 %v615_v5, %v266_v27 }
  0x25   : > { %372 = vst [vmem:[%s634_s25 + $0x68] sm:$0xff] %v336_v13  ;;  %v307_v36 = vadd.f32 %v615_v5, %v267_v28  ;;  %v308_v37 = vadd.f32 %v615_v5, %v268_v29  ;;  %v309_v38 = vadd.f32 %v615_v5, %v269_v30  ;;  %v310_v39 = vadd.f32 %v615_v5, %v270_v31  ;;  %v546_v13 = vld [vmem:[%s602_s17 + $0x80] sm:$0xff]  }
  0x26   : > { %373 = vst [vmem:[%s634_s25 + $0x70] sm:$0xff] %v337_v14  ;;  %v339_v43 = vmax.f32 %v303_v32, 0.0  ;;  %v340_v44 = vmax.f32 %v304_v33, 0.0  ;;  %v341_v45 = vmax.f32 %v305_v34, 0.0  ;;  %v342_v46 = vmax.f32 %v306_v35, 0.0  ;;  %v547_v14 = vld [vmem:[%s602_s17 + $0x88] sm:$0xff]  }
  0x27   : > { %374 = vst [vmem:[%s634_s25 + $0x78] sm:$0xff] %v338_v15  ;;  %v343_v48 = vmax.f32 %v307_v36, 0.0  ;;  %v344_v49 = vmax.f32 %v308_v37, 0.0  ;;  %v345_v50 = vmax.f32 %v309_v38, 0.0  ;;  %v346_v51 = vmax.f32 %v310_v39, 0.0 }
  0x28   : > { %375 = vst [vmem:[%s634_s25 + $0x80] sm:$0xff] %v339_v43  ;;  %v509_v52 = vunpack.c.l.bf16 %v542_v40  ;;  %v510_v53 = vunpack.c.h.bf16 %v542_v40  ;;  %v513_v54 = vunpack.c.l.bf16 %v543_v41  ;;  %v514_v55 = vunpack.c.h.bf16 %v543_v41 }
  0x29   : > { %376 = vst [vmem:[%s634_s25 + $0x88] sm:$0xff] %v340_v44  ;;  %v517_v56 = vunpack.c.l.bf16 %v544_v42  ;;  %v518_v57 = vunpack.c.h.bf16 %v544_v42  ;;  %v521_v58 = vunpack.c.l.bf16 %v545_v47  ;;  %v522_v59 = vunpack.c.h.bf16 %v545_v47 }
  0x2a   : > { %377 = vst [vmem:[%s634_s25 + $0x90] sm:$0xff] %v341_v45  ;;  %v271_v60 = vmul.f32 %v607_v0, %v509_v52  ;;  %v272_v61 = vmul.f32 %v607_v0, %v510_v53  ;;  %v273_v62 = vmul.f32 %v607_v0, %v513_v54  ;;  %v274_v63 = vmul.f32 %v607_v0, %v514_v55 }
  0x2b   : > { %378 = vst [vmem:[%s634_s25 + $0x98] sm:$0xff] %v342_v46  ;;  %v275_v1 = vmul.f32 %v607_v0, %v517_v56  ;;  %v276_v2 = vmul.f32 %v607_v0, %v518_v57  ;;  %v277_v3 = vmul.f32 %v607_v0, %v521_v58  ;;  %v278_v4 = vmul.f32 %v607_v0, %v522_v59 }
  0x2c   : > { %379 = vst [vmem:[%s634_s25 + $0xa0] sm:$0xff] %v343_v48  ;;  %v311_v6 = vadd.f32 %v615_v5, %v271_v60  ;;  %v312_v7 = vadd.f32 %v615_v5, %v272_v61  ;;  %v313_v8 = vadd.f32 %v615_v5, %v273_v62  ;;  %v314_v9 = vadd.f32 %v615_v5, %v274_v63 }
  0x2d   : > { %380 = vst [vmem:[%s634_s25 + $0xa8] sm:$0xff] %v344_v49  ;;  %v315_v10 = vadd.f32 %v615_v5, %v275_v1  ;;  %v316_v11 = vadd.f32 %v615_v5, %v276_v2  ;;  %v317_v12 = vadd.f32 %v615_v5, %v277_v3  ;;  %v318_v20 = vadd.f32 %v615_v5, %v278_v4 }
  0x2e   : > { %381 = vst [vmem:[%s634_s25 + $0xb0] sm:$0xff] %v345_v50  ;;  %v347_v15 = vmax.f32 %v311_v6, 0.0  ;;  %v348_v16 = vmax.f32 %v312_v7, 0.0  ;;  %v349_v17 = vmax.f32 %v313_v8, 0.0  ;;  %v350_v18 = vmax.f32 %v314_v9, 0.0 }
  0x2f   : > { %382 = vst [vmem:[%s634_s25 + $0xb8] sm:$0xff] %v346_v51  ;;  %v351_v19 = vmax.f32 %v315_v10, 0.0  ;;  %v525_v21 = vunpack.c.l.bf16 %v546_v13  ;;  %v526_v22 = vunpack.c.h.bf16 %v546_v13  ;;  %v529_v23 = vunpack.c.l.bf16 %v547_v14 }
  0x30   : > { %383 = vst [vmem:[%s634_s25 + $0xc0] sm:$0xff] %v347_v15  ;;  %v530_v24 = vunpack.c.h.bf16 %v547_v14  ;;  %v352_v25 = vmax.f32 %v316_v11, 0.0  ;;  %v353_v26 = vmax.f32 %v317_v12, 0.0  ;;  %v354_v31 = vmax.f32 %v318_v20, 0.0 }
  0x31   : > { %384 = vst [vmem:[%s634_s25 + $0xc8] sm:$0xff] %v348_v16  ;;  %v279_v27 = vmul.f32 %v607_v0, %v525_v21  ;;  %v280_v28 = vmul.f32 %v607_v0, %v526_v22  ;;  %v281_v29 = vmul.f32 %v607_v0, %v529_v23 }
  0x32   : > { %385 = vst [vmem:[%s634_s25 + $0xd0] sm:$0xff] %v349_v17  ;;  %v282_v30 = vmul.f32 %v607_v0, %v530_v24 }
  0x33   : > { %386 = vst [vmem:[%s634_s25 + $0xd8] sm:$0xff] %v350_v18  ;;  %v319_v32 = vadd.f32 %v615_v5, %v279_v27  ;;  %v320_v33 = vadd.f32 %v615_v5, %v280_v28  ;;  %v321_v34 = vadd.f32 %v615_v5, %v281_v29 }
  0x34   : > { %387 = vst [vmem:[%s634_s25 + $0xe0] sm:$0xff] %v351_v19  ;;  %v322_v35 = vadd.f32 %v615_v5, %v282_v30 }
  0x35   : > { %388 = vst [vmem:[%s634_s25 + $0xe8] sm:$0xff] %v352_v25  ;;  %v355_v36 = vmax.f32 %v319_v32, 0.0  ;;  %v356_v37 = vmax.f32 %v320_v33, 0.0  ;;  %v357_v38 = vmax.f32 %v321_v34, 0.0 }
  0x36   : > { %389 = vst [vmem:[%s634_s25 + $0xf0] sm:$0xff] %v353_v26  ;;  %v358_v0 = vmax.f32 %v322_v35, 0.0 }
  0x37   : > { %390 = vst [vmem:[%s634_s25 + $0xf8] sm:$0xff] %v354_v31 }
  0x38   : > { %391 = vst [vmem:[%s634_s25 + $0x100] sm:$0xff] %v355_v36 }
  0x39   : > { %392 = vst [vmem:[%s634_s25 + $0x108] sm:$0xff] %v356_v37 }
  0x3a   : > { %393 = vst [vmem:[%s634_s25 + $0x110] sm:$0xff] %v357_v38 }
  0x3b   : > { %394 = vst [vmem:[%s634_s25 + $0x118] sm:$0xff] %v358_v0 }
  0x3c PF: > { %s13_s12 = sadd.s32 1, %s566_s12  }
  0x3d   : > { %p10_p4 = scmp.ge.s32.totalorder %s13_s12, 4  }
  0x3f   :  { %12 = sbr.rel (!%p10_p4) target bundleno = 1 (0x1), region = 62 }

// kernel: conv_block_forward.5
= control target key start
LH: loop header
LB: loop body
LE: loop exit
PB: predicated region body
PF: predicated region fallthrough
CT: control target
= control target key end

     0   :  { %s2798_s12 = smov 0   ;;  %s4008_s0 = inlined_call_operand.vmem [shape: bf16[2,288,128], index: 0, kind: input, shape index: {}]   ;;  %s4009_s1 = inlined_call_operand.vmem [shape: f32[1,128], index: 1, kind: input, shape index: {}]   ;;  %s4010_s2 = inlined_call_operand.vmem [shape: f32[1,128], index: 2, kind: input, shape index: {}]   ;;  %s4011_s3 = inlined_call_operand.vmem [shape: bf16[2,328,128], index: 3, kind: output, shape index: {}]  }
   0x1 LB: > { %s2652_s13 = sadd.s32 4294967295, %s2775_s12   ;;  %p2656_p0 = scmp.ge.s32.totalorder %s2775_s12, 1  ;;  %s2775_s12 = sphi %s2798_s12, %s13_s12  }
   0x2   : > { %p137_p1 = scmp.lt.s32.totalorder %s2775_s12, 3 }
   0x4   : > { %p138_p2 = pnand %p2656_p0, %p137_p1 }
   0x5   : > { %p161_p3 = scmp.lt.s32.totalorder (!%p138_p2), %s2652_s13, 1 }
   0x6   : > { %141 = sbr.rel (%p138_p2) target bundleno = 468 (0x1d4), region = 32 }
   0xb   : > { %v360_v0 = vlaneseq  ;;  %s4021_s13 = smov (!%p161_p3, %s2652_s13), 1  ;;  %v2831_v13 = vld [vmem:[%s4009_s1] ss:$0 sm:$0xff]  ;;  %v2777_v16 = vmov 0   ;;  %vm1657_vm2 = vcmask 1040384   ;;  %vm1766_vm3 = vcmask 1046528  }
   0xc   : > { %s2750_s14 = smul.u32 144, %s4021_s13  ;;  %v2842_v23 = vld [vmem:[%s4010_s2] ss:$0 sm:$0xff]  ;;  %vm2454_vm8 = vcmask 1043457   ;;  %vm2455_vm9 = vsmask.f32 7942 }
   0xd   : > { %v2806_v1 = vshrl.u32 %v360_v0, 7  ;;  %s2751_s15 = smul.u32 164, %s4021_s13 }
   0xe   : > { %s2816_s18 = scalar_lea.vmem %s4008_s0, %s2750_s14 }
   0xf   : > { %v400_v2 = vand.u32 65535, %v2806_v1  ;;  %v401_v3 = vshrl.u32 %v2806_v1, 16  ;;  %v2811_v4 = vadd.s32 8, %v2806_v1  ;;  %s2821_s21 = scalar_lea.vmem %s4011_s3, %s2751_s15  ;;  %v2662_v8 = vld [vmem:[%s2816_s18] sm:$0xff]   ;;  %v2825_v9 = vld [vmem:[%s2816_s18 + $0x8] sm:$0xff]   ;;  %v2857_v44 = vadd.s32 16, %v2806_v1 }
  0x10   : > { %v2663_v11 = vunpack.c.l.bf16 %v2662_v8  ;;  %v2664_v12 = vunpack.c.h.bf16 %v2662_v8  ;;  %2596 = vst [vmem:[%s2821_s21 + $0xa0] sm:$0xc] %v2777_v16  ;;  %v2667_v19 = vunpack.c.l.bf16 %v2825_v9  ;;  %v2860_v45 = vadd.s32 24, %v2806_v1  ;;  %v2876_v0 = vld [vmem:[%s2816_s18 + $0x10] sm:$0xff]  }
  0x11   : > { %v403_v5 = vmul.u32 14564, %v400_v2  ;;  %v404_v6 = vmul.u32 58254, %v400_v2  ;;  %v405_v7 = vmul.u32 14564, %v401_v3  ;;  %v429_v10 = vand.u32 65535, %v2811_v4 }
  0x12   : > { %v406_v14 = vmul.u32 58254, %v401_v3  ;;  %v430_v20 = vshrl.u32 %v2811_v4, 16  ;;  %v248_v21 = vmul.f32 %v2831_v13, %v2663_v11  ;;  %v249_v22 = vmul.f32 %v2831_v13, %v2664_v12 }
  0x13   : > { %v407_v15 = vshll.u32 %v404_v6, 16  ;;  %v408_v17 = vshrl.u32 %v404_v6, 16  ;;  %v409_v18 = vshll.u32 %v405_v7, 16  ;;  %v410_v25 = vshrl.u32 %v405_v7, 16 }
  0x14   : > { %v250_v27 = vmul.f32 %v2831_v13, %v2667_v19  ;;  %v433_v28 = vmul.u32 58254, %v429_v10  ;;  %v288_v29 = vadd.f32 %v2842_v23, %v248_v21  ;;  %v289_v30 = vadd.f32 %v2842_v23, %v249_v22 }
  0x15   : > { %vm411_vm0 = vc.u32 %v403_v5, %v407_v15  ;;  %v413_v24 = vadd.s32 %v407_v15, %v403_v5  ;;  %v432_v34 = vmul.u32 14564, %v429_v10  ;;  %v434_v35 = vmul.u32 14564, %v430_v20 }
  0x16   : > { %v412_v26 = vsel %vm411_vm0, 1, %v2777_v16  ;;  %v290_v33 = vadd.f32 %v2842_v23, %v250_v27  ;;  %v2850_v36 = vmax.f32 %v288_v29, 0.0  ;;  %v2852_v37 = vmax.f32 %v289_v30, 0.0 }
  0x17   : > { %v414_v31 = vadd.s32 %v412_v26, %v406_v14  ;;  %vm415_vm1 = vc.u32 %v413_v24, %v409_v18  ;;  %v436_v39 = vshll.u32 %v433_v28, 16  ;;  %v435_v40 = vmul.u32 58254, %v430_v20 }
  0x18   : > { %v416_v32 = vsel %vm415_vm1, 1, %v2777_v16  ;;  %v438_v41 = vshll.u32 %v434_v35, 16  ;;  %v2854_v43 = vmax.f32 %v290_v33, 0.0  ;;  %v1658_v46 = vrot.slane %v2850_v36, 7 }
  0x19   : > { %v418_v38 = vadd.s32 %v416_v32, %v414_v31  ;;  %v1767_v47 = vrot.slane %v2850_v36, 1  ;;  %vm440_vm4 = vc.u32 %v432_v34, %v436_v39  ;;  %v442_v48 = vadd.s32 %v436_v39, %v432_v34 }
  0x1a   : > { %v1768_v50 = vrot.slane %v2852_v37, 1  ;;  %v441_v51 = vsel %vm440_vm4, 1, %v2777_v16  ;;  %v1659_v52 = vrot.slane %v2852_v37, 7  ;;  %v437_v53 = vshrl.u32 %v433_v28, 16 }
  0x1b   : > { %v419_v42 = vadd.s32 %v418_v38, %v408_v17  ;;  %v443_v54 = vadd.s32 %v441_v51, %v435_v40  ;;  %vm444_vm5 = vc.u32 %v442_v48, %v438_v41  ;;  %v2868_v55 = vadd.s32 32, %v2806_v1 }
  0x1c   : > { %v439_v57 = vshrl.u32 %v434_v35, 16  ;;  %v445_v58 = vsel %vm444_vm5, 1, %v2777_v16  ;;  %v1770_v59 = vrot.slane %v2854_v43, 1  ;;  %v2668_v61 = vunpack.c.h.bf16 %v2825_v9 }
  0x1d   : > { %v420_v49 = vadd.s32 %v419_v42, %v410_v25  ;;  %v447_v60 = vadd.s32 %v445_v58, %v443_v54  ;;  %v458_v62 = vand.u32 65535, %v2857_v44  ;;  %v459_v63 = vshrl.u32 %v2857_v44, 16 }
  0x1e   : > { %v1765_v3 = vsel %vm1657_vm2, %v2850_v36, %v1658_v46  ;;  %v1769_v5 = vsel %vm1766_vm3, %v1767_v47, %v1768_v50  ;;  %v2882_v6 = vsel %vm1657_vm2, %v1658_v46, %v1659_v52  ;;  %v251_v8 = vmul.f32 %v2831_v13, %v2668_v61 }
  0x1f   : > { %v421_v56 = vshrl.u32 %v420_v49, 4  ;;  %v448_v7 = vadd.s32 %v447_v60, %v437_v53  ;;  %v461_v10 = vmul.u32 14564, %v458_v62  ;;  %v462_v9 = vmul.u32 58254, %v458_v62  ;;  %v2457_v62 = vld [vmem:[%s2821_s21 + $0x8] sm:$0xe] }
  0x20   : > { %v2889_v12 = vsel %vm1766_vm3, %v1768_v50, %v1770_v59  ;;  %v463_v14 = vmul.u32 14564, %v459_v63  ;;  %v2671_v15 = vunpack.c.l.bf16 %v2876_v0  ;;  %v291_v18 = vadd.f32 %v2842_v23, %v251_v8 }
  0x21   : > { %v422_v2 = vmul.u32 18, %v421_v56  ;;  %v449_v17 = vadd.s32 %v448_v7, %v439_v57  ;;  %v464_v19 = vmul.u32 58254, %v459_v63  ;;  %v465_v20 = vshll.u32 %v462_v9, 16 }
  0x22   : > { %v467_v22 = vshll.u32 %v463_v14, 16  ;;  %v1661_v25 = vrot.slane %v2854_v43, 7  ;;  %v487_v26 = vand.u32 65535, %v2860_v45  ;;  %v2895_v28 = vmax.f32 %v291_v18, 0.0 }
  0x23   : > { %v423_v11 = vsub.s32 %v2806_v1, %v422_v2  ;;  %v450_v24 = vshrl.u32 %v449_v17, 4  ;;  %vm469_vm11 = vc.u32 %v461_v10, %v465_v20  ;;  %v471_v30 = vadd.s32 %v465_v20, %v461_v10 }
  0x24   : > { %v470_v29 = vsel %vm469_vm11, 1, %v2777_v16  ;;  %v466_v34 = vshrl.u32 %v462_v9, 16  ;;  %v252_v35 = vmul.f32 %v2831_v13, %v2671_v15  ;;  %v488_v41 = vshrl.u32 %v2860_v45, 16 }
  0x25   : > { %vm1441_vm6 = vcmp.ne.s32.totalorder %v423_v11, 0  ;;  %vm1477_vm7 = vcmp.lt.s32.totalorder %v423_v11, 0  ;;  %v1549_v21 = vadd.s32 18, %v423_v11  ;;  %v451_v31 = vmul.u32 18, %v450_v24 }
  0x26   : > { %vm1513_vm10 = vmand %vm1477_vm7, %vm1441_vm6  ;;  %v472_v32 = vadd.s32 %v470_v29, %v464_v19  ;;  %vm473_vm14 = vc.u32 %v471_v30, %v467_v22  ;;  %v468_v46 = vshrl.u32 %v463_v14, 16  ;;  %v2908_v48 = vsel %vm1657_vm2, %v1659_v52, %v1661_v25 }
  0x27   : > { %v1585_v27 = vsel %vm1513_vm10, %v1549_v21, %v423_v11  ;;  %v452_v39 = vsub.s32 %v2811_v4, %v451_v31  ;;  %v474_v40 = vsel %vm473_vm14, 1, %v2777_v16  ;;  %vm2055_vm1 = vsmask.f32 1280  ;;  %vm2916_vm10 = vmand %vm2454_vm8, %vm2455_vm9 }
  0x28   : > { %vm1875_vm12 = vcmp.eq.s32.totalorder %v1585_v27, 16  ;;  %vm1947_vm13 = vcmp.eq.s32.totalorder %v1585_v27, 17  ;;  %v476_v47 = vadd.s32 %v474_v40, %v472_v32  ;;  %vm2056_vm4 = vsmask.f32 5392 }
  0x29   : > { %v1911_v33 = vsel %vm1875_vm12, %v1765_v3, %v2850_v36  ;;  %vm1442_vm15 = vcmp.ne.s32.totalorder %v452_v39, 0  ;;  %vm1478_vm0 = vcmp.lt.s32.totalorder %v452_v39, 0  ;;  %v1550_v36 = vadd.s32 18, %v452_v39  ;;  %vm2945_vm11 = vmor %vm2055_vm1, %vm2056_vm4 }
  0x2a   : > { %v1983_v38 = vsel %vm1947_vm13, %v1769_v5, %v1911_v33  ;;  %v1772_v4 = vrot.slane %v2895_v28, 1  ;;  %vm1514_vm5 = vmand %vm1478_vm0, %vm1442_vm15  ;;  %v477_v51 = vadd.s32 %v476_v47, %v466_v34  ;;  %v491_v53 = vmul.u32 58254, %v487_v26 }
  0x2b   : > { %v2903_v42 = vpack.c.bf16 %v1983_v38, %v1983_v38  ;;  %v1586_v54 = vsel %vm1514_vm5, %v1550_v36, %v452_v39  ;;  %v292_v56 = vadd.f32 %v2842_v23, %v252_v35  ;;  %v490_v52 = vmul.u32 14564, %v487_v26 }
  0x2c   : > { %v492_v57 = vmul.u32 14564, %v488_v41  ;;  %vm1876_vm6 = vcmp.eq.s32.totalorder %v1586_v54, 16  ;;  %vm1948_vm7 = vcmp.eq.s32.totalorder %v1586_v54, 17  ;;  %v478_v2 = vadd.s32 %v477_v51, %v468_v46 }
  0x2d   : > { %v2059_v49 = vshrl.u32 %v2903_v42, 16  ;;  %v2062_v50 = vshll.u32 %v2903_v42, 16  ;;  %v1912_v63 = vsel %vm1876_vm6, %v2882_v6, %v2852_v37  ;;  %v493_v3 = vmul.u32 58254, %v488_v41 }
  0x2e   : > { %v494_v5 = vshll.u32 %v491_v53, 16  ;;  %v1984_v8 = vsel %vm1948_vm7, %v2889_v12, %v1912_v63  ;;  %v1773_v10 = vsel %vm1766_vm3, %v1770_v59, %v1772_v4  ;;  %v496_v9 = vshll.u32 %v492_v57, 16 }
  0x2f   : > { %v2061_v58 = vrot.slane %v2059_v49, 6  ;;  %v2064_v60 = vrot.slane %v2062_v50, 7  ;;  %v2929_v11 = vpack.c.bf16 %v1984_v8, %v1984_v8  ;;  %v479_v14 = vshrl.u32 %v478_v2, 4 }
  0x30   : > { %vm498_vm8 = vc.u32 %v490_v52, %v494_v5  ;;  %v500_v15 = vadd.s32 %v494_v5, %v490_v52  ;;  %v2933_v6 = vmax.f32 %v292_v56, 0.0  ;;  %v495_v17 = vshrl.u32 %v491_v53, 16 }
  0x31   : > { %v2065_v7 = vor.u32 %v2064_v60, %v2061_v58  ;;  %v499_v12 = vsel %vm498_vm8, 1, %v2777_v16  ;;  %v2068_v18 = vshrl.u32 %v2929_v11, 16  ;;  %v2071_v19 = vshll.u32 %v2929_v11, 16 }
  0x32   : > { %v480_v59 = vmul.u32 18, %v479_v14  ;;  %v501_v20 = vadd.s32 %v499_v12, %v493_v3  ;;  %vm502_vm9 = vc.u32 %v500_v15, %v496_v9  ;;  %v2672_v22 = vunpack.c.h.bf16 %v2876_v0 }
  0x33   : > { %v2458_v37 = vsel %vm2916_vm10, %v2065_v7, %v2457_v62  ;;  %v2066_v21 = vrot.slane %v2065_v7, 4  ;;  %v516_v24 = vand.u32 65535, %v2868_v55  ;;  %v2070_v26 = vrot.slane %v2068_v18, 6 }
  0x34   : > { %2459 = vst [vmem:[%s2821_s21 + $0x8] sm:$0xe] %v2458_v37  ;;  %v2073_v27 = vrot.slane %v2071_v19, 7  ;;  %v481_v29 = vsub.s32 %v2857_v44, %v480_v59  ;;  %v503_v30 = vsel %vm502_vm9, 1, %v2777_v16  ;;  %v497_v32 = vshrl.u32 %v492_v57, 16  ;;  %v2960_v57 = vld [vmem:[%s2816_s18 + $0x18] sm:$0xff]  }
  0x35   : > { %v505_v33 = vadd.s32 %v503_v30, %v501_v20  ;;  %v253_v34 = vmul.f32 %v2831_v13, %v2672_v22  ;;  %v517_v0 = vshrl.u32 %v2868_v55, 16  ;;  %v1663_v39 = vrot.slane %v2895_v28, 7 }
  0x36   : > { %v2074_v35 = vor.u32 %v2073_v27, %v2070_v26  ;;  %vm1443_vm12 = vcmp.ne.s32.totalorder %v481_v29, 0  ;;  %vm1479_vm13 = vcmp.lt.s32.totalorder %v481_v29, 0  ;;  %v1551_v38 = vadd.s32 18, %v481_v29 }
  0x37   : > { %vm1515_vm14 = vmand %vm1479_vm13, %vm1443_vm12  ;;  %v506_v44 = vadd.s32 %v505_v33, %v495_v17  ;;  %v293_v40 = vadd.f32 %v2842_v23, %v253_v34  ;;  %v520_v41 = vmul.u32 58254, %v516_v24  ;;  %v519_v36 = vmul.u32 14564, %v516_v24 }
  0x38   : > { %v2075_v46 = vsel %vm2945_vm11, %v2066_v21, %v2074_v35  ;;  %v1587_v47 = vsel %vm1515_vm14, %v1551_v38, %v481_v29  ;;  %v521_v49 = vmul.u32 14564, %v517_v0  ;;  %v1774_v51 = vrot.slane %v2933_v6, 1 }
  0x39   : > { %2460 = vst [vmem:[%s2821_s21 + $0xc] sm:$0xf] %v2075_v46  ;;  %vm1877_vm15 = vcmp.eq.s32.totalorder %v1587_v47, 16  ;;  %vm1949_vm0 = vcmp.eq.s32.totalorder %v1587_v47, 17  ;;  %v507_v50 = vadd.s32 %v506_v44, %v497_v32  ;;  %v2076_v54 = vrot.slane %v2074_v35, 4 }
  0x3a   : > { %v1913_v53 = vsel %vm1877_vm15, %v2908_v48, %v2854_v43  ;;  %v522_v56 = vmul.u32 58254, %v517_v0  ;;  %v523_v52 = vshll.u32 %v520_v41, 16  ;;  %v2962_v61 = vmax.f32 %v293_v40, 0.0 }
  0x3b   : > { %v1985_v58 = vsel %vm1949_vm0, %v1773_v10, %v1913_v53  ;;  %v508_v60 = vshrl.u32 %v507_v50, 4  ;;  %v525_v62 = vshll.u32 %v521_v49, 16  ;;  %v524_v2 = vshrl.u32 %v520_v41, 16 }
  0x3c   : > { %v2964_v63 = vpack.c.bf16 %v1985_v58, %v1985_v58  ;;  %vm527_vm4 = vc.u32 %v519_v36, %v523_v52  ;;  %v529_v3 = vadd.s32 %v523_v52, %v519_v36  ;;  %v526_v7 = vshrl.u32 %v521_v49, 16 }
  0x3d   : > { %v509_v5 = vmul.u32 18, %v508_v60  ;;  %v528_v8 = vsel %vm527_vm4, 1, %v2777_v16  ;;  %v2675_v48 = vunpack.c.l.bf16 %v2960_v57  ;;  %v1665_v17 = vrot.slane %v2933_v6, 7 }
  0x3e   : > { %v2078_v9 = vshrl.u32 %v2964_v63, 16  ;;  %v2081_v14 = vshll.u32 %v2964_v63, 16  ;;  %v530_v10 = vadd.s32 %v528_v8, %v522_v56  ;;  %vm531_vm5 = vc.u32 %v529_v3, %v525_v62 }
  0x3f   : > { %v510_v15 = vsub.s32 %v2860_v45, %v509_v5  ;;  %v532_v37 = vsel %vm531_vm5, 1, %v2777_v16  ;;  %v1776_v12 = vrot.slane %v2962_v61, 1  ;;  %v254_v20 = vmul.f32 %v2831_v13, %v2675_v48 }
  0x40   : > { %v2080_v18 = vrot.slane %v2078_v9, 6  ;;  %v2083_v19 = vrot.slane %v2081_v14, 7  ;;  %v534_v59 = vadd.s32 %v532_v37, %v530_v10  ;;  %v2976_v22 = vadd.s32 40, %v2806_v1 }
  0x41   : > { %vm1444_vm6 = vcmp.ne.s32.totalorder %v510_v15, 0  ;;  %vm1480_vm7 = vcmp.lt.s32.totalorder %v510_v15, 0  ;;  %v1552_v21 = vadd.s32 18, %v510_v15  ;;  %v1664_v45 = vsel %vm1657_vm2, %v1661_v25, %v1663_v39 }
  0x42   : > { %v2084_v24 = vor.u32 %v2083_v19, %v2080_v18  ;;  %vm1516_vm10 = vmand %vm1480_vm7, %vm1444_vm6  ;;  %v1775_v26 = vsel %vm1766_vm3, %v1772_v4, %v1774_v51  ;;  %v535_v27 = vadd.s32 %v534_v59, %v524_v2  ;;  %v1666_v30 = vsel %vm1657_vm2, %v1663_v39, %v1665_v17 }
  0x43   : > { %v1588_v29 = vsel %vm1516_vm10, %v1552_v21, %v510_v15  ;;  %v545_v32 = vand.u32 65535, %v2976_v22  ;;  %v546_v33 = vshrl.u32 %v2976_v22, 16  ;;  %v294_v43 = vadd.f32 %v2842_v23, %v254_v20 }
  0x44   : > { %v2085_v34 = vsel %vm2945_vm11, %v2076_v54, %v2084_v24  ;;  %vm1878_vm8 = vcmp.eq.s32.totalorder %v1588_v29, 16  ;;  %vm1950_vm9 = vcmp.eq.s32.totalorder %v1588_v29, 17  ;;  %v536_v4 = vadd.s32 %v535_v27, %v526_v7 }
  0x45   : > { %2461 = vst [vmem:[%s2821_s21 + $0x10] sm:$0xf] %v2085_v34  ;;  %v1914_v25 = vsel %vm1878_vm8, %v1664_v45, %v2895_v28  ;;  %v1777_v0 = vsel %vm1766_vm3, %v1774_v51, %v1776_v12  ;;  %v2676_v35 = vunpack.c.h.bf16 %v2960_v57  ;;  %v548_v44 = vmul.u32 14564, %v545_v32 }
  0x46   : > { %v1986_v38 = vsel %vm1950_vm9, %v1775_v26, %v1914_v25  ;;  %v549_v39 = vmul.u32 58254, %v545_v32  ;;  %v550_v40 = vmul.u32 14564, %v546_v33  ;;  %v2086_v46 = vrot.slane %v2084_v24, 4  ;;  %v3024_v32 = vld [vmem:[%s2816_s18 + $0x20] sm:$0xff]  }
  0x47   : > { %v2022_v41 = vpack.c.bf16 %v1986_v38, %v1986_v38  ;;  %v537_v47 = vshrl.u32 %v536_v4, 4  ;;  %v1667_v36 = vrot.slane %v2962_v61, 7  ;;  %v2999_v49 = vmax.f32 %v294_v43, 0.0 }
  0x48   : > { %v551_v50 = vmul.u32 58254, %v546_v33  ;;  %v552_v28 = vshll.u32 %v549_v39, 16  ;;  %v554_v53 = vshll.u32 %v550_v40, 16  ;;  %v553_v51 = vshrl.u32 %v549_v39, 16 }
  0x49   : > { %v2088_v54 = vshrl.u32 %v2022_v41, 16  ;;  %v2091_v56 = vshll.u32 %v2022_v41, 16  ;;  %v538_v52 = vmul.u32 18, %v537_v47  ;;  %v255_v58 = vmul.f32 %v2831_v13, %v2676_v35 }
  0x4a   : > { %vm556_vm12 = vc.u32 %v548_v44, %v552_v28  ;;  %v558_v57 = vadd.s32 %v552_v28, %v548_v44  ;;  %v3003_v60 = vadd.s32 48, %v2806_v1  ;;  %v555_v10 = vshrl.u32 %v550_v40, 16 }
  0x4b   : > { %v2090_v62 = vrot.slane %v2088_v54, 6  ;;  %v2093_v2 = vrot.slane %v2091_v56, 7  ;;  %v539_v3 = vsub.s32 %v2868_v55, %v538_v52  ;;  %v557_v5 = vsel %vm556_vm12, 1, %v2777_v16 }
  0x4c   : > { %v559_v7 = vadd.s32 %v557_v5, %v551_v50  ;;  %vm560_vm13 = vc.u32 %v558_v57, %v554_v53  ;;  %v295_v8 = vadd.f32 %v2842_v23, %v255_v58  ;;  %v574_v48 = vand.u32 65535, %v3003_v60 }
  0x4d   : > { %v2094_v9 = vor.u32 %v2093_v2, %v2090_v62  ;;  %vm1445_vm14 = vcmp.ne.s32.totalorder %v539_v3, 0  ;;  %vm1481_vm15 = vcmp.lt.s32.totalorder %v539_v3, 0  ;;  %v1553_v14 = vadd.s32 18, %v539_v3 }
  0x4e   : > { %vm1517_vm0 = vmand %vm1481_vm15, %vm1445_vm14  ;;  %v561_v15 = vsel %vm560_vm13, 1, %v2777_v16  ;;  %v3010_v37 = vmax.f32 %v295_v8, 0.0  ;;  %v575_v55 = vshrl.u32 %v3003_v60, 16  ;;  %v577_v20 = vmul.u32 14564, %v574_v48 }
  0x4f   : > { %v2095_v18 = vsel %vm2945_vm11, %v2086_v46, %v2094_v9  ;;  %v1589_v19 = vsel %vm1517_vm0, %v1553_v14, %v539_v3  ;;  %v563_v59 = vadd.s32 %v561_v15, %v559_v7  ;;  %v578_v21 = vmul.u32 58254, %v574_v48 }
  0x50   : > { %2462 = vst [vmem:[%s2821_s21 + $0x14] sm:$0xf] %v2095_v18  ;;  %vm1879_vm4 = vcmp.eq.s32.totalorder %v1589_v19, 16  ;;  %vm1951_vm5 = vcmp.eq.s32.totalorder %v1589_v19, 17  ;;  %v579_v24 = vmul.u32 14564, %v575_v55  ;;  %v1668_v27 = vsel %vm1657_vm2, %v1665_v17, %v1667_v36 }
  0x51   : > { %v1915_v45 = vsel %vm1879_vm4, %v1666_v30, %v2933_v6  ;;  %v564_v26 = vadd.s32 %v563_v59, %v553_v51  ;;  %v1778_v29 = vrot.slane %v2999_v49, 1  ;;  %v580_v34 = vmul.u32 58254, %v575_v55 }
  0x52   : > { %v1987_v33 = vsel %vm1951_vm5, %v1777_v0, %v1915_v45  ;;  %v581_v43 = vshll.u32 %v578_v21, 16  ;;  %v583_v25 = vshll.u32 %v579_v24, 16  ;;  %v2096_v35 = vrot.slane %v2094_v9, 4 }
  0x53   : > { %v2023_v4 = vpack.c.bf16 %v1987_v33, %v1987_v33  ;;  %v565_v38 = vadd.s32 %v564_v26, %v555_v10  ;;  %v1669_v30 = vrot.slane %v2999_v49, 7  ;;  %v1780_v39 = vrot.slane %v3010_v37, 1 }
  0x54   : > { %vm585_vm6 = vc.u32 %v577_v20, %v581_v43  ;;  %v587_v44 = vadd.s32 %v581_v43, %v577_v20  ;;  %v2679_v6 = vunpack.c.l.bf16 %v3024_v32  ;;  %v582_v0 = vshrl.u32 %v578_v21, 16 }
  0x55   : > { %v2098_v17 = vshrl.u32 %v2023_v4, 16  ;;  %v2101_v40 = vshll.u32 %v2023_v4, 16  ;;  %v566_v41 = vshrl.u32 %v565_v38, 4  ;;  %v586_v46 = vsel %vm585_vm6, 1, %v2777_v16 }
  0x56   : > { %v588_v47 = vadd.s32 %v586_v46, %v580_v34  ;;  %vm589_vm7 = vc.u32 %v587_v44, %v583_v25  ;;  %v256_v50 = vmul.f32 %v2831_v13, %v2679_v6  ;;  %v1779_v52 = vsel %vm1766_vm3, %v1776_v12, %v1778_v29 }
  0x57   : > { %v2100_v28 = vrot.slane %v2098_v17, 6  ;;  %v2103_v53 = vrot.slane %v2101_v40, 7  ;;  %v567_v54 = vmul.u32 18, %v566_v41  ;;  %v590_v56 = vsel %vm589_vm7, 1, %v2777_v16 }
  0x58   : > { %v584_v51 = vshrl.u32 %v579_v24, 16  ;;  %v592_v57 = vadd.s32 %v590_v56, %v588_v47  ;;  %v3036_v58 = vadd.s32 56, %v2806_v1  ;;  %v1670_v3 = vsel %vm1657_vm2, %v1667_v36, %v1669_v30 }
  0x59   : > { %v3038_v62 = vor.u32 %v2103_v53, %v2100_v28  ;;  %v568_v2 = vsub.s32 %v2976_v22, %v567_v54  ;;  %v3049_v12 = vsel %vm1766_vm3, %v1778_v29, %v1780_v39  ;;  %v296_v7 = vadd.f32 %v2842_v23, %v256_v50 }
  0x5a   : > { %v593_v5 = vadd.s32 %v592_v57, %v582_v0  ;;  %v603_v8 = vand.u32 65535, %v3036_v58  ;;  %v604_v48 = vshrl.u32 %v3036_v58, 16  ;;  %v2680_v15 = vunpack.c.h.bf16 %v3024_v32 }
  0x5b   : > { %v2105_v22 = vsel %vm2945_vm11, %v2096_v35, %v3038_v62  ;;  %vm1446_vm10 = vcmp.ne.s32.totalorder %v568_v2, 0  ;;  %vm1482_vm8 = vcmp.lt.s32.totalorder %v568_v2, 0  ;;  %v1554_v9 = vadd.s32 18, %v568_v2 }
  0x5c   : > { %2463 = vst [vmem:[%s2821_s21 + $0x18] sm:$0xf] %v2105_v22  ;;  %vm1518_vm9 = vmand %vm1482_vm8, %vm1446_vm10  ;;  %v594_v36 = vadd.s32 %v593_v5, %v584_v51  ;;  %v606_v14 = vmul.u32 14564, %v603_v8  ;;  %v607_v10 = vmul.u32 58254, %v603_v8  ;;  %v608_v18 = vmul.u32 14564, %v604_v48 }
  0x5d   : > { %v1590_v55 = vsel %vm1518_vm9, %v1554_v9, %v568_v2  ;;  %v609_v19 = vmul.u32 58254, %v604_v48  ;;  %v3060_v59 = vadd.s32 64, %v2806_v1  ;;  %v3063_v45 = vmax.f32 %v296_v7, 0.0 }
  0x5e   : > { %vm1880_vm12 = vcmp.eq.s32.totalorder %v1590_v55, 16  ;;  %vm1952_vm13 = vcmp.eq.s32.totalorder %v1590_v55, 17  ;;  %v595_v20 = vshrl.u32 %v594_v36, 4  ;;  %v610_v21 = vshll.u32 %v607_v10, 16 }
  0x5f   : > { %v1916_v24 = vsel %vm1880_vm12, %v1668_v27, %v2962_v61  ;;  %v612_v26 = vshll.u32 %v608_v18, 16  ;;  %v1671_v29 = vrot.slane %v3010_v37, 7  ;;  %v611_v25 = vshrl.u32 %v607_v10, 16 }
  0x60   : > { %v1988_v33 = vsel %vm1952_vm13, %v1779_v52, %v1916_v24  ;;  %v596_v34 = vmul.u32 18, %v595_v20  ;;  %vm614_vm14 = vc.u32 %v606_v14, %v610_v21  ;;  %v616_v32 = vadd.s32 %v610_v21, %v606_v14 }
  0x61   : > { %v2024_v43 = vpack.c.bf16 %v1988_v33, %v1988_v33  ;;  %v615_v4 = vsel %vm614_vm14, 1, %v2777_v16  ;;  %v257_v35 = vmul.f32 %v2831_v13, %v2680_v15  ;;  %v632_v61 = vand.u32 65535, %v3060_v59 }
  0x62   : > { %v597_v38 = vsub.s32 %v3003_v60, %v596_v34  ;;  %v617_v44 = vadd.s32 %v615_v4, %v609_v19  ;;  %vm618_vm15 = vc.u32 %v616_v32, %v612_v26  ;;  %v613_v17 = vshrl.u32 %v608_v18, 16 }
  0x63   : > { %v2108_v27 = vshrl.u32 %v2024_v43, 16  ;;  %v2111_v6 = vshll.u32 %v2024_v43, 16  ;;  %v619_v40 = vsel %vm618_vm15, 1, %v2777_v16  ;;  %v2106_v0 = vrot.slane %v3038_v62, 4 }
  0x64   : > { %vm1447_vm0 = vcmp.ne.s32.totalorder %v597_v38, 0  ;;  %vm1483_vm4 = vcmp.lt.s32.totalorder %v597_v38, 0  ;;  %v1555_v41 = vadd.s32 18, %v597_v38  ;;  %v621_v46 = vadd.s32 %v619_v40, %v617_v44 }
  0x65   : > { %v2110_v47 = vrot.slane %v2108_v27, 6  ;;  %v2113_v50 = vrot.slane %v2111_v6, 7  ;;  %vm1519_vm5 = vmand %vm1483_vm4, %vm1447_vm0  ;;  %v633_v60 = vshrl.u32 %v3060_v59, 16  ;;  %v297_v54 = vadd.f32 %v2842_v23, %v257_v35 }
  0x66   : > { %v1591_v28 = vsel %vm1519_vm5, %v1555_v41, %v597_v38  ;;  %v622_v53 = vadd.s32 %v621_v46, %v611_v25  ;;  %v636_v56 = vmul.u32 58254, %v632_v61  ;;  %v635_v51 = vmul.u32 14564, %v632_v61 }
  0x67   : > { %v2114_v52 = vor.u32 %v2113_v50, %v2110_v47  ;;  %vm1881_vm6 = vcmp.eq.s32.totalorder %v1591_v28, 16  ;;  %vm1953_vm7 = vcmp.eq.s32.totalorder %v1591_v28, 17  ;;  %v1672_v62 = vsel %vm1657_vm2, %v1669_v30, %v1671_v29 }
  0x68   : > { %v1917_v57 = vsel %vm1881_vm6, %v1670_v3, %v2999_v49  ;;  %v623_v2 = vadd.s32 %v622_v53, %v613_v17  ;;  %v637_v5 = vmul.u32 14564, %v633_v60  ;;  %v638_v48 = vmul.u32 58254, %v633_v60 }
  0x69   : > { %v2115_v7 = vsel %vm2945_vm11, %v2106_v0, %v2114_v52  ;;  %v1989_v8 = vsel %vm1953_vm7, %v3049_v12, %v1917_v57  ;;  %v639_v22 = vshll.u32 %v636_v56, 16  ;;  %v1782_v3 = vrot.slane %v3063_v45, 1  ;;  %v3089_v12 = vld [vmem:[%s2816_s18 + $0x28] sm:$0xff]  }
  0x6a   : > { %2464 = vst [vmem:[%s2821_s21 + $0x1c] sm:$0xf] %v2115_v7  ;;  %v2025_v9 = vpack.c.bf16 %v1989_v8, %v1989_v8  ;;  %v624_v36 = vshrl.u32 %v623_v2, 4  ;;  %v641_v14 = vshll.u32 %v637_v5, 16  ;;  %v2116_v10 = vrot.slane %v2114_v52, 4 }
  0x6b   : > { %v3085_v15 = vmax.f32 %v297_v54, 0.0  ;;  %vm643_vm10 = vc.u32 %v635_v51, %v639_v22  ;;  %v645_v49 = vadd.s32 %v639_v22, %v635_v51  ;;  %v640_v20 = vshrl.u32 %v636_v56, 16 }
  0x6c   : > { %v2118_v30 = vshrl.u32 %v2025_v9, 16  ;;  %v2121_v55 = vshll.u32 %v2025_v9, 16  ;;  %v625_v18 = vmul.u32 18, %v624_v36  ;;  %v644_v19 = vsel %vm643_vm10, 1, %v2777_v16 }
  0x6d   : > { %v646_v21 = vadd.s32 %v644_v19, %v638_v48  ;;  %vm647_vm8 = vc.u32 %v645_v49, %v641_v14  ;;  %v1673_v24 = vrot.slane %v3063_v45, 7  ;;  %v642_v43 = vshrl.u32 %v637_v5, 16 }
  0x6e   : > { %v2120_v26 = vrot.slane %v2118_v30, 6  ;;  %v2123_v33 = vrot.slane %v2121_v55, 7  ;;  %v626_v34 = vsub.s32 %v3036_v58, %v625_v18  ;;  %v648_v32 = vsel %vm647_vm8, 1, %v2777_v16 }
  0x6f   : > { %v650_v25 = vadd.s32 %v648_v32, %v646_v21  ;;  %v2683_v4 = vunpack.c.l.bf16 %v3089_v12  ;;  %v3096_v35 = vadd.s32 72, %v2806_v1  ;;  %v1783_v41 = vsel %vm1766_vm3, %v1780_v39, %v1782_v3 }
  0x70   : > { %v2124_v38 = vor.u32 %v2123_v33, %v2120_v26  ;;  %vm1448_vm9 = vcmp.ne.s32.totalorder %v626_v34, 0  ;;  %vm1484_vm12 = vcmp.lt.s32.totalorder %v626_v34, 0  ;;  %v1556_v44 = vadd.s32 18, %v626_v34 }
  0x71   : > { %vm1520_vm13 = vmand %vm1484_vm12, %vm1448_vm9  ;;  %v651_v61 = vadd.s32 %v650_v25, %v640_v20  ;;  %v258_v27 = vmul.f32 %v2831_v13, %v2683_v4  ;;  %v661_v58 = vand.u32 65535, %v3096_v35  ;;  %v662_v6 = vshrl.u32 %v3096_v35, 16 }
  0x72   : > { %v2125_v17 = vsel %vm2945_vm11, %v2116_v10, %v2124_v38  ;;  %v1592_v40 = vsel %vm1520_vm13, %v1556_v44, %v626_v34  ;;  %v1674_v46 = vsel %vm1657_vm2, %v1671_v29, %v1673_v24  ;;  %v1784_v39 = vrot.slane %v3085_v15, 1 }
  0x73   : > { %2465 = vst [vmem:[%s2821_s21 + $0x20] sm:$0xf] %v2125_v17  ;;  %vm1882_vm14 = vcmp.eq.s32.totalorder %v1592_v40, 16  ;;  %vm1954_vm15 = vcmp.eq.s32.totalorder %v1592_v40, 17  ;;  %v652_v0 = vadd.s32 %v651_v61, %v642_v43  ;;  %v298_v47 = vadd.f32 %v2842_v23, %v258_v27  ;;  %v3138_v43 = vld [vmem:[%s2816_s18 + $0x30] sm:$0xff]  }
  0x74   : > { %v1918_v50 = vsel %vm1882_vm14, %v1672_v62, %v3010_v37  ;;  %v664_v60 = vmul.u32 14564, %v661_v58  ;;  %v665_v28 = vmul.u32 58254, %v661_v58  ;;  %v666_v53 = vmul.u32 14564, %v662_v6 }
  0x75   : > { %v1990_v54 = vsel %vm1954_vm15, %v1783_v41, %v1918_v50  ;;  %v653_v56 = vshrl.u32 %v652_v0, 4  ;;  %v3117_v52 = vmax.f32 %v298_v47, 0.0  ;;  %v667_v57 = vmul.u32 58254, %v662_v6 }
  0x76   : > { %v2026_v51 = vpack.c.bf16 %v1990_v54, %v1990_v54  ;;  %v668_v29 = vshll.u32 %v665_v28, 16  ;;  %v670_v2 = vshll.u32 %v666_v53, 16  ;;  %v2126_v5 = vrot.slane %v2124_v38, 4 }
  0x77   : > { %v654_v7 = vmul.u32 18, %v653_v56  ;;  %v669_v8 = vshrl.u32 %v665_v28, 16  ;;  %v1675_v48 = vrot.slane %v3085_v15, 7  ;;  %v1786_v14 = vrot.slane %v3117_v52, 1 }
  0x78   : > { %v2128_v22 = vshrl.u32 %v2026_v51, 16  ;;  %v2131_v37 = vshll.u32 %v2026_v51, 16  ;;  %vm672_vm0 = vc.u32 %v664_v60, %v668_v29  ;;  %v674_v62 = vadd.s32 %v668_v29, %v664_v60 }
  0x79   : > { %v655_v9 = vsub.s32 %v3060_v59, %v654_v7  ;;  %v673_v36 = vsel %vm672_vm0, 1, %v2777_v16  ;;  %v2684_v10 = vunpack.c.h.bf16 %v3089_v12  ;;  %v3127_v26 = vadd.s32 80, %v2806_v1 }
  0x7a   : > { %v2130_v49 = vrot.slane %v2128_v22, 6  ;;  %v2133_v30 = vrot.slane %v2131_v37, 7  ;;  %v675_v55 = vadd.s32 %v673_v36, %v667_v57  ;;  %vm676_vm4 = vc.u32 %v674_v62, %v670_v2 }
  0x7b   : > { %vm1449_vm5 = vcmp.ne.s32.totalorder %v655_v9, 0  ;;  %vm1485_vm6 = vcmp.lt.s32.totalorder %v655_v9, 0  ;;  %v1557_v18 = vadd.s32 18, %v655_v9  ;;  %v677_v19 = vsel %vm676_vm4, 1, %v2777_v16 }
  0x7c   : > { %v2134_v20 = vor.u32 %v2133_v30, %v2130_v49  ;;  %vm1521_vm7 = vmand %vm1485_vm6, %vm1449_vm5  ;;  %v679_v59 = vadd.s32 %v677_v19, %v675_v55  ;;  %v259_v21 = vmul.f32 %v2831_v13, %v2684_v10  ;;  %v1785_v33 = vsel %vm1766_vm3, %v1782_v3, %v1784_v39 }
  0x7d   : > { %v1593_v12 = vsel %vm1521_vm7, %v1557_v18, %v655_v9  ;;  %v671_v34 = vshrl.u32 %v666_v53, 16  ;;  %v3135_v32 = vsel %vm1657_vm2, %v1673_v24, %v1675_v48  ;;  %v1677_v4 = vrot.slane %v3117_v52, 7 }
  0x7e   : > { %v2135_v25 = vsel %vm2945_vm11, %v2126_v5, %v2134_v20  ;;  %vm1883_vm10 = vcmp.eq.s32.totalorder %v1593_v12, 16  ;;  %vm1955_vm8 = vcmp.eq.s32.totalorder %v1593_v12, 17  ;;  %v680_v44 = vadd.s32 %v679_v59, %v669_v8 }
  0x7f   : > { %2466 = vst [vmem:[%s2821_s21 + $0x24] sm:$0xf] %v2135_v25  ;;  %v1919_v38 = vsel %vm1883_vm10, %v1674_v46, %v3063_v45  ;;  %v299_v3 = vadd.f32 %v2842_v23, %v259_v21  ;;  %v690_v61 = vand.u32 65535, %v3127_v26  ;;  %v1787_v24 = vsel %vm1766_vm3, %v1784_v39, %v1786_v14 }
  0x80   : > { %v1991_v27 = vsel %vm1955_vm8, %v1785_v33, %v1919_v38  ;;  %v691_v58 = vshrl.u32 %v3127_v26, 16  ;;  %v2687_v6 = vunpack.c.l.bf16 %v3138_v43  ;;  %v681_v40 = vadd.s32 %v680_v44, %v671_v34 }
  0x81   : > { %v2027_v17 = vpack.c.bf16 %v1991_v27, %v1991_v27  ;;  %v3152_v41 = vmax.f32 %v299_v3, 0.0  ;;  %v3155_v45 = vadd.s32 88, %v2806_v1  ;;  %v2136_v46 = vrot.slane %v2134_v20, 4 }
  0x82   : > { %v693_v0 = vmul.u32 14564, %v690_v61  ;;  %v694_v47 = vmul.u32 58254, %v690_v61  ;;  %v695_v50 = vmul.u32 14564, %v691_v58  ;;  %v682_v53 = vshrl.u32 %v681_v40, 4 }
  0x83   : > { %v2138_v60 = vshrl.u32 %v2027_v17, 16  ;;  %v2141_v28 = vshll.u32 %v2027_v17, 16  ;;  %v3160_v54 = vsel %vm1657_vm2, %v1675_v48, %v1677_v4  ;;  %v696_v56 = vmul.u32 58254, %v691_v58 }
  0x84   : > { %v697_v39 = vshll.u32 %v694_v47, 16  ;;  %v699_v51 = vshll.u32 %v695_v50, 16  ;;  %v260_v57 = vmul.f32 %v2831_v13, %v2687_v6  ;;  %v683_v5 = vmul.u32 18, %v682_v53 }
  0x85   : > { %v2140_v29 = vrot.slane %v2138_v60, 6  ;;  %v2143_v2 = vrot.slane %v2141_v28, 7  ;;  %v1788_v7 = vrot.slane %v3152_v41, 1  ;;  %v698_v8 = vshrl.u32 %v694_v47, 16  ;;  %v3192_v60 = vld [vmem:[%s2816_s18 + $0x38] sm:$0xff]  }
  0x86   : > { %vm701_vm9 = vc.u32 %v693_v0, %v697_v39  ;;  %v703_v22 = vadd.s32 %v697_v39, %v693_v0  ;;  %v719_v37 = vand.u32 65535, %v3155_v45  ;;  %v684_v48 = vsub.s32 %v3096_v35, %v683_v5 }
  0x87   : > { %v3165_v62 = vor.u32 %v2143_v2, %v2140_v29  ;;  %v702_v9 = vsel %vm701_vm9, 1, %v2777_v16  ;;  %v720_v36 = vshrl.u32 %v3155_v45, 16  ;;  %v700_v18 = vshrl.u32 %v695_v50, 16 }
  0x88   : > { %v704_v13 = vadd.s32 %v702_v9, %v696_v56  ;;  %vm705_vm12 = vc.u32 %v703_v22, %v699_v51  ;;  %v722_v10 = vmul.u32 14564, %v719_v37  ;;  %v723_v49 = vmul.u32 58254, %v719_v37  ;;  %v3199_v56 = vld [vmem:[%s4009_s1] ss:$0 sm:$0xff] }
  0x89   : > { %v2145_v30 = vsel %vm2945_vm11, %v2136_v46, %v3165_v62  ;;  %vm1450_vm13 = vcmp.ne.s32.totalorder %v684_v48, 0  ;;  %vm1486_vm14 = vcmp.lt.s32.totalorder %v684_v48, 0  ;;  %v1558_v55 = vadd.s32 18, %v684_v48 }
  0x8a   : > { %2467 = vst [vmem:[%s2821_s21 + $0x28] sm:$0xf] %v2145_v30  ;;  %vm1522_vm15 = vmand %vm1486_vm14, %vm1450_vm13  ;;  %v706_v35 = vsel %vm705_vm12, 1, %v2777_v16  ;;  %v300_v19 = vadd.f32 %v2842_v23, %v260_v57  ;;  %v724_v20 = vmul.u32 14564, %v720_v36  ;;  %v725_v12 = vmul.u32 58254, %v720_v36 }
  0x8b   : > { %v1594_v59 = vsel %vm1522_vm15, %v1558_v55, %v684_v48  ;;  %v708_v21 = vadd.s32 %v706_v35, %v704_v13  ;;  %v726_v33 = vshll.u32 %v723_v49, 16  ;;  %v3181_v34 = vsel %vm1766_vm3, %v1786_v14, %v1788_v7  ;;  %v3219_v36 = vld [vmem:[%s4010_s2] ss:$0 sm:$0xff] }
  0x8c   : > { %vm1884_vm0 = vcmp.eq.s32.totalorder %v1594_v59, 16  ;;  %vm1956_vm4 = vcmp.eq.s32.totalorder %v1594_v59, 17  ;;  %v728_v25 = vshll.u32 %v724_v20, 16  ;;  %v3185_v61 = vmax.f32 %v300_v19, 0.0 }
  0x8d   : > { %v1920_v38 = vsel %vm1884_vm0, %v3135_v32, %v3085_v15  ;;  %v709_v44 = vadd.s32 %v708_v21, %v698_v8  ;;  %vm730_vm5 = vc.u32 %v722_v10, %v726_v33  ;;  %v732_v23 = vadd.s32 %v726_v33, %v722_v10 }
  0x8e   : > { %v1992_v3 = vsel %vm1956_vm4, %v1787_v24, %v1920_v38  ;;  %v727_v27 = vshrl.u32 %v723_v49, 16  ;;  %v731_v58 = vsel %vm730_vm5, 1, %v2777_v16  ;;  %v729_v14 = vshrl.u32 %v724_v20, 16 }
  0x8f   : > { %v2028_v6 = vpack.c.bf16 %v1992_v3, %v1992_v3  ;;  %v710_v17 = vadd.s32 %v709_v44, %v700_v18  ;;  %v733_v40 = vadd.s32 %v731_v58, %v725_v12  ;;  %vm734_vm6 = vc.u32 %v732_v23, %v728_v25 }
  0x90   : > { %v735_v46 = vsel %vm734_vm6, 1, %v2777_v16  ;;  %v1679_v0 = vrot.slane %v3152_v41, 7  ;;  %v2688_v15 = vunpack.c.h.bf16 %v3138_v43  ;;  %v2146_v28 = vrot.slane %v3165_v62, 4 }
  0x91   : > { %v2148_v32 = vshrl.u32 %v2028_v6, 16  ;;  %v2151_v47 = vshll.u32 %v2028_v6, 16  ;;  %v711_v24 = vshrl.u32 %v710_v17, 4  ;;  %v737_v50 = vadd.s32 %v735_v46, %v733_v40 }
  0x92   : > { %v1790_v53 = vrot.slane %v3185_v61, 1  ;;  %v261_v39 = vmul.f32 %v3199_v56, %v2688_v15  ;;  %v3203_v51 = vadd.s32 96, %v2806_v1  ;;  %v1680_v5 = vsel %vm1657_vm2, %v1677_v4, %v1679_v0 }
  0x93   : > { %v2150_v43 = vrot.slane %v2148_v32, 6  ;;  %v2153_v57 = vrot.slane %v2151_v47, 7  ;;  %v712_v29 = vmul.u32 18, %v711_v24  ;;  %v738_v2 = vadd.s32 %v737_v50, %v727_v27 }
  0x94   : > { %v748_v8 = vand.u32 65535, %v3203_v51  ;;  %v749_v22 = vshrl.u32 %v3203_v51, 16  ;;  %v2691_v37 = vunpack.c.l.bf16 %v3192_v60  ;;  %v301_v13 = vadd.f32 %v3219_v36, %v261_v39 }
  0x95   : > { %v3213_v62 = vor.u32 %v2153_v57, %v2150_v43  ;;  %v713_v48 = vsub.s32 %v3127_v26, %v712_v29  ;;  %v739_v9 = vadd.s32 %v738_v2, %v729_v14  ;;  %v1791_v4 = vsel %vm1766_vm3, %v1788_v7, %v1790_v53 }
  0x96   : > { %v751_v10 = vmul.u32 14564, %v748_v8  ;;  %v752_v49 = vmul.u32 58254, %v748_v8  ;;  %v753_v30 = vmul.u32 14564, %v749_v22  ;;  %v754_v35 = vmul.u32 58254, %v749_v22 }
  0x97   : > { %v2155_v26 = vsel %vm2945_vm11, %v2146_v28, %v3213_v62  ;;  %vm1451_vm7 = vcmp.ne.s32.totalorder %v713_v48, 0  ;;  %vm1487_vm10 = vcmp.lt.s32.totalorder %v713_v48, 0  ;;  %v1559_v55 = vadd.s32 18, %v713_v48 }
  0x98   : > { %2468 = vst [vmem:[%s2821_s21 + $0x2c] sm:$0xf] %v2155_v26  ;;  %vm1523_vm8 = vmand %vm1487_vm10, %vm1451_vm7  ;;  %v740_v18 = vshrl.u32 %v739_v9, 4  ;;  %v755_v19 = vshll.u32 %v752_v49, 16  ;;  %v1681_v20 = vrot.slane %v3185_v61, 7  ;;  %v3232_v21 = vmax.f32 %v301_v13, 0.0 }
  0x99   : > { %v1595_v59 = vsel %vm1523_vm8, %v1559_v55, %v713_v48  ;;  %v757_v7 = vshll.u32 %v753_v30, 16  ;;  %v262_v12 = vmul.f32 %v3199_v56, %v2691_v37  ;;  %v2156_v38 = vrot.slane %v3213_v62, 4 }
  0x9a   : > { %vm1885_vm9 = vcmp.eq.s32.totalorder %v1595_v59, 16  ;;  %vm1957_vm12 = vcmp.eq.s32.totalorder %v1595_v59, 17  ;;  %v741_v33 = vmul.u32 18, %v740_v18  ;;  %vm759_vm13 = vc.u32 %v751_v10, %v755_v19 }
  0x9b   : > { %v1921_v25 = vsel %vm1885_vm9, %v3160_v54, %v3117_v52  ;;  %v760_v44 = vsel %vm759_vm13, 1, %v2777_v16  ;;  %v761_v23 = vadd.s32 %v755_v19, %v751_v10  ;;  %v756_v58 = vshrl.u32 %v752_v49, 16 }
  0x9c   : > { %v1993_v3 = vsel %vm1957_vm12, %v3181_v34, %v1921_v25  ;;  %v742_v27 = vsub.s32 %v3155_v45, %v741_v33  ;;  %v762_v6 = vadd.s32 %v760_v44, %v754_v35  ;;  %v758_v40 = vshrl.u32 %v753_v30, 16 }
  0x9d   : > { %v2029_v17 = vpack.c.bf16 %v1993_v3, %v1993_v3  ;;  %vm763_vm14 = vc.u32 %v761_v23, %v757_v7  ;;  %v3242_v14 = vadd.s32 104, %v2806_v1  ;;  %v1792_v34 = vrot.slane %v3232_v21, 1 }
  0x9e   : > { %vm1452_vm15 = vcmp.ne.s32.totalorder %v742_v27, 0  ;;  %vm1488_vm0 = vcmp.lt.s32.totalorder %v742_v27, 0  ;;  %v1560_v52 = vadd.s32 18, %v742_v27  ;;  %v764_v54 = vsel %vm763_vm14, 1, %v2777_v16 }
  0x9f   : > { %v2158_v46 = vshrl.u32 %v2029_v17, 16  ;;  %v2161_v15 = vshll.u32 %v2029_v17, 16  ;;  %vm1524_vm4 = vmand %vm1488_vm0, %vm1452_vm15  ;;  %v766_v32 = vadd.s32 %v764_v54, %v762_v6  ;;  %v302_v47 = vadd.f32 %v3219_v36, %v262_v12 }
  0xa0   : > { %v1596_v45 = vsel %vm1524_vm4, %v1560_v52, %v742_v27  ;;  %v777_v24 = vand.u32 65535, %v3242_v14  ;;  %v778_v50 = vshrl.u32 %v3242_v14, 16  ;;  %v1682_v37 = vsel %vm1657_vm2, %v1679_v0, %v1681_v20 }
  0xa1   : > { %v2160_v28 = vrot.slane %v2158_v46, 6  ;;  %v2163_v39 = vrot.slane %v2161_v15, 7  ;;  %vm1886_vm5 = vcmp.eq.s32.totalorder %v1596_v45, 16  ;;  %vm1958_vm6 = vcmp.eq.s32.totalorder %v1596_v45, 17 }
  0xa2   : > { %v1922_v43 = vsel %vm1886_vm5, %v1680_v5, %v3152_v41  ;;  %v767_v57 = vadd.s32 %v766_v32, %v756_v58  ;;  %v780_v29 = vmul.u32 14564, %v777_v24  ;;  %v781_v2 = vmul.u32 58254, %v777_v24 }
  0xa3   : > { %v2164_v8 = vor.u32 %v2163_v39, %v2160_v28  ;;  %v1994_v22 = vsel %vm1958_vm6, %v1791_v4, %v1922_v43  ;;  %v782_v62 = vmul.u32 14564, %v778_v50  ;;  %v783_v13 = vmul.u32 58254, %v778_v50 }
  0xa4   : > { %v2030_v48 = vpack.c.bf16 %v1994_v22, %v1994_v22  ;;  %v768_v9 = vadd.s32 %v767_v57, %v758_v40  ;;  %v784_v10 = vshll.u32 %v781_v2, 16  ;;  %v1793_v4 = vsel %vm1766_vm3, %v1790_v53, %v1792_v34 }
  0xa5   : > { %v2165_v5 = vsel %vm2945_vm11, %v2156_v38, %v2164_v8  ;;  %v3262_v49 = vmax.f32 %v302_v47, 0.0  ;;  %v786_v30 = vshll.u32 %v782_v62, 16  ;;  %v2166_v55 = vrot.slane %v2164_v8, 4 }
  0xa6   : > { %2469 = vst [vmem:[%s2821_s21 + $0x30] sm:$0xf] %v2165_v5  ;;  %v2168_v41 = vshrl.u32 %v2030_v48, 16  ;;  %v2171_v0 = vshll.u32 %v2030_v48, 16  ;;  %v769_v26 = vshrl.u32 %v768_v9, 4  ;;  %vm788_vm7 = vc.u32 %v780_v29, %v784_v10 }
  0xa7   : > { %v789_v18 = vsel %vm788_vm7, 1, %v2777_v16  ;;  %v790_v35 = vadd.s32 %v784_v10, %v780_v29  ;;  %v1683_v19 = vrot.slane %v3232_v21, 7  ;;  %v785_v25 = vshrl.u32 %v781_v2, 16  ;;  %v3292_v2 = vld [vmem:[%s2816_s18 + $0x40] sm:$0xff]  }
  0xa8   : > { %v2170_v59 = vrot.slane %v2168_v41, 6  ;;  %v2173_v7 = vrot.slane %v2171_v0, 7  ;;  %v770_v12 = vmul.u32 18, %v769_v26  ;;  %v791_v33 = vadd.s32 %v789_v18, %v783_v13 }
  0xa9   : > { %vm792_vm10 = vc.u32 %v790_v35, %v786_v30  ;;  %v2692_v53 = vunpack.c.h.bf16 %v3192_v60  ;;  %v3269_v38 = vadd.s32 112, %v2806_v1  ;;  %v787_v3 = vshrl.u32 %v782_v62, 16 }
  0xaa   : > { %v3271_v44 = vor.u32 %v2173_v7, %v2170_v59  ;;  %v771_v23 = vsub.s32 %v3203_v51, %v770_v12  ;;  %v793_v27 = vsel %vm792_vm10, 1, %v2777_v16  ;;  %v1684_v54 = vsel %vm1657_vm2, %v1681_v20, %v1683_v19 }
  0xab   : > { %v795_v58 = vadd.s32 %v793_v27, %v791_v33  ;;  %v263_v6 = vmul.f32 %v3199_v56, %v2692_v53  ;;  %v806_v17 = vand.u32 65535, %v3269_v38  ;;  %v807_v40 = vshrl.u32 %v3269_v38, 16 }
  0xac   : > { %v2175_v60 = vsel %vm2945_vm11, %v2166_v55, %v3271_v44  ;;  %vm1453_vm8 = vcmp.ne.s32.totalorder %v771_v23, 0  ;;  %vm1489_vm9 = vcmp.lt.s32.totalorder %v771_v23, 0  ;;  %v1561_v52 = vadd.s32 18, %v771_v23 }
  0xad   : > { %2470 = vst [vmem:[%s2821_s21 + $0x34] sm:$0xf] %v2175_v60  ;;  %vm1525_vm12 = vmand %vm1489_vm9, %vm1453_vm8  ;;  %v796_v51 = vadd.s32 %v795_v58, %v785_v25  ;;  %v1794_v46 = vrot.slane %v3262_v49, 1  ;;  %v303_v15 = vadd.f32 %v3219_v36, %v263_v6  ;;  %v809_v45 = vmul.u32 14564, %v806_v17 }
  0xae   : > { %v1597_v32 = vsel %vm1525_vm12, %v1561_v52, %v771_v23  ;;  %v810_v47 = vmul.u32 58254, %v806_v17  ;;  %v811_v24 = vmul.u32 14564, %v807_v40  ;;  %v1685_v28 = vrot.slane %v3262_v49, 7 }
  0xaf   : > { %vm1887_vm13 = vcmp.eq.s32.totalorder %v1597_v32, 16  ;;  %vm1959_vm14 = vcmp.eq.s32.totalorder %v1597_v32, 17  ;;  %v797_v50 = vadd.s32 %v796_v51, %v787_v3  ;;  %v812_v43 = vmul.u32 58254, %v807_v40 }
  0xb0   : > { %v1923_v39 = vsel %vm1887_vm13, %v1682_v37, %v3185_v61  ;;  %v813_v57 = vshll.u32 %v810_v47, 16  ;;  %v815_v29 = vshll.u32 %v811_v24, 16  ;;  %v2176_v8 = vrot.slane %v3271_v44, 4 }
  0xb1   : > { %v1995_v20 = vsel %vm1959_vm14, %v1793_v4, %v1923_v39  ;;  %v798_v22 = vshrl.u32 %v797_v50, 4  ;;  %v3295_v62 = vmax.f32 %v303_v15, 0.0  ;;  %v814_v9 = vshrl.u32 %v810_v47, 16 }
  0xb2   : > { %v2031_v48 = vpack.c.bf16 %v1995_v20, %v1995_v20  ;;  %vm817_vm15 = vc.u32 %v809_v45, %v813_v57  ;;  %v819_v13 = vadd.s32 %v813_v57, %v809_v45  ;;  %v2695_v61 = vunpack.c.l.bf16 %v3292_v2 }
  0xb3   : > { %v799_v10 = vmul.u32 18, %v798_v22  ;;  %v818_v5 = vsel %vm817_vm15, 1, %v2777_v16  ;;  %v3300_v37 = vadd.s32 120, %v2806_v1  ;;  %v816_v26 = vshrl.u32 %v811_v24, 16 }
  0xb4   : > { %v2178_v30 = vshrl.u32 %v2031_v48, 16  ;;  %v2181_v41 = vshll.u32 %v2031_v48, 16  ;;  %v820_v4 = vadd.s32 %v818_v5, %v812_v43  ;;  %vm821_vm0 = vc.u32 %v819_v13, %v815_v29 }
  0xb5   : > { %v800_v0 = vsub.s32 %v3242_v14, %v799_v10  ;;  %v822_v55 = vsel %vm821_vm0, 1, %v2777_v16  ;;  %v264_v18 = vmul.f32 %v3199_v56, %v2695_v61  ;;  %v835_v12 = vand.u32 65535, %v3300_v37 }
  0xb6   : > { %v2180_v35 = vrot.slane %v2178_v30, 6  ;;  %v2183_v59 = vrot.slane %v2181_v41, 7  ;;  %v824_v7 = vadd.s32 %v822_v55, %v820_v4  ;;  %v1795_v14 = vsel %vm1766_vm3, %v1792_v34, %v1794_v46 }
  0xb7   : > { %vm1454_vm4 = vcmp.ne.s32.totalorder %v800_v0, 0  ;;  %vm1490_vm5 = vcmp.lt.s32.totalorder %v800_v0, 0  ;;  %v1562_v33 = vadd.s32 18, %v800_v0  ;;  %v304_v25 = vadd.f32 %v3219_v36, %v264_v18 }
  0xb8   : > { %v2184_v53 = vor.u32 %v2183_v59, %v2180_v35  ;;  %vm1526_vm6 = vmand %vm1490_vm5, %vm1454_vm4  ;;  %v825_v44 = vadd.s32 %v824_v7, %v814_v9  ;;  %v836_v23 = vshrl.u32 %v3300_v37, 16  ;;  %v1686_v27 = vsel %vm1657_vm2, %v1683_v19, %v1685_v28 }
  0xb9   : > { %v1598_v3 = vsel %vm1526_vm6, %v1562_v33, %v800_v0  ;;  %v1796_v58 = vrot.slane %v3295_v62, 1  ;;  %v839_v6 = vmul.u32 58254, %v835_v12  ;;  %v838_v40 = vmul.u32 14564, %v835_v12  ;;  %v3350_v33 = vld [vmem:[%s2816_s18 + $0x48] sm:$0xff]  }
  0xba   : > { %v2185_v17 = vsel %vm2945_vm11, %v2176_v8, %v2184_v53  ;;  %vm1888_vm7 = vcmp.eq.s32.totalorder %v1598_v3, 16  ;;  %vm1960_vm10 = vcmp.eq.s32.totalorder %v1598_v3, 17  ;;  %v826_v60 = vadd.s32 %v825_v44, %v816_v26 }
  0xbb   : > { %2471 = vst [vmem:[%s2821_s21 + $0x38] sm:$0xf] %v2185_v17  ;;  %v1924_v34 = vsel %vm1888_vm7, %v1684_v54, %v3232_v21  ;;  %v3323_v52 = vmax.f32 %v304_v25, 0.0  ;;  %v840_v51 = vmul.u32 14564, %v836_v23  ;;  %v841_v32 = vmul.u32 58254, %v836_v23 }
  0xbc   : > { %v1996_v15 = vsel %vm1960_vm10, %v1795_v14, %v1924_v34  ;;  %v842_v45 = vshll.u32 %v839_v6, 16  ;;  %v1687_v19 = vrot.slane %v3295_v62, 7  ;;  %v2186_v24 = vrot.slane %v2184_v53, 4 }
  0xbd   : > { %v2032_v47 = vpack.c.bf16 %v1996_v15, %v1996_v15  ;;  %v827_v50 = vshrl.u32 %v826_v60, 4  ;;  %v844_v39 = vshll.u32 %v840_v51, 16  ;;  %v843_v43 = vshrl.u32 %v839_v6, 16 }
  0xbe   : > { %vm846_vm8 = vc.u32 %v838_v40, %v842_v45  ;;  %v848_v57 = vadd.s32 %v842_v45, %v838_v40  ;;  %v2696_v29 = vunpack.c.h.bf16 %v3292_v2  ;;  %v1798_v48 = vrot.slane %v3323_v52, 1 }
  0xbf   : > { %v2188_v20 = vshrl.u32 %v2032_v47, 16  ;;  %v2191_v21 = vshll.u32 %v2032_v47, 16  ;;  %v828_v54 = vmul.u32 18, %v827_v50  ;;  %v847_v8 = vsel %vm846_vm8, 1, %v2777_v16 }
  0xc0   : > { %v849_v22 = vadd.s32 %v847_v8, %v841_v32  ;;  %vm850_vm9 = vc.u32 %v848_v57, %v844_v39  ;;  %v265_v9 = vmul.f32 %v3199_v56, %v2696_v29  ;;  %v1797_v2 = vsel %vm1766_vm3, %v1794_v46, %v1796_v58 }
  0xc1   : > { %v2190_v13 = vrot.slane %v2188_v20, 6  ;;  %v2193_v10 = vrot.slane %v2191_v21, 7  ;;  %v829_v5 = vsub.s32 %v3269_v38, %v828_v54  ;;  %v851_v61 = vsel %vm850_vm9, 1, %v2777_v16 }
  0xc2   : > { %v845_v30 = vshrl.u32 %v840_v51, 16  ;;  %v853_v41 = vadd.s32 %v851_v61, %v849_v22  ;;  %v3336_v4 = vadd.s32 128, %v2806_v1  ;;  %v305_v38 = vadd.f32 %v3219_v36, %v265_v9 }
  0xc3   : > { %v2194_v0 = vor.u32 %v2193_v10, %v2190_v13  ;;  %vm1455_vm12 = vcmp.ne.s32.totalorder %v829_v5, 0  ;;  %vm1491_vm13 = vcmp.lt.s32.totalorder %v829_v5, 0  ;;  %v1563_v26 = vadd.s32 18, %v829_v5 }
  0xc4   : > { %vm1527_vm14 = vmand %vm1491_vm13, %vm1455_vm12  ;;  %v854_v55 = vadd.s32 %v853_v41, %v843_v43  ;;  %v864_v18 = vand.u32 65535, %v3336_v4  ;;  %v865_v35 = vshrl.u32 %v3336_v4, 16  ;;  %v1688_v7 = vsel %vm1657_vm2, %v1685_v28, %v1687_v19 }
  0xc5   : > { %v2195_v46 = vsel %vm2945_vm11, %v2186_v24, %v2194_v0  ;;  %v1599_v59 = vsel %vm1527_vm14, %v1563_v26, %v829_v5  ;;  %v1799_v12 = vsel %vm1766_vm3, %v1796_v58, %v1798_v48  ;;  %v1689_v53 = vrot.slane %v3323_v52, 7 }
  0xc6   : > { %2472 = vst [vmem:[%s2821_s21 + $0x3c] sm:$0xf] %v2195_v46  ;;  %vm1889_vm15 = vcmp.eq.s32.totalorder %v1599_v59, 16  ;;  %vm1961_vm0 = vcmp.eq.s32.totalorder %v1599_v59, 17  ;;  %v855_v25 = vadd.s32 %v854_v55, %v845_v30  ;;  %v867_v44 = vmul.u32 14564, %v864_v18 }
  0xc7   : > { %v1925_v14 = vsel %vm1889_vm15, %v1686_v27, %v3262_v49  ;;  %v868_v23 = vmul.u32 58254, %v864_v18  ;;  %v869_v3 = vmul.u32 14564, %v865_v35  ;;  %v3355_v28 = vmax.f32 %v305_v38, 0.0 }
  0xc8   : > { %v1997_v6 = vsel %vm1961_vm0, %v1797_v2, %v1925_v14  ;;  %v856_v17 = vshrl.u32 %v855_v25, 4  ;;  %v2699_v40 = vunpack.c.l.bf16 %v3350_v33  ;;  %v870_v34 = vmul.u32 58254, %v865_v35 }
  0xc9   : > { %v2033_v58 = vpack.c.bf16 %v1997_v6, %v1997_v6  ;;  %v871_v60 = vshll.u32 %v868_v23, 16  ;;  %v873_v51 = vshll.u32 %v869_v3, 16  ;;  %v2196_v15 = vrot.slane %v2194_v0, 4 }
  0xca   : > { %v857_v32 = vmul.u32 18, %v856_v17  ;;  %v872_v45 = vshrl.u32 %v868_v23, 16  ;;  %v3361_v49 = vsel %vm1657_vm2, %v1687_v19, %v1689_v53  ;;  %v266_v43 = vmul.f32 %v3199_v56, %v2699_v40 }
  0xcb   : > { %v2198_v27 = vshrl.u32 %v2033_v58, 16  ;;  %v2201_v47 = vshll.u32 %v2033_v58, 16  ;;  %vm875_vm4 = vc.u32 %v867_v44, %v871_v60  ;;  %v877_v24 = vadd.s32 %v871_v60, %v867_v44 }
  0xcc   : > { %v858_v50 = vsub.s32 %v3300_v37, %v857_v32  ;;  %v876_v39 = vsel %vm875_vm4, 1, %v2777_v16  ;;  %v3367_v57 = vadd.s32 136, %v2806_v1  ;;  %v1800_v22 = vrot.slane %v3355_v28, 1 }
  0xcd   : > { %v2200_v29 = vrot.slane %v2198_v27, 6  ;;  %v2203_v20 = vrot.slane %v2201_v47, 7  ;;  %v878_v21 = vadd.s32 %v876_v39, %v870_v34  ;;  %vm879_vm5 = vc.u32 %v877_v24, %v873_v51 }
  0xce   : > { %vm1456_vm6 = vcmp.ne.s32.totalorder %v858_v50, 0  ;;  %vm1492_vm7 = vcmp.lt.s32.totalorder %v858_v50, 0  ;;  %v1564_v19 = vadd.s32 18, %v858_v50  ;;  %v880_v54 = vsel %vm879_vm5, 1, %v2777_v16 }
  0xcf   : > { %v2204_v8 = vor.u32 %v2203_v20, %v2200_v29  ;;  %vm1528_vm10 = vmand %vm1492_vm7, %vm1456_vm6  ;;  %v882_v37 = vadd.s32 %v880_v54, %v878_v21  ;;  %v893_v9 = vand.u32 65535, %v3367_v57  ;;  %v874_v10 = vshrl.u32 %v869_v3, 16  ;;  %v3408_v21 = vld [vmem:[%s2816_s18 + $0x50] sm:$0xff]  }
  0xd0   : > { %v1600_v13 = vsel %vm1528_vm10, %v1564_v19, %v858_v50  ;;  %v306_v5 = vadd.f32 %v3219_v36, %v266_v43  ;;  %v894_v61 = vshrl.u32 %v3367_v57, 16  ;;  %v2700_v30 = vunpack.c.h.bf16 %v3350_v33 }
  0xd1   : > { %v2205_v2 = vsel %vm2945_vm11, %v2196_v15, %v2204_v8  ;;  %vm1890_vm8 = vcmp.eq.s32.totalorder %v1600_v13, 16  ;;  %vm1962_vm9 = vcmp.eq.s32.totalorder %v1600_v13, 17  ;;  %v883_v0 = vadd.s32 %v882_v37, %v872_v45 }
  0xd2   : > { %2473 = vst [vmem:[%s2821_s21 + $0x40] sm:$0xf] %v2205_v2  ;;  %v1926_v41 = vsel %vm1890_vm8, %v1688_v7, %v3295_v62  ;;  %v896_v26 = vmul.u32 14564, %v893_v9  ;;  %v897_v55 = vmul.u32 58254, %v893_v9  ;;  %v1801_v18 = vsel %vm1766_vm3, %v1798_v48, %v1800_v22 }
  0xd3   : > { %v1998_v38 = vsel %vm1962_vm9, %v1799_v12, %v1926_v41  ;;  %v898_v35 = vmul.u32 14564, %v894_v61  ;;  %v1691_v46 = vrot.slane %v3355_v28, 7  ;;  %v884_v25 = vadd.s32 %v883_v0, %v874_v10 }
  0xd4   : > { %v2034_v59 = vpack.c.bf16 %v1998_v38, %v1998_v38  ;;  %v899_v14 = vmul.u32 58254, %v894_v61  ;;  %v900_v44 = vshll.u32 %v897_v55, 16  ;;  %v2206_v23 = vrot.slane %v2204_v8, 4 }
  0xd5   : > { %v3383_v33 = vmax.f32 %v306_v5, 0.0  ;;  %v902_v3 = vshll.u32 %v898_v35, 16  ;;  %v267_v62 = vmul.f32 %v3199_v56, %v2700_v30  ;;  %v885_v12 = vshrl.u32 %v884_v25, 4 }
  0xd6   : > { %v2208_v7 = vshrl.u32 %v2034_v59, 16  ;;  %v2211_v6 = vshll.u32 %v2034_v59, 16  ;;  %vm904_vm12 = vc.u32 %v896_v26, %v900_v44  ;;  %v906_v48 = vadd.s32 %v900_v44, %v896_v26 }
  0xd7   : > { %v905_v17 = vsel %vm904_vm12, 1, %v2777_v16  ;;  %v3392_v40 = vsel %vm1657_vm2, %v1689_v53, %v1691_v46  ;;  %v307_v58 = vadd.f32 %v3219_v36, %v267_v62  ;;  %v886_v51 = vmul.u32 18, %v885_v12 }
  0xd8   : > { %v2210_v34 = vrot.slane %v2208_v7, 6  ;;  %v2213_v60 = vrot.slane %v2211_v6, 7  ;;  %v907_v15 = vadd.s32 %v905_v17, %v899_v14  ;;  %v901_v32 = vshrl.u32 %v897_v55, 16 }
  0xd9   : > { %vm908_vm13 = vc.u32 %v906_v48, %v902_v3  ;;  %v1802_v45 = vrot.slane %v3383_v33, 1  ;;  %v3397_v27 = vadd.s32 144, %v2806_v1  ;;  %v887_v53 = vsub.s32 %v3336_v4, %v886_v51 }
  0xda   : > { %v3399_v47 = vor.u32 %v2213_v60, %v2210_v34  ;;  %v903_v24 = vshrl.u32 %v898_v35, 16  ;;  %v909_v50 = vsel %vm908_vm13, 1, %v2777_v16  ;;  %v3403_v43 = vmax.f32 %v307_v58, 0.0 }
  0xdb   : > { %v911_v39 = vadd.s32 %v909_v50, %v907_v15  ;;  %v922_v29 = vand.u32 65535, %v3397_v27  ;;  %v923_v20 = vshrl.u32 %v3397_v27, 16  ;;  %vm1457_vm14 = vcmp.ne.s32.totalorder %v887_v53, 0 }
  0xdc   : > { %v2215_v19 = vsel %vm2945_vm11, %v2206_v23, %v3399_v47  ;;  %vm1493_vm15 = vcmp.lt.s32.totalorder %v887_v53, 0  ;;  %v1565_v54 = vadd.s32 18, %v887_v53  ;;  %v1803_v8 = vsel %vm1766_vm3, %v1800_v22, %v1802_v45 }
  0xdd   : > { %2474 = vst [vmem:[%s2821_s21 + $0x44] sm:$0xf] %v2215_v19  ;;  %vm1529_vm0 = vmand %vm1493_vm15, %vm1457_vm14  ;;  %v912_v4 = vadd.s32 %v911_v39, %v901_v32  ;;  %v925_v37 = vmul.u32 14564, %v922_v29  ;;  %v926_v9 = vmul.u32 58254, %v922_v29  ;;  %v927_v10 = vmul.u32 14564, %v923_v20 }
  0xde   : > { %v1601_v13 = vsel %vm1529_vm0, %v1565_v54, %v887_v53  ;;  %v928_v5 = vmul.u32 58254, %v923_v20  ;;  %v2703_v61 = vunpack.c.l.bf16 %v3408_v21  ;;  %v1693_v26 = vrot.slane %v3383_v33, 7 }
  0xdf   : > { %vm1891_vm4 = vcmp.eq.s32.totalorder %v1601_v13, 16  ;;  %vm1963_vm5 = vcmp.eq.s32.totalorder %v1601_v13, 17  ;;  %v913_v2 = vadd.s32 %v912_v4, %v903_v24  ;;  %v929_v30 = vshll.u32 %v926_v9, 16 }
  0xe0   : > { %v1927_v41 = vsel %vm1891_vm4, %v3361_v49, %v3323_v52  ;;  %v931_v0 = vshll.u32 %v927_v10, 16  ;;  %v1804_v55 = vrot.slane %v3403_v43, 1  ;;  %v930_v25 = vshrl.u32 %v926_v9, 16 }
  0xe1   : > { %v1999_v22 = vsel %vm1963_vm5, %v1801_v18, %v1927_v41  ;;  %v914_v38 = vshrl.u32 %v913_v2, 4  ;;  %vm933_vm6 = vc.u32 %v925_v37, %v929_v30  ;;  %v935_v35 = vadd.s32 %v929_v30, %v925_v37 }
  0xe2   : > { %v2035_v59 = vpack.c.bf16 %v1999_v22, %v1999_v22  ;;  %v934_v14 = vsel %vm933_vm6, 1, %v2777_v16  ;;  %v268_v44 = vmul.f32 %v3199_v56, %v2703_v61  ;;  %v3425_v52 = vadd.s32 152, %v2806_v1 }
  0xe3   : > { %v915_v23 = vmul.u32 18, %v914_v38  ;;  %v936_v3 = vadd.s32 %v934_v14, %v928_v5  ;;  %vm937_vm7 = vc.u32 %v935_v35, %v931_v0  ;;  %v932_v7 = vshrl.u32 %v927_v10, 16 }
  0xe4   : > { %v2218_v49 = vshrl.u32 %v2035_v59, 16  ;;  %v2221_v62 = vshll.u32 %v2035_v59, 16  ;;  %v938_v18 = vsel %vm937_vm7, 1, %v2777_v16  ;;  %v951_v17 = vand.u32 65535, %v3425_v52 }
  0xe5   : > { %v916_v6 = vsub.s32 %v3367_v57, %v915_v23  ;;  %v940_v12 = vadd.s32 %v938_v18, %v936_v3  ;;  %v952_v48 = vshrl.u32 %v3425_v52, 16  ;;  %v2216_v58 = vrot.slane %v3399_v47, 4 }
  0xe6   : > { %v2220_v34 = vrot.slane %v2218_v49, 6  ;;  %v2223_v60 = vrot.slane %v2221_v62, 7  ;;  %v308_v51 = vadd.f32 %v3219_v36, %v268_v44  ;;  %v1694_v57 = vsel %vm1657_vm2, %v1691_v46, %v1693_v26 }
  0xe7   : > { %vm1458_vm10 = vcmp.ne.s32.totalorder %v916_v6, 0  ;;  %vm1494_vm8 = vcmp.lt.s32.totalorder %v916_v6, 0  ;;  %v1566_v15 = vadd.s32 18, %v916_v6  ;;  %v941_v32 = vadd.s32 %v940_v12, %v930_v25 }
  0xe8   : > { %v2224_v53 = vor.u32 %v2223_v60, %v2220_v34  ;;  %vm1530_vm9 = vmand %vm1494_vm8, %vm1458_vm10  ;;  %v955_v24 = vmul.u32 58254, %v951_v17  ;;  %v3438_v50 = vmul.u32 14564, %v952_v48  ;;  %v1805_v29 = vsel %vm1766_vm3, %v1802_v45, %v1804_v55 }
  0xe9   : > { %v1602_v47 = vsel %vm1530_vm9, %v1566_v15, %v916_v6  ;;  %v942_v39 = vadd.s32 %v941_v32, %v932_v7  ;;  %v954_v20 = vmul.u32 14564, %v951_v17  ;;  %v3447_v54 = vmax.f32 %v308_v51, 0.0 }
  0xea   : > { %v2225_v19 = vsel %vm2945_vm11, %v2216_v58, %v2224_v53  ;;  %vm1892_vm12 = vcmp.eq.s32.totalorder %v1602_v47, 16  ;;  %vm1964_vm13 = vcmp.eq.s32.totalorder %v1602_v47, 17  ;;  %v957_v37 = vmul.u32 58254, %v952_v48 }
  0xeb   : > { %2475 = vst [vmem:[%s2821_s21 + $0x48] sm:$0xf] %v2225_v19  ;;  %v1928_v46 = vsel %vm1892_vm12, %v3392_v40, %v3355_v28  ;;  %v943_v4 = vshrl.u32 %v942_v39, 4  ;;  %v958_v9 = vshll.u32 %v955_v24, 16  ;;  %v2226_v10 = vrot.slane %v2224_v53, 4  ;;  %v3486_v53 = vld [vmem:[%s2816_s18 + $0x58] sm:$0xff]  }
  0xec   : > { %v2000_v13 = vsel %vm1964_vm13, %v1803_v8, %v1928_v46  ;;  %v960_v5 = vshll.u32 %v3438_v50, 16  ;;  %v1695_v45 = vrot.slane %v3403_v43, 7  ;;  %v1806_v0 = vrot.slane %v3447_v54, 1 }
  0xed   : > { %v2036_v61 = vpack.c.bf16 %v2000_v13, %v2000_v13  ;;  %v944_v2 = vmul.u32 18, %v943_v4  ;;  %vm962_vm14 = vc.u32 %v954_v20, %v958_v9  ;;  %v964_v30 = vadd.s32 %v958_v9, %v954_v20 }
  0xee   : > { %v963_v41 = vsel %vm962_vm14, 1, %v2777_v16  ;;  %v2704_v22 = vunpack.c.h.bf16 %v3408_v21  ;;  %v3458_v28 = vadd.s32 160, %v2806_v1  ;;  %v959_v3 = vshrl.u32 %v955_v24, 16 }
  0xef   : > { %v2228_v40 = vshrl.u32 %v2036_v61, 16  ;;  %v2231_v8 = vshll.u32 %v2036_v61, 16  ;;  %v945_v38 = vsub.s32 %v3397_v27, %v944_v2  ;;  %v965_v35 = vadd.s32 %v963_v41, %v957_v37 }
  0xf0   : > { %vm966_vm15 = vc.u32 %v964_v30, %v960_v5  ;;  %v269_v59 = vmul.f32 %v3199_v56, %v2704_v22  ;;  %v980_v25 = vand.u32 65535, %v3458_v28  ;;  %v981_v14 = vshrl.u32 %v3458_v28, 16 }
  0xf1   : > { %v2230_v44 = vrot.slane %v2228_v40, 6  ;;  %v2233_v23 = vrot.slane %v2231_v8, 7  ;;  %vm1459_vm0 = vcmp.ne.s32.totalorder %v945_v38, 0  ;;  %vm1495_vm4 = vcmp.lt.s32.totalorder %v945_v38, 0 }
  0xf2   : > { %vm1531_vm5 = vmand %vm1495_vm4, %vm1459_vm0  ;;  %v1567_v21 = vadd.s32 18, %v945_v38  ;;  %v967_v49 = vsel %vm966_vm15, 1, %v2777_v16  ;;  %v309_v27 = vadd.f32 %v3219_v36, %v269_v59  ;;  %v984_v18 = vmul.u32 58254, %v980_v25 }
  0xf3   : > { %v2234_v62 = vor.u32 %v2233_v23, %v2230_v44  ;;  %v969_v7 = vadd.s32 %v967_v49, %v965_v35  ;;  %v985_v6 = vmul.u32 14564, %v981_v14  ;;  %v961_v17 = vshrl.u32 %v3438_v50, 16 }
  0xf4   : > { %v1603_v12 = vsel %vm1531_vm5, %v1567_v21, %v945_v38  ;;  %v3472_v48 = vsel %vm1657_vm2, %v1693_v26, %v1695_v45  ;;  %v983_v58 = vmul.u32 14564, %v980_v25  ;;  %v3481_v60 = vsel %vm1766_vm3, %v1804_v55, %v1806_v0 }
  0xf5   : > { %v2235_v34 = vsel %vm2945_vm11, %v2226_v10, %v2234_v62  ;;  %vm1893_vm6 = vcmp.eq.s32.totalorder %v1603_v12, 16  ;;  %vm1965_vm7 = vcmp.eq.s32.totalorder %v1603_v12, 17  ;;  %v970_v15 = vadd.s32 %v969_v7, %v959_v3 }
  0xf6   : > { %2476 = vst [vmem:[%s2821_s21 + $0x4c] sm:$0xf] %v2235_v34  ;;  %v1929_v51 = vsel %vm1893_vm6, %v1694_v57, %v3383_v33  ;;  %v986_v32 = vmul.u32 58254, %v981_v14  ;;  %v987_v26 = vshll.u32 %v984_v18, 16  ;;  %v3488_v50 = vmax.f32 %v309_v27, 0.0 }
  0xf7   : > { %v2001_v24 = vsel %vm1965_vm7, %v1805_v29, %v1929_v51  ;;  %v989_v47 = vshll.u32 %v985_v6, 16  ;;  %v1697_v39 = vrot.slane %v3447_v54, 7  ;;  %v971_v19 = vadd.s32 %v970_v15, %v961_v17 }
  0xf8   : > { %v2037_v20 = vpack.c.bf16 %v2001_v24, %v2001_v24  ;;  %vm991_vm10 = vc.u32 %v983_v58, %v987_v26  ;;  %v993_v46 = vadd.s32 %v987_v26, %v983_v58  ;;  %v2236_v55 = vrot.slane %v2234_v62, 4 }
  0xf9   : > { %v992_v4 = vsel %vm991_vm10, 1, %v2777_v16  ;;  %v2707_v33 = vunpack.c.l.bf16 %v3486_v53  ;;  %v3494_v57 = vadd.s32 168, %v2806_v1  ;;  %v972_v29 = vshrl.u32 %v971_v19, 4 }
  0xfa   : > { %v2238_v37 = vshrl.u32 %v2037_v20, 16  ;;  %v2241_v9 = vshll.u32 %v2037_v20, 16  ;;  %v994_v13 = vadd.s32 %v992_v4, %v986_v32  ;;  %v988_v10 = vshrl.u32 %v984_v18, 16 }
  0xfb   : > { %vm995_vm8 = vc.u32 %v993_v46, %v989_v47  ;;  %v270_v5 = vmul.f32 %v3199_v56, %v2707_v33  ;;  %v1009_v61 = vand.u32 65535, %v3494_v57  ;;  %v973_v41 = vmul.u32 18, %v972_v29 }
  0xfc   : > { %v2240_v2 = vrot.slane %v2238_v37, 6  ;;  %v2243_v30 = vrot.slane %v2241_v9, 7  ;;  %v996_v22 = vsel %vm995_vm8, 1, %v2777_v16  ;;  %v990_v40 = vshrl.u32 %v985_v6, 16 }
  0xfd   : > { %v998_v8 = vadd.s32 %v996_v22, %v994_v13  ;;  %v1808_v38 = vrot.slane %v3488_v50, 1  ;;  %v1010_v35 = vshrl.u32 %v3494_v57, 16  ;;  %v974_v25 = vsub.s32 %v3425_v52, %v973_v41 }
  0xfe   : > { %v3501_v59 = vor.u32 %v2243_v30, %v2240_v2  ;;  %v310_v14 = vadd.f32 %v3219_v36, %v270_v5  ;;  %v1013_v44 = vmul.u32 58254, %v1009_v61  ;;  %v1698_v21 = vsel %vm1657_vm2, %v1695_v45, %v1697_v39 }
  0xff   : > { %v999_v23 = vadd.s32 %v998_v8, %v988_v10  ;;  %v1012_v3 = vmul.u32 14564, %v1009_v61  ;;  %v1014_v49 = vmul.u32 14564, %v1010_v35  ;;  %vm1460_vm9 = vcmp.ne.s32.totalorder %v974_v25, 0 }
 0x100   : > { %v2245_v27 = vsel %vm2945_vm11, %v2236_v55, %v3501_v59  ;;  %vm1496_vm12 = vcmp.lt.s32.totalorder %v974_v25, 0  ;;  %v1568_v62 = vadd.s32 18, %v974_v25  ;;  %v1809_v7 = vsel %vm1766_vm3, %v1806_v0, %v1808_v38 }
 0x101   : > { %2477 = vst [vmem:[%s2821_s21 + $0x50] sm:$0xf] %v2245_v27  ;;  %vm1532_vm13 = vmand %vm1496_vm12, %vm1460_vm9  ;;  %v1000_v52 = vadd.s32 %v999_v23, %v990_v40  ;;  %v1015_v18 = vmul.u32 58254, %v1010_v35  ;;  %v1016_v45 = vshll.u32 %v1013_v44, 16  ;;  %v3519_v12 = vmax.f32 %v310_v14, 0.0 }
 0x102   : > { %v1604_v6 = vsel %vm1532_vm13, %v1568_v62, %v974_v25  ;;  %v1018_v17 = vshll.u32 %v1014_v49, 16  ;;  %v1699_v58 = vrot.slane %v3488_v50, 7  ;;  %v2246_v15 = vrot.slane %v3501_v59, 4  ;;  %v2744_v62 = vld [vmem:[%s2816_s18 + $0x60] sm:$0xff]  }
 0x103   : > { %vm1894_vm14 = vcmp.eq.s32.totalorder %v1604_v6, 16  ;;  %vm1966_vm15 = vcmp.eq.s32.totalorder %v1604_v6, 17  ;;  %v1001_v34 = vshrl.u32 %v1000_v52, 4  ;;  %vm1020_vm0 = vc.u32 %v1012_v3, %v1016_v45 }
 0x104   : > { %v1930_v51 = vsel %vm1894_vm14, %v3472_v48, %v3403_v43  ;;  %v1021_v32 = vsel %vm1020_vm0, 1, %v2777_v16  ;;  %v1022_v0 = vadd.s32 %v1016_v45, %v1012_v3  ;;  %v2708_v20 = vunpack.c.h.bf16 %v3486_v53 }
 0x105   : > { %v2002_v26 = vsel %vm1966_vm15, %v3481_v60, %v1930_v51  ;;  %v1002_v24 = vmul.u32 18, %v1001_v34  ;;  %v1023_v47 = vadd.s32 %v1021_v32, %v1015_v18  ;;  %v1017_v46 = vshrl.u32 %v1013_v44, 16 }
 0x106   : > { %v2038_v19 = vpack.c.bf16 %v2002_v26, %v2002_v26  ;;  %vm1024_vm4 = vc.u32 %v1022_v0, %v1018_v17  ;;  %v3529_v55 = vadd.s32 176, %v2806_v1  ;;  %v1019_v43 = vshrl.u32 %v1014_v49, 16 }
 0x107   : > { %v1003_v4 = vsub.s32 %v3458_v28, %v1002_v24  ;;  %v1025_v48 = vsel %vm1024_vm4, 1, %v2777_v16  ;;  %v271_v33 = vmul.f32 %v3199_v56, %v2708_v20  ;;  %v3540_v13 = vsel %vm1657_vm2, %v1697_v39, %v1699_v58 }
 0x108   : > { %v2248_v37 = vshrl.u32 %v2038_v19, 16  ;;  %v2251_v9 = vshll.u32 %v2038_v19, 16  ;;  %v1027_v60 = vadd.s32 %v1025_v48, %v1023_v47  ;;  %v1038_v29 = vand.u32 65535, %v3529_v55 }
 0x109   : > { %vm1461_vm5 = vcmp.ne.s32.totalorder %v1003_v4, 0  ;;  %vm1497_vm6 = vcmp.lt.s32.totalorder %v1003_v4, 0  ;;  %v1569_v53 = vadd.s32 18, %v1003_v4  ;;  %v1039_v56 = vshrl.u32 %v3529_v55, 16 }
 0x10a   : > { %v2250_v28 = vrot.slane %v2248_v37, 6  ;;  %v2253_v10 = vrot.slane %v2251_v9, 7  ;;  %vm1533_vm7 = vmand %vm1497_vm6, %vm1461_vm5  ;;  %v1028_v5 = vadd.s32 %v1027_v60, %v1017_v46  ;;  %v311_v2 = vadd.f32 %v3219_v36, %v271_v33 }
 0x10b   : > { %v1605_v61 = vsel %vm1533_vm7, %v1569_v53, %v1003_v4  ;;  %v1041_v30 = vmul.u32 14564, %v1038_v29  ;;  %v1042_v41 = vmul.u32 58254, %v1038_v29  ;;  %v1810_v8 = vrot.slane %v3519_v12, 1 }
 0x10c   : > { %v2254_v22 = vor.u32 %v2253_v10, %v2250_v28  ;;  %vm1895_vm10 = vcmp.eq.s32.totalorder %v1605_v61, 16  ;;  %vm1967_vm8 = vcmp.eq.s32.totalorder %v1605_v61, 17  ;;  %v1029_v40 = vadd.s32 %v1028_v5, %v1019_v43 }
 0x10d   : > { %v1931_v39 = vsel %vm1895_vm10, %v1698_v21, %v3447_v54  ;;  %v1043_v35 = vmul.u32 14564, %v1039_v56  ;;  %v1045_v59 = vshll.u32 %v1042_v41, 16  ;;  %v1044_v23 = vmul.u32 58254, %v1039_v56 }
 0x10e   : > { %v2255_v25 = vsel %vm2945_vm11, %v2246_v15, %v2254_v22  ;;  %v2003_v14 = vsel %vm1967_vm8, %v1809_v7, %v1931_v39  ;;  %v1030_v44 = vshrl.u32 %v1029_v40, 4  ;;  %v3549_v3 = vmax.f32 %v311_v2, 0.0 }
 0x10f   : > { %2478 = vst [vmem:[%s2821_s21 + $0x54] sm:$0xf] %v2255_v25  ;;  %v2039_v36 = vpack.c.bf16 %v2003_v14, %v2003_v14  ;;  %v1047_v49 = vshll.u32 %v1043_v35, 16  ;;  %v1701_v27 = vrot.slane %v3519_v12, 7  ;;  %v2256_v52 = vrot.slane %v2254_v22, 4 }
 0x110   : > { %v1031_v54 = vmul.u32 18, %v1030_v44  ;;  %vm1049_vm9 = vc.u32 %v1041_v30, %v1045_v59  ;;  %v1051_v21 = vadd.s32 %v1045_v59, %v1041_v30  ;;  %v1046_v6 = vshrl.u32 %v1042_v41, 16 }
 0x111   : > { %v2258_v18 = vshrl.u32 %v2039_v36, 16  ;;  %v2261_v45 = vshll.u32 %v2039_v36, 16  ;;  %v1050_v17 = vsel %vm1049_vm9, 1, %v2777_v16  ;;  %v2711_v51 = vunpack.c.l.bf16 %v2744_v62 }
 0x112   : > { %v1032_v7 = vsub.s32 %v3494_v57, %v1031_v54  ;;  %v1052_v34 = vadd.s32 %v1050_v17, %v1044_v23  ;;  %vm1053_vm12 = vc.u32 %v1051_v21, %v1047_v49  ;;  %v1048_v0 = vshrl.u32 %v1043_v35, 16  ;;  %v3560_v57 = vld [vmem:[%s4009_s1] ss:$0 sm:$0xff] }
 0x113   : > { %v2260_v15 = vrot.slane %v2258_v18, 6  ;;  %v2263_v32 = vrot.slane %v2261_v45, 7  ;;  %v1054_v26 = vsel %vm1053_vm12, 1, %v2777_v16  ;;  %v1812_v19 = vrot.slane %v3549_v3, 1 }
 0x114   : > { %vm1462_vm13 = vcmp.ne.s32.totalorder %v1032_v7, 0  ;;  %vm1498_vm14 = vcmp.lt.s32.totalorder %v1032_v7, 0  ;;  %v1570_v24 = vadd.s32 18, %v1032_v7  ;;  %v1056_v47 = vadd.s32 %v1054_v26, %v1052_v34 }
 0x115   : > { %v2264_v20 = vor.u32 %v2263_v32, %v2260_v15  ;;  %vm1534_vm15 = vmand %vm1498_vm14, %vm1462_vm13  ;;  %v272_v46 = vmul.f32 %v3560_v57, %v2711_v51  ;;  %v3564_v4 = vadd.s32 184, %v2806_v1  ;;  %v1811_v48 = vsel %vm1766_vm3, %v1808_v38, %v1810_v8  ;;  %v3580_v38 = vld [vmem:[%s4010_s2] ss:$0 sm:$0xff] }
 0x116   : > { %v1606_v43 = vsel %vm1534_vm15, %v1570_v24, %v1032_v7  ;;  %v1057_v33 = vadd.s32 %v1056_v47, %v1046_v6  ;;  %v2712_v37 = vunpack.c.h.bf16 %v2744_v62  ;;  %v1702_v60 = vsel %vm1657_vm2, %v1699_v58, %v1701_v27 }
 0x117   : > { %v2265_v9 = vsel %vm2945_vm11, %v2256_v52, %v2264_v20  ;;  %vm1896_vm0 = vcmp.eq.s32.totalorder %v1606_v43, 16  ;;  %vm1968_vm4 = vcmp.eq.s32.totalorder %v1606_v43, 17  ;;  %v312_v28 = vadd.f32 %v3580_v38, %v272_v46 }
 0x118   : > { %2479 = vst [vmem:[%s2821_s21 + $0x58] sm:$0xf] %v2265_v9  ;;  %v1932_v29 = vsel %vm1896_vm0, %v3540_v13, %v3488_v50  ;;  %v1058_v53 = vadd.s32 %v1057_v33, %v1048_v0  ;;  %v1067_v10 = vand.u32 65535, %v3564_v4  ;;  %v1813_v56 = vsel %vm1766_vm3, %v1810_v8, %v1812_v19 }
 0x119   : > { %v2004_v5 = vsel %vm1968_vm4, %v1811_v48, %v1932_v29  ;;  %v1068_v58 = vshrl.u32 %v3564_v4, 16  ;;  %v1703_v61 = vrot.slane %v3549_v3, 7  ;;  %v273_v2 = vmul.f32 %v3560_v57, %v2712_v37 }
 0x11a   : > { %v2040_v50 = vpack.c.bf16 %v2004_v5, %v2004_v5  ;;  %v1059_v13 = vshrl.u32 %v1058_v53, 4  ;;  %v3591_v30 = vadd.s32 192, %v2806_v1  ;;  %v3593_v41 = vmax.f32 %v312_v28, 0.0 }
 0x11b   : > { %v1070_v22 = vmul.u32 14564, %v1067_v10  ;;  %v1071_v40 = vmul.u32 58254, %v1067_v10  ;;  %v1072_v39 = vmul.u32 14564, %v1068_v58  ;;  %v2266_v35 = vrot.slane %v2264_v20, 4  ;;  %v3614_v10 = vld [vmem:[%s2816_s18 + $0x68] sm:$0xff]  }
 0x11c   : > { %v2268_v59 = vshrl.u32 %v2040_v50, 16  ;;  %v2271_v25 = vshll.u32 %v2040_v50, 16  ;;  %v1060_v8 = vmul.u32 18, %v1059_v13  ;;  %v1073_v14 = vmul.u32 58254, %v1068_v58 }
 0x11d   : > { %v1074_v44 = vshll.u32 %v1071_v40, 16  ;;  %v1076_v23 = vshll.u32 %v1072_v39, 16  ;;  %v3598_v36 = vsel %vm1657_vm2, %v1701_v27, %v1703_v61  ;;  %v313_v54 = vadd.f32 %v3580_v38, %v273_v2 }
 0x11e   : > { %v2270_v49 = vrot.slane %v2268_v59, 6  ;;  %v2273_v62 = vrot.slane %v2271_v25, 7  ;;  %v1061_v52 = vsub.s32 %v3529_v55, %v1060_v8  ;;  %v1814_v18 = vrot.slane %v3593_v41, 1 }
 0x11f   : > { %vm1078_vm5 = vc.u32 %v1070_v22, %v1074_v44  ;;  %v1080_v21 = vadd.s32 %v1074_v44, %v1070_v22  ;;  %v1096_v45 = vand.u32 65535, %v3591_v30  ;;  %v1075_v27 = vshrl.u32 %v1071_v40, 16 }
 0x120   : > { %v2274_v6 = vor.u32 %v2273_v62, %v2270_v49  ;;  %vm1463_vm6 = vcmp.ne.s32.totalorder %v1061_v52, 0  ;;  %vm1499_vm7 = vcmp.lt.s32.totalorder %v1061_v52, 0  ;;  %v1571_v17 = vadd.s32 18, %v1061_v52 }
 0x121   : > { %vm1535_vm10 = vmand %vm1499_vm7, %vm1463_vm6  ;;  %v1079_v7 = vsel %vm1078_vm5, 1, %v2777_v16  ;;  %vm1082_vm8 = vc.u32 %v1080_v21, %v1076_v23  ;;  %v1097_v55 = vshrl.u32 %v3591_v30, 16  ;;  %v1099_v32 = vmul.u32 14564, %v1096_v45 }
 0x122   : > { %v2275_v34 = vsel %vm2945_vm11, %v2266_v35, %v2274_v6  ;;  %v1607_v51 = vsel %vm1535_vm10, %v1571_v17, %v1061_v52  ;;  %v1081_v15 = vadd.s32 %v1079_v7, %v1073_v14  ;;  %v1083_v0 = vsel %vm1082_vm8, 1, %v2777_v16 }
 0x123   : > { %2480 = vst [vmem:[%s2821_s21 + $0x5c] sm:$0xf] %v2275_v34  ;;  %vm1897_vm9 = vcmp.eq.s32.totalorder %v1607_v51, 16  ;;  %vm1969_vm12 = vcmp.eq.s32.totalorder %v1607_v51, 17  ;;  %v1100_v26 = vmul.u32 58254, %v1096_v45  ;;  %v1077_v47 = vshrl.u32 %v1072_v39, 16 }
 0x124   : > { %v1933_v24 = vsel %vm1897_vm9, %v1702_v60, %v3519_v12  ;;  %v1085_v20 = vadd.s32 %v1083_v0, %v1081_v15  ;;  %v1101_v46 = vmul.u32 14564, %v1097_v55  ;;  %v3611_v48 = vmax.f32 %v313_v54, 0.0 }
 0x125   : > { %v2005_v43 = vsel %vm1969_vm12, %v1813_v56, %v1933_v24  ;;  %v1102_v33 = vmul.u32 58254, %v1097_v55  ;;  %v1103_v37 = vshll.u32 %v1100_v26, 16  ;;  %v2276_v29 = vrot.slane %v2274_v6, 4 }
 0x126   : > { %v2041_v9 = vpack.c.bf16 %v2005_v43, %v2005_v43  ;;  %v1086_v53 = vadd.s32 %v1085_v20, %v1075_v27  ;;  %v1105_v28 = vshll.u32 %v1101_v46, 16  ;;  %v1104_v5 = vshrl.u32 %v1100_v26, 16 }
 0x127   : > { %vm1107_vm13 = vc.u32 %v1099_v32, %v1103_v37  ;;  %v1109_v58 = vadd.s32 %v1103_v37, %v1099_v32  ;;  %v1705_v50 = vrot.slane %v3593_v41, 7  ;;  %v1816_v22 = vrot.slane %v3611_v48, 1 }
 0x128   : > { %v2278_v12 = vshrl.u32 %v2041_v9, 16  ;;  %v2281_v60 = vshll.u32 %v2041_v9, 16  ;;  %v1087_v13 = vadd.s32 %v1086_v53, %v1077_v47  ;;  %v1108_v56 = vsel %vm1107_vm13, 1, %v2777_v16 }
 0x129   : > { %v1110_v2 = vadd.s32 %v1108_v56, %v1102_v33  ;;  %vm1111_vm14 = vc.u32 %v1109_v58, %v1105_v28  ;;  %v2715_v40 = vunpack.c.l.bf16 %v3614_v10  ;;  %v1106_v8 = vshrl.u32 %v1101_v46, 16 }
 0x12a   : > { %v2280_v39 = vrot.slane %v2278_v12, 6  ;;  %v2283_v35 = vrot.slane %v2281_v60, 7  ;;  %v1088_v59 = vshrl.u32 %v1087_v13, 4  ;;  %v1112_v25 = vsel %vm1111_vm14, 1, %v2777_v16 }
 0x12b   : > { %v1114_v14 = vadd.s32 %v1112_v25, %v1110_v2  ;;  %v274_v44 = vmul.f32 %v3560_v57, %v2715_v40  ;;  %v3623_v23 = vadd.s32 200, %v2806_v1  ;;  %v1815_v52 = vsel %vm1766_vm3, %v1812_v19, %v1814_v18 }
 0x12c   : > { %v3625_v49 = vor.u32 %v2283_v35, %v2280_v39  ;;  %v1089_v62 = vmul.u32 18, %v1088_v59  ;;  %v1706_v54 = vsel %vm1657_vm2, %v1703_v61, %v1705_v50  ;;  %v3638_v45 = vsel %vm1766_vm3, %v1814_v18, %v1816_v22 }
 0x12d   : > { %v1115_v21 = vadd.s32 %v1114_v14, %v1104_v5  ;;  %v1125_v6 = vand.u32 65535, %v3623_v23  ;;  %v1126_v17 = vshrl.u32 %v3623_v23, 16  ;;  %v314_v7 = vadd.f32 %v3580_v38, %v274_v44 }
 0x12e   : > { %v2285_v19 = vsel %vm2945_vm11, %v2276_v29, %v3625_v49  ;;  %v1090_v27 = vsub.s32 %v3564_v4, %v1089_v62  ;;  %v2716_v61 = vunpack.c.h.bf16 %v3614_v10  ;;  %v3650_v18 = vadd.s32 208, %v2806_v1 }
 0x12f   : > { %2481 = vst [vmem:[%s2821_s21 + $0x60] sm:$0xf] %v2285_v19  ;;  %v1116_v55 = vadd.s32 %v1115_v21, %v1106_v8  ;;  %v1128_v34 = vmul.u32 14564, %v1125_v6  ;;  %v1129_v51 = vmul.u32 58254, %v1125_v6  ;;  %v1130_v32 = vmul.u32 14564, %v1126_v17 }
 0x130   : > { %vm1464_vm15 = vcmp.ne.s32.totalorder %v1090_v27, 0  ;;  %vm1500_vm0 = vcmp.lt.s32.totalorder %v1090_v27, 0  ;;  %v1572_v15 = vadd.s32 18, %v1090_v27  ;;  %v2286_v0 = vrot.slane %v3625_v49, 4 }
 0x131   : > { %vm1536_vm4 = vmand %vm1500_vm0, %vm1464_vm15  ;;  %v1117_v26 = vshrl.u32 %v1116_v55, 4  ;;  %v1131_v4 = vmul.u32 58254, %v1126_v17  ;;  %v1132_v24 = vshll.u32 %v1129_v51, 16  ;;  %v3653_v20 = vmax.f32 %v314_v7, 0.0 }
 0x132   : > { %v1608_v47 = vsel %vm1536_vm4, %v1572_v15, %v1090_v27  ;;  %v1133_v46 = vshrl.u32 %v1129_v51, 16  ;;  %v1134_v43 = vshll.u32 %v1130_v32, 16  ;;  %v1135_v9 = vshrl.u32 %v1130_v32, 16  ;;  %v3673_v51 = vld [vmem:[%s2816_s18 + $0x70] sm:$0xff]  }
 0x133   : > { %vm1898_vm5 = vcmp.eq.s32.totalorder %v1608_v47, 16  ;;  %vm1970_vm6 = vcmp.eq.s32.totalorder %v1608_v47, 17  ;;  %v1118_v33 = vmul.u32 18, %v1117_v26  ;;  %vm1136_vm7 = vc.u32 %v1128_v34, %v1132_v24 }
 0x134   : > { %v1934_v37 = vsel %vm1898_vm5, %v3598_v36, %v3549_v3  ;;  %v1137_v29 = vsel %vm1136_vm7, 1, %v2777_v16  ;;  %v1138_v53 = vadd.s32 %v1132_v24, %v1128_v34  ;;  %v275_v58 = vmul.f32 %v3560_v57, %v2716_v61 }
 0x135   : > { %v2006_v28 = vsel %vm1970_vm6, %v1815_v52, %v1934_v37  ;;  %v1119_v10 = vsub.s32 %v3591_v30, %v1118_v33  ;;  %v1139_v5 = vadd.s32 %v1137_v29, %v1131_v4  ;;  %v1154_v60 = vand.u32 65535, %v3650_v18 }
 0x136   : > { %v2042_v12 = vpack.c.bf16 %v2006_v28, %v2006_v28  ;;  %vm1140_vm10 = vc.u32 %v1138_v53, %v1134_v43  ;;  %v1155_v13 = vshrl.u32 %v3650_v18, 16  ;;  %v315_v30 = vadd.f32 %v3580_v38, %v275_v58 }
 0x137   : > { %vm1465_vm8 = vcmp.ne.s32.totalorder %v1119_v10, 0  ;;  %vm1501_vm9 = vcmp.lt.s32.totalorder %v1119_v10, 0  ;;  %v1573_v56 = vadd.s32 18, %v1119_v10  ;;  %v1141_v3 = vsel %vm1140_vm10, 1, %v2777_v16 }
 0x138   : > { %v2288_v36 = vshrl.u32 %v2042_v12, 16  ;;  %v2291_v2 = vshll.u32 %v2042_v12, 16  ;;  %vm1537_vm12 = vmand %vm1501_vm9, %vm1465_vm8  ;;  %v1143_v40 = vadd.s32 %v1141_v3, %v1139_v5  ;;  %v1157_v35 = vmul.u32 14564, %v1154_v60 }
 0x139   : > { %v1609_v39 = vsel %vm1537_vm12, %v1573_v56, %v1119_v10  ;;  %v1158_v59 = vmul.u32 58254, %v1154_v60  ;;  %v1159_v25 = vmul.u32 14564, %v1155_v13  ;;  %v1707_v62 = vrot.slane %v3611_v48, 7 }
 0x13a   : > { %v2290_v8 = vrot.slane %v2288_v36, 6  ;;  %v2293_v14 = vrot.slane %v2291_v2, 7  ;;  %vm1899_vm13 = vcmp.eq.s32.totalorder %v1609_v39, 16  ;;  %vm1971_vm14 = vcmp.eq.s32.totalorder %v1609_v39, 17 }
 0x13b   : > { %v1935_v44 = vsel %vm1899_vm13, %v1706_v54, %v3593_v41  ;;  %v1144_v49 = vadd.s32 %v1143_v40, %v1133_v46  ;;  %v1160_v6 = vmul.u32 58254, %v1155_v13  ;;  %v1161_v17 = vshll.u32 %v1158_v59, 16 }
 0x13c   : > { %v2294_v52 = vor.u32 %v2293_v14, %v2290_v8  ;;  %v2007_v21 = vsel %vm1971_vm14, %v3638_v45, %v1935_v44  ;;  %v1818_v7 = vrot.slane %v3653_v20, 1  ;;  %v1163_v61 = vshll.u32 %v1159_v25, 16 }
 0x13d   : > { %v2043_v19 = vpack.c.bf16 %v2007_v21, %v2007_v21  ;;  %v1145_v27 = vadd.s32 %v1144_v49, %v1135_v9  ;;  %v3670_v34 = vmax.f32 %v315_v30, 0.0  ;;  %vm1165_vm15 = vc.u32 %v1157_v35, %v1161_v17 }
 0x13e   : > { %v2295_v55 = vsel %vm2945_vm11, %v2286_v0, %v2294_v52  ;;  %v1167_v54 = vadd.s32 %v1161_v17, %v1157_v35  ;;  %v1166_v26 = vsel %vm1165_vm15, 1, %v2777_v16  ;;  %v2296_v4 = vrot.slane %v2294_v52, 4 }
 0x13f   : > { %2482 = vst [vmem:[%s2821_s21 + $0x64] sm:$0xf] %v2295_v55  ;;  %v2298_v15 = vshrl.u32 %v2043_v19, 16  ;;  %v2301_v32 = vshll.u32 %v2043_v19, 16  ;;  %v1146_v45 = vshrl.u32 %v1145_v27, 4  ;;  %v1162_v24 = vshrl.u32 %v1158_v59, 16 }
 0x140   : > { %v1168_v47 = vadd.s32 %v1166_v26, %v1160_v6  ;;  %vm1169_vm0 = vc.u32 %v1167_v54, %v1163_v61  ;;  %v1164_v37 = vshrl.u32 %v1159_v25, 16  ;;  %v1709_v29 = vrot.slane %v3653_v20, 7 }
 0x141   : > { %v2300_v46 = vrot.slane %v2298_v15, 6  ;;  %v2303_v43 = vrot.slane %v2301_v32, 7  ;;  %v1147_v33 = vmul.u32 18, %v1146_v45  ;;  %v1170_v0 = vsel %vm1169_vm0, 1, %v2777_v16 }
 0x142   : > { %v1172_v9 = vadd.s32 %v1170_v0, %v1168_v47  ;;  %v2719_v53 = vunpack.c.l.bf16 %v3673_v51  ;;  %v1820_v5 = vrot.slane %v3670_v34, 1  ;;  %v3685_v58 = vadd.s32 216, %v2806_v1 }
 0x143   : > { %v3680_v28 = vor.u32 %v2303_v43, %v2300_v46  ;;  %v1148_v10 = vsub.s32 %v3623_v23, %v1147_v33  ;;  %v1708_v12 = vsel %vm1657_vm2, %v1705_v50, %v1707_v62  ;;  %v1819_v23 = vsel %vm1766_vm3, %v1816_v22, %v1818_v7 }
 0x144   : > { %v1173_v60 = vadd.s32 %v1172_v9, %v1162_v24  ;;  %v276_v13 = vmul.f32 %v3560_v57, %v2719_v53  ;;  %v1710_v41 = vsel %vm1657_vm2, %v1707_v62, %v1709_v29  ;;  %v1183_v50 = vand.u32 65535, %v3685_v58 }
 0x145   : > { %v2305_v56 = vsel %vm2945_vm11, %v2296_v4, %v3680_v28  ;;  %vm1466_vm4 = vcmp.ne.s32.totalorder %v1148_v10, 0  ;;  %vm1502_vm5 = vcmp.lt.s32.totalorder %v1148_v10, 0  ;;  %v1574_v3 = vadd.s32 18, %v1148_v10 }
 0x146   : > { %2483 = vst [vmem:[%s2821_s21 + $0x68] sm:$0xf] %v2305_v56  ;;  %vm1538_vm6 = vmand %vm1502_vm5, %vm1466_vm4  ;;  %v1174_v36 = vadd.s32 %v1173_v60, %v1164_v37  ;;  %v1821_v40 = vsel %vm1766_vm3, %v1818_v7, %v1820_v5  ;;  %v1184_v30 = vshrl.u32 %v3685_v58, 16  ;;  %v1711_v39 = vrot.slane %v3670_v34, 7 }
 0x147   : > { %v1610_v2 = vsel %vm1538_vm6, %v1574_v3, %v1148_v10  ;;  %v316_v22 = vadd.f32 %v3580_v38, %v276_v13  ;;  %v1186_v25 = vmul.u32 14564, %v1183_v50  ;;  %v1187_v8 = vmul.u32 58254, %v1183_v50 }
 0x148   : > { %vm1900_vm7 = vcmp.eq.s32.totalorder %v1610_v2, 16  ;;  %vm1972_vm10 = vcmp.eq.s32.totalorder %v1610_v2, 17  ;;  %v1175_v35 = vshrl.u32 %v1174_v36, 4  ;;  %v1188_v14 = vmul.u32 14564, %v1184_v30 }
 0x149   : > { %v1936_v59 = vsel %vm1900_vm7, %v1708_v12, %v3611_v48  ;;  %v2720_v62 = vunpack.c.h.bf16 %v3673_v51  ;;  %v3711_v52 = vadd.s32 224, %v2806_v1  ;;  %v1189_v6 = vmul.u32 58254, %v1184_v30 }
 0x14a   : > { %v2008_v44 = vsel %vm1972_vm10, %v1819_v23, %v1936_v59  ;;  %v1176_v49 = vmul.u32 18, %v1175_v35  ;;  %v1190_v17 = vshll.u32 %v1187_v8, 16  ;;  %v1192_v19 = vshll.u32 %v1188_v14, 16 }
 0x14b   : > { %v2044_v21 = vpack.c.bf16 %v2008_v44, %v2008_v44  ;;  %v2306_v27 = vrot.slane %v3680_v28, 4  ;;  %v3715_v61 = vmax.f32 %v316_v22, 0.0  ;;  %v1191_v48 = vshrl.u32 %v1187_v8, 16  ;;  %v3734_v22 = vld [vmem:[%s2816_s18 + $0x78] sm:$0xff]  }
 0x14c   : > { %v1177_v7 = vsub.s32 %v3650_v18, %v1176_v49  ;;  %vm1194_vm8 = vc.u32 %v1186_v25, %v1190_v17  ;;  %v1196_v15 = vadd.s32 %v1190_v17, %v1186_v25  ;;  %v1193_v18 = vshrl.u32 %v1188_v14, 16 }
 0x14d   : > { %v2308_v55 = vshrl.u32 %v2044_v21, 16  ;;  %v2311_v54 = vshll.u32 %v2044_v21, 16  ;;  %v1195_v32 = vsel %vm1194_vm8, 1, %v2777_v16  ;;  %v1212_v46 = vand.u32 65535, %v3711_v52 }
 0x14e   : > { %vm1467_vm9 = vcmp.ne.s32.totalorder %v1177_v7, 0  ;;  %vm1503_vm12 = vcmp.lt.s32.totalorder %v1177_v7, 0  ;;  %v1575_v51 = vadd.s32 18, %v1177_v7  ;;  %v1197_v4 = vadd.s32 %v1195_v32, %v1189_v6 }
 0x14f   : > { %v2310_v45 = vrot.slane %v2308_v55, 6  ;;  %v2313_v26 = vrot.slane %v2311_v54, 7  ;;  %vm1539_vm13 = vmand %vm1503_vm12, %vm1467_vm9  ;;  %vm1198_vm14 = vc.u32 %v1196_v15, %v1192_v19  ;;  %v277_v37 = vmul.f32 %v3560_v57, %v2720_v62 }
 0x150   : > { %v1611_v24 = vsel %vm1539_vm13, %v1575_v51, %v1177_v7  ;;  %v1199_v47 = vsel %vm1198_vm14, 1, %v2777_v16  ;;  %v1213_v9 = vshrl.u32 %v3711_v52, 16  ;;  %v1216_v53 = vmul.u32 58254, %v1212_v46 }
 0x151   : > { %v2314_v43 = vor.u32 %v2313_v26, %v2310_v45  ;;  %vm1901_vm15 = vcmp.eq.s32.totalorder %v1611_v24, 16  ;;  %vm1973_vm0 = vcmp.eq.s32.totalorder %v1611_v24, 17  ;;  %v1201_v33 = vadd.s32 %v1199_v47, %v1197_v4 }
 0x152   : > { %v1937_v0 = vsel %vm1901_vm15, %v1710_v41, %v3653_v20  ;;  %v1215_v60 = vmul.u32 14564, %v1212_v46  ;;  %v1217_v56 = vmul.u32 14564, %v1213_v9  ;;  %v1219_v3 = vshll.u32 %v1216_v53, 16 }
 0x153   : > { %v2315_v28 = vsel %vm2945_vm11, %v2306_v27, %v2314_v43  ;;  %v2009_v10 = vsel %vm1973_vm0, %v1821_v40, %v1937_v0  ;;  %v1202_v12 = vadd.s32 %v1201_v33, %v1191_v48  ;;  %v1712_v36 = vsel %vm1657_vm2, %v1709_v29, %v1711_v39 }
 0x154   : > { %2484 = vst [vmem:[%s2821_s21 + $0x6c] sm:$0xf] %v2315_v28  ;;  %v2045_v13 = vpack.c.bf16 %v2009_v10, %v2009_v10  ;;  %v1822_v41 = vrot.slane %v3715_v61, 1  ;;  %v1218_v50 = vmul.u32 58254, %v1213_v9  ;;  %v317_v40 = vadd.f32 %v3580_v38, %v277_v37 }
 0x155   : > { %v1203_v23 = vadd.s32 %v1202_v12, %v1193_v18  ;;  %v1221_v35 = vshll.u32 %v1217_v56, 16  ;;  %v2316_v59 = vrot.slane %v2314_v43, 4  ;;  %vm1223_vm4 = vc.u32 %v1215_v60, %v1219_v3 }
 0x156   : > { %v2318_v2 = vshrl.u32 %v2045_v13, 16  ;;  %v2321_v30 = vshll.u32 %v2045_v13, 16  ;;  %v1225_v8 = vadd.s32 %v1219_v3, %v1215_v60  ;;  %v1220_v49 = vshrl.u32 %v1216_v53, 16 }
 0x157   : > { %v1204_v25 = vshrl.u32 %v1203_v23, 4  ;;  %v1224_v20 = vsel %vm1223_vm4, 1, %v2777_v16  ;;  %v2723_v21 = vunpack.c.l.bf16 %v3734_v22  ;;  %v3740_v17 = vmax.f32 %v317_v40, 0.0 }
 0x158   : > { %v2320_v14 = vrot.slane %v2318_v2, 6  ;;  %v2323_v44 = vrot.slane %v2321_v30, 7  ;;  %v1226_v62 = vadd.s32 %v1224_v20, %v1218_v50  ;;  %vm1227_vm5 = vc.u32 %v1225_v8, %v1221_v35 }
 0x159   : > { %v1205_v29 = vmul.u32 18, %v1204_v25  ;;  %v1228_v19 = vsel %vm1227_vm5, 1, %v2777_v16  ;;  %v3744_v27 = vadd.s32 232, %v2806_v1  ;;  %v1222_v48 = vshrl.u32 %v1217_v56, 16 }
 0x15a   : > { %v3738_v6 = vor.u32 %v2323_v44, %v2320_v14  ;;  %v1230_v55 = vadd.s32 %v1228_v19, %v1226_v62  ;;  %v278_v54 = vmul.f32 %v3560_v57, %v2723_v21  ;;  %v1713_v51 = vrot.slane %v3715_v61, 7 }
 0x15b   : > { %v1206_v7 = vsub.s32 %v3685_v58, %v1205_v29  ;;  %v1241_v32 = vand.u32 65535, %v3744_v27  ;;  %v1242_v45 = vshrl.u32 %v3744_v27, 16  ;;  %v1823_v58 = vsel %vm1766_vm3, %v1820_v5, %v1822_v41 }
 0x15c   : > { %v2325_v15 = vsel %vm2945_vm11, %v2316_v59, %v3738_v6  ;;  %v1231_v4 = vadd.s32 %v1230_v55, %v1220_v49  ;;  %v1824_v33 = vrot.slane %v3740_v17, 1  ;;  %v318_v0 = vadd.f32 %v3580_v38, %v278_v54 }
 0x15d   : > { %2485 = vst [vmem:[%s2821_s21 + $0x70] sm:$0xf] %v2325_v15  ;;  %vm1468_vm6 = vcmp.ne.s32.totalorder %v1206_v7, 0  ;;  %vm1504_vm7 = vcmp.lt.s32.totalorder %v1206_v7, 0  ;;  %v1576_v26 = vadd.s32 18, %v1206_v7  ;;  %v1244_v24 = vmul.u32 14564, %v1241_v32 }
 0x15e   : > { %vm1540_vm10 = vmand %vm1504_vm7, %vm1468_vm6  ;;  %v1245_v18 = vmul.u32 58254, %v1241_v32  ;;  %v1246_v47 = vmul.u32 14564, %v1242_v45  ;;  %v1232_v43 = vadd.s32 %v1231_v4, %v1222_v48  ;;  %v1247_v37 = vmul.u32 58254, %v1242_v45 }
 0x15f   : > { %v1612_v46 = vsel %vm1540_vm10, %v1576_v26, %v1206_v7  ;;  %v1714_v5 = vsel %vm1657_vm2, %v1711_v39, %v1713_v51  ;;  %v2724_v13 = vunpack.c.h.bf16 %v3734_v22  ;;  %v3769_v23 = vmax.f32 %v318_v0, 0.0 }
 0x160   : > { %vm1902_vm8 = vcmp.eq.s32.totalorder %v1612_v46, 16  ;;  %vm1974_vm9 = vcmp.eq.s32.totalorder %v1612_v46, 17  ;;  %v1248_v9 = vshll.u32 %v1245_v18, 16  ;;  %v1233_v28 = vshrl.u32 %v1232_v43, 4 }
 0x161   : > { %v1938_v53 = vsel %vm1902_vm8, %v1712_v36, %v3670_v34  ;;  %v1250_v10 = vshll.u32 %v1246_v47, 16  ;;  %v1249_v36 = vshrl.u32 %v1245_v18, 16  ;;  %v3773_v30 = vadd.s32 240, %v2806_v1 }
 0x162   : > { %v2010_v12 = vsel %vm1974_vm9, %v1823_v58, %v1938_v53  ;;  %vm1252_vm12 = vc.u32 %v1244_v24, %v1248_v9  ;;  %v1254_v60 = vadd.s32 %v1248_v9, %v1244_v24  ;;  %v1234_v3 = vmul.u32 18, %v1233_v28  ;;  %v3793_v58 = vld [vmem:[%s2816_s18 + $0x80] sm:$0xff]  }
 0x163   : > { %v2046_v56 = vpack.c.bf16 %v2010_v12, %v2010_v12  ;;  %v1253_v50 = vsel %vm1252_vm12, 1, %v2777_v16  ;;  %v2326_v22 = vrot.slane %v3738_v6, 4  ;;  %v1251_v59 = vshrl.u32 %v1246_v47, 16 }
 0x164   : > { %v1255_v2 = vadd.s32 %v1253_v50, %v1247_v37  ;;  %vm1256_vm13 = vc.u32 %v1254_v60, %v1250_v10  ;;  %v1235_v40 = vsub.s32 %v3711_v52, %v1234_v3  ;;  %v1270_v8 = vand.u32 65535, %v3773_v30 }
 0x165   : > { %v2328_v34 = vshrl.u32 %v2046_v56, 16  ;;  %v2331_v39 = vshll.u32 %v2046_v56, 16  ;;  %v1257_v35 = vsel %vm1256_vm13, 1, %v2777_v16  ;;  %v1825_v20 = vsel %vm1766_vm3, %v1822_v41, %v1824_v33 }
 0x166   : > { %v1259_v25 = vadd.s32 %v1257_v35, %v1255_v2  ;;  %vm1469_vm14 = vcmp.ne.s32.totalorder %v1235_v40, 0  ;;  %vm1505_vm15 = vcmp.lt.s32.totalorder %v1235_v40, 0  ;;  %v1577_v49 = vadd.s32 18, %v1235_v40 }
 0x167   : > { %v2330_v14 = vrot.slane %v2328_v34, 6  ;;  %v2333_v44 = vrot.slane %v2331_v39, 7  ;;  %vm1541_vm0 = vmand %vm1505_vm15, %vm1469_vm14  ;;  %v1271_v29 = vshrl.u32 %v3773_v30, 16  ;;  %v1715_v21 = vrot.slane %v3740_v17, 7 }
 0x168   : > { %v1260_v52 = vadd.s32 %v1259_v25, %v1249_v36  ;;  %v1826_v6 = vrot.slane %v3769_v23, 1  ;;  %v1274_v19 = vmul.u32 58254, %v1270_v8  ;;  %v1613_v7 = vsel %vm1541_vm0, %v1577_v49, %v1235_v40 }
 0x169   : > { %v2334_v62 = vor.u32 %v2333_v44, %v2330_v14  ;;  %v1273_v55 = vmul.u32 14564, %v1270_v8  ;;  %v3785_v54 = vmul.u32 14564, %v1271_v29  ;;  %vm1903_vm4 = vcmp.eq.s32.totalorder %v1613_v7, 16 }
 0x16a   : > { %v1261_v48 = vadd.s32 %v1260_v52, %v1251_v59  ;;  %vm1975_vm5 = vcmp.eq.s32.totalorder %v1613_v7, 17  ;;  %v279_v41 = vmul.f32 %v3560_v57, %v2724_v13  ;;  %v1939_v32 = vsel %vm1903_vm4, %v1714_v5, %v3715_v61 }
 0x16b   : > { %v2335_v15 = vsel %vm2945_vm11, %v2326_v22, %v2334_v62  ;;  %v1276_v26 = vmul.u32 58254, %v1271_v29  ;;  %v1277_v4 = vshll.u32 %v1274_v19, 16  ;;  %v2011_v24 = vsel %vm1975_vm5, %v1825_v20, %v1939_v32 }
 0x16c   : > { %2486 = vst [vmem:[%s2821_s21 + $0x74] sm:$0xf] %v2335_v15  ;;  %v1262_v45 = vshrl.u32 %v1261_v48, 4  ;;  %v1716_v18 = vsel %vm1657_vm2, %v1713_v51, %v1715_v21  ;;  %v1827_v47 = vsel %vm1766_vm3, %v1824_v33, %v1826_v6  ;;  %v1279_v46 = vshll.u32 %v3785_v54, 16 }
 0x16d   : > { %v2047_v43 = vpack.c.bf16 %v2011_v24, %v2011_v24  ;;  %vm1281_vm6 = vc.u32 %v1273_v55, %v1277_v4  ;;  %v1283_v37 = vadd.s32 %v1277_v4, %v1273_v55  ;;  %v319_v9 = vadd.f32 %v3580_v38, %v279_v41 }
 0x16e   : > { %v1263_v0 = vmul.u32 18, %v1262_v45  ;;  %v1282_v53 = vsel %vm1281_vm6, 1, %v2777_v16  ;;  %v2727_v28 = vunpack.c.l.bf16 %v3793_v58  ;;  %v3808_v61 = vadd.s32 248, %v2806_v1 }
 0x16f   : > { %v2338_v51 = vshrl.u32 %v2047_v43, 16  ;;  %v2341_v5 = vshll.u32 %v2047_v43, 16  ;;  %v1284_v33 = vadd.s32 %v1282_v53, %v1276_v26  ;;  %v2336_v12 = vrot.slane %v2334_v62, 4 }
 0x170   : > { %v1264_v10 = vsub.s32 %v3744_v27, %v1263_v0  ;;  %vm1285_vm7 = vc.u32 %v1283_v37, %v1279_v46  ;;  %v280_v60 = vmul.f32 %v3560_v57, %v2727_v28  ;;  %v1299_v13 = vand.u32 65535, %v3808_v61 }
 0x171   : > { %v2340_v56 = vrot.slane %v2338_v51, 6  ;;  %v2343_v3 = vrot.slane %v2341_v5, 7  ;;  %v1278_v36 = vshrl.u32 %v1274_v19, 16  ;;  %v1286_v2 = vsel %vm1285_vm7, 1, %v2777_v16 }
 0x172   : > { %vm1470_vm10 = vcmp.ne.s32.totalorder %v1264_v10, 0  ;;  %vm1506_vm8 = vcmp.lt.s32.totalorder %v1264_v10, 0  ;;  %v1578_v50 = vadd.s32 18, %v1264_v10  ;;  %v1300_v34 = vshrl.u32 %v3808_v61, 16 }
 0x173   : > { %vm1542_vm9 = vmand %vm1506_vm8, %vm1470_vm10  ;;  %v2344_v27 = vor.u32 %v2343_v3, %v2340_v56  ;;  %v3815_v39 = vmax.f32 %v319_v9, 0.0  ;;  %v1288_v40 = vadd.s32 %v1286_v2, %v1284_v33  ;;  %v1303_v35 = vmul.u32 58254, %v1299_v13 }
 0x174   : > { %v1614_v22 = vsel %vm1542_vm9, %v1578_v50, %v1264_v10  ;;  %v1280_v59 = vshrl.u32 %v3785_v54, 16  ;;  %v1302_v25 = vmul.u32 14564, %v1299_v13  ;;  %v1304_v8 = vmul.u32 14564, %v1300_v34 }
 0x175   : > { %v2345_v14 = vsel %vm2945_vm11, %v2336_v12, %v2344_v27  ;;  %vm1904_vm12 = vcmp.eq.s32.totalorder %v1614_v22, 16  ;;  %vm1976_vm13 = vcmp.eq.s32.totalorder %v1614_v22, 17  ;;  %v320_v44 = vadd.f32 %v3580_v38, %v280_v60 }
 0x176   : > { %2487 = vst [vmem:[%s2821_s21 + $0x78] sm:$0xf] %v2345_v14  ;;  %v1940_v49 = vsel %vm1904_vm12, %v1716_v18, %v3740_v17  ;;  %v1289_v20 = vadd.s32 %v1288_v40, %v1278_v36  ;;  %v1305_v52 = vmul.u32 58254, %v1300_v34  ;;  %v1306_v29 = vshll.u32 %v1303_v35, 16 }
 0x177   : > { %v2012_v62 = vsel %vm1976_vm13, %v1827_v47, %v1940_v49  ;;  %v1717_v19 = vrot.slane %v3769_v23, 7  ;;  %v1828_v7 = vrot.slane %v3815_v39, 1  ;;  %v1308_v48 = vshll.u32 %v1304_v8, 16  ;;  %v3860_v49 = vld [vmem:[%s2816_s18 + $0x88] sm:$0xff]  }
 0x178   : > { %v2048_v55 = vpack.c.bf16 %v2012_v62, %v2012_v62  ;;  %v1290_v54 = vadd.s32 %v1289_v20, %v1280_v59  ;;  %vm1310_vm14 = vc.u32 %v1302_v25, %v1306_v29  ;;  %v1312_v15 = vadd.s32 %v1306_v29, %v1302_v25 }
 0x179   : > { %v2346_v41 = vrot.slane %v2344_v27, 4  ;;  %v3825_v32 = vmax.f32 %v320_v44, 0.0  ;;  %v1307_v45 = vshrl.u32 %v1303_v35, 16  ;;  %v1311_v26 = vsel %vm1310_vm14, 1, %v2777_v16 }
 0x17a   : > { %v2348_v4 = vshrl.u32 %v2048_v55, 16  ;;  %v2351_v24 = vshll.u32 %v2048_v55, 16  ;;  %v1291_v18 = vshrl.u32 %v1290_v54, 4  ;;  %v1313_v46 = vadd.s32 %v1311_v26, %v1305_v52 }
 0x17b   : > { %v1309_v47 = vshrl.u32 %v1304_v8, 16  ;;  %vm1314_vm15 = vc.u32 %v1312_v15, %v1308_v48  ;;  %v2728_v43 = vunpack.c.h.bf16 %v3793_v58  ;;  %v3830_v0 = vadd.s32 256, %v2806_v1 }
 0x17c   : > { %v2350_v37 = vrot.slane %v2348_v4, 6  ;;  %v2353_v9 = vrot.slane %v2351_v24, 7  ;;  %v1292_v53 = vmul.u32 18, %v1291_v18  ;;  %v1315_v28 = vsel %vm1314_vm15, 1, %v2777_v16 }
 0x17d   : > { %v1317_v51 = vadd.s32 %v1315_v28, %v1313_v46  ;;  %v1719_v5 = vrot.slane %v3815_v39, 7  ;;  %v1328_v10 = vand.u32 65535, %v3830_v0  ;;  %v1329_v33 = vshrl.u32 %v3830_v0, 16 }
 0x17e   : > { %v3836_v12 = vor.u32 %v2353_v9, %v2350_v37  ;;  %v1293_v58 = vsub.s32 %v3773_v30, %v1292_v53  ;;  %v1718_v60 = vsel %vm1657_vm2, %v1715_v21, %v1717_v19  ;;  %v1830_v13 = vrot.slane %v3825_v32, 1 }
 0x17f   : > { %v1318_v56 = vadd.s32 %v1317_v51, %v1307_v45  ;;  %v281_v3 = vmul.f32 %v3560_v57, %v2728_v43  ;;  %v1331_v50 = vmul.u32 14564, %v1328_v10  ;;  %v1332_v36 = vmul.u32 58254, %v1328_v10 }
 0x180   : > { %v2355_v2 = vsel %vm2945_vm11, %v2346_v41, %v3836_v12  ;;  %vm1471_vm0 = vcmp.ne.s32.totalorder %v1293_v58, 0  ;;  %vm1507_vm4 = vcmp.lt.s32.totalorder %v1293_v58, 0  ;;  %v1579_v34 = vadd.s32 18, %v1293_v58 }
 0x181   : > { %2488 = vst [vmem:[%s2821_s21 + $0x7c] sm:$0xf] %v2355_v2  ;;  %vm1543_vm5 = vmand %vm1507_vm4, %vm1471_vm0  ;;  %v1829_v17 = vsel %vm1766_vm3, %v1826_v6, %v1828_v7  ;;  %v1319_v30 = vadd.s32 %v1318_v56, %v1309_v47  ;;  %v1720_v21 = vsel %vm1657_vm2, %v1717_v19, %v1719_v5  ;;  %v1333_v27 = vmul.u32 14564, %v1329_v33 }
 0x182   : > { %v1615_v40 = vsel %vm1543_vm5, %v1579_v34, %v1293_v58  ;;  %v1831_v35 = vsel %vm1766_vm3, %v1828_v7, %v1830_v13  ;;  %v1334_v22 = vmul.u32 58254, %v1329_v33  ;;  %v1335_v59 = vshll.u32 %v1332_v36, 16 }
 0x183   : > { %vm1905_vm6 = vcmp.eq.s32.totalorder %v1615_v40, 16  ;;  %vm1977_vm7 = vcmp.eq.s32.totalorder %v1615_v40, 17  ;;  %v1320_v25 = vshrl.u32 %v1319_v30, 4  ;;  %v1337_v8 = vshll.u32 %v1333_v27, 16 }
 0x184   : > { %v1941_v6 = vsel %vm1905_vm6, %v1718_v60, %v3769_v23  ;;  %v321_v14 = vadd.f32 %v3580_v38, %v281_v3  ;;  %vm1339_vm10 = vc.u32 %v1331_v50, %v1335_v59  ;;  %v1341_v44 = vadd.s32 %v1335_v59, %v1331_v50 }
 0x185   : > { %v2013_v20 = vsel %vm1977_vm7, %v1829_v17, %v1941_v6  ;;  %v1321_v52 = vmul.u32 18, %v1320_v25  ;;  %v1340_v29 = vsel %vm1339_vm10, 1, %v2777_v16  ;;  %v1721_v62 = vrot.slane %v3825_v32, 7 }
 0x186   : > { %v2049_v19 = vpack.c.bf16 %v2013_v20, %v2013_v20  ;;  %v1336_v7 = vshrl.u32 %v1332_v36, 16  ;;  %v1342_v48 = vadd.s32 %v1340_v29, %v1334_v22  ;;  %vm1343_vm8 = vc.u32 %v1341_v44, %v1337_v8 }
 0x187   : > { %v1322_v55 = vsub.s32 %v3808_v61, %v1321_v52  ;;  %v1338_v54 = vshrl.u32 %v1333_v27, 16  ;;  %v1344_v23 = vsel %vm1343_vm8, 1, %v2777_v16  ;;  %v2731_v15 = vunpack.c.l.bf16 %v3860_v49 }
 0x188   : > { %v2358_v41 = vshrl.u32 %v2049_v19, 16  ;;  %v2361_v45 = vshll.u32 %v2049_v19, 16  ;;  %v1346_v26 = vadd.s32 %v1344_v23, %v1342_v48  ;;  %v3868_v4 = vadd.s32 264, %v2806_v1 }
 0x189   : > { %v2356_v24 = vrot.slane %v3836_v12, 4  ;;  %vm1472_vm9 = vcmp.ne.s32.totalorder %v1322_v55, 0  ;;  %vm1508_vm12 = vcmp.lt.s32.totalorder %v1322_v55, 0  ;;  %v1580_v18 = vadd.s32 18, %v1322_v55 }
 0x18a   : > { %v2360_v46 = vrot.slane %v2358_v41, 6  ;;  %v2363_v47 = vrot.slane %v2361_v45, 7  ;;  %vm1544_vm13 = vmand %vm1508_vm12, %vm1472_vm9  ;;  %v1347_v61 = vadd.s32 %v1346_v26, %v1336_v7  ;;  %v1357_v43 = vand.u32 65535, %v3868_v4 }
 0x18b   : > { %v1616_v37 = vsel %vm1544_vm13, %v1580_v18, %v1322_v55  ;;  %v3872_v9 = vmax.f32 %v321_v14, 0.0  ;;  %v282_v53 = vmul.f32 %v3560_v57, %v2731_v15  ;;  %v1358_v28 = vshrl.u32 %v3868_v4, 16 }
 0x18c   : > { %v2364_v51 = vor.u32 %v2363_v47, %v2360_v46  ;;  %vm1906_vm14 = vcmp.eq.s32.totalorder %v1616_v37, 16  ;;  %vm1978_vm15 = vcmp.eq.s32.totalorder %v1616_v37, 17  ;;  %v1348_v10 = vadd.s32 %v1347_v61, %v1338_v54 }
 0x18d   : > { %v1942_v33 = vsel %vm1906_vm14, %v1720_v21, %v3815_v39  ;;  %v1360_v12 = vmul.u32 14564, %v1357_v43  ;;  %v1361_v58 = vmul.u32 58254, %v1357_v43  ;;  %v1362_v60 = vmul.u32 14564, %v1358_v28 }
 0x18e   : > { %v2365_v56 = vsel %vm2945_vm11, %v2356_v24, %v2364_v51  ;;  %v2014_v3 = vsel %vm1978_vm15, %v1831_v35, %v1942_v33  ;;  %v1349_v50 = vshrl.u32 %v1348_v10, 4  ;;  %v1722_v57 = vsel %vm1657_vm2, %v1719_v5, %v1721_v62 }
 0x18f   : > { %2489 = vst [vmem:[%s2821_s21 + $0x80] sm:$0xf] %v2365_v56  ;;  %v2050_v36 = vpack.c.bf16 %v2014_v3, %v2014_v3  ;;  %v1832_v2 = vrot.slane %v3872_v9, 1  ;;  %v1363_v34 = vmul.u32 58254, %v1358_v28  ;;  %v1364_v17 = vshll.u32 %v1361_v58, 16 }
 0x190   : > { %v1350_v30 = vmul.u32 18, %v1349_v50  ;;  %v322_v21 = vadd.f32 %v3580_v38, %v282_v53  ;;  %v1366_v27 = vshll.u32 %v1362_v60, 16  ;;  %v1723_v40 = vrot.slane %v3872_v9, 7  ;;  %v2768_v56 = vld [vmem:[%s4010_s2] ss:$0 sm:$0xff] }
 0x191   : > { %v2368_v35 = vshrl.u32 %v2050_v36, 16  ;;  %v2371_v22 = vshll.u32 %v2050_v36, 16  ;;  %vm1368_vm0 = vc.u32 %v1360_v12, %v1364_v17  ;;  %v1370_v59 = vadd.s32 %v1364_v17, %v1360_v12 }
 0x192   : > { %v2366_v25 = vrot.slane %v2364_v51, 4  ;;  %v1351_v39 = vsub.s32 %v3830_v0, %v1350_v30  ;;  %v1365_v5 = vshrl.u32 %v1361_v58, 16  ;;  %v1369_v8 = vsel %vm1368_vm0, 1, %v2777_v16 }
 0x193   : > { %v2370_v6 = vrot.slane %v2368_v35, 6  ;;  %v2373_v14 = vrot.slane %v2371_v22, 7  ;;  %v1371_v44 = vadd.s32 %v1369_v8, %v1363_v34  ;;  %vm1372_vm4 = vc.u32 %v1370_v59, %v1366_v27 }
 0x194   : > { %vm1473_vm5 = vcmp.ne.s32.totalorder %v1351_v39, 0  ;;  %vm1509_vm6 = vcmp.lt.s32.totalorder %v1351_v39, 0  ;;  %v1581_v38 = vadd.s32 18, %v1351_v39  ;;  %v1373_v20 = vsel %vm1372_vm4, 1, %v2777_v16 }
 0x195   : > { %v2374_v52 = vor.u32 %v2373_v14, %v2370_v6  ;;  %vm1545_vm7 = vmand %vm1509_vm6, %vm1473_vm5  ;;  %v2732_v29 = vunpack.c.h.bf16 %v3860_v49  ;;  %v3892_v19 = vmax.f32 %v322_v21, 0.0  ;;  %v1375_v0 = vadd.s32 %v1373_v20, %v1371_v44 }
 0x196   : > { %v1617_v7 = vsel %vm1545_vm7, %v1581_v38, %v1351_v39  ;;  %v1833_v48 = vsel %vm1766_vm3, %v1830_v13, %v1832_v2  ;;  %v1367_v55 = vshrl.u32 %v1362_v60, 16  ;;  %v3898_v54 = vadd.s32 272, %v2806_v1 }
 0x197   : > { %v2375_v23 = vsel %vm2945_vm11, %v2366_v25, %v2374_v52  ;;  %vm1907_vm10 = vcmp.eq.s32.totalorder %v1617_v7, 16  ;;  %vm1979_vm8 = vcmp.eq.s32.totalorder %v1617_v7, 17  ;;  %v3903_v15 = vadd.s32 280, %v2806_v1  ;;  %v2767_v1 = vld [vmem:[%s4009_s1] ss:$0 sm:$0xff] }
 0x198   : > { %2490 = vst [vmem:[%s2821_s21 + $0x84] sm:$0xf] %v2375_v23  ;;  %v1943_v49 = vsel %vm1907_vm10, %v1722_v57, %v3825_v32  ;;  %v1376_v41 = vadd.s32 %v1375_v0, %v1365_v5  ;;  %v1724_v13 = vsel %vm1657_vm2, %v1721_v62, %v1723_v40  ;;  %v1386_v45 = vand.u32 65535, %v3898_v54 }
 0x199   : > { %v2015_v26 = vsel %vm1979_vm8, %v1833_v48, %v1943_v49  ;;  %v1834_v24 = vrot.slane %v3892_v19, 1  ;;  %v283_v18 = vmul.f32 %v2767_v1, %v2732_v29  ;;  %v1387_v46 = vshrl.u32 %v3898_v54, 16 }
 0x19a   : > { %v2051_v47 = vpack.c.bf16 %v2015_v26, %v2015_v26  ;;  %v1377_v61 = vadd.s32 %v1376_v41, %v1367_v55  ;;  %v1389_v43 = vmul.u32 14564, %v1386_v45  ;;  %v1390_v37 = vmul.u32 58254, %v1386_v45 }
 0x19b   : > { %v1391_v53 = vmul.u32 14564, %v1387_v46  ;;  %v1392_v32 = vmul.u32 58254, %v1387_v46  ;;  %v1415_v62 = vand.u32 65535, %v3903_v15  ;;  %v1416_v28 = vshrl.u32 %v3903_v15, 16 }
 0x19c   : > { %v2378_v51 = vshrl.u32 %v2051_v47, 16  ;;  %v2381_v10 = vshll.u32 %v2051_v47, 16  ;;  %v1378_v33 = vshrl.u32 %v1377_v61, 4  ;;  %v1393_v12 = vshll.u32 %v1390_v37, 16 }
 0x19d   : > { %v2376_v58 = vrot.slane %v2374_v52, 4  ;;  %v1835_v60 = vsel %vm1766_vm3, %v1832_v2, %v1834_v24  ;;  %v323_v3 = vadd.f32 %v2768_v56, %v283_v18  ;;  %v1395_v50 = vshll.u32 %v1391_v53, 16 }
 0x19e   : > { %v2380_v57 = vrot.slane %v2378_v51, 6  ;;  %v2383_v36 = vrot.slane %v2381_v10, 7  ;;  %v1379_v34 = vmul.u32 18, %v1378_v33  ;;  %vm1397_vm9 = vc.u32 %v1389_v43, %v1393_v12 }
 0x19f   : > { %v1398_v17 = vsel %vm1397_vm9, 1, %v2777_v16  ;;  %v1399_v30 = vadd.s32 %v1393_v12, %v1389_v43  ;;  %v1418_v21 = vmul.u32 14564, %v1415_v62  ;;  %v1419_v27 = vmul.u32 58254, %v1415_v62 }
 0x1a0   : > { %v3927_v35 = vor.u32 %v2383_v36, %v2380_v57  ;;  %v1380_v2 = vsub.s32 %v3868_v4, %v1379_v34  ;;  %v1400_v22 = vadd.s32 %v1398_v17, %v1392_v32  ;;  %v1420_v59 = vmul.u32 14564, %v1416_v28 }
 0x1a1   : > { %v1394_v25 = vshrl.u32 %v1390_v37, 16  ;;  %vm1401_vm12 = vc.u32 %v1399_v30, %v1395_v50  ;;  %v1421_v39 = vmul.u32 58254, %v1416_v28  ;;  %v1422_v5 = vshll.u32 %v1419_v27, 16 }
 0x1a2   : > { %v2385_v8 = vsel %vm2945_vm11, %v2376_v58, %v3927_v35  ;;  %vm1474_vm13 = vcmp.ne.s32.totalorder %v1380_v2, 0  ;;  %vm1510_vm14 = vcmp.lt.s32.totalorder %v1380_v2, 0  ;;  %v1582_v6 = vadd.s32 18, %v1380_v2 }
 0x1a3   : > { %2491 = vst [vmem:[%s2821_s21 + $0x88] sm:$0xf] %v2385_v8  ;;  %vm1546_vm15 = vmand %vm1510_vm14, %vm1474_vm13  ;;  %v3934_v14 = vmax.f32 %v323_v3, 0.0  ;;  %v1396_v44 = vshrl.u32 %v1391_v53, 16  ;;  %v1402_v4 = vsel %vm1401_vm12, 1, %v2777_v16  ;;  %v1424_v38 = vshll.u32 %v1420_v59, 16 }
 0x1a4   : > { %v1618_v20 = vsel %vm1546_vm15, %v1582_v6, %v1380_v2  ;;  %v1404_v52 = vadd.s32 %v1402_v4, %v1400_v22  ;;  %vm1426_vm0 = vc.u32 %v1418_v21, %v1422_v5  ;;  %v1428_v29 = vadd.s32 %v1422_v5, %v1418_v21 }
 0x1a5   : > { %vm1908_vm4 = vcmp.eq.s32.totalorder %v1618_v20, 16  ;;  %vm1980_vm5 = vcmp.eq.s32.totalorder %v1618_v20, 17  ;;  %v1423_v0 = vshrl.u32 %v1419_v27, 16  ;;  %v1427_v7 = vsel %vm1426_vm0, 1, %v2777_v16 }
 0x1a6   : > { %v1944_v48 = vsel %vm1908_vm4, %v1724_v13, %v3872_v9  ;;  %v1405_v55 = vadd.s32 %v1404_v52, %v1394_v25  ;;  %v1429_v23 = vadd.s32 %v1427_v7, %v1421_v39  ;;  %vm1430_vm6 = vc.u32 %v1428_v29, %v1424_v38 }
 0x1a7   : > { %v2016_v49 = vsel %vm1980_vm5, %v1835_v60, %v1944_v48  ;;  %v1425_v41 = vshrl.u32 %v1420_v59, 16  ;;  %v1431_v45 = vsel %vm1430_vm6, 1, %v2777_v16  ;;  %v2499_v46 = vunpack.c.l.b16 %v2903_v42 }
 0x1a8   : > { %v3940_v26 = vpack.c.bf16 %v2016_v49, %v2016_v49  ;;  %v1406_v1 = vadd.s32 %v1405_v55, %v1396_v44  ;;  %v1433_v18 = vadd.s32 %v1431_v45, %v1429_v23  ;;  %v1725_v47 = vrot.slane %v3892_v19, 7 }
 0x1a9   : > { %v1836_v61 = vrot.slane %v3934_v14, 1  ;;  %v2500_v43 = vunpack.c.l.b16 %v2929_v11  ;;  %v2501_v13 = vunpack.c.l.b16 %v2964_v63  ;;  %v2386_v62 = vrot.slane %v3927_v35, 4 }
 0x1aa   : > { %v2388_v37 = vshrl.u32 %v3940_v26, 16  ;;  %v2391_v53 = vshll.u32 %v3940_v26, 16  ;;  %v1407_v32 = vshrl.u32 %v1406_v1, 4  ;;  %v1434_v16 = vadd.s32 %v1433_v18, %v1423_v0 }
 0x1ab   : > { %v2502_v28 = vpack.c.b16 %v2500_v43, %v2499_v46  ;;  %v2503_v51 = vpack.c.b16 %v2501_v13, %v2501_v13  ;;  %v2517_v10 = vpack.c.b16 %v2499_v46, %v2499_v46  ;;  %v1727_v11 = vrot.slane %v3934_v14, 7 }
 0x1ac   : > { %v2390_v33 = vrot.slane %v2388_v37, 6  ;;  %v2393_v12 = vrot.slane %v2391_v53, 7  ;;  %v1408_v58 = vmul.u32 18, %v1407_v32  ;;  %v1435_v60 = vadd.s32 %v1434_v16, %v1425_v41 }
 0x1ad   : > { %v2506_v56 = vshrl.u32 %v2502_v28, 16  ;;  %v2509_v63 = vshll.u32 %v2502_v28, 16  ;;  %v2513_v3 = vshll.u32 %v2503_v51, 16  ;;  %v2518_v34 = vrot.slane %v2517_v10, 7 }
 0x1ae   : > { %v3951_v50 = vor.u32 %v2393_v12, %v2390_v33  ;;  %v1409_v57 = vsub.s32 %v3898_v54, %v1408_v58  ;;  %v1436_v36 = vshrl.u32 %v1435_v60, 4  ;;  %v1726_v17 = vsel %vm1657_vm2, %v1723_v40, %v1725_v47 }
 0x1af   : > { %vm2504_vm7 = vsmask.f32 256  ;;  %v2508_v30 = vrot.slane %v2506_v56, 7  ;;  %v1837_v54 = vsel %vm1766_vm3, %v1834_v24, %v1836_v61  ;;  %v1728_v40 = vsel %vm1657_vm2, %v1725_v47, %v1727_v11 }
 0x1b0   : > { %v2395_v21 = vsel %vm2945_vm11, %v2386_v62, %v3951_v50  ;;  %vm1475_vm10 = vcmp.ne.s32.totalorder %v1409_v57, 0  ;;  %vm1511_vm8 = vcmp.lt.s32.totalorder %v1409_v57, 0  ;;  %v1583_v27 = vadd.s32 18, %v1409_v57  ;;  %vm3966_vm12 = vmand %vm1657_vm2, %vm2504_vm7 }
 0x1b1   : > { %2492 = vst [vmem:[%s2821_s21 + $0x8c] sm:$0xf] %v2395_v21  ;;  %vm1547_vm9 = vmand %vm1511_vm8, %vm1475_vm10  ;;  %v1437_v35 = vmul.u32 18, %v1436_v36  ;;  %v2511_v2 = vor.u32 %v2509_v63, %v2508_v30  ;;  %v2515_v9 = vsel %vm2504_vm7, %v2508_v30, %v2513_v3  ;;  %vm2538_vm13 = vcmask 1041408  }
 0x1b2   : > { %v1619_v22 = vsel %vm1547_vm9, %v1583_v27, %v1409_v57  ;;  %v2524_v25 = vsel %vm1657_vm2, %v2515_v9, %v2518_v34  ;;  %vm3977_vm5 = vmand %vm2538_vm13, %vm2055_vm1  ;;  %v1874_v7 = vsel %vm1766_vm3, %v1836_v61, %v3934_v14  ;;  %v2544_v48 = vunpack.c.l.b16 %v3940_v26 }
 0x1b3   : > { %vm1909_vm14 = vcmp.eq.s32.totalorder %v1619_v22, 16  ;;  %vm1981_vm15 = vcmp.eq.s32.totalorder %v1619_v22, 17  ;;  %v1438_v39 = vsub.s32 %v3903_v15, %v1437_v35  ;;  %v2521_v24 = vsel %vm3966_vm12, %v2903_v42, %v2511_v2 }
 0x1b4   : > { %v1945_v5 = vsel %vm1909_vm14, %v1726_v17, %v3892_v19  ;;  %v2527_v8 = vunpack.c.l.b16 %v2521_v24  ;;  %v2528_v6 = vunpack.c.h.b16 %v2521_v24  ;;  %v2529_v44 = vunpack.c.l.b16 %v2524_v25  ;;  %v2540_v19 = vld [vmem:[%s2821_s21 + $0x8] sm:$0x3] }
 0x1b5   : > { %v2017_v4 = vsel %vm1981_vm15, %v1837_v54, %v1945_v5  ;;  %vm1476_vm0 = vcmp.ne.s32.totalorder %v1438_v39, 0  ;;  %vm1512_vm4 = vcmp.lt.s32.totalorder %v1438_v39, 0  ;;  %v1584_v38 = vadd.s32 18, %v1438_v39 }
 0x1b6   : > { %v2053_v15 = vpack.c.bf16 %v2017_v4, %v2017_v4  ;;  %vm1548_vm6 = vmand %vm1512_vm4, %vm1476_vm0  ;;  %v2530_v52 = vpack.c.b16 %v2527_v8, %v2527_v8  ;;  %v2531_v42 = vpack.c.b16 %v2528_v6, %v2528_v6  ;;  %v2532_v29 = vpack.c.b16 %v2529_v44, %v2529_v44 }
 0x1b7   : > { %v1620_v0 = vsel %vm1548_vm6, %v1584_v38, %v1438_v39  ;;  %v2396_v1 = vrot.slane %v3951_v50, 4  ;;  %v2545_v12 = vpack.c.b16 %v2544_v48, %v2544_v48  ;;  %vm2554_vm3 = vsmask.f32 5376 }
 0x1b8   : > { %v2398_v55 = vshrl.u32 %v2053_v15, 16  ;;  %v2401_v23 = vshll.u32 %v2053_v15, 16  ;;  %vm1910_vm1 = vcmp.eq.s32.totalorder %v1620_v0, 16  ;;  %vm1982_vm7 = vcmp.eq.s32.totalorder %v1620_v0, 17  ;;  %2536 = vst [vmem:[%s2821_s21] sm:$0xf] %v2530_v52 }
 0x1b9   : > { %v1946_v49 = vsel %vm1910_vm1, %v1728_v40, %v3934_v14  ;;  %2537 = vst [vmem:[%s2821_s21 + $0x4] sm:$0xf] %v2531_v42  ;;  %v2541_v41 = vsel %vm3977_vm5, %v2532_v29, %v2540_v19  ;;  %v2550_v45 = vunpack.c.l.b16 %v2053_v15  ;;  %v2546_v34 = vrot.slane %v2545_v12, 3 }
 0x1ba   : > { %v2400_v18 = vrot.slane %v2398_v55, 6  ;;  %v2403_v46 = vrot.slane %v2401_v23, 7  ;;  %v2018_v47 = vsel %vm1982_vm7, %v1874_v7, %v1946_v49  ;;  %2542 = vst [vmem:[%s2821_s21 + $0x8] sm:$0x3] %v2541_v41 }
 0x1bb   : > { %v2054_v26 = vpack.c.bf16 %v2018_v47, %v2018_v47  ;;  %v2552_v61 = vpack.c.b16 %v2550_v45, %v2544_v48 }
 0x1bc   : > { %v2404_v43 = vor.u32 %v2403_v46, %v2400_v18 }
 0x1bd   : > { %v2408_v13 = vshrl.u32 %v2054_v26, 16  ;;  %v2411_v37 = vshll.u32 %v2054_v26, 16  ;;  %v2551_v53 = vunpack.c.l.b16 %v2054_v26  ;;  %v2556_v32 = vshrl.u32 %v2552_v61, 16 }
 0x1be   : > { %v2405_v14 = vsel %vm2945_vm11, %v2396_v1, %v2404_v43  ;;  %v2406_v16 = vrot.slane %v2404_v43, 4  ;;  %v2559_v62 = vshll.u32 %v2552_v61, 16 }
 0x1bf   : > { %2493 = vst [vmem:[%s2821_s21 + $0x90] sm:$0xf] %v2405_v14  ;;  %v2410_v28 = vrot.slane %v2408_v13, 6  ;;  %v2413_v51 = vrot.slane %v2411_v37, 7  ;;  %v2553_v10 = vpack.c.b16 %v2551_v53, %v2551_v53  ;;  %v2558_v33 = vrot.slane %v2556_v32, 2 }
 0x1c0   : > { %v2561_v58 = vrot.slane %v2559_v62, 3 }
 0x1c1   : > { %v2414_v60 = vor.u32 %v2413_v51, %v2410_v28  ;;  %v2564_v11 = vshrl.u32 %v2553_v10, 16  ;;  %v2567_v56 = vshll.u32 %v2553_v10, 16 }
 0x1c2   : > { %v2562_v63 = vor.u32 %v2561_v58, %v2558_v33 }
 0x1c3   : > { %v2415_v3 = vsel %vm2945_vm11, %v2406_v16, %v2414_v60  ;;  %v2416_v50 = vrot.slane %v2414_v60, 4  ;;  %v2566_v57 = vrot.slane %v2564_v11, 2  ;;  %v2569_v36 = vrot.slane %v2567_v56, 3 }
 0x1c4   : > { %2494 = vst [vmem:[%s2821_s21 + $0x94] sm:$0xf] %v2415_v3  ;;  %vm2581_vm11 = vcmask 1044484  }
 0x1c5   : > { %2495 = vst [vmem:[%s2821_s21 + $0x98] sm:$0x1] %v2416_v50  ;;  %v2570_v17 = vor.u32 %v2569_v36, %v2566_v57  ;;  %vm2582_vm10 = vmor %vm1657_vm2, %vm2581_vm11 }
 0x1c7   : > { %v2571_v30 = vsel %vm2554_vm3, %v2562_v63, %v2570_v17  ;;  %v2577_v21 = vunpack.c.l.b16 %v2570_v17 }
 0x1c8   : > { %v2573_v27 = vsel %vm3966_vm12, %v2546_v34, %v2571_v30 }
 0x1c9   : > { %v2575_v54 = vunpack.c.l.b16 %v2573_v27  ;;  %v2576_v35 = vunpack.c.h.b16 %v2573_v27  ;;  %v2580_v31 = vpack.c.b16 %v2577_v21, %v2577_v21 }
 0x1cb   : > { %v2578_v2 = vpack.c.b16 %v2575_v54, %v2575_v54  ;;  %v2579_v9 = vpack.c.b16 %v2576_v35, %v2576_v35  ;;  %v2588_v25 = vrot.slane %v2580_v31, 7 }
 0x1cd   : > { %v2583_v22 = vrot.slane %v2578_v2, 7  ;;  %v2585_v40 = vrot.slane %v2579_v9, 7 }
 0x1cf   : > { %v2584_v39 = vrot.slane %v2583_v22, 4  ;;  %2593 = vst [vmem:[%s2821_s21 + $0x98] sm:$0xe] %v2583_v22  ;;  %v2587_v24 = vrot.slane %v2585_v40, 4 }
 0x1d1   : > { %v2586_v5 = vsel %vm2582_vm10, %v2584_v39, %v2585_v40  ;;  %v2589_v8 = vsel %vm2582_vm10, %v2587_v24, %v2588_v25 }
 0x1d2   : > { %2594 = vst [vmem:[%s2821_s21 + $0x9c] sm:$0xf] %v2586_v5 }
 0x1d3   : > { %2595 = vst [vmem:[%s2821_s21 + $0xa0] sm:$0x3] %v2589_v8 }
 0x1d4 PF: > { %s13_s12 = sadd.s32 1, %s2775_s12  }
 0x1d5   : > { %p10_p4 = scmp.ge.s32.totalorder %s13_s12, 4  }
 0x1d7   :  { %12 = sbr.rel (!%p10_p4) target bundleno = 1 (0x1), region = 62 }

// kernel: conv_block_forward.4
= control target key start
LH: loop header
LB: loop body
LE: loop exit
PB: predicated region body
PF: predicated region fallthrough
CT: control target
= control target key end

     0   :  { %s5553_s15 = smov 0   ;;  %s7203_s0 = inlined_call_operand.vmem [shape: bf16[2,328,128], index: 0, kind: input, shape index: {}]   ;;  %s7204_s1 = inlined_call_operand.vmem [shape: bf16[9,128,128], index: 1, kind: input, shape index: {}]   ;;  %s7205_s2 = inlined_call_operand.vmem [shape: bf16[2,288,128], index: 2, kind: output, shape index: {0}]   ;;  %s7206_s3 = inlined_call_operand.vmem [shape: f32[2,1,128], index: 3, kind: output, shape index: {1}]   ;;  %s7207_s4 = inlined_call_operand.vmem [shape: f32[2,1,128], index: 4, kind: output, shape index: {2}]  }
   0x1 LB: > { %s4757_s16 = sadd.s32 4294967295, %s5525_s15   ;;  %p4761_p0 = scmp.ge.s32.totalorder %s5525_s15, 1  ;;  %s5525_s15 = sphi %s5553_s15, %s15_s15  }
   0x2   : > { %p167_p1 = scmp.lt.s32.totalorder %s5525_s15, 3 }
   0x4   : > { %p168_p2 = pnand %p4761_p0, %p167_p1 }
   0x6   : > { %171 = sbr.rel (%p168_p2) target bundleno = 857 (0x359), region = 28 }
   0xb   : > { %v5377_v0 = vld [vmem:[%s7204_s1 + $0x38] sm:$0xff]   ;;  %v5376_v1 = vld [vmem:[%s7204_s1 + $0x30] sm:$0xff]   ;;  %p199_p3 = scmp.lt.s32.totalorder %s4757_s16, 1  ;;  %v5375_v5 = vld [vmem:[%s7204_s1 + $0x28] sm:$0xff]  }
   0xc   : > { %v5005_v2 = vunpack.c.h.bf16 %v5377_v0  ;;  %v5004_v3 = vunpack.c.l.bf16 %v5377_v0  ;;  %v5001_v4 = vunpack.c.h.bf16 %v5376_v1  ;;  %v5000_v6 = vunpack.c.l.bf16 %v5376_v1  ;;  %v5374_v11 = vld [vmem:[%s7204_s1 + $0x20] sm:$0xff]   ;;  %v5373_v21 = vld [vmem:[%s7204_s1 + $0x18] sm:$0xff]   ;;  %v5372_v29 = vld [vmem:[%s7204_s1 + $0x10] sm:$0xff]  }
   0xd   : > { %s7310_s16 = smov (!%p199_p3, %s4757_s16), 1  ;;  %v4997_v7 = vunpack.c.h.bf16 %v5375_v5  ;;  %v4996_v14 = vunpack.c.l.bf16 %v5375_v5  ;;  %v4993_v18 = vunpack.c.h.bf16 %v5374_v11  ;;  %v4992_v23 = vunpack.c.l.bf16 %v5374_v11  ;;  %v5371_v35 = vld [vmem:[%s7204_s1 + $0x8] sm:$0xff]   ;;  %v4975_v40 = vld [vmem:[%s7204_s1] sm:$0xff]   ;;  %v5393_v48 = vld [vmem:[%s7204_s1 + $0xb8] sm:$0xff]  }
   0xe   : > { %5459 = vmatpush.msra.mxu1 %v5005_v2  ;;  %5460 = vmatpush.msra.mxu2 %v5005_v2  ;;  %s5507_s23 = smul.u32 164, %s7310_s16  ;;  %v4989_v26 = vunpack.c.h.bf16 %v5373_v21  ;;  %v4988_v31 = vunpack.c.l.bf16 %v5373_v21  ;;  %v4985_v33 = vunpack.c.h.bf16 %v5372_v29  ;;  %v4984_v36 = vunpack.c.l.bf16 %v5372_v29  ;;  %v5385_v51 = vld [vmem:[%s7204_s1 + $0x78] sm:$0xff]   ;;  %v5392_v56 = vld [vmem:[%s7204_s1 + $0xb0] sm:$0xff]   ;;  %v5391_v11 = vld [vmem:[%s7204_s1 + $0xa8] sm:$0xff]   ;;  %s211_s6 = scalar_lea.vmem %s7206_s3, %s7310_s16 }
   0xf   : > { %5461 = vmatpush.msra.mxu3 %v5005_v2  ;;  %478 = vmatpush.msra.mxu0 %v5005_v2  ;;  %v4981_v39 = vunpack.c.h.bf16 %v5371_v35  ;;  %v4980_v42 = vunpack.c.l.bf16 %v5371_v35  ;;  %v4977_v46 = vunpack.c.h.bf16 %v4975_v40  ;;  %v4976_v50 = vunpack.c.l.bf16 %v4975_v40  ;;  %v5401_v52 = vld [vmem:[%s7204_s1 + $0xf8] sm:$0xff]   ;;  %v5384_v60 = vld [vmem:[%s7204_s1 + $0x70] sm:$0xff]   ;;  %s5508_s27 = smul.u32 144, %s7310_s16  ;;  %s214_s9 = scalar_lea.vmem %s7207_s4, %s7310_s16 }
  0x10   : > { %5462 = vmatpush.msra.mxu1 %v5004_v3  ;;  %5463 = vmatpush.msra.mxu2 %v5004_v3  ;;  %s5576_s26 = scalar_lea.vmem %s7203_s0, %s5507_s23  ;;  %v5069_v53 = vunpack.c.h.bf16 %v5393_v48  ;;  %v5037_v55 = vunpack.c.h.bf16 %v5385_v51  ;;  %v5101_v58 = vunpack.c.h.bf16 %v5401_v52  ;;  %v5068_v59 = vunpack.c.l.bf16 %v5393_v48  ;;  %v5409_v62 = vld [vmem:[%s7204_s1 + $0x138] sm:$0xff]   ;;  %v5400_v63 = vld [vmem:[%s7204_s1 + $0xf0] sm:$0xff]  }
  0x11   : > { %5464 = vmatpush.msra.mxu3 %v5004_v3  ;;  %479 = vmatpush.msra.mxu0 %v5004_v3  ;;  %v5579_v8 = vld [vmem:[%s5576_s26 + $0x20] sm:$0xff]   ;;  %v5582_v9 = vld [vmem:[%s5576_s26 + $0x48] sm:$0xff]   ;;  %v5605_v20 = vld [vmem:[%s5576_s26 + $0x70] sm:$0xff]   ;;  %v5036_v61 = vunpack.c.l.bf16 %v5385_v51  ;;  %v5100_v1 = vunpack.c.l.bf16 %v5401_v52  ;;  %v5065_v2 = vunpack.c.h.bf16 %v5392_v56  ;;  %v5133_v5 = vunpack.c.h.bf16 %v5409_v62  ;;  %s6399_s30 = scalar_lea.vmem %s7205_s2, %s5508_s27 }
  0x12   : > { %5465 = vmatpush.msra.mxu1 %v5001_v4  ;;  %5466 = vmatpush.msra.mxu2 %v5001_v4  ;;  %v5585_v10 = vld [vmem:[%s5576_s26 + $0x68] sm:$0xff]   ;;  %v4913_v12 = vunpack.c.h.bf16 %v5579_v8  ;;  %v4932_v15 = vunpack.c.l.bf16 %v5582_v9  ;;  %v5599_v17 = vld [vmem:[%s5576_s26] sm:$0xff]   ;;  %v4933_v22 = vunpack.c.h.bf16 %v5582_v9  ;;  %v4952_v25 = vunpack.c.l.bf16 %v5605_v20  ;;  %v5623_v28 = vld [vmem:[%s5576_s26 + $0x50] sm:$0xff]  }
  0x13   : > { %5467 = vmatpush.msra.mxu3 %v5001_v4  ;;  %480 = vmatpush.msra.mxu0 %v5001_v4  ;;  %v5592_v13 = vld [vmem:[%s5576_s26 + $0x28] sm:$0xff]   ;;  %v4949_v16 = vunpack.c.h.bf16 %v5585_v10  ;;  %v4896_v24 = vunpack.c.l.bf16 %v5599_v17  ;;  %v4936_v30 = vunpack.c.l.bf16 %v5623_v28  ;;  %v4897_v32 = vunpack.c.h.bf16 %v5599_v17  ;;  %v5645_v37 = vld [vmem:[%s5576_s26 + $0x30] sm:$0xff]   ;;  %v5658_v44 = vld [vmem:[%s5576_s26 + $0x78] sm:$0xff]  }
  0x14   : > { %5468 = vmatpush.msra.mxu1 %v5000_v6  ;;  %5469 = vmatpush.msra.mxu2 %v5000_v6  ;;  %306 = vst [vmem:[#allocation2 + $0x48] sm:$0xff] %v4913_v12  ;;  %v4916_v19 = vunpack.c.l.bf16 %v5592_v13  ;;  %v4917_v27 = vunpack.c.h.bf16 %v5592_v13  ;;  %v4953_v34 = vunpack.c.h.bf16 %v5605_v20  ;;  %v4920_v38 = vunpack.c.l.bf16 %v5645_v37  ;;  %v5655_v43 = vld [vmem:[%s5576_s26 + $0x8] sm:$0xff]   ;;  %v5681_v54 = vld [vmem:[%s5576_s26 + $0x58] sm:$0xff]   ;;  %v5735_v35 = vld [vmem:[%s5576_s26 + $0x80] sm:$0xff]  }
  0x15   : > { %5470 = vmatpush.msra.mxu3 %v5000_v6  ;;  %481 = vmatpush.msra.mxu0 %v5000_v6  ;;  %315 = vst [vmem:[#allocation2 + $0x90] sm:$0xff] %v4932_v15  ;;  %v4937_v41 = vunpack.c.h.bf16 %v5623_v28  ;;  %v4900_v45 = vunpack.c.l.bf16 %v5655_v43  ;;  %v4956_v47 = vunpack.c.l.bf16 %v5658_v44  ;;  %v4921_v49 = vunpack.c.h.bf16 %v5645_v37  ;;  %v5390_v9 = vld [vmem:[%s7204_s1 + $0xa0] sm:$0xff]   ;;  %v5388_v20 = vld [vmem:[%s7204_s1 + $0x90] sm:$0xff]   ;;  %v5387_v28 = vld [vmem:[%s7204_s1 + $0x88] sm:$0xff]  }
  0x16   : > { %5471 = vmatpush.msra.mxu1 %v4997_v7  ;;  %5472 = vmatpush.msra.mxu2 %v4997_v7  ;;  %324 = vst [vmem:[#allocation2 + $0xd8] sm:$0xff] %v4949_v16  ;;  %v4940_v57 = vunpack.c.l.bf16 %v5681_v54  ;;  %v4901_v0 = vunpack.c.h.bf16 %v5655_v43  ;;  %v4957_v3 = vunpack.c.h.bf16 %v5658_v44  ;;  %v5033_v4 = vunpack.c.h.bf16 %v5384_v60  ;;  %v5382_v51 = vld [vmem:[%s7204_s1 + $0x60] sm:$0xff]  }
  0x17   : > { %5473 = vmatpush.msra.mxu3 %v4997_v7  ;;  %482 = vmatpush.msra.mxu0 %v4997_v7  ;;  %307 = vst [vmem:[#allocation2 + $0x50] sm:$0xff] %v4916_v19  ;;  %v5097_v6 = vunpack.c.h.bf16 %v5400_v63  ;;  %v5711_v7 = vld [vmem:[%s5576_s26 + $0x38] sm:$0xff]   ;;  %v5032_v21 = vunpack.c.l.bf16 %v5384_v60  ;;  %v5096_v29 = vunpack.c.l.bf16 %v5400_v63  ;;  %v5398_v52 = vld [vmem:[%s7204_s1 + $0xe0] sm:$0xff]  }
  0x18   : > { %5474 = vmatpush.msra.mxu1 %v4996_v14  ;;  %5475 = vmatpush.msra.mxu2 %v4996_v14  ;;  %316 = vst [vmem:[#allocation2 + $0x98] sm:$0xff] %v4933_v22  ;;  %v4925_v48 = vunpack.c.h.bf16 %v5711_v7  ;;  %v5381_v63 = vld [vmem:[%s7204_s1 + $0x58] sm:$0xff]  }
  0x19   : > { %5476 = vmatpush.msra.mxu3 %v4996_v14  ;;  %483 = vmatpush.msra.mxu0 %v4996_v14  ;;  %297 = vst [vmem:[#allocation2] sm:$0xff] %v4896_v24  ;;  %v5064_v14 = vunpack.c.l.bf16 %v5392_v56  ;;  %v5767_v56 = vld [vmem:[%s5576_s26 + $0x60] sm:$0xff]  }
  0x1a   : > { %5477 = vmatpush.msra.mxu1 %v4993_v18  ;;  %5478 = vmatpush.msra.mxu2 %v4993_v18  ;;  %325 = vst [vmem:[#allocation2 + $0xe0] sm:$0xff] %v4952_v25  ;;  %v4944_v60 = vunpack.c.l.bf16 %v5767_v56 }
  0x1b   : > { %5479 = vmatpush.msra.mxu3 %v4993_v18  ;;  %484 = vmatpush.msra.mxu0 %v4993_v18  ;;  %308 = vst [vmem:[#allocation2 + $0x58] sm:$0xff] %v4917_v27  ;;  %v5383_v18 = vld [vmem:[%s7204_s1 + $0x68] sm:$0xff]  }
  0x1c   : > { %5480 = vmatpush.msra.mxu1 %v4992_v23  ;;  %5481 = vmatpush.msra.mxu2 %v4992_v23  ;;  %317 = vst [vmem:[#allocation2 + $0xa0] sm:$0xff] %v4936_v30 }
  0x1d   : > { %5482 = vmatpush.msra.mxu3 %v4992_v23  ;;  %485 = vmatpush.msra.mxu0 %v4992_v23  ;;  %298 = vst [vmem:[#allocation2 + $0x8] sm:$0xff] %v4897_v32  ;;  %v5399_v23 = vld [vmem:[%s7204_s1 + $0xe8] sm:$0xff]  }
  0x1e   : > { %5483 = vmatpush.msra.mxu1 %v4989_v26  ;;  %5484 = vmatpush.msra.mxu2 %v4989_v26  ;;  %326 = vst [vmem:[#allocation2 + $0xe8] sm:$0xff] %v4953_v34  ;;  %v5093_v40 = vunpack.c.h.bf16 %v5399_v23 }
  0x1f   : > { %5485 = vmatpush.msra.mxu3 %v4989_v26  ;;  %486 = vmatpush.msra.mxu0 %v4989_v26  ;;  %309 = vst [vmem:[#allocation2 + $0x60] sm:$0xff] %v4920_v38  ;;  %v4941_v26 = vunpack.c.h.bf16 %v5681_v54  ;;  %v5433_v54 = vld [vmem:[%s7204_s1 + $0x1f8] sm:$0xff]  }
  0x20   : > { %5486 = vmatpush.msra.mxu1 %v4988_v31  ;;  %5487 = vmatpush.msra.mxu2 %v4988_v31  ;;  %318 = vst [vmem:[#allocation2 + $0xa8] sm:$0xff] %v4937_v41 }
  0x21   : > { %5488 = vmatpush.msra.mxu3 %v4988_v31  ;;  %487 = vmatpush.msra.mxu0 %v4988_v31  ;;  %299 = vst [vmem:[#allocation2 + $0x10] sm:$0xff] %v4900_v45  ;;  %v5061_v31 = vunpack.c.h.bf16 %v5391_v11 }
  0x22   : > { %5489 = vmatpush.msra.mxu1 %v4985_v33  ;;  %5490 = vmatpush.msra.mxu2 %v4985_v33  ;;  %327 = vst [vmem:[#allocation2 + $0xf0] sm:$0xff] %v4956_v47 }
  0x23   : > { %5491 = vmatpush.msra.mxu3 %v4985_v33  ;;  %488 = vmatpush.msra.mxu0 %v4985_v33  ;;  %310 = vst [vmem:[#allocation2 + $0x68] sm:$0xff] %v4921_v49  ;;  %v5732_v33 = vld [vmem:[%s5576_s26 + $0x10] sm:$0xff]  }
  0x24   : > { %5492 = vmatpush.msra.mxu1 %v4984_v36  ;;  %5493 = vmatpush.msra.mxu2 %v4984_v36  ;;  %319 = vst [vmem:[#allocation2 + $0xb0] sm:$0xff] %v4940_v57  ;;  %v4905_v13 = vunpack.c.h.bf16 %v5732_v33 }
  0x25   : > { %5494 = vmatpush.msra.mxu3 %v4984_v36  ;;  %489 = vmatpush.msra.mxu0 %v4984_v36  ;;  %300 = vst [vmem:[#allocation2 + $0x18] sm:$0xff] %v4901_v0  ;;  %v5029_v36 = vunpack.c.h.bf16 %v5383_v18 }
  0x26   : > { %5495 = vmatpush.msra.mxu1 %v4981_v39  ;;  %5496 = vmatpush.msra.mxu2 %v4981_v39  ;;  %328 = vst [vmem:[#allocation2 + $0xf8] sm:$0xff] %v4957_v3 }
  0x27   : > { %5497 = vmatpush.msra.mxu3 %v4981_v39  ;;  %490 = vmatpush.msra.mxu0 %v4981_v39  ;;  %320 = vst [vmem:[#allocation2 + $0xb8] sm:$0xff] %v4941_v26  ;;  %v4904_v39 = vunpack.c.l.bf16 %v5732_v33  ;;  %v5228_v33 = vunpack.c.l.bf16 %v5433_v54 }
  0x28   : > { %5498 = vmatpush.msra.mxu1 %v4980_v42  ;;  %5499 = vmatpush.msra.mxu2 %v4980_v42  ;;  %312 = vst [vmem:[#allocation2 + $0x78] sm:$0xff] %v4925_v48 }
  0x29   : > { %5500 = vmatpush.msra.mxu3 %v4980_v42  ;;  %491 = vmatpush.msra.mxu0 %v4980_v42  ;;  %v5060_v42 = vunpack.c.l.bf16 %v5391_v11  ;;  %301 = vst [vmem:[#allocation2 + $0x20] sm:$0xff] %v4904_v39 }
  0x2a   : > { %5501 = vmatpush.msra.mxu1 %v4977_v46  ;;  %5502 = vmatpush.msra.mxu2 %v4977_v46  ;;  %321 = vst [vmem:[#allocation2 + $0xc0] sm:$0xff] %v4944_v60 }
  0x2b   : > { %5503 = vmatpush.msra.mxu3 %v4977_v46  ;;  %492 = vmatpush.msra.mxu0 %v4977_v46  ;;  %v4960_v46 = vunpack.c.l.bf16 %v5735_v35  ;;  %302 = vst [vmem:[#allocation2 + $0x28] sm:$0xff] %v4905_v13 }
  0x2c   : > { %5504 = vmatpush.msra.mxu1 %v4976_v50  ;;  %5505 = vmatpush.msra.mxu2 %v4976_v50 }
  0x2d   : > { %521 = vmatmul.f32.vlgmr.msra.gmra.mxu1 %v4913_v12  ;;  %548 = vmatmul.f32.vlgmr.msra.gmra.mxu2 %v4932_v15  ;;  %v4924_v12 = vunpack.c.l.bf16 %v5711_v7  ;;  %v5132_v15 = vunpack.c.l.bf16 %v5409_v62  ;;  %329 = vst [vmem:[#allocation2 + $0x100] sm:$0xff] %v4960_v46  ;;  %v5056_v62 = vunpack.c.l.bf16 %v5390_v9 }
  0x2e   : > { %1082 = vmatpush.msrb.mxu2 %v5069_v53  ;;  %5506 = vmatpush.msra.mxu3 %v4976_v50  ;;  %v5057_v53 = vunpack.c.h.bf16 %v5390_v9 }
  0x2f   : > { %575 = vmatmul.f32.vlgmr.msra.gmra.mxu3 %v4949_v16  ;;  %780 = vmatpush.msrb.mxu1 %v5037_v55  ;;  %v5408_v16 = vld [vmem:[%s7204_s1 + $0x130] sm:$0xff]   ;;  %311 = vst [vmem:[#allocation2 + $0x70] sm:$0xff] %v4924_v12 }
  0x30   : > { %1384 = vmatpush.msrb.mxu3 %v5101_v58  ;;  %1083 = vmatpush.msrb.mxu2 %v5068_v59  ;;  %v5025_v58 = vunpack.c.h.bf16 %v5382_v51  ;;  %v5389_v59 = vld [vmem:[%s7204_s1 + $0x98] sm:$0xff]  }
  0x31   : > { %493 = vmatpush.msra.mxu0 %v4976_v50  ;;  %781 = vmatpush.msrb.mxu1 %v5036_v61  ;;  %v5128_v50 = vunpack.c.l.bf16 %v5408_v16  ;;  %v5089_v61 = vunpack.c.h.bf16 %v5398_v52 }
  0x32   : > { %1385 = vmatpush.msrb.mxu3 %v5100_v1  ;;  %1084 = vmatpush.msrb.mxu2 %v5065_v2  ;;  %v5406_v1 = vld [vmem:[%s7204_s1 + $0x120] sm:$0xff]   ;;  %v5397_v2 = vld [vmem:[%s7204_s1 + $0xd8] sm:$0xff]  }
  0x33   : > { %494 = vmatmul.f32.vlgmr.msra.gmra.mxu0 %v4896_v24  ;;  %782 = vmatpush.msrb.mxu1 %v5033_v4  ;;  %v5129_v24 = vunpack.c.h.bf16 %v5408_v16  ;;  %v4961_v4 = vunpack.c.h.bf16 %v5735_v35  ;;  %v5121_v11 = vunpack.c.h.bf16 %v5406_v1  ;;  %v5120_v16 = vunpack.c.l.bf16 %v5406_v1  ;;  %v5403_v1 = vld [vmem:[%s7204_s1 + $0x108] sm:$0xff]  }
  0x34   : > { %1686 = vmatpush.msrb.mxu0 %v5133_v5  ;;  %1386 = vmatpush.msrb.mxu3 %v5097_v6  ;;  %v5021_v5 = vunpack.c.h.bf16 %v5381_v63  ;;  %v5797_v6 = vld [vmem:[%s5576_s26 + $0x40] sm:$0xff]  }
  0x35   : > { %524 = vmatmul.f32.gmra.mxu1 %v4916_v19  ;;  %551 = vmatmul.f32.gmra.mxu2 %v4933_v22  ;;  %v5028_v19 = vunpack.c.l.bf16 %v5383_v18  ;;  %v5407_v22 = vld [vmem:[%s7204_s1 + $0x128] sm:$0xff]   ;;  %330 = vst [vmem:[#allocation2 + $0x108] sm:$0xff] %v4961_v4  ;;  %v5405_v18 = vld [vmem:[%s7204_s1 + $0x118] sm:$0xff]  }
  0x36   : > { %1085 = vmatpush.msrb.mxu2 %v5064_v14  ;;  %1687 = vmatpush.msrb.mxu0 %v5132_v15  ;;  %v5125_v55 = vunpack.c.h.bf16 %v5407_v22  ;;  %v5124_v17 = vunpack.c.l.bf16 %v5407_v22  ;;  %v5085_v14 = vunpack.c.h.bf16 %v5397_v2  ;;  %v4928_v15 = vunpack.c.l.bf16 %v5797_v6 }
  0x37   : > { %578 = vmatmul.f32.gmra.mxu3 %v4952_v25  ;;  %783 = vmatpush.msrb.mxu1 %v5032_v21  ;;  %v5092_v25 = vunpack.c.l.bf16 %v5399_v23  ;;  %v5380_v21 = vld [vmem:[%s7204_s1 + $0x50] sm:$0xff]   ;;  %v5020_v23 = vunpack.c.l.bf16 %v5381_v63  ;;  %v4948_v63 = vunpack.c.l.bf16 %v5585_v10 }
  0x38   : > { %1387 = vmatpush.msrb.mxu3 %v5096_v29  ;;  %1086 = vmatpush.msrb.mxu2 %v5061_v31  ;;  %313 = vst [vmem:[#allocation2 + $0x80] sm:$0xff] %v4928_v15  ;;  %v5396_v29 = vld [vmem:[%s7204_s1 + $0xd0] sm:$0xff]   ;;  %v4945_v31 = vunpack.c.h.bf16 %v5767_v56  ;;  %v711_v56 = vld [vmem:[#allocation2 + $0x1] sm:$0xff] }
  0x39   : > { %1688 = vmatpush.msrb.mxu0 %v5129_v24  ;;  %784 = vmatpush.msrb.mxu1 %v5029_v36  ;;  %v5084_v24 = vunpack.c.l.bf16 %v5397_v2  ;;  %v5049_v36 = vunpack.c.h.bf16 %v5388_v20  ;;  %v5081_v22 = vunpack.c.h.bf16 %v5396_v29  ;;  %323 = vst [vmem:[#allocation2 + $0xd0] sm:$0xff] %v4948_v63  ;;  %v5394_v2 = vld [vmem:[%s7204_s1 + $0xc0] sm:$0xff]   ;;  %v5432_v10 = vld [vmem:[%s7204_s1 + $0x1f0] sm:$0xff]  }
  0x3a   : > { %1388 = vmatpush.msrb.mxu3 %v5093_v40  ;;  %1087 = vmatpush.msrb.mxu2 %v5060_v42  ;;  %v5820_v40 = vld [vmem:[%s5576_s26 + $0x18] sm:$0xff]   ;;  %v5823_v42 = vld [vmem:[%s5576_s26 + $0x88] sm:$0xff]   ;;  %322 = vst [vmem:[#allocation2 + $0xc8] sm:$0xff] %v4945_v31 }
  0x3b   : > { %497 = vmatmul.f32.gmra.mxu0 %v4897_v32  ;;  %785 = vmatpush.msrb.mxu1 %v5028_v19  ;;  %v5024_v32 = vunpack.c.l.bf16 %v5382_v51  ;;  %v5017_v19 = vunpack.c.h.bf16 %v5380_v21  ;;  %v4908_v9 = vunpack.c.l.bf16 %v5820_v40  ;;  %v4929_v51 = vunpack.c.h.bf16 %v5797_v6  ;;  %v1617_v6 = vld [vmem:[#allocation2 + $0x13] sm:$0xff] }
  0x3c   : > { %1689 = vmatpush.msrb.mxu0 %v5128_v50  ;;  %1389 = vmatpush.msrb.mxu3 %v5092_v25  ;;  %v5048_v50 = vunpack.c.l.bf16 %v5388_v20  ;;  %v4964_v25 = vunpack.c.l.bf16 %v5823_v42 }
  0x3d   : > { %527 = vmatmul.f32.gmra.mxu1 %v4917_v27  ;;  %554 = vmatmul.f32.gmra.mxu2 %v4936_v30  ;;  %v5088_v27 = vunpack.c.l.bf16 %v5398_v52  ;;  %v5053_v30 = vunpack.c.h.bf16 %v5389_v59  ;;  %303 = vst [vmem:[#allocation2 + $0x30] sm:$0xff] %v4908_v9  ;;  %v5116_v52 = vunpack.c.l.bf16 %v5405_v18 }
  0x3e   : > { %1088 = vmatpush.msrb.mxu2 %v5057_v53  ;;  %1690 = vmatpush.msrb.mxu0 %v5125_v55  ;;  %v5080_v53 = vunpack.c.l.bf16 %v5396_v29  ;;  %331 = vst [vmem:[#allocation2 + $0x110] sm:$0xff] %v4964_v25  ;;  %v5395_v55 = vld [vmem:[%s7204_s1 + $0xc8] sm:$0xff]  }
  0x3f   : > { %581 = vmatmul.f32.gmra.mxu3 %v4953_v34  ;;  %786 = vmatpush.msrb.mxu1 %v5025_v58  ;;  %v5052_v34 = vunpack.c.l.bf16 %v5389_v59  ;;  %314 = vst [vmem:[#allocation2 + $0x88] sm:$0xff] %v4929_v51  ;;  %v5045_v58 = vunpack.c.h.bf16 %v5387_v28  ;;  %v5076_v37 = vunpack.c.l.bf16 %v5395_v55 }
  0x40   : > { %1390 = vmatpush.msrb.mxu3 %v5089_v61  ;;  %1089 = vmatpush.msrb.mxu2 %v5056_v62  ;;  %v5386_v62 = vld [vmem:[%s7204_s1 + $0x80] sm:$0xff]  }
  0x41   : > { %1691 = vmatpush.msrb.mxu0 %v5124_v17  ;;  %787 = vmatpush.msrb.mxu1 %v5024_v32  ;;  %v5077_v17 = vunpack.c.h.bf16 %v5395_v55  ;;  %v5044_v32 = vunpack.c.l.bf16 %v5387_v28  ;;  %v5040_v44 = vunpack.c.l.bf16 %v5386_v62  ;;  %v1619_v28 = vld [vmem:[#allocation2 + $0x23] sm:$0xff] }
  0x42   : > { %1391 = vmatpush.msrb.mxu3 %v5088_v27  ;;  %1090 = vmatpush.msrb.mxu2 %v5053_v30  ;;  %v4909_v27 = vunpack.c.h.bf16 %v5820_v40  ;;  %v5378_v30 = vld [vmem:[%s7204_s1 + $0x40] sm:$0xff]   ;;  %v1014_v40 = vld [vmem:[#allocation2 + $0xa] sm:$0xff] }
  0x43   : > { %500 = vmatmul.f32.gmra.mxu0 %v4900_v45  ;;  %788 = vmatpush.msrb.mxu1 %v5021_v5  ;;  %v5117_v45 = vunpack.c.h.bf16 %v5405_v18  ;;  %v5109_v5 = vunpack.c.h.bf16 %v5403_v1  ;;  %v5008_v20 = vunpack.c.l.bf16 %v5378_v30  ;;  %v5402_v18 = vld [vmem:[%s7204_s1 + $0x100] sm:$0xff]  }
  0x44   : > { %1692 = vmatpush.msrb.mxu0 %v5121_v11  ;;  %1392 = vmatpush.msrb.mxu3 %v5085_v14  ;;  %304 = vst [vmem:[#allocation2 + $0x38] sm:$0xff] %v4909_v27  ;;  %v5073_v11 = vunpack.c.h.bf16 %v5394_v2  ;;  %v5009_v14 = vunpack.c.h.bf16 %v5378_v30  ;;  %v5104_v29 = vunpack.c.l.bf16 %v5402_v18  ;;  %v1620_v55 = vld [vmem:[#allocation2 + $0x2b] sm:$0xff] }
  0x45   : > { %530 = vmatmul.f32.gmra.mxu1 %v4920_v38  ;;  %557 = vmatmul.f32.gmra.mxu2 %v4937_v41  ;;  %v5016_v38 = vunpack.c.l.bf16 %v5380_v21  ;;  %v5404_v41 = vld [vmem:[%s7204_s1 + $0x110] sm:$0xff]   ;;  %v5439_v30 = vld [vmem:[%s7204_s1 + $0x228] sm:$0xff]  }
  0x46   : > { %1091 = vmatpush.msrb.mxu2 %v5052_v34  ;;  %1693 = vmatpush.msrb.mxu0 %v5120_v16  ;;  %v5113_v59 = vunpack.c.h.bf16 %v5404_v41  ;;  %v5112_v43 = vunpack.c.l.bf16 %v5404_v41  ;;  %v5072_v34 = vunpack.c.l.bf16 %v5394_v2  ;;  %v5425_v16 = vld [vmem:[%s7204_s1 + $0x1b8] sm:$0xff]  }
  0x47   : > { %584 = vmatmul.f32.gmra.mxu3 %v4956_v47  ;;  %789 = vmatpush.msrb.mxu1 %v5020_v23  ;;  %v5379_v47 = vld [vmem:[%s7204_s1 + $0x48] sm:$0xff]   ;;  %v5197_v21 = vunpack.c.h.bf16 %v5425_v16  ;;  %v5105_v23 = vunpack.c.h.bf16 %v5402_v18  ;;  %v5196_v7 = vunpack.c.l.bf16 %v5425_v16  ;;  %v714_v41 = vld [vmem:[#allocation2 + $0x19] sm:$0xff] }
  0x48   : > { %1393 = vmatpush.msrb.mxu3 %v5084_v24  ;;  %1092 = vmatpush.msrb.mxu2 %v5049_v36  ;;  %v5013_v61 = vunpack.c.h.bf16 %v5379_v47  ;;  %v712_v36 = vld [vmem:[#allocation2 + $0x9] sm:$0xff] }
  0x49   : > { %1694 = vmatpush.msrb.mxu0 %v5117_v45  ;;  %790 = vmatpush.msrb.mxu1 %v5017_v19  ;;  %v5416_v45 = vld [vmem:[%s7204_s1 + $0x170] sm:$0xff]  }
  0x4a   : > { %1394 = vmatpush.msrb.mxu3 %v5081_v22  ;;  %1093 = vmatpush.msrb.mxu2 %v5048_v50  ;;  %v5161_v19 = vunpack.c.h.bf16 %v5416_v45  ;;  %v1618_v22 = vld [vmem:[#allocation2 + $0x1b] sm:$0xff]  ;;  %v1624_v18 = vld [vmem:[#allocation2 + $0x4b] sm:$0xff] }
  0x4b   : > { %503 = vmatmul.f32.gmra.mxu0 %v4901_v0  ;;  %791 = vmatpush.msrb.mxu1 %v5016_v38  ;;  %v5012_v0 = vunpack.c.l.bf16 %v5379_v47  ;;  %v1317_v38 = vld [vmem:[#allocation2 + $0x22] sm:$0xff]  ;;  %v5160_v47 = vunpack.c.l.bf16 %v5416_v45 }
  0x4c   : > { %1695 = vmatpush.msrb.mxu0 %v5116_v52  ;;  %1395 = vmatpush.msrb.mxu3 %v5080_v53  ;;  %v1318_v52 = vld [vmem:[#allocation2 + $0x2a] sm:$0xff]  ;;  %v5224_v53 = vunpack.c.l.bf16 %v5432_v10  ;;  %v5414_v45 = vld [vmem:[%s7204_s1 + $0x160] sm:$0xff]  }
  0x4d   : > { %533 = vmatmul.f32.gmra.mxu1 %v4921_v49  ;;  %560 = vmatmul.f32.gmra.mxu2 %v4940_v57  ;;  %v5041_v49 = vunpack.c.h.bf16 %v5386_v62  ;;  %v4965_v57 = vunpack.c.h.bf16 %v5823_v42  ;;  %v1316_v42 = vld [vmem:[#allocation2 + $0x1a] sm:$0xff] }
  0x4e   : > { %1094 = vmatpush.msrb.mxu2 %v5045_v58  ;;  %1696 = vmatpush.msrb.mxu0 %v5113_v59  ;;  %v715_v58 = vld [vmem:[#allocation2 + $0x21] sm:$0xff]  ;;  %v1319_v59 = vld [vmem:[#allocation2 + $0x32] sm:$0xff] }
  0x4f   : > { %587 = vmatmul.f32.gmra.mxu3 %v4957_v3  ;;  %792 = vmatpush.msrb.mxu1 %v5013_v61  ;;  %332 = vst [vmem:[#allocation2 + $0x118] sm:$0xff] %v4965_v57  ;;  %v5108_v3 = vunpack.c.l.bf16 %v5403_v1  ;;  %v1621_v62 = vld [vmem:[#allocation2 + $0x33] sm:$0xff] }
  0x50   : > { %1396 = vmatpush.msrb.mxu3 %v5077_v17  ;;  %1095 = vmatpush.msrb.mxu2 %v5044_v32  ;;  %v5423_v32 = vld [vmem:[%s7204_s1 + $0x1a8] sm:$0xff]  }
  0x51   : > { %1697 = vmatpush.msrb.mxu0 %v5112_v43  ;;  %793 = vmatpush.msrb.mxu1 %v5012_v0  ;;  %v5189_v43 = vunpack.c.h.bf16 %v5423_v32  ;;  %v5431_v0 = vld [vmem:[%s7204_s1 + $0x1e8] sm:$0xff]  }
  0x52   : > { %1397 = vmatpush.msrb.mxu3 %v5076_v37  ;;  %1096 = vmatpush.msrb.mxu2 %v5041_v49  ;;  %v5221_v2 = vunpack.c.h.bf16 %v5431_v0  ;;  %v717_v49 = vld [vmem:[#allocation2 + $0x31] sm:$0xff] }
  0x53   : > { %506 = vmatmul.f32.gmra.mxu0 %v4904_v39  ;;  %794 = vmatpush.msrb.mxu1 %v5009_v14  ;;  %v4912_v39 = vunpack.c.l.bf16 %v5579_v8  ;;  %v5229_v8 = vunpack.c.h.bf16 %v5433_v54 }
  0x54   : > { %1698 = vmatpush.msrb.mxu0 %v5109_v5  ;;  %1398 = vmatpush.msrb.mxu3 %v5073_v11  ;;  %v5253_v11 = vunpack.c.h.bf16 %v5439_v30 }
  0x55   : > { %536 = vmatmul.f32.gmra.mxu1 %v4924_v12  ;;  %563 = vmatmul.f32.gmra.mxu2 %v4941_v26  ;;  %305 = vst [vmem:[#allocation2 + $0x40] sm:$0xff] %v4912_v39  ;;  %v5417_v12 = vld [vmem:[%s7204_s1 + $0x178] sm:$0xff]  }
  0x56   : > { %1097 = vmatpush.msrb.mxu2 %v5040_v44  ;;  %1699 = vmatpush.msrb.mxu0 %v5108_v3  ;;  %v5165_v26 = vunpack.c.h.bf16 %v5417_v12  ;;  %v5164_v35 = vunpack.c.l.bf16 %v5417_v12  ;;  %v1322_v3 = vld [vmem:[#allocation2 + $0x4a] sm:$0xff] }
  0x57   : > { %590 = vmatmul.f32.gmra.mxu3 %v4960_v46  ;;  %795 = vmatpush.msrb.mxu1 %v5008_v20  ;;  %v5441_v46 = vld [vmem:[%s7204_s1 + $0x238] sm:$0xff]   ;;  %v5188_v20 = vunpack.c.l.bf16 %v5423_v32  ;;  %v5152_v32 = vunpack.c.l.bf16 %v5414_v45 }
  0x58   : > { %1399 = vmatpush.msrb.mxu3 %v5072_v34  ;;  %2290 = vmatpush.msra.mxu2 %v5197_v21  ;;  %v5261_v24 = vunpack.c.h.bf16 %v5441_v46 }
  0x59   : > { %1700 = vmatpush.msrb.mxu0 %v5105_v23  ;;  %1988 = vmatpush.msra.mxu1 %v5165_v26 }
  0x5a   : > { %2592 = vmatpush.msra.mxu3 %v5229_v8  ;;  %2291 = vmatpush.msra.mxu2 %v5196_v7  ;;  %v1323_v8 = vld [vmem:[#allocation2 + $0x52] sm:$0xff] }
  0x5b   : > { %509 = vmatmul.f32.gmra.mxu0 %v4905_v13  ;;  %1989 = vmatpush.msra.mxu1 %v5164_v35  ;;  %v1315_v13 = vld [vmem:[#allocation2 + $0x12] sm:$0xff]  ;;  %v720_v35 = vld [vmem:[#allocation2 + $0x49] sm:$0xff] }
  0x5c   : > { %1701 = vmatpush.msrb.mxu0 %v5104_v29  ;;  %2593 = vmatpush.msra.mxu3 %v5228_v33  ;;  %v1320_v17 = vld [vmem:[#allocation2 + $0x3a] sm:$0xff]  ;;  %v1623_v5 = vld [vmem:[#allocation2 + $0x43] sm:$0xff] }
  0x5d   : > { %539 = vmatmul.f32.gmra.mxu1 %v4925_v48  ;;  %566 = vmatmul.f32.gmra.mxu2 %v4944_v60  ;;  %v5260_v48 = vunpack.c.l.bf16 %v5441_v46  ;;  %v1013_v60 = vld [vmem:[#allocation2 + $0x2] sm:$0xff]  ;;  %v718_v44 = vld [vmem:[#allocation2 + $0x39] sm:$0xff] }
  0x5e   : > { %2894 = vmatpush.msra.mxu0 %v5261_v24  ;;  %1990 = vmatpush.msra.mxu1 %v5161_v19  ;;  %v1622_v1 = vld [vmem:[#allocation2 + $0x3b] sm:$0xff]  ;;  %v1625_v46 = vld [vmem:[#allocation2 + $0x53] sm:$0xff]  ;;  %v5252_v24 = vunpack.c.l.bf16 %v5439_v30  ;;  %v5153_v19 = vunpack.c.h.bf16 %v5414_v45 }
  0x5f   : > { %593 = vmatmul.f32.gmra.mxu3 %v4961_v4  ;;  %v5424_v4 = vld [vmem:[%s7204_s1 + $0x1b0] sm:$0xff]   ;;  %v719_v54 = vld [vmem:[#allocation2 + $0x41] sm:$0xff] }
  0x60   : > { %2895 = vmatpush.msra.mxu0 %v5260_v48  ;;  %1991 = vmatpush.msra.mxu1 %v5160_v47  ;;  %v1324_v48 = vld [vmem:[#allocation2 + $0x5a] sm:$0xff] }
  0x63   : > { %512 = vmatmul.f32.gmra.mxu0 %v4908_v9  ;;  %v5440_v9 = vld [vmem:[%s7204_s1 + $0x230] sm:$0xff]  }
  0x64   : > { %v5257_v50 = vunpack.c.h.bf16 %v5440_v9  ;;  %v5256_v61 = vunpack.c.l.bf16 %v5440_v9 }
  0x65   : > { %542 = vmatmul.f32.gmra.mxu1 %v4928_v15  ;;  %569 = vmatmul.f32.gmra.mxu2 %v4945_v31  ;;  %v5193_v15 = vunpack.c.h.bf16 %v5424_v4  ;;  %v5225_v31 = vunpack.c.h.bf16 %v5432_v10 }
  0x66   : > { %2896 = vmatpush.msra.mxu0 %v5257_v50  ;;  %v1627_v50 = vld [vmem:[#allocation2 + $0x63] sm:$0xff] }
  0x67   : > { %596 = vmatmul.f32.gmra.mxu3 %v4964_v25  ;;  %2292 = vmatpush.msra.mxu2 %v5193_v15  ;;  %v713_v25 = vld [vmem:[#allocation2 + $0x11] sm:$0xff] }
  0x68   : > { %2594 = vmatpush.msra.mxu3 %v5225_v31  ;;  %2897 = vmatpush.msra.mxu0 %v5256_v61  ;;  %v721_v31 = vld [vmem:[#allocation2 + $0x51] sm:$0xff]  ;;  %v723_v61 = vld [vmem:[#allocation2 + $0x61] sm:$0xff] }
  0x6a   : > { %2595 = vmatpush.msra.mxu3 %v5224_v53  ;;  %2898 = vmatpush.msra.mxu0 %v5253_v11  ;;  %v1630_v11 = vld [vmem:[#allocation2 + $0x7b] sm:$0xff] }
  0x6b   : > { %515 = vmatmul.f32.gmra.mxu0 %v4909_v27  ;;  %v5415_v27 = vld [vmem:[%s7204_s1 + $0x168] sm:$0xff]  }
  0x6c   : > { %v5157_v37 = vunpack.c.h.bf16 %v5415_v27  ;;  %2596 = vmatpush.msra.mxu3 %v5221_v2  ;;  %v5156_v12 = vunpack.c.l.bf16 %v5415_v27  ;;  %2899 = vmatpush.msra.mxu0 %v5252_v24  ;;  %v1631_v24 = vld [vmem:[#allocation2 + $0x83] sm:$0xff] }
  0x6d   : > { %545 = vmatmul.f32.gmra.mxu1 %v4929_v51  ;;  %572 = vmatmul.f32.gmra.mxu2 %v4948_v63  ;;  %v5192_v51 = vunpack.c.l.bf16 %v5424_v4  ;;  %v716_v63 = vld [vmem:[#allocation2 + $0x29] sm:$0xff]  ;;  %v5422_v4 = vld [vmem:[%s7204_s1 + $0x1a0] sm:$0xff]  }
  0x6e   : > { %1992 = vmatpush.msra.mxu1 %v5157_v37  ;;  %v5185_v10 = vunpack.c.h.bf16 %v5422_v4  ;;  %v724_v37 = vld [vmem:[#allocation2 + $0x69] sm:$0xff] }
  0x6f   : > { %599 = vmatmul.f32.gmra.mxu3 %v4965_v57  ;;  %2293 = vmatpush.msra.mxu2 %v5192_v51  ;;  %v1321_v57 = vld [vmem:[#allocation2 + $0x42] sm:$0xff] }
  0x70   : > { %1993 = vmatpush.msra.mxu1 %v5156_v12  ;;  %v5429_v12 = vld [vmem:[%s7204_s1 + $0x1d8] sm:$0xff]  }
  0x71   : > { %2294 = vmatpush.msra.mxu2 %v5189_v43 }
  0x72   : > { %1994 = vmatpush.msra.mxu1 %v5153_v19  ;;  %v1632_v19 = vld [vmem:[#allocation2 + $0x8b] sm:$0xff] }
  0x73   : > { %518 = vmatmul.f32.gmra.mxu0 %v4912_v39  ;;  %v5220_v39 = vunpack.c.l.bf16 %v5431_v0  ;;  %2295 = vmatpush.msra.mxu2 %v5188_v20  ;;  %v725_v20 = vld [vmem:[#allocation2 + $0x71] sm:$0xff] }
  0x74   : > { %1995 = vmatpush.msra.mxu1 %v5152_v32 }
  0x75   : > { %796 = vmatmul.f32.vlgmr.msrb.gmra.mxu1 %v711_v56  ;;  %1098 = vmatmul.f32.vlgmr.msrb.gmra.mxu2 %v1013_v60 }
  0x76   : > { %2597 = vmatpush.msra.mxu3 %v5220_v39  ;;  %2296 = vmatpush.msra.mxu2 %v5185_v10  ;;  %v5421_v39 = vld [vmem:[%s7204_s1 + $0x198] sm:$0xff]  }
  0x77   : > { %1400 = vmatmul.f32.vlgmr.msrb.gmra.mxu3 %v1315_v13  ;;  %v726_v10 = vld [vmem:[#allocation2 + $0x79] sm:$0xff] }
  0x7b   : > { %1702 = vmatmul.f32.vlgmr.msrb.gmra.mxu0 %v1617_v6 }
  0x7d   : > { %799 = vmatmul.f32.gmra.mxu1 %v712_v36  ;;  %1101 = vmatmul.f32.gmra.mxu2 %v1014_v40  ;;  %v5430_v36 = vld [vmem:[%s7204_s1 + $0x1e0] sm:$0xff]  }
  0x7e   : > { %v5217_v40 = vunpack.c.h.bf16 %v5430_v36 }
  0x7f   : > { %1403 = vmatmul.f32.gmra.mxu3 %v1316_v42 }
  0x80   : > { %2598 = vmatpush.msra.mxu3 %v5217_v40  ;;  %v5437_v40 = vld [vmem:[%s7204_s1 + $0x218] sm:$0xff]  }
  0x83   : > { %1705 = vmatmul.f32.gmra.mxu0 %v1618_v22 }
  0x85   : > { %802 = vmatmul.f32.gmra.mxu1 %v713_v25  ;;  %1104 = vmatmul.f32.gmra.mxu2 %v1315_v13  ;;  %v1626_v13 = vld [vmem:[#allocation2 + $0x5b] sm:$0xff] }
  0x87   : > { %1406 = vmatmul.f32.gmra.mxu3 %v1317_v38 }
  0x8b   : > { %1708 = vmatmul.f32.gmra.mxu0 %v1619_v28  ;;  %v722_v28 = vld [vmem:[#allocation2 + $0x59] sm:$0xff] }
  0x8d   : > { %805 = vmatmul.f32.gmra.mxu1 %v714_v41  ;;  %1107 = vmatmul.f32.gmra.mxu2 %v1316_v42  ;;  %v1325_v42 = vld [vmem:[#allocation2 + $0x62] sm:$0xff] }
  0x8e   : > { %v5438_v41 = vld [vmem:[%s7204_s1 + $0x220] sm:$0xff]  }
  0x8f   : > { %1409 = vmatmul.f32.gmra.mxu3 %v1318_v52  ;;  %v5249_v51 = vunpack.c.h.bf16 %v5438_v41 }
  0x91   : > { %2900 = vmatpush.msra.mxu0 %v5249_v51  ;;  %v727_v51 = vld [vmem:[#allocation2 + $0x81] sm:$0xff] }
  0x93   : > { %1711 = vmatmul.f32.gmra.mxu0 %v1620_v55  ;;  %v1628_v55 = vld [vmem:[#allocation2 + $0x6b] sm:$0xff] }
  0x95   : > { %808 = vmatmul.f32.gmra.mxu1 %v715_v58  ;;  %1110 = vmatmul.f32.gmra.mxu2 %v1317_v38 }
  0x97   : > { %1412 = vmatmul.f32.gmra.mxu3 %v1319_v59 }
  0x9b   : > { %1714 = vmatmul.f32.gmra.mxu0 %v1621_v62  ;;  %v5184_v62 = vunpack.c.l.bf16 %v5422_v4 }
  0x9d   : > { %811 = vmatmul.f32.gmra.mxu1 %v716_v63  ;;  %1113 = vmatmul.f32.gmra.mxu2 %v1318_v52  ;;  %v1326_v52 = vld [vmem:[#allocation2 + $0x6a] sm:$0xff]  ;;  %v1327_v63 = vld [vmem:[#allocation2 + $0x72] sm:$0xff] }
  0x9e   : > { %2297 = vmatpush.msra.mxu2 %v5184_v62 }
  0x9f   : > { %1415 = vmatmul.f32.gmra.mxu3 %v1320_v17 }
  0xa3   : > { %1717 = vmatmul.f32.gmra.mxu0 %v1622_v1  ;;  %v1629_v1 = vld [vmem:[#allocation2 + $0x73] sm:$0xff] }
  0xa5   : > { %814 = vmatmul.f32.gmra.mxu1 %v717_v49  ;;  %1116 = vmatmul.f32.gmra.mxu2 %v1319_v59  ;;  %v1328_v49 = vld [vmem:[#allocation2 + $0x7a] sm:$0xff] }
  0xa7   : > { %1418 = vmatmul.f32.gmra.mxu3 %v1321_v57 }
  0xaa   : > { %v5955_v14 = vpop.f32.mrf.mxu1 }
  0xab   : > { %1720 = vmatmul.f32.gmra.mxu0 %v1623_v5 }
  0xad   : > { %817 = vmatmul.f32.gmra.mxu1 %v718_v44  ;;  %1119 = vmatmul.f32.gmra.mxu2 %v1320_v17  ;;  %v5216_v17 = vunpack.c.l.bf16 %v5430_v36  ;;  %v1330_v36 = vld [vmem:[#allocation2 + $0x8a] sm:$0xff] }
  0xaf   : > { %1421 = vmatmul.f32.gmra.mxu3 %v1322_v3 }
  0xb0   : > { %v5957_v34 = vpop.f32.mrf.mxu2  ;;  %v5959_v16 = vpop.f32.mrf.mxu0  ;;  %2599 = vmatpush.msra.mxu3 %v5216_v17  ;;  %v1633_v17 = vld [vmem:[#allocation2 + $0x93] sm:$0xff] }
  0xb2   : > { %v5961_v21 = vpop.f32.mrf.mxu1  ;;  %v5963_v23 = vpop.f32.mrf.mxu3 }
  0xb3   : > { %1723 = vmatmul.f32.gmra.mxu0 %v1624_v18  ;;  %v1329_v18 = vld [vmem:[#allocation2 + $0x82] sm:$0xff] }
  0xb5   : > { %820 = vmatmul.f32.gmra.mxu1 %v719_v54  ;;  %1122 = vmatmul.f32.gmra.mxu2 %v1321_v57  ;;  %v5248_v57 = vunpack.c.l.bf16 %v5438_v41  ;;  %v5181_v54 = vunpack.c.h.bf16 %v5421_v39 }
  0xb7   : > { %1424 = vmatmul.f32.gmra.mxu3 %v1323_v8  ;;  %2901 = vmatpush.msra.mxu0 %v5248_v57  ;;  %v728_v57 = vld [vmem:[#allocation2 + $0x89] sm:$0xff] }
  0xb8   : > { %v5965_v26 = vpop.f32.mrf.mxu2  ;;  %v5967_v29 = vpop.f32.mrf.mxu0  ;;  %2298 = vmatpush.msra.mxu2 %v5181_v54  ;;  %v1332_v54 = vld [vmem:[#allocation2 + $0x9a] sm:$0xff] }
  0xba   : > { %v5969_v7 = vpop.f32.mrf.mxu1  ;;  %v5971_v33 = vpop.f32.mrf.mxu3 }
  0xbb   : > { %1726 = vmatmul.f32.gmra.mxu0 %v1625_v46 }
  0xbd   : > { %823 = vmatmul.f32.gmra.mxu1 %v720_v35  ;;  %1125 = vmatmul.f32.gmra.mxu2 %v1322_v3  ;;  %v5213_v35 = vunpack.c.h.bf16 %v5429_v12 }
  0xbf   : > { %1427 = vmatmul.f32.gmra.mxu3 %v1324_v48 }
  0xc0   : > { %v5973_v56 = vpop.f32.mrf.mxu2  ;;  %v5975_v60 = vpop.f32.mrf.mxu0  ;;  %2600 = vmatpush.msra.mxu3 %v5213_v35  ;;  %v1634_v35 = vld [vmem:[#allocation2 + $0x9b] sm:$0xff] }
  0xc2   : > { %v5980_v6 = vpop.f32.mrf.mxu1  ;;  %v5982_v15 = vpop.f32.mrf.mxu3 }
  0xc3   : > { %1729 = vmatmul.f32.gmra.mxu0 %v1626_v13 }
  0xc5   : > { %826 = vmatmul.f32.gmra.mxu1 %v721_v31  ;;  %1128 = vmatmul.f32.gmra.mxu2 %v1323_v8 }
  0xc7   : > { %1430 = vmatmul.f32.gmra.mxu3 %v1325_v42 }
  0xc8   : > { %v5990_v9 = vpop.f32.mrf.mxu2  ;;  %v5992_v22 = vpop.f32.mrf.mxu0 }
  0xca   : > { %v5994_v25 = vpop.f32.mrf.mxu1  ;;  %v5996_v38 = vpop.f32.mrf.mxu3 }
  0xcb   : > { %1732 = vmatmul.f32.gmra.mxu0 %v1627_v50  ;;  %v5245_v50 = vunpack.c.h.bf16 %v5437_v40 }
  0xcd   : > { %829 = vmatmul.f32.gmra.mxu1 %v722_v28  ;;  %1131 = vmatmul.f32.gmra.mxu2 %v1324_v48  ;;  %v5413_v48 = vld [vmem:[%s7204_s1 + $0x158] sm:$0xff]  }
  0xce   : > { %v5149_v31 = vunpack.c.h.bf16 %v5413_v48  ;;  %2902 = vmatpush.msra.mxu0 %v5245_v50  ;;  %v729_v50 = vld [vmem:[#allocation2 + $0x91] sm:$0xff] }
  0xcf   : > { %1433 = vmatmul.f32.gmra.mxu3 %v1326_v52 }
  0xd0   : > { %v6001_v53 = vpop.f32.mrf.mxu2  ;;  %v6003_v47 = vpop.f32.mrf.mxu0  ;;  %1996 = vmatpush.msra.mxu1 %v5149_v31 }
  0xd2   : > { %v6005_v58 = vpop.f32.mrf.mxu1  ;;  %v6007_v59 = vpop.f32.mrf.mxu3 }
  0xd3   : > { %1735 = vmatmul.f32.gmra.mxu0 %v1628_v55 }
  0xd5   : > { %832 = vmatmul.f32.gmra.mxu1 %v723_v61  ;;  %1134 = vmatmul.f32.gmra.mxu2 %v1325_v42  ;;  %v5180_v61 = vunpack.c.l.bf16 %v5421_v39 }
  0xd7   : > { %1436 = vmatmul.f32.gmra.mxu3 %v1327_v63  ;;  %2299 = vmatpush.msra.mxu2 %v5180_v61  ;;  %v1635_v61 = vld [vmem:[#allocation2 + $0xa3] sm:$0xff] }
  0xd8   : > { %v6009_v43 = vpop.f32.mrf.mxu2  ;;  %v6011_v0 = vpop.f32.mrf.mxu0 }
  0xda   : > { %v6013_v2 = vpop.f32.mrf.mxu1  ;;  %v6015_v27 = vpop.f32.mrf.mxu3 }
  0xdb   : > { %1738 = vmatmul.f32.gmra.mxu0 %v1629_v1  ;;  %v5212_v1 = vunpack.c.l.bf16 %v5429_v12 }
  0xdd   : > { %835 = vmatmul.f32.gmra.mxu1 %v724_v37  ;;  %1137 = vmatmul.f32.gmra.mxu2 %v1326_v52  ;;  %v1331_v52 = vld [vmem:[#allocation2 + $0x92] sm:$0xff] }
  0xde   : > { %2601 = vmatpush.msra.mxu3 %v5212_v1 }
  0xdf   : > { %1439 = vmatmul.f32.gmra.mxu3 %v1328_v49 }
  0xe0   : > { %v6017_v30 = vpop.f32.mrf.mxu2  ;;  %v6019_v5 = vpop.f32.mrf.mxu0 }
  0xe2   : > { %v6021_v44 = vpop.f32.mrf.mxu1  ;;  %v6023_v3 = vpop.f32.mrf.mxu3 }
  0xe3   : > { %1741 = vmatmul.f32.gmra.mxu0 %v1630_v11 }
  0xe5   : > { %838 = vmatmul.f32.gmra.mxu1 %v725_v20  ;;  %1140 = vmatmul.f32.gmra.mxu2 %v1327_v63  ;;  %v5148_v20 = vunpack.c.l.bf16 %v5413_v48  ;;  %v1333_v48 = vld [vmem:[#allocation2 + $0xa2] sm:$0xff] }
  0xe7   : > { %1442 = vmatmul.f32.gmra.mxu3 %v1329_v18  ;;  %1997 = vmatpush.msra.mxu1 %v5148_v20 }
  0xe8   : > { %v6031_v8 = vpop.f32.mrf.mxu2  ;;  %v6033_v46 = vpop.f32.mrf.mxu0 }
  0xea   : > { %v6038_v13 = vpop.f32.mrf.mxu1  ;;  %v6040_v4 = vpop.f32.mrf.mxu3 }
  0xeb   : > { %1744 = vmatmul.f32.gmra.mxu0 %v1631_v24 }
  0xed   : > { %841 = vmatmul.f32.gmra.mxu1 %v726_v10  ;;  %1143 = vmatmul.f32.gmra.mxu2 %v1328_v49  ;;  %v5244_v10 = vunpack.c.l.bf16 %v5437_v40  ;;  %v5420_v40 = vld [vmem:[%s7204_s1 + $0x190] sm:$0xff]  }
  0xee   : > { %v5177_v1 = vunpack.c.h.bf16 %v5420_v40 }
  0xef   : > { %1445 = vmatmul.f32.gmra.mxu3 %v1330_v36  ;;  %2903 = vmatpush.msra.mxu0 %v5244_v10 }
  0xf0   : > { %v6045_v42 = vpop.f32.mrf.mxu2  ;;  %v6047_v45 = vpop.f32.mrf.mxu0  ;;  %2300 = vmatpush.msra.mxu2 %v5177_v1  ;;  %v732_v1 = vld [vmem:[#allocation2 + $0xa9] sm:$0xff] }
  0xf2   : > { %v6049_v28 = vpop.f32.mrf.mxu3  ;;  %v797_v41 = vpop.f32.mrf.mxu1 }
  0xf3   : > { %1747 = vmatmul.f32.gmra.mxu0 %v1632_v19  ;;  %v905_v55 = vadd.f32 %v797_v41, %v5959_v16 }
  0xf5   : > { %844 = vmatmul.f32.gmra.mxu1 %v727_v51  ;;  %1146 = vmatmul.f32.gmra.mxu2 %v1329_v18 }
  0xf7   : > { %1448 = vmatmul.f32.gmra.mxu3 %v1331_v52 }
  0xf8   : > { %v1099_v62 = vpop.f32.mrf.mxu2  ;;  %v1703_v63 = vpop.f32.mrf.mxu0 }
  0xf9   : > { %v1207_v32 = vadd.f32 %v1099_v62, %v905_v55 }
  0xfa   : > { %v800_v37 = vpop.f32.mrf.mxu1  ;;  %v1401_v49 = vpop.f32.mrf.mxu3 }
  0xfb   : > { %v1509_v11 = vadd.f32 %v1401_v49, %v1207_v32  ;;  %1750 = vmatmul.f32.gmra.mxu0 %v1633_v17  ;;  %v906_v16 = vadd.f32 %v800_v37, %v5967_v29  ;;  %v730_v32 = vld [vmem:[#allocation2 + $0x99] sm:$0xff] }
  0xfd   : > { %v6052_v24 = vadd.f32 %v1703_v63, %v1509_v11  ;;  %847 = vmatmul.f32.gmra.mxu1 %v728_v57  ;;  %1149 = vmatmul.f32.gmra.mxu2 %v1330_v36  ;;  %v5412_v11 = vld [vmem:[%s7204_s1 + $0x150] sm:$0xff]  }
  0xfe   : > { %v5145_v20 = vunpack.c.h.bf16 %v5412_v11 }
  0xff   : > { %1451 = vmatmul.f32.gmra.mxu3 %v1332_v54 }
 0x100   : > { %v1102_v18 = vpop.f32.mrf.mxu2  ;;  %v1706_v39 = vpop.f32.mrf.mxu0  ;;  %1998 = vmatpush.msra.mxu1 %v5145_v20  ;;  %v1336_v20 = vld [vmem:[#allocation2 + $0xba] sm:$0xff] }
 0x101   : > { %v1208_v12 = vadd.f32 %v1102_v18, %v906_v16 }
 0x102   : > { %v803_v31 = vpop.f32.mrf.mxu1  ;;  %v1404_v19 = vpop.f32.mrf.mxu3 }
 0x103   : > { %v1510_v41 = vadd.f32 %v1404_v19, %v1208_v12  ;;  %1753 = vmatmul.f32.gmra.mxu0 %v1634_v35  ;;  %v907_v36 = vadd.f32 %v803_v31, %v5975_v60  ;;  %v1334_v60 = vld [vmem:[#allocation2 + $0xaa] sm:$0xff]  ;;  %v731_v19 = vld [vmem:[#allocation2 + $0xa1] sm:$0xff] }
 0x104   : > { %v1636_v35 = vld [vmem:[#allocation2 + $0xab] sm:$0xff] }
 0x105   : > { %v6055_v51 = vadd.f32 %v1706_v39, %v1510_v41  ;;  %850 = vmatmul.f32.gmra.mxu1 %v729_v50  ;;  %1152 = vmatmul.f32.gmra.mxu2 %v1331_v52  ;;  %v5428_v52 = vld [vmem:[%s7204_s1 + $0x1d0] sm:$0xff]  }
 0x106   : > { %v5209_v49 = vunpack.c.h.bf16 %v5428_v52  ;;  %v1335_v41 = vld [vmem:[#allocation2 + $0xb2] sm:$0xff] }
 0x107   : > { %1454 = vmatmul.f32.gmra.mxu3 %v1333_v48 }
 0x108   : > { %v1105_v29 = vpop.f32.mrf.mxu2  ;;  %v1709_v55 = vpop.f32.mrf.mxu0  ;;  %2602 = vmatpush.msra.mxu3 %v5209_v49  ;;  %v5176_v49 = vunpack.c.l.bf16 %v5420_v40  ;;  %v733_v40 = vld [vmem:[#allocation2 + $0xb1] sm:$0xff] }
 0x109   : > { %v1209_v62 = vadd.f32 %v1105_v29, %v907_v36 }
 0x10a   : > { %v806_v63 = vpop.f32.mrf.mxu1  ;;  %v1407_v17 = vpop.f32.mrf.mxu3  ;;  %2301 = vmatpush.msra.mxu2 %v5176_v49  ;;  %v5427_v49 = vld [vmem:[%s7204_s1 + $0x1c8] sm:$0xff]  }
 0x10b   : > { %v1511_v37 = vadd.f32 %v1407_v17, %v1209_v62  ;;  %1756 = vmatmul.f32.gmra.mxu0 %v1635_v61  ;;  %v908_v16 = vadd.f32 %v806_v63, %v5992_v22  ;;  %v1637_v62 = vld [vmem:[#allocation2 + $0xb3] sm:$0xff] }
 0x10d   : > { %v6064_v57 = vadd.f32 %v1709_v55, %v1511_v37  ;;  %853 = vmatmul.f32.gmra.mxu1 %v730_v32  ;;  %1155 = vmatmul.f32.gmra.mxu2 %v1332_v54  ;;  %v5436_v54 = vld [vmem:[%s7204_s1 + $0x210] sm:$0xff]  }
 0x10e   : > { %v5241_v36 = vunpack.c.h.bf16 %v5436_v54 }
 0x10f   : > { %1457 = vmatmul.f32.gmra.mxu3 %v1334_v60 }
 0x110   : > { %v1108_v18 = vpop.f32.mrf.mxu2  ;;  %v1712_v39 = vpop.f32.mrf.mxu0  ;;  %2904 = vmatpush.msra.mxu0 %v5241_v36  ;;  %v1337_v36 = vld [vmem:[#allocation2 + $0xc2] sm:$0xff] }
 0x111   : > { %v1210_v12 = vadd.f32 %v1108_v18, %v908_v16  ;;  %v5144_v18 = vunpack.c.l.bf16 %v5412_v11 }
 0x112   : > { %v809_v10 = vpop.f32.mrf.mxu1  ;;  %v1410_v31 = vpop.f32.mrf.mxu3 }
 0x113   : > { %v1512_v50 = vadd.f32 %v1410_v31, %v1210_v12  ;;  %1759 = vmatmul.f32.gmra.mxu0 %v1636_v35  ;;  %v909_v22 = vadd.f32 %v809_v10, %v6003_v47  ;;  %v1638_v12 = vld [vmem:[#allocation2 + $0xbb] sm:$0xff]  ;;  %1999 = vmatpush.msra.mxu1 %v5144_v18  ;;  %v1640_v18 = vld [vmem:[#allocation2 + $0xcb] sm:$0xff] }
 0x115   : > { %v6073_v29 = vadd.f32 %v1712_v39, %v1512_v50  ;;  %856 = vmatmul.f32.gmra.mxu1 %v731_v19  ;;  %1158 = vmatmul.f32.gmra.mxu2 %v1333_v48  ;;  %v5208_v48 = vunpack.c.l.bf16 %v5428_v52  ;;  %v5240_v52 = vunpack.c.l.bf16 %v5436_v54 }
 0x117   : > { %1460 = vmatmul.f32.gmra.mxu3 %v1335_v41  ;;  %2905 = vmatpush.msra.mxu0 %v5240_v52 }
 0x118   : > { %v1111_v55 = vpop.f32.mrf.mxu2  ;;  %v1715_v61 = vpop.f32.mrf.mxu0  ;;  %2603 = vmatpush.msra.mxu3 %v5208_v48 }
 0x119   : > { %v1211_v63 = vadd.f32 %v1111_v55, %v909_v22  ;;  %v1639_v55 = vld [vmem:[#allocation2 + $0xc3] sm:$0xff] }
 0x11a   : > { %v812_v17 = vpop.f32.mrf.mxu1  ;;  %v1413_v32 = vpop.f32.mrf.mxu3 }
 0x11b   : > { %v1513_v37 = vadd.f32 %v1413_v32, %v1211_v63  ;;  %1762 = vmatmul.f32.gmra.mxu0 %v1637_v62  ;;  %v910_v47 = vadd.f32 %v812_v17, %v6011_v0  ;;  %v734_v17 = vld [vmem:[#allocation2 + $0xb9] sm:$0xff] }
 0x11d   : > { %v6076_v16 = vadd.f32 %v1715_v61, %v1513_v37  ;;  %859 = vmatmul.f32.gmra.mxu1 %v732_v1  ;;  %1161 = vmatmul.f32.gmra.mxu2 %v1334_v60  ;;  %v1338_v1 = vld [vmem:[#allocation2 + $0xca] sm:$0xff] }
 0x11f   : > { %1463 = vmatmul.f32.gmra.mxu3 %v1336_v20 }
 0x120   : > { %v1114_v39 = vpop.f32.mrf.mxu2  ;;  %v1718_v35 = vpop.f32.mrf.mxu0 }
 0x121   : > { %v1212_v10 = vadd.f32 %v1114_v39, %v910_v47  ;;  %v5205_v39 = vunpack.c.h.bf16 %v5427_v49 }
 0x122   : > { %v815_v31 = vpop.f32.mrf.mxu1  ;;  %v1416_v19 = vpop.f32.mrf.mxu3 }
 0x123   : > { %v1514_v50 = vadd.f32 %v1416_v19, %v1212_v10  ;;  %1765 = vmatmul.f32.gmra.mxu0 %v1638_v12  ;;  %v911_v0 = vadd.f32 %v815_v31, %v6019_v5  ;;  %v5419_v5 = vld [vmem:[%s7204_s1 + $0x188] sm:$0xff]   ;;  %2604 = vmatpush.msra.mxu3 %v5205_v39  ;;  %v1642_v39 = vld [vmem:[#allocation2 + $0xdb] sm:$0xff] }
 0x124   : > { %v5173_v54 = vunpack.c.h.bf16 %v5419_v5  ;;  %v735_v31 = vld [vmem:[#allocation2 + $0xc1] sm:$0xff] }
 0x125   : > { %v6079_v22 = vadd.f32 %v1718_v35, %v1514_v50  ;;  %862 = vmatmul.f32.gmra.mxu1 %v733_v40  ;;  %1164 = vmatmul.f32.gmra.mxu2 %v1335_v41  ;;  %v1339_v40 = vld [vmem:[#allocation2 + $0xd2] sm:$0xff] }
 0x126   : > { %2302 = vmatpush.msra.mxu2 %v5173_v54 }
 0x127   : > { %1466 = vmatmul.f32.gmra.mxu3 %v1337_v36 }
 0x128   : > { %v1117_v60 = vpop.f32.mrf.mxu2  ;;  %v1721_v11 = vpop.f32.mrf.mxu0 }
 0x129   : > { %v1213_v61 = vadd.f32 %v1117_v60, %v911_v0  ;;  %v5435_v0 = vld [vmem:[%s7204_s1 + $0x208] sm:$0xff]  }
 0x12a   : > { %v818_v62 = vpop.f32.mrf.mxu1  ;;  %v1419_v63 = vpop.f32.mrf.mxu3 }
 0x12b   : > { %v1515_v32 = vadd.f32 %v1419_v63, %v1213_v61  ;;  %1768 = vmatmul.f32.gmra.mxu0 %v1639_v55  ;;  %v912_v41 = vadd.f32 %v818_v62, %v6033_v46  ;;  %v1641_v55 = vld [vmem:[#allocation2 + $0xd3] sm:$0xff]  ;;  %v5237_v61 = vunpack.c.h.bf16 %v5435_v0 }
 0x12d   : > { %v6082_v37 = vadd.f32 %v1721_v11, %v1515_v32  ;;  %865 = vmatmul.f32.gmra.mxu1 %v734_v17  ;;  %1167 = vmatmul.f32.gmra.mxu2 %v1336_v20  ;;  %v5411_v20 = vld [vmem:[%s7204_s1 + $0x148] sm:$0xff]  }
 0x12e   : > { %v5141_v46 = vunpack.c.h.bf16 %v5411_v20  ;;  %v736_v32 = vld [vmem:[#allocation2 + $0xc9] sm:$0xff]  ;;  %2906 = vmatpush.msra.mxu0 %v5237_v61  ;;  %v5236_v61 = vunpack.c.l.bf16 %v5435_v0  ;;  %v5418_v0 = vld [vmem:[%s7204_s1 + $0x180] sm:$0xff]  }
 0x12f   : > { %1469 = vmatmul.f32.gmra.mxu3 %v1338_v1 }
 0x130   : > { %v1120_v48 = vpop.f32.mrf.mxu2  ;;  %v1724_v47 = vpop.f32.mrf.mxu0  ;;  %2000 = vmatpush.msra.mxu1 %v5141_v46  ;;  %v737_v46 = vld [vmem:[#allocation2 + $0xd1] sm:$0xff]  ;;  %2907 = vmatpush.msra.mxu0 %v5236_v61 }
 0x131   : > { %v1214_v35 = vadd.f32 %v1120_v48, %v912_v41  ;;  %v1340_v41 = vld [vmem:[#allocation2 + $0xda] sm:$0xff]  ;;  %v5172_v48 = vunpack.c.l.bf16 %v5419_v5 }
 0x132   : > { %v821_v12 = vpop.f32.mrf.mxu1  ;;  %v1422_v10 = vpop.f32.mrf.mxu3  ;;  %v1645_v61 = vld [vmem:[#allocation2 + $0xf3] sm:$0xff] }
 0x133   : > { %v1516_v19 = vadd.f32 %v1422_v10, %v1214_v35  ;;  %1771 = vmatmul.f32.gmra.mxu0 %v1640_v18  ;;  %v913_v52 = vadd.f32 %v821_v12, %v6047_v45  ;;  %2303 = vmatpush.msra.mxu2 %v5172_v48  ;;  %v5204_v12 = vunpack.c.l.bf16 %v5427_v49  ;;  %v1644_v48 = vld [vmem:[#allocation2 + $0xeb] sm:$0xff] }
 0x135   : > { %v6094_v50 = vadd.f32 %v1724_v47, %v1516_v19  ;;  %868 = vmatmul.f32.gmra.mxu1 %v735_v31  ;;  %1170 = vmatmul.f32.gmra.mxu2 %v1337_v36 }
 0x136   : > { %2605 = vmatpush.msra.mxu3 %v5204_v12  ;;  %v5169_v12 = vunpack.c.h.bf16 %v5418_v0 }
 0x137   : > { %1472 = vmatmul.f32.gmra.mxu3 %v1339_v40 }
 0x138   : > { %v1123_v60 = vpop.f32.mrf.mxu2  ;;  %v1727_v11 = vpop.f32.mrf.mxu0  ;;  %2304 = vmatpush.msra.mxu2 %v5169_v12 }
 0x139   : > { %v1215_v62 = vadd.f32 %v1123_v60, %v913_v52  ;;  %v5140_v52 = vunpack.c.l.bf16 %v5411_v20  ;;  %v1341_v60 = vld [vmem:[#allocation2 + $0xe2] sm:$0xff]  ;;  %v1342_v20 = vld [vmem:[#allocation2 + $0xea] sm:$0xff] }
 0x13a   : > { %v824_v63 = vpop.f32.mrf.mxu1  ;;  %v1425_v17 = vpop.f32.mrf.mxu3 }
 0x13b   : > { %v1517_v54 = vadd.f32 %v1425_v17, %v1215_v62  ;;  %1774 = vmatmul.f32.gmra.mxu0 %v1641_v55  ;;  %v914_v45 = vadd.f32 %v824_v63, %v5955_v14  ;;  %2001 = vmatpush.msra.mxu1 %v5140_v52  ;;  %v1643_v55 = vld [vmem:[#allocation2 + $0xe3] sm:$0xff]  ;;  %v738_v17 = vld [vmem:[#allocation2 + $0xd9] sm:$0xff] }
 0x13c   : > { %v5410_v52 = vld [vmem:[%s7204_s1 + $0x140] sm:$0xff]  }
 0x13d   : > { %v6100_v36 = vadd.f32 %v1727_v11, %v1517_v54  ;;  %871 = vmatmul.f32.gmra.mxu1 %v736_v32  ;;  %1173 = vmatmul.f32.gmra.mxu2 %v1338_v1 }
 0x13f   : > { %1475 = vmatmul.f32.gmra.mxu3 %v1340_v41 }
 0x140   : > { %v1126_v47 = vpop.f32.mrf.mxu2  ;;  %v1730_v18 = vpop.f32.mrf.mxu0 }
 0x141   : > { %v1216_v35 = vadd.f32 %v1126_v47, %v914_v45 }
 0x142   : > { %v827_v10 = vpop.f32.mrf.mxu1  ;;  %v1428_v31 = vpop.f32.mrf.mxu3 }
 0x143   : > { %v1518_v19 = vadd.f32 %v1428_v31, %v1216_v35  ;;  %1777 = vmatmul.f32.gmra.mxu0 %v1642_v39  ;;  %v915_v14 = vadd.f32 %v827_v10, %v5961_v21  ;;  %v739_v35 = vld [vmem:[#allocation2 + $0xe1] sm:$0xff] }
 0x145   : > { %v6103_v11 = vadd.f32 %v1730_v18, %v1518_v19  ;;  %874 = vmatmul.f32.gmra.mxu1 %v737_v46  ;;  %1176 = vmatmul.f32.gmra.mxu2 %v1339_v40  ;;  %v5369_v46 = vld [vmem:[%s5576_s26 + $0x90] sm:$0xff]  }
 0x147   : > { %1478 = vmatmul.f32.gmra.mxu3 %v1341_v60 }
 0x148   : > { %v1129_v1 = vpop.f32.mrf.mxu2  ;;  %v1733_v5 = vpop.f32.mrf.mxu0 }
 0x149   : > { %v1217_v49 = vadd.f32 %v1129_v1, %v915_v14  ;;  %v4968_v14 = vunpack.c.l.bf16 %v5369_v46  ;;  %v5137_v1 = vunpack.c.h.bf16 %v5410_v52 }
 0x14a   : > { %v830_v62 = vpop.f32.mrf.mxu1  ;;  %v1431_v63 = vpop.f32.mrf.mxu3 }
 0x14b   : > { %v1519_v32 = vadd.f32 %v1431_v63, %v1217_v49  ;;  %1780 = vmatmul.f32.gmra.mxu0 %v1643_v55  ;;  %v916_v40 = vadd.f32 %v830_v62, %v5969_v7  ;;  %v5426_v7 = vld [vmem:[%s7204_s1 + $0x1c0] sm:$0xff]   ;;  %333 = vst [vmem:[#allocation2 + $0x120] sm:$0xff] %v4968_v14  ;;  %2002 = vmatpush.msra.mxu1 %v5137_v1  ;;  %v741_v14 = vld [vmem:[#allocation2 + $0xf1] sm:$0xff] }
 0x14c   : > { %v5201_v31 = vunpack.c.h.bf16 %v5426_v7 }
 0x14d   : > { %v6106_v54 = vadd.f32 %v1733_v5, %v1519_v32  ;;  %877 = vmatmul.f32.gmra.mxu1 %v738_v17  ;;  %1179 = vmatmul.f32.gmra.mxu2 %v1340_v41  ;;  %v1343_v41 = vld [vmem:[#allocation2 + $0xf2] sm:$0xff]  ;;  %v740_v32 = vld [vmem:[#allocation2 + $0xe9] sm:$0xff] }
 0x14e   : > { %2606 = vmatpush.msra.mxu3 %v5201_v31 }
 0x14f   : > { %1481 = vmatmul.f32.gmra.mxu3 %v1342_v20 }
 0x150   : > { %v1132_v21 = vpop.f32.mrf.mxu2  ;;  %v1736_v45 = vpop.f32.mrf.mxu0 }
 0x151   : > { %v1218_v47 = vadd.f32 %v1132_v21, %v916_v40  ;;  %v5434_v40 = vld [vmem:[%s7204_s1 + $0x200] sm:$0xff]  }
 0x152   : > { %v833_v18 = vpop.f32.mrf.mxu1  ;;  %v1434_v39 = vpop.f32.mrf.mxu3  ;;  %v1344_v21 = vld [vmem:[#allocation2 + $0xfa] sm:$0xff] }
 0x153   : > { %v1520_v10 = vadd.f32 %v1434_v39, %v1218_v47  ;;  %1783 = vmatmul.f32.gmra.mxu0 %v1644_v48  ;;  %v917_v5 = vadd.f32 %v833_v18, %v5980_v6  ;;  %v4969_v6 = vunpack.c.h.bf16 %v5369_v46  ;;  %v5200_v46 = vunpack.c.l.bf16 %v5426_v7 }
 0x155   : > { %v6116_v19 = vadd.f32 %v1736_v45, %v1520_v10  ;;  %880 = vmatmul.f32.gmra.mxu1 %v739_v35  ;;  %1182 = vmatmul.f32.gmra.mxu2 %v1341_v60  ;;  %v5233_v45 = vunpack.c.h.bf16 %v5434_v40  ;;  %334 = vst [vmem:[#allocation2 + $0x128] sm:$0xff] %v4969_v6  ;;  %v1646_v35 = vld [vmem:[#allocation2 + $0xfb] sm:$0xff] }
 0x156   : > { %2607 = vmatpush.msra.mxu3 %v5200_v46  ;;  %v742_v6 = vld [vmem:[#allocation2 + $0xf9] sm:$0xff] }
 0x157   : > { %1484 = vmatmul.f32.gmra.mxu3 %v1343_v41  ;;  %2908 = vmatpush.msra.mxu0 %v5233_v45  ;;  %v1649_v46 = vld [vmem:[#allocation2 + $0x113] sm:$0xff] }
 0x158   : > { %v1135_v55 = vpop.f32.mrf.mxu2  ;;  %v1739_v49 = vpop.f32.mrf.mxu0 }
 0x159   : > { %v1219_v62 = vadd.f32 %v1135_v55, %v917_v5  ;;  %v5168_v5 = vunpack.c.l.bf16 %v5418_v0  ;;  %v1345_v55 = vld [vmem:[#allocation2 + $0x102] sm:$0xff] }
 0x15a   : > { %v836_v63 = vpop.f32.mrf.mxu1  ;;  %v1437_v17 = vpop.f32.mrf.mxu3 }
 0x15b   : > { %v1521_v60 = vadd.f32 %v1437_v17, %v1219_v62  ;;  %1786 = vmatmul.f32.gmra.mxu0 %v1645_v61  ;;  %v918_v47 = vadd.f32 %v836_v63, %v5994_v25  ;;  %2305 = vmatpush.msra.mxu2 %v5168_v5  ;;  %v5136_v62 = vunpack.c.l.bf16 %v5410_v52  ;;  %v1347_v5 = vld [vmem:[#allocation2 + $0x112] sm:$0xff] }
 0x15d   : > { %v6125_v48 = vadd.f32 %v1739_v49, %v1521_v60  ;;  %883 = vmatmul.f32.gmra.mxu1 %v740_v32  ;;  %1185 = vmatmul.f32.gmra.mxu2 %v1342_v20  ;;  %v5370_v49 = vld [vmem:[%s5576_s26 + $0x98] sm:$0xff]   ;;  %v1647_v32 = vld [vmem:[#allocation2 + $0x103] sm:$0xff] }
 0x15e   : > { %v4972_v25 = vunpack.c.l.bf16 %v5370_v49  ;;  %2003 = vmatpush.msra.mxu1 %v5136_v62 }
 0x15f   : > { %1487 = vmatmul.f32.gmra.mxu3 %v1344_v21 }
 0x160   : > { %v1138_v18 = vpop.f32.mrf.mxu2  ;;  %v1742_v39 = vpop.f32.mrf.mxu0  ;;  %335 = vst [vmem:[#allocation2 + $0x130] sm:$0xff] %v4972_v25 }
 0x161   : > { %v1220_v12 = vadd.f32 %v1138_v18, %v918_v47 }
 0x162   : > { %v839_v10 = vpop.f32.mrf.mxu1  ;;  %v1440_v31 = vpop.f32.mrf.mxu3 }
 0x163   : > { %v1522_v1 = vadd.f32 %v1440_v31, %v1220_v12  ;;  %1789 = vmatmul.f32.gmra.mxu0 %v1646_v35  ;;  %v919_v61 = vadd.f32 %v839_v10, %v6005_v58  ;;  %v5232_v58 = vunpack.c.l.bf16 %v5434_v40  ;;  %v1648_v35 = vld [vmem:[#allocation2 + $0x10b] sm:$0xff] }
 0x165   : > { %v6129_v20 = vadd.f32 %v1742_v39, %v1522_v1  ;;  %886 = vmatmul.f32.gmra.mxu1 %v741_v14  ;;  %1188 = vmatmul.f32.gmra.mxu2 %v1343_v41  ;;  %v1346_v41 = vld [vmem:[#allocation2 + $0x10a] sm:$0xff]  ;;  %v743_v14 = vld [vmem:[#allocation2 + $0x101] sm:$0xff] }
 0x166   : > { %2909 = vmatpush.msra.mxu0 %v5232_v58 }
 0x167   : > { %1490 = vmatmul.f32.gmra.mxu3 %v1345_v55 }
 0x168   : > { %v1141_v63 = vpop.f32.mrf.mxu2  ;;  %v1745_v17 = vpop.f32.mrf.mxu0 }
 0x169   : > { %v1221_v60 = vadd.f32 %v1141_v63, %v919_v61  ;;  %v744_v63 = vld [vmem:[#allocation2 + $0x109] sm:$0xff] }
 0x16a   : > { %v842_v0 = vpop.f32.mrf.mxu1  ;;  %v1443_v45 = vpop.f32.mrf.mxu3 }
 0x16b   : > { %v1523_v47 = vadd.f32 %v1443_v45, %v1221_v60  ;;  %1792 = vmatmul.f32.gmra.mxu0 %v1647_v32  ;;  %v920_v52 = vadd.f32 %v842_v0, %v6013_v2  ;;  %v1348_v32 = vld [vmem:[#allocation2 + $0x11a] sm:$0xff] }
 0x16c   : > { %v1650_v45 = vld [vmem:[#allocation2 + $0x11b] sm:$0xff] }
 0x16d   : > { %v6132_v7 = vadd.f32 %v1745_v17, %v1523_v47  ;;  %889 = vmatmul.f32.gmra.mxu1 %v742_v6  ;;  %1191 = vmatmul.f32.gmra.mxu2 %v1344_v21 }
 0x16f   : > { %1493 = vmatmul.f32.gmra.mxu3 %v1346_v41 }
 0x170   : > { %v1144_v18 = vpop.f32.mrf.mxu2  ;;  %v1748_v39 = vpop.f32.mrf.mxu0 }
 0x171   : > { %v1222_v12 = vadd.f32 %v1144_v18, %v920_v52  ;;  %v745_v52 = vld [vmem:[#allocation2 + $0x111] sm:$0xff] }
 0x172   : > { %v845_v10 = vpop.f32.mrf.mxu1  ;;  %v1446_v31 = vpop.f32.mrf.mxu3 }
 0x173   : > { %v1524_v1 = vadd.f32 %v1446_v31, %v1222_v12  ;;  %1795 = vmatmul.f32.gmra.mxu0 %v1648_v35  ;;  %v921_v40 = vadd.f32 %v845_v10, %v6021_v44  ;;  %v1651_v10 = vld [vmem:[#allocation2 + $0x123] sm:$0xff] }
 0x175   : > { %v6135_v49 = vadd.f32 %v1748_v39, %v1524_v1  ;;  %892 = vmatmul.f32.gmra.mxu1 %v743_v14  ;;  %1194 = vmatmul.f32.gmra.mxu2 %v1345_v55  ;;  %v1349_v39 = vld [vmem:[#allocation2 + $0x122] sm:$0xff] }
 0x177   : > { %1496 = vmatmul.f32.gmra.mxu3 %v1347_v5 }
 0x178   : > { %v1147_v2 = vpop.f32.mrf.mxu2  ;;  %v1751_v21 = vpop.f32.mrf.mxu0 }
 0x179   : > { %v1223_v25 = vadd.f32 %v1147_v2, %v921_v40  ;;  %v746_v40 = vld [vmem:[#allocation2 + $0x119] sm:$0xff] }
 0x17a   : > { %v848_v61 = vpop.f32.mrf.mxu1  ;;  %v1449_v62 = vpop.f32.mrf.mxu3 }
 0x17b   : > { %v1525_v17 = vadd.f32 %v1449_v62, %v1223_v25  ;;  %1798 = vmatmul.f32.gmra.mxu0 %v1649_v46  ;;  %v922_v0 = vadd.f32 %v848_v61, %v6038_v13  ;;  %v1652_v61 = vld [vmem:[#allocation2 + $0x12b] sm:$0xff] }
 0x17d   : > { %v6138_v60 = vadd.f32 %v1751_v21, %v1525_v17  ;;  %895 = vmatmul.f32.gmra.mxu1 %v744_v63  ;;  %1197 = vmatmul.f32.gmra.mxu2 %v1346_v41  ;;  %v1350_v21 = vld [vmem:[#allocation2 + $0x12a] sm:$0xff] }
 0x17f   : > { %1499 = vmatmul.f32.gmra.mxu3 %v1348_v32 }
 0x180   : > { %v1150_v55 = vpop.f32.mrf.mxu2  ;;  %v1754_v44 = vpop.f32.mrf.mxu0 }
 0x181   : > { %v1224_v6 = vadd.f32 %v1150_v55, %v922_v0  ;;  %v1919_v0 = vld [vmem:[#allocation2 + $0x14] sm:$0xff]  ;;  %v2221_v55 = vld [vmem:[#allocation2 + $0x24] sm:$0xff] }
 0x182   : > { %v851_v47 = vpop.f32.mrf.mxu1  ;;  %v1452_v58 = vpop.f32.mrf.mxu3 }
 0x183   : > { %v1526_v18 = vadd.f32 %v1452_v58, %v1224_v6  ;;  %1801 = vmatmul.f32.gmra.mxu0 %v1650_v45  ;;  %v923_v12 = vadd.f32 %v851_v47, %v5957_v34  ;;  %v2523_v45 = vld [vmem:[#allocation2 + $0x25] sm:$0xff] }
 0x184   : > { %v2825_v58 = vld [vmem:[#allocation2 + $0x26] sm:$0xff] }
 0x185   : > { %v6141_v35 = vadd.f32 %v1754_v44, %v1526_v18  ;;  %898 = vmatmul.f32.gmra.mxu1 %v745_v52  ;;  %1200 = vmatmul.f32.gmra.mxu2 %v1347_v5 }
 0x187   : > { %1502 = vmatmul.f32.gmra.mxu3 %v1349_v39 }
 0x188   : > { %v1153_v41 = vpop.f32.mrf.mxu2  ;;  %v1757_v13 = vpop.f32.mrf.mxu0 }
 0x189   : > { %v1225_v31 = vadd.f32 %v1153_v41, %v923_v12  ;;  %v1920_v12 = vld [vmem:[#allocation2 + $0x1c] sm:$0xff]  ;;  %v2222_v41 = vld [vmem:[#allocation2 + $0x2c] sm:$0xff] }
 0x18a   : > { %v854_v14 = vpop.f32.mrf.mxu1  ;;  %v1455_v1 = vpop.f32.mrf.mxu3 }
 0x18b   : > { %v1527_v2 = vadd.f32 %v1455_v1, %v1225_v31  ;;  %1804 = vmatmul.f32.gmra.mxu0 %v1651_v10  ;;  %v924_v25 = vadd.f32 %v854_v14, %v5965_v26  ;;  %v2524_v10 = vld [vmem:[#allocation2 + $0x2d] sm:$0xff] }
 0x18d   : > { %v6144_v46 = vadd.f32 %v1757_v13, %v1527_v2  ;;  %901 = vmatmul.f32.gmra.mxu1 %v746_v40  ;;  %1203 = vmatmul.f32.gmra.mxu2 %v1348_v32  ;;  %v2826_v40 = vld [vmem:[#allocation2 + $0x2e] sm:$0xff] }
 0x18f   : > { %1505 = vmatmul.f32.gmra.mxu3 %v1350_v21 }
 0x190   : > { %v1156_v5 = vpop.f32.mrf.mxu2  ;;  %v1760_v34 = vpop.f32.mrf.mxu0 }
 0x191   : > { %v1226_v62 = vadd.f32 %v1156_v5, %v924_v25  ;;  %v2223_v5 = vld [vmem:[#allocation2 + $0x34] sm:$0xff] }
 0x192   : > { %v857_v63 = vpop.f32.mrf.mxu1  ;;  %v1458_v17 = vpop.f32.mrf.mxu3 }
 0x193   : > { %v1528_v44 = vadd.f32 %v1458_v17, %v1226_v62  ;;  %1807 = vmatmul.f32.gmra.mxu0 %v1652_v61  ;;  %v925_v32 = vadd.f32 %v857_v63, %v5973_v56  ;;  %v2525_v61 = vld [vmem:[#allocation2 + $0x35] sm:$0xff] }
 0x195   : > { %v6147_v6 = vadd.f32 %v1760_v34, %v1528_v44  ;;  %2004 = vmatmul.f32.vlgmr.msra.gmra.mxu1 %v1919_v0  ;;  %2306 = vmatmul.f32.vlgmr.msra.gmra.mxu2 %v2221_v55  ;;  %v2827_v0 = vld [vmem:[#allocation2 + $0x36] sm:$0xff] }
 0x197   : > { %2608 = vmatmul.f32.vlgmr.msra.gmra.mxu3 %v2523_v45 }
 0x198   : > { %v1159_v26 = vpop.f32.mrf.mxu2  ;;  %v1763_v47 = vpop.f32.mrf.mxu0 }
 0x199   : > { %v1227_v52 = vadd.f32 %v1159_v26, %v925_v32  ;;  %v2224_v26 = vld [vmem:[#allocation2 + $0x3c] sm:$0xff] }
 0x19a   : > { %v860_v18 = vpop.f32.mrf.mxu1  ;;  %v1461_v39 = vpop.f32.mrf.mxu3 }
 0x19b   : > { %v1529_v13 = vadd.f32 %v1461_v39, %v1227_v52  ;;  %2910 = vmatmul.f32.vlgmr.msra.gmra.mxu0 %v2825_v58  ;;  %v926_v14 = vadd.f32 %v860_v18, %v5990_v9  ;;  %v2526_v58 = vld [vmem:[#allocation2 + $0x3d] sm:$0xff] }
 0x19c   : > { %v2828_v39 = vld [vmem:[#allocation2 + $0x3e] sm:$0xff] }
 0x19d   : > { %v6150_v31 = vadd.f32 %v1763_v47, %v1529_v13  ;;  %2007 = vmatmul.f32.gmra.mxu1 %v1920_v12  ;;  %2309 = vmatmul.f32.gmra.mxu2 %v2222_v41 }
 0x19f   : > { %2611 = vmatmul.f32.gmra.mxu3 %v2524_v10 }
 0x1a0   : > { %v1162_v56 = vpop.f32.mrf.mxu2  ;;  %v1766_v1 = vpop.f32.mrf.mxu0 }
 0x1a1   : > { %v1228_v2 = vadd.f32 %v1162_v56, %v926_v14  ;;  %v2225_v14 = vld [vmem:[#allocation2 + $0x44] sm:$0xff] }
 0x1a2   : > { %v863_v21 = vpop.f32.mrf.mxu1  ;;  %v1464_v25 = vpop.f32.mrf.mxu3 }
 0x1a3   : > { %v1530_v34 = vadd.f32 %v1464_v25, %v1228_v2  ;;  %2913 = vmatmul.f32.gmra.mxu0 %v2826_v40  ;;  %v927_v63 = vadd.f32 %v863_v21, %v6001_v53  ;;  %v2829_v21 = vld [vmem:[#allocation2 + $0x46] sm:$0xff] }
 0x1a5   : > { %v6153_v62 = vadd.f32 %v1766_v1, %v1530_v34  ;;  %2010 = vmatmul.f32.gmra.mxu1 %v2221_v55  ;;  %2312 = vmatmul.f32.gmra.mxu2 %v2223_v5  ;;  %v2527_v1 = vld [vmem:[#allocation2 + $0x45] sm:$0xff] }
 0x1a7   : > { %2614 = vmatmul.f32.gmra.mxu3 %v2525_v61 }
 0x1a8   : > { %v1165_v17 = vpop.f32.mrf.mxu2  ;;  %v1769_v9 = vpop.f32.mrf.mxu0 }
 0x1a9   : > { %v1229_v44 = vadd.f32 %v1165_v17, %v927_v63  ;;  %v2226_v63 = vld [vmem:[#allocation2 + $0x4c] sm:$0xff] }
 0x1aa   : > { %v866_v45 = vpop.f32.mrf.mxu1  ;;  %v1467_v32 = vpop.f32.mrf.mxu3 }
 0x1ab   : > { %v1531_v47 = vadd.f32 %v1467_v32, %v1229_v44  ;;  %2916 = vmatmul.f32.gmra.mxu0 %v2827_v0  ;;  %v928_v55 = vadd.f32 %v866_v45, %v6009_v43  ;;  %v2830_v45 = vld [vmem:[#allocation2 + $0x4e] sm:$0xff] }
 0x1ad   : > { %v6156_v52 = vadd.f32 %v1769_v9, %v1531_v47  ;;  %2013 = vmatmul.f32.gmra.mxu1 %v2222_v41  ;;  %2315 = vmatmul.f32.gmra.mxu2 %v2224_v26  ;;  %v2528_v9 = vld [vmem:[#allocation2 + $0x4d] sm:$0xff] }
 0x1af   : > { %2617 = vmatmul.f32.gmra.mxu3 %v2526_v58 }
 0x1b0   : > { %v1168_v18 = vpop.f32.mrf.mxu2  ;;  %v1772_v53 = vpop.f32.mrf.mxu0 }
 0x1b1   : > { %v1230_v12 = vadd.f32 %v1168_v18, %v928_v55  ;;  %v2227_v55 = vld [vmem:[#allocation2 + $0x54] sm:$0xff] }
 0x1b2   : > { %v869_v13 = vpop.f32.mrf.mxu1  ;;  %v1470_v10 = vpop.f32.mrf.mxu3 }
 0x1b3   : > { %v1532_v56 = vadd.f32 %v1470_v10, %v1230_v12  ;;  %2919 = vmatmul.f32.gmra.mxu0 %v2828_v39  ;;  %v929_v41 = vadd.f32 %v869_v13, %v6017_v30  ;;  %v2831_v13 = vld [vmem:[#allocation2 + $0x56] sm:$0xff] }
 0x1b5   : > { %v6159_v40 = vadd.f32 %v1772_v53, %v1532_v56  ;;  %2016 = vmatmul.f32.gmra.mxu1 %v2223_v5  ;;  %2318 = vmatmul.f32.gmra.mxu2 %v2225_v14  ;;  %v2529_v53 = vld [vmem:[#allocation2 + $0x55] sm:$0xff] }
 0x1b7   : > { %7210 = vst [vmem:[#allocation4_spill] sm:$0xff] %v6159_v40  ;;  %2620 = vmatmul.f32.gmra.mxu3 %v2527_v1 }
 0x1b8   : > { %v1171_v2 = vpop.f32.mrf.mxu2  ;;  %v1775_v43 = vpop.f32.mrf.mxu0 }
 0x1b9   : > { %v1231_v25 = vadd.f32 %v1171_v2, %v929_v41  ;;  %v2228_v41 = vld [vmem:[#allocation2 + $0x5c] sm:$0xff] }
 0x1ba   : > { %v872_v34 = vpop.f32.mrf.mxu1  ;;  %v1473_v61 = vpop.f32.mrf.mxu3 }
 0x1bb   : > { %v1533_v17 = vadd.f32 %v1473_v61, %v1231_v25  ;;  %2922 = vmatmul.f32.gmra.mxu0 %v2829_v21  ;;  %v930_v5 = vadd.f32 %v872_v34, %v6031_v8  ;;  %v2832_v34 = vld [vmem:[#allocation2 + $0x5e] sm:$0xff] }
 0x1bd   : > { %v6162_v0 = vadd.f32 %v1775_v43, %v1533_v17  ;;  %2019 = vmatmul.f32.gmra.mxu1 %v2224_v26  ;;  %2321 = vmatmul.f32.gmra.mxu2 %v2226_v63  ;;  %v2530_v43 = vld [vmem:[#allocation2 + $0x5d] sm:$0xff] }
 0x1bf   : > { %7211 = vst [vmem:[#allocation5_spill] sm:$0xff] %v6162_v0  ;;  %2623 = vmatmul.f32.gmra.mxu3 %v2528_v9 }
 0x1c0   : > { %v1174_v44 = vpop.f32.mrf.mxu2  ;;  %v1778_v30 = vpop.f32.mrf.mxu0 }
 0x1c1   : > { %v1232_v32 = vadd.f32 %v1174_v44, %v930_v5  ;;  %v2229_v5 = vld [vmem:[#allocation2 + $0x64] sm:$0xff] }
 0x1c2   : > { %v875_v47 = vpop.f32.mrf.mxu1  ;;  %v1476_v58 = vpop.f32.mrf.mxu3 }
 0x1c3   : > { %v1534_v18 = vadd.f32 %v1476_v58, %v1232_v32  ;;  %2925 = vmatmul.f32.gmra.mxu0 %v2830_v45  ;;  %v931_v26 = vadd.f32 %v875_v47, %v6045_v42  ;;  %v2833_v47 = vld [vmem:[#allocation2 + $0x66] sm:$0xff] }
 0x1c5   : > { %v6165_v39 = vadd.f32 %v1778_v30, %v1534_v18  ;;  %2022 = vmatmul.f32.gmra.mxu1 %v2225_v14  ;;  %2324 = vmatmul.f32.gmra.mxu2 %v2227_v55  ;;  %v2531_v30 = vld [vmem:[#allocation2 + $0x65] sm:$0xff] }
 0x1c7   : > { %7212 = vst [vmem:[#allocation6_spill] sm:$0xff] %v6165_v39  ;;  %2626 = vmatmul.f32.gmra.mxu3 %v2529_v53 }
 0x1c8   : > { %v1177_v12 = vpop.f32.mrf.mxu2  ;;  %v1781_v8 = vpop.f32.mrf.mxu0 }
 0x1c9   : > { %v1233_v10 = vadd.f32 %v1177_v12, %v931_v26  ;;  %v2230_v26 = vld [vmem:[#allocation2 + $0x6c] sm:$0xff] }
 0x1ca   : > { %v878_v56 = vpop.f32.mrf.mxu1  ;;  %v1479_v1 = vpop.f32.mrf.mxu3 }
 0x1cb   : > { %v1535_v2 = vadd.f32 %v1479_v1, %v1233_v10  ;;  %2928 = vmatmul.f32.gmra.mxu0 %v2831_v13  ;;  %v932_v14 = vadd.f32 %v878_v56, %v5963_v23  ;;  %v2834_v56 = vld [vmem:[#allocation2 + $0x6e] sm:$0xff] }
 0x1cd   : > { %v6168_v21 = vadd.f32 %v1781_v8, %v1535_v2  ;;  %2025 = vmatmul.f32.gmra.mxu1 %v2226_v63  ;;  %2327 = vmatmul.f32.gmra.mxu2 %v2228_v41  ;;  %v2532_v8 = vld [vmem:[#allocation2 + $0x6d] sm:$0xff]  ;;  %v3127_v2 = vlaneseq }
 0x1cf   : > { %7213 = vst [vmem:[#allocation7_spill] sm:$0xff] %v6168_v21  ;;  %2629 = vmatmul.f32.gmra.mxu3 %v2530_v43 }
 0x1d0   : > { %v1180_v25 = vpop.f32.mrf.mxu2  ;;  %v1784_v42 = vpop.f32.mrf.mxu0 }
 0x1d1   : > { %v1234_v61 = vadd.f32 %v1180_v25, %v932_v14  ;;  %v6177_v25 = vld [vmem:[#allocation2 + $0x74] sm:$0xff] }
 0x1d2   : > { %v881_v17 = vpop.f32.mrf.mxu1  ;;  %v1482_v9 = vpop.f32.mrf.mxu3 }
 0x1d3   : > { %v1536_v44 = vadd.f32 %v1482_v9, %v1234_v61  ;;  %2931 = vmatmul.f32.gmra.mxu0 %v2832_v34  ;;  %v933_v63 = vadd.f32 %v881_v17, %v5971_v33  ;;  %v6179_v34 = vshrl.u32 %v3127_v2, 7  ;;  %v2533_v61 = vld [vmem:[#allocation2 + $0x75] sm:$0xff]  ;;  %v7208_v2 = vmov 0  }
 0x1d5   : > { %v6171_v45 = vadd.f32 %v1784_v42, %v1536_v44  ;;  %2028 = vmatmul.f32.gmra.mxu1 %v2227_v55  ;;  %2330 = vmatmul.f32.gmra.mxu2 %v2229_v5  ;;  %v3168_v9 = vshrl.u32 %v6179_v34, 16 }
 0x1d7   : > { %7214 = vst [vmem:[#allocation8_spill] sm:$0xff] %v6171_v45  ;;  %2632 = vmatmul.f32.gmra.mxu3 %v2531_v30  ;;  %v2536_v45 = vld [vmem:[#allocation2 + $0x8d] sm:$0xff] }
 0x1d8   : > { %v1183_v32 = vpop.f32.mrf.mxu2  ;;  %v1787_v23 = vpop.f32.mrf.mxu0 }
 0x1d9   : > { %v1235_v58 = vadd.f32 %v1183_v32, %v933_v63  ;;  %v2835_v32 = vld [vmem:[#allocation2 + $0x76] sm:$0xff] }
 0x1da   : > { %v884_v18 = vpop.f32.mrf.mxu1  ;;  %v1485_v53 = vpop.f32.mrf.mxu3 }
 0x1db   : > { %v1537_v12 = vadd.f32 %v1485_v53, %v1235_v58  ;;  %2934 = vmatmul.f32.gmra.mxu0 %v2833_v47  ;;  %v934_v55 = vadd.f32 %v884_v18, %v5982_v15  ;;  %v3167_v15 = vand.u32 65535, %v6179_v34  ;;  %v6187_v58 = vmul.u32 14564, %v3168_v9 }
 0x1dd   : > { %v6174_v13 = vadd.f32 %v1787_v23, %v1537_v12  ;;  %2031 = vmatmul.f32.gmra.mxu1 %v2228_v41  ;;  %2333 = vmatmul.f32.gmra.mxu2 %v2230_v26  ;;  %v3171_v44 = vmul.u32 58254, %v3167_v15  ;;  %v3170_v47 = vmul.u32 14564, %v3167_v15  ;;  %v6189_v12 = vld [vmem:[#allocation2 + $0x7c] sm:$0xff] }
 0x1df   : > { %7215 = vst [vmem:[#allocation9_spill] sm:$0xff] %v6174_v13  ;;  %2635 = vmatmul.f32.gmra.mxu3 %v2532_v8  ;;  %v3174_v18 = vshll.u32 %v3171_v44, 16 }
 0x1e0   : > { %v1186_v10 = vpop.f32.mrf.mxu2  ;;  %v1790_v33 = vpop.f32.mrf.mxu0 }
 0x1e1   : > { %v1236_v1 = vadd.f32 %v1186_v10, %v934_v55  ;;  %v3173_v55 = vmul.u32 58254, %v3168_v9  ;;  %v2534_v10 = vld [vmem:[#allocation2 + $0x7d] sm:$0xff]  ;;  %vm3178_vm0 = vc.u32 %v3170_v47, %v3174_v18 }
 0x1e2   : > { %v887_v43 = vpop.f32.mrf.mxu1  ;;  %v1488_v14 = vpop.f32.mrf.mxu3 }
 0x1e3   : > { %v1538_v42 = vadd.f32 %v1488_v14, %v1236_v1  ;;  %2937 = vmatmul.f32.gmra.mxu0 %v2834_v56  ;;  %v935_v41 = vadd.f32 %v887_v43, %v5996_v38  ;;  %v3176_v38 = vshll.u32 %v6187_v58, 16  ;;  %v6193_v56 = vadd.s32 8, %v6179_v34 }
 0x1e4   : > { %v3179_v43 = vsel %vm3178_vm0, 1, %v7208_v2 }
 0x1e5   : > { %v6181_v17 = vadd.f32 %v1790_v33, %v1538_v42  ;;  %2034 = vmatmul.f32.gmra.mxu1 %v2229_v5  ;;  %2336 = vmatmul.f32.gmra.mxu2 %v6177_v25  ;;  %v3180_v33 = vadd.s32 %v3174_v18, %v3170_v47  ;;  %v3181_v14 = vadd.s32 %v3179_v43, %v3173_v55  ;;  %v3196_v42 = vand.u32 65535, %v6193_v56  ;;  %v2535_v43 = vld [vmem:[#allocation2 + $0x85] sm:$0xff] }
 0x1e6   : > { %v3175_v55 = vshrl.u32 %v3171_v44, 16  ;;  %v3177_v44 = vshrl.u32 %v6187_v58, 16 }
 0x1e7   : > { %7216 = vst [vmem:[#allocation10_spill] sm:$0xff] %v6181_v17  ;;  %2638 = vmatmul.f32.gmra.mxu3 %v2533_v61  ;;  %vm3182_vm1 = vc.u32 %v3180_v33, %v3176_v38 }
 0x1e8   : > { %v1189_v30 = vpop.f32.mrf.mxu2  ;;  %v1793_v63 = vpop.f32.mrf.mxu0  ;;  %v3183_v15 = vsel %vm3182_vm1, 1, %v7208_v2 }
 0x1e9   : > { %v1237_v23 = vadd.f32 %v1189_v30, %v935_v41  ;;  %v3197_v41 = vshrl.u32 %v6193_v56, 16  ;;  %v3185_v38 = vadd.s32 %v3183_v15, %v3181_v14  ;;  %v7219_v14 = vmov 0  }
 0x1ea   : > { %v890_v53 = vpop.f32.mrf.mxu1  ;;  %v1491_v5 = vpop.f32.mrf.mxu3 }
 0x1eb   : > { %v1539_v8 = vadd.f32 %v1491_v5, %v1237_v23  ;;  %2940 = vmatmul.f32.gmra.mxu0 %v2835_v32  ;;  %v936_v61 = vadd.f32 %v890_v53, %v6007_v59  ;;  %v3199_v23 = vmul.u32 14564, %v3196_v42  ;;  %v3201_v47 = vmul.u32 14564, %v3197_v41 }
 0x1ec   : > { %v3202_v53 = vmul.u32 58254, %v3197_v41  ;;  %v3186_v15 = vadd.s32 %v3185_v38, %v3175_v55 }
 0x1ed   : > { %v6195_v1 = vadd.f32 %v1793_v63, %v1539_v8  ;;  %2037 = vmatmul.f32.gmra.mxu1 %v2230_v26  ;;  %2339 = vmatmul.f32.gmra.mxu2 %v6189_v12  ;;  %v2836_v63 = vld [vmem:[#allocation2 + $0x7e] sm:$0xff]  ;;  %v3200_v26 = vmul.u32 58254, %v3196_v42 }
 0x1ee   : > { %v6203_v8 = vld [vmem:[#allocation2 + $0x84] sm:$0xff] }
 0x1ef   : > { %7217 = vst [vmem:[#allocation11_spill] sm:$0xff] %v6195_v1  ;;  %2641 = vmatmul.f32.gmra.mxu3 %v2534_v10  ;;  %v3203_v33 = vshll.u32 %v3200_v26, 16  ;;  %v3205_v10 = vshll.u32 %v3201_v47, 16  ;;  %v6206_v1 = vadd.s32 16, %v6179_v34 }
 0x1f0   : > { %v1192_v9 = vpop.f32.mrf.mxu2  ;;  %v1796_v30 = vpop.f32.mrf.mxu0 }
 0x1f1   : > { %v1238_v32 = vadd.f32 %v1192_v9, %v936_v61  ;;  %vm3207_vm2 = vc.u32 %v3199_v23, %v3203_v33  ;;  %v3209_v2 = vadd.s32 %v3203_v33, %v3199_v23  ;;  %v3225_v41 = vand.u32 65535, %v6206_v1  ;;  %v2837_v33 = vld [vmem:[#allocation2 + $0x86] sm:$0xff] }
 0x1f2   : > { %v893_v18 = vpop.f32.mrf.mxu1  ;;  %v1494_v5 = vpop.f32.mrf.mxu3  ;;  %v3208_v42 = vsel %vm3207_vm2, 1, %v7219_v14  ;;  %v3226_v23 = vshrl.u32 %v6206_v1, 16 }
 0x1f3   : > { %v1540_v59 = vadd.f32 %v1494_v5, %v1238_v32  ;;  %2943 = vmatmul.f32.gmra.mxu0 %v2836_v63  ;;  %v3210_v9 = vadd.s32 %v3208_v42, %v3202_v53  ;;  %vm3211_vm3 = vc.u32 %v3209_v2, %v3205_v10  ;;  %v937_v63 = vadd.f32 %v893_v18, %v6015_v27  ;;  %v6218_v53 = vld [vmem:[#allocation2 + $0x8c] sm:$0xff] }
 0x1f4   : > { %v3204_v32 = vshrl.u32 %v3200_v26, 16  ;;  %v3229_v58 = vmul.u32 58254, %v3225_v41  ;;  %v3228_v17 = vmul.u32 14564, %v3225_v41  ;;  %v3230_v55 = vmul.u32 14564, %v3226_v23 }
 0x1f5   : > { %v6208_v61 = vadd.f32 %v1796_v30, %v1540_v59  ;;  %2040 = vmatmul.f32.gmra.mxu1 %v6177_v25  ;;  %2342 = vmatmul.f32.gmra.mxu2 %v6203_v8  ;;  %v3212_v30 = vsel %vm3211_vm3, 1, %v7219_v14  ;;  %v3187_v10 = vadd.s32 %v3186_v15, %v3177_v44  ;;  %v3206_v27 = vshrl.u32 %v3201_v47, 16 }
 0x1f6   : > { %v3214_v59 = vadd.s32 %v3212_v30, %v3210_v9  ;;  %v3232_v18 = vshll.u32 %v3229_v58, 16  ;;  %v3231_v42 = vmul.u32 58254, %v3226_v23  ;;  %v3234_v13 = vshll.u32 %v3230_v55, 16 }
 0x1f7   : > { %7218 = vst [vmem:[#allocation12_spill] sm:$0xff] %v6208_v61  ;;  %2644 = vmatmul.f32.gmra.mxu3 %v2535_v43  ;;  %v6225_v41 = vadd.s32 24, %v6179_v34  ;;  %v3188_v44 = vshrl.u32 %v3187_v10, 4  ;;  %v6232_v10 = vld [vmem:[#allocation2 + $0x94] sm:$0xff] }
 0x1f8   : > { %v1195_v25 = vpop.f32.mrf.mxu2  ;;  %v1799_v5 = vpop.f32.mrf.mxu0  ;;  %v3215_v43 = vadd.s32 %v3214_v59, %v3204_v32  ;;  %vm3236_vm4 = vc.u32 %v3228_v17, %v3232_v18  ;;  %v3238_v9 = vadd.s32 %v3232_v18, %v3228_v17  ;;  %v3235_v59 = vshrl.u32 %v3230_v55, 16 }
 0x1f9   : > { %v1239_v61 = vadd.f32 %v1195_v25, %v937_v63  ;;  %v3233_v63 = vshrl.u32 %v3229_v58, 16  ;;  %v3254_v17 = vand.u32 65535, %v6225_v41 }
 0x1fa   : > { %v896_v38 = vpop.f32.mrf.mxu1  ;;  %v1497_v2 = vpop.f32.mrf.mxu3  ;;  %v3216_v15 = vadd.s32 %v3215_v43, %v3206_v27  ;;  %vm3240_vm5 = vc.u32 %v3238_v9, %v3234_v13 }
 0x1fb   : > { %v1541_v26 = vadd.f32 %v1497_v2, %v1239_v61  ;;  %2946 = vmatmul.f32.gmra.mxu0 %v2837_v33  ;;  %v938_v47 = vadd.f32 %v896_v38, %v6023_v3  ;;  %v3237_v61 = vsel %vm3236_vm4, 1, %v7219_v14  ;;  %v3241_v25 = vsel %vm3240_vm5, 1, %v7219_v14 }
 0x1fc   : > { %v3239_v32 = vadd.s32 %v3237_v61, %v3231_v42  ;;  %v3257_v58 = vmul.u32 14564, %v3254_v17  ;;  %v3258_v27 = vmul.u32 58254, %v3254_v17  ;;  %v2537_v42 = vld [vmem:[#allocation2 + $0x95] sm:$0xff] }
 0x1fd   : > { %v6220_v21 = vadd.f32 %v1799_v5, %v1541_v26  ;;  %2043 = vmatmul.f32.gmra.mxu1 %v6189_v12  ;;  %2345 = vmatmul.f32.gmra.mxu2 %v6218_v53  ;;  %v2838_v12 = vld [vmem:[#allocation2 + $0x8e] sm:$0xff]  ;;  %v3255_v5 = vshrl.u32 %v6225_v41, 16  ;;  %v3217_v26 = vshrl.u32 %v3216_v15, 4  ;;  %v2839_v17 = vld [vmem:[#allocation2 + $0x96] sm:$0xff] }
 0x1fe   : > { %v3243_v3 = vadd.s32 %v3241_v25, %v3239_v32  ;;  %v3261_v61 = vshll.u32 %v3258_v27, 16 }
 0x1ff   : > { %7220 = vst [vmem:[#allocation13_spill] sm:$0xff] %v6220_v21  ;;  %2647 = vmatmul.f32.gmra.mxu3 %v2536_v45  ;;  %v3189_v45 = vmul.u32 18, %v3188_v44  ;;  %v3259_v13 = vmul.u32 14564, %v3255_v5  ;;  %v3260_v9 = vmul.u32 58254, %v3255_v5  ;;  %v6239_v44 = vadd.s32 32, %v6179_v34 }
 0x200   : > { %v1198_v30 = vpop.f32.mrf.mxu2  ;;  %v1802_v23 = vpop.f32.mrf.mxu0  ;;  %v3244_v43 = vadd.s32 %v3243_v3, %v3233_v63  ;;  %vm3265_vm6 = vc.u32 %v3257_v58, %v3261_v61  ;;  %v3267_v15 = vadd.s32 %v3261_v61, %v3257_v58 }
 0x201   : > { %v1240_v33 = vadd.f32 %v1198_v30, %v938_v47  ;;  %v3263_v47 = vshll.u32 %v3259_v13, 16  ;;  %v6242_v32 = vsub.s32 %v6179_v34, %v3189_v45  ;;  %v3218_v30 = vmul.u32 18, %v3217_v26 }
 0x202   : > { %v899_v38 = vpop.f32.mrf.mxu1  ;;  %v1500_v2 = vpop.f32.mrf.mxu3  ;;  %v3245_v55 = vadd.s32 %v3244_v43, %v3235_v59  ;;  %v3284_v59 = vshrl.u32 %v6239_v44, 16  ;;  %v3264_v45 = vshrl.u32 %v3259_v13, 16 }
 0x203   : > { %v1542_v18 = vadd.f32 %v1500_v2, %v1240_v33  ;;  %2949 = vmatmul.f32.gmra.mxu0 %v2838_v12  ;;  %v939_v63 = vadd.f32 %v899_v38, %v6040_v4  ;;  %v3266_v12 = vsel %vm3265_vm6, 1, %v7219_v14  ;;  %vm3269_vm7 = vc.u32 %v3267_v15, %v3263_v47  ;;  %v2538_v15 = vld [vmem:[#allocation2 + $0x9d] sm:$0xff] }
 0x204   : > { %v3268_v5 = vadd.s32 %v3266_v12, %v3260_v9  ;;  %v3283_v33 = vand.u32 65535, %v6239_v44  ;;  %v3246_v2 = vshrl.u32 %v3245_v55, 4  ;;  %v3270_v58 = vsel %vm3269_vm7, 1, %v7219_v14 }
 0x205   : > { %v6234_v21 = vadd.f32 %v1802_v23, %v1542_v18  ;;  %2046 = vmatmul.f32.gmra.mxu1 %v6203_v8  ;;  %2348 = vmatmul.f32.gmra.mxu2 %v6232_v10  ;;  %v3262_v23 = vshrl.u32 %v3258_v27, 16  ;;  %v6249_v18 = vld [vmem:[#allocation2 + $0x9c] sm:$0xff]  ;;  %v6254_v61 = vsub.s32 %v6193_v56, %v3218_v30  ;;  %v3289_v47 = vmul.u32 58254, %v3284_v59 }
 0x206   : > { %v3272_v27 = vadd.s32 %v3270_v58, %v3268_v5  ;;  %v3286_v26 = vmul.u32 14564, %v3283_v33  ;;  %v3287_v43 = vmul.u32 58254, %v3283_v33  ;;  %v6258_v12 = vadd.s32 40, %v6179_v34 }
 0x207   : > { %7221 = vst [vmem:[#allocation14_spill] sm:$0xff] %v6234_v21  ;;  %2650 = vmatmul.f32.gmra.mxu3 %v2537_v42  ;;  %v6251_v42 = vmul.u32 14564, %v3284_v59  ;;  %vm4208_vm8 = vcmp.ne.s32.totalorder %v6242_v32, 0  ;;  %vm4244_vm10 = vcmp.lt.s32.totalorder %v6242_v32, 0  ;;  %vm4209_vm11 = vcmp.ne.s32.totalorder %v6254_v61, 0  ;;  %v6325_v21 = vld [vmem:[#allocation2 + $0xac] sm:$0xff] }
 0x208   : > { %v1201_v8 = vpop.f32.mrf.mxu2  ;;  %v1805_v25 = vpop.f32.mrf.mxu0  ;;  %v3273_v55 = vadd.s32 %v3272_v27, %v3262_v23  ;;  %v3290_v13 = vshll.u32 %v3287_v43, 16  ;;  %v3312_v23 = vand.u32 65535, %v6258_v12  ;;  %v3313_v33 = vshrl.u32 %v6258_v12, 16  ;;  %vm6297_vm14 = vmand %vm4244_vm10, %vm4208_vm8 }
 0x209   : > { %v1241_v3 = vadd.f32 %v1201_v8, %v939_v63  ;;  %v3292_v63 = vshll.u32 %v6251_v42, 16  ;;  %vm4245_vm13 = vcmp.lt.s32.totalorder %v6254_v61, 0 }
 0x20a   : > { %v902_v4 = vpop.f32.mrf.mxu1  ;;  %v1503_v38 = vpop.f32.mrf.mxu3  ;;  %v3274_v56 = vadd.s32 %v3273_v55, %v3264_v45  ;;  %vm3294_vm9 = vc.u32 %v3286_v26, %v3290_v13  ;;  %v3296_v30 = vadd.s32 %v3290_v13, %v3286_v26  ;;  %v6278_v13 = vmul.u32 58254, %v3312_v23  ;;  %vm6307_vm0 = vmand %vm4245_vm13, %vm4209_vm11 }
 0x20b   : > { %v1543_v9 = vadd.f32 %v1503_v38, %v1241_v3  ;;  %2952 = vmatmul.f32.gmra.mxu0 %v2839_v17  ;;  %v3247_v17 = vmul.u32 18, %v3246_v2  ;;  %v940_v5 = vadd.f32 %v902_v4, %v6049_v28  ;;  %v2840_v3 = vld [vmem:[#allocation2 + $0x9e] sm:$0xff]  ;;  %v3291_v2 = vshrl.u32 %v3287_v43, 16 }
 0x20c   : > { %vm3298_vm12 = vc.u32 %v3296_v30, %v3292_v63  ;;  %v3275_v28 = vshrl.u32 %v3274_v56, 4  ;;  %v2539_v63 = vld [vmem:[#allocation2 + $0xa5] sm:$0xff]  ;;  %v4317_v56 = vadd.s32 18, %v6254_v61 }
 0x20d   : > { %v6260_v8 = vadd.f32 %v1805_v25, %v1543_v9  ;;  %2049 = vmatmul.f32.gmra.mxu1 %v6218_v53  ;;  %2351 = vmatmul.f32.gmra.mxu2 %v6249_v18  ;;  %v3295_v25 = vsel %vm3294_vm9, 1, %v7219_v14  ;;  %v6272_v38 = vsub.s32 %v6206_v1, %v3247_v17  ;;  %v3299_v4 = vsel %vm3298_vm12, 1, %v7219_v14  ;;  %v6275_v9 = vld [vmem:[#allocation2 + $0xa4] sm:$0xff] }
 0x20e   : > { %v3297_v45 = vadd.s32 %v3295_v25, %v3289_v47  ;;  %v3315_v1 = vmul.u32 14564, %v3312_v23  ;;  %v6284_v47 = vadd.s32 48, %v6179_v34  ;;  %v4316_v17 = vadd.s32 18, %v6242_v32 }
 0x20f   : > { %7222 = vst [vmem:[#allocation15_spill] sm:$0xff] %v6260_v8  ;;  %2653 = vmatmul.f32.gmra.mxu3 %v2538_v15  ;;  %v3293_v15 = vshrl.u32 %v6251_v42, 16  ;;  %v6280_v8 = vmul.u32 14564, %v3313_v33  ;;  %v3319_v42 = vshll.u32 %v6278_v13, 16  ;;  %vm4210_vm15 = vcmp.ne.s32.totalorder %v6272_v38, 0 }
 0x210   : > { %v1204_v53 = vpop.f32.mrf.mxu2  ;;  %v1808_v59 = vpop.f32.mrf.mxu0  ;;  %v3301_v55 = vadd.s32 %v3299_v4, %v3297_v45  ;;  %v3318_v25 = vmul.u32 58254, %v3313_v33  ;;  %vm4246_vm1 = vcmp.lt.s32.totalorder %v6272_v38, 0 }
 0x211   : > { %v1242_v58 = vadd.f32 %v1204_v53, %v940_v5  ;;  %v3341_v53 = vand.u32 65535, %v6284_v47  ;;  %vm3323_vm2 = vc.u32 %v3315_v1, %v3319_v42  ;;  %v3325_v33 = vadd.s32 %v3319_v42, %v3315_v1  ;;  %vm6331_vm3 = vmand %vm4246_vm1, %vm4210_vm15 }
 0x212   : > { %v1506_v27 = vpop.f32.mrf.mxu3  ;;  %v2005_v26 = vpop.f32.mrf.mxu1  ;;  %v3302_v30 = vadd.s32 %v3301_v55, %v3291_v2  ;;  %v3321_v2 = vshll.u32 %v6280_v8, 16  ;;  %v4352_v55 = vsel %vm6297_vm14, %v4316_v17, %v6242_v32 }
 0x213   : > { %v1544_v43 = vadd.f32 %v1506_v27, %v1242_v58  ;;  %2955 = vmatmul.f32.gmra.mxu0 %v2840_v3  ;;  %v2113_v45 = vadd.f32 %v2005_v26, %v6052_v24  ;;  %v3342_v58 = vshrl.u32 %v6284_v47, 16  ;;  %v4353_v24 = vsel %vm6307_vm0, %v4317_v56, %v6254_v61 }
 0x214   : > { %v3303_v3 = vadd.s32 %v3302_v30, %v3293_v15  ;;  %v6319_v15 = vmul.u32 58254, %v3341_v53  ;;  %v4318_v26 = vadd.s32 18, %v6272_v38  ;;  %v3320_v61 = vshrl.u32 %v6278_v13, 16 }
 0x215   : > { %v6289_v5 = vadd.f32 %v1808_v59, %v1544_v43  ;;  %2052 = vmatmul.f32.gmra.mxu1 %v6232_v10  ;;  %2354 = vmatmul.f32.gmra.mxu2 %v6275_v9  ;;  %v3276_v59 = vmul.u32 18, %v3275_v28  ;;  %v2841_v43 = vld [vmem:[#allocation2 + $0xa6] sm:$0xff]  ;;  %v3324_v28 = vsel %vm3323_vm2, 1, %v7219_v14  ;;  %vm3327_vm4 = vc.u32 %v3325_v33, %v3321_v2 }
 0x216   : > { %v3326_v1 = vadd.s32 %v3324_v28, %v3318_v25  ;;  %v6339_v56 = vmul.u32 14564, %v3342_v58  ;;  %v3328_v25 = vsel %vm3327_vm4, 1, %v7219_v14  ;;  %v3344_v10 = vmul.u32 14564, %v3341_v53 }
 0x217   : > { %7223 = vst [vmem:[#allocation16_spill] sm:$0xff] %v6289_v5  ;;  %2656 = vmatmul.f32.gmra.mxu3 %v2539_v63  ;;  %v3304_v5 = vshrl.u32 %v3303_v3, 4  ;;  %v6336_v17 = vsub.s32 %v6225_v41, %v3276_v59  ;;  %v3348_v39 = vshll.u32 %v6319_v15, 16  ;;  %vm6344_vm5 = vcmp.lt.s32.totalorder %v4352_v55, 16 }
 0x218   : > { %v2307_v4 = vpop.f32.mrf.mxu2  ;;  %v2911_v27 = vpop.f32.mrf.mxu0  ;;  %v3330_v28 = vadd.s32 %v3328_v25, %v3326_v1  ;;  %vm6350_vm6 = vcmp.lt.s32.totalorder %v4353_v24, 16  ;;  %v3350_v59 = vshll.u32 %v6339_v56, 16  ;;  %v6360_v2 = vadd.s32 56, %v6179_v34 }
 0x219   : > { %v2415_v30 = vadd.f32 %v2307_v4, %v2113_v45  ;;  %v3305_v23 = vmul.u32 18, %v3304_v5  ;;  %v2540_v45 = vld [vmem:[#allocation2 + $0xad] sm:$0xff]  ;;  %v3322_v4 = vshrl.u32 %v6280_v8, 16  ;;  %v4354_v5 = vsel %vm6331_vm3, %v4318_v26, %v6272_v38 }
 0x21a   : > { %v2008_v63 = vpop.f32.mrf.mxu1  ;;  %v2609_v42 = vpop.f32.mrf.mxu3  ;;  %v3347_v8 = vmul.u32 58254, %v3342_v58  ;;  %vm4211_vm7 = vcmp.ne.s32.totalorder %v6336_v17, 0  ;;  %v3331_v53 = vadd.s32 %v3330_v28, %v3320_v61  ;;  %vm3352_vm8 = vc.u32 %v3344_v10, %v3348_v39 }
 0x21b   : > { %2958 = vmatmul.f32.gmra.mxu0 %v2841_v43  ;;  %v2717_v3 = vadd.f32 %v2609_v42, %v2415_v30  ;;  %v6364_v33 = vsub.s32 %v6239_v44, %v3305_v23  ;;  %v3354_v55 = vadd.s32 %v3348_v39, %v3344_v10  ;;  %v2842_v30 = vld [vmem:[#allocation2 + $0xae] sm:$0xff]  ;;  %vm4247_vm9 = vcmp.lt.s32.totalorder %v6336_v17, 0 }
 0x21c   : > { %v3332_v24 = vadd.s32 %v3331_v53, %v3322_v4  ;;  %v3353_v26 = vsel %vm3352_vm8, 1, %v7219_v14  ;;  %v6369_v42 = vadd.s32 18, %v6336_v17  ;;  %v6373_v39 = vld [vmem:[#allocation2 + $0xb4] sm:$0xff]  ;;  %v3370_v61 = vand.u32 65535, %v6360_v2  ;;  %vm6412_vm14 = vmand %vm4247_vm9, %vm4211_vm7 }
 0x21d   : > { %2055 = vmatmul.f32.gmra.mxu1 %v6249_v18  ;;  %2357 = vmatmul.f32.gmra.mxu2 %v6325_v21  ;;  %v2114_v18 = vadd.f32 %v2008_v63, %v6055_v51  ;;  %v3019_v43 = vadd.f32 %v2911_v27, %v2717_v3  ;;  %v3349_v51 = vshrl.u32 %v6319_v15, 16  ;;  %v3355_v44 = vadd.s32 %v3353_v26, %v3347_v8  ;;  %v2541_v3 = vld [vmem:[#allocation2 + $0xb5] sm:$0xff] }
 0x21e   : > { %v3333_v27 = vshrl.u32 %v3332_v24, 4  ;;  %vm3356_vm10 = vc.u32 %v3354_v55, %v3350_v59  ;;  %v3371_v23 = vshrl.u32 %v6360_v2, 16  ;;  %vm4212_vm11 = vcmp.ne.s32.totalorder %v6364_v33, 0 }
 0x21f   : > { %2659 = vmatmul.f32.gmra.mxu3 %v2540_v45  ;;  %vm4248_vm12 = vcmp.lt.s32.totalorder %v6364_v33, 0  ;;  %v3357_v15 = vsel %vm3356_vm10, 1, %v7219_v14  ;;  %v4424_v10 = vsel %vm6344_vm5, %v3019_v43, 0.0  ;;  %vm6382_vm13 = vcmp.lt.s32.totalorder %v4354_v5, 16 }
 0x220   : > { %v2310_v38 = vpop.f32.mrf.mxu2  ;;  %v2914_v58 = vpop.f32.mrf.mxu0  ;;  %v3334_v4 = vmul.u32 18, %v3333_v27  ;;  %v3359_v28 = vadd.s32 %v3357_v15, %v3355_v44  ;;  %v6386_v8 = vmul.u32 58254, %v3370_v61  ;;  %v3351_v59 = vshrl.u32 %v6339_v56, 16  ;;  %v2843_v27 = vld [vmem:[#allocation2 + $0xb6] sm:$0xff]  ;;  %vm6420_vm15 = vmand %vm4248_vm12, %vm4212_vm11 }
 0x221   : > { %v2416_v1 = vadd.f32 %v2310_v38, %v2114_v18  ;;  %v6391_v18 = vmul.u32 14564, %v3371_v23  ;;  %v6394_v41 = vadd.s32 64, %v6179_v34  ;;  %v6402_v5 = vadd.s32 18, %v6364_v33 }
 0x222   : > { %v2011_v63 = vpop.f32.mrf.mxu1  ;;  %v2612_v32 = vpop.f32.mrf.mxu3  ;;  %v3360_v55 = vadd.s32 %v3359_v28, %v3349_v51  ;;  %v3373_v38 = vmul.u32 14564, %v3370_v61  ;;  %v6425_v13 = vsub.s32 %v6258_v12, %v3334_v4  ;;  %v4355_v12 = vsel %vm6412_vm14, %v6369_v42, %v6336_v17 }
 0x223   : > { %v2718_v25 = vadd.f32 %v2612_v32, %v2416_v1  ;;  %2961 = vmatmul.f32.gmra.mxu0 %v2842_v30  ;;  %v2115_v56 = vadd.f32 %v2011_v63, %v6064_v57  ;;  %v3399_v15 = vand.u32 65535, %v6394_v41  ;;  %v3400_v0 = vshrl.u32 %v6394_v41, 16  ;;  %v2844_v57 = vld [vmem:[#allocation2 + $0xbe] sm:$0xff] }
 0x224   : > { %v3361_v61 = vadd.s32 %v3360_v55, %v3351_v59  ;;  %v2542_v59 = vld [vmem:[#allocation2 + $0xbd] sm:$0xff]  ;;  %vm4213_vm1 = vcmp.ne.s32.totalorder %v6425_v13, 0  ;;  %vm4249_vm2 = vcmp.lt.s32.totalorder %v6425_v13, 0  ;;  %vm6480_vm5 = vcmp.lt.s32.totalorder %v4355_v12, 16 }
 0x225   : > { %v3020_v53 = vadd.f32 %v2914_v58, %v2718_v25  ;;  %2058 = vmatmul.f32.gmra.mxu1 %v6275_v9  ;;  %2360 = vmatmul.f32.gmra.mxu2 %v6373_v39  ;;  %v3377_v9 = vshll.u32 %v6386_v8, 16  ;;  %v4574_v58 = vmul.f32 %v4424_v10, %v4424_v10  ;;  %v3376_v25 = vmul.u32 58254, %v3371_v23  ;;  %vm6465_vm4 = vmand %vm4249_vm2, %vm4213_vm1 }
 0x226   : > { %v4356_v23 = vsel %vm6420_vm15, %v6402_v5, %v6364_v33  ;;  %v3362_v4 = vshrl.u32 %v3361_v61, 4  ;;  %v6450_v33 = vadd.s32 18, %v6425_v13  ;;  %v3378_v5 = vshrl.u32 %v6386_v8, 16 }
 0x227   : > { %v4425_v30 = vsel %vm6350_vm6, %v3020_v53, 0.0  ;;  %v5265_v24 = vpack.c.bf16 %v3020_v53, %v3019_v43  ;;  %2662 = vmatmul.f32.gmra.mxu3 %v2541_v3  ;;  %v3379_v43 = vshll.u32 %v6391_v18, 16  ;;  %v6430_v53 = vld [vmem:[#allocation2 + $0xbc] sm:$0xff]  ;;  %vm3381_vm0 = vc.u32 %v3373_v38, %v3377_v9 }
 0x228   : > { %v4532_v1 = vadd.f32 %v4425_v30, %v4424_v10  ;;  %v4575_v51 = vmul.f32 %v4425_v30, %v4425_v30  ;;  %v2313_v44 = vpop.f32.mrf.mxu2  ;;  %v2917_v32 = vpop.f32.mrf.mxu0  ;;  %v3383_v30 = vadd.s32 %v3377_v9, %v3373_v38  ;;  %v3382_v55 = vsel %vm3381_vm0, 1, %v7219_v14 }
 0x229   : > { %5266 = vst [vmem:[%s6399_s30] sm:$0xff] %v5265_v24   ;;  %v2417_v63 = vadd.f32 %v2313_v44, %v2115_v56  ;;  %v3363_v17 = vmul.u32 18, %v3362_v4  ;;  %v3384_v42 = vadd.s32 %v3382_v55, %v3376_v25  ;;  %v6455_v56 = vmul.u32 14564, %v3400_v0 }
 0x22a   : > { %v4610_v10 = vadd.f32 %v4575_v51, %v4574_v58  ;;  %v2014_v3 = vpop.f32.mrf.mxu1  ;;  %v2615_v28 = vpop.f32.mrf.mxu3  ;;  %vm3385_vm3 = vc.u32 %v3383_v30, %v3379_v43  ;;  %v6453_v58 = vmul.u32 58254, %v3399_v15  ;;  %v3402_v26 = vmul.u32 14564, %v3399_v15 }
 0x22b   : > { %v2719_v40 = vadd.f32 %v2615_v28, %v2417_v63  ;;  %2964 = vmatmul.f32.gmra.mxu0 %v2843_v27  ;;  %v3386_v9 = vsel %vm3385_vm3, 1, %v7219_v14  ;;  %v6472_v63 = vsub.s32 %v6284_v47, %v3363_v17  ;;  %v6475_v61 = vadd.s32 72, %v6179_v34  ;;  %v6477_v28 = vld [vmem:[#allocation2 + $0xc4] sm:$0xff] }
 0x22c   : > { %v3388_v24 = vadd.s32 %v3386_v9, %v3384_v42  ;;  %v3406_v45 = vshll.u32 %v6453_v58, 16  ;;  %v3408_v4 = vshll.u32 %v6455_v56, 16  ;;  %v2543_v47 = vld [vmem:[#allocation2 + $0xc5] sm:$0xff]  ;;  %vm6488_vm7 = vcmp.lt.s32.totalorder %v4356_v23, 16 }
 0x22d   : > { %v6444_v38 = vadd.f32 %v2917_v32, %v2719_v40  ;;  %2061 = vmatmul.f32.gmra.mxu1 %v6325_v21  ;;  %2363 = vmatmul.f32.gmra.mxu2 %v6430_v53  ;;  %v2116_v40 = vadd.f32 %v2014_v3, %v6073_v29  ;;  %v3380_v29 = vshrl.u32 %v6391_v18, 16  ;;  %v3407_v17 = vshrl.u32 %v6453_v58, 16  ;;  %v6512_v18 = vld [vmem:[#allocation2 + $0xcc] sm:$0xff] }
 0x22e   : > { %v3389_v30 = vadd.s32 %v3388_v24, %v3378_v5  ;;  %vm3410_vm6 = vc.u32 %v3402_v26, %v3406_v45  ;;  %v3412_v42 = vadd.s32 %v3406_v45, %v3402_v26  ;;  %vm4214_vm8 = vcmp.ne.s32.totalorder %v6472_v63, 0  ;;  %v2845_v45 = vld [vmem:[#allocation2 + $0xc6] sm:$0xff] }
 0x22f   : > { %v4426_v21 = vsel %vm6382_vm13, %v6444_v38, 0.0  ;;  %2665 = vmatmul.f32.gmra.mxu3 %v2542_v59  ;;  %v3411_v12 = vsel %vm3410_vm6, 1, %v7219_v14  ;;  %vm4250_vm9 = vcmp.lt.s32.totalorder %v6472_v63, 0  ;;  %v3428_v23 = vand.u32 65535, %v6475_v61 }
 0x230   : > { %v4533_v51 = vadd.f32 %v4532_v1, %v4426_v21  ;;  %v4576_v44 = vmul.f32 %v4426_v21, %v4426_v21  ;;  %v2316_v32 = vpop.f32.mrf.mxu2  ;;  %v2920_v27 = vpop.f32.mrf.mxu0  ;;  %v3405_v1 = vmul.u32 58254, %v3400_v0  ;;  %v4357_v0 = vsel %vm6465_vm4, %v6450_v33, %v6425_v13  ;;  %vm6542_vm14 = vmand %vm4250_vm9, %vm4214_vm8 }
 0x231   : > { %v2418_v43 = vadd.f32 %v2316_v32, %v2116_v40  ;;  %v3390_v55 = vadd.s32 %v3389_v30, %v3380_v29  ;;  %v3429_v40 = vshrl.u32 %v6475_v61, 16  ;;  %v3409_v24 = vshrl.u32 %v6455_v56, 16 }
 0x232   : > { %v4611_v25 = vadd.f32 %v4610_v10, %v4576_v44  ;;  %v2017_v15 = vpop.f32.mrf.mxu1  ;;  %v2618_v3 = vpop.f32.mrf.mxu3  ;;  %v3413_v5 = vadd.s32 %v3411_v12, %v3405_v1  ;;  %vm3414_vm10 = vc.u32 %v3412_v42, %v3408_v4  ;;  %v6507_v32 = vadd.s32 80, %v6179_v34 }
 0x233   : > { %v2720_v59 = vadd.f32 %v2618_v3, %v2418_v43  ;;  %2967 = vmatmul.f32.gmra.mxu0 %v2844_v57  ;;  %v2117_v21 = vadd.f32 %v2017_v15, %v6076_v16  ;;  %v3391_v58 = vshrl.u32 %v3390_v55, 4  ;;  %v3415_v44 = vsel %vm3414_vm10, 1, %v7219_v14 }
 0x234   : > { %v3417_v1 = vadd.s32 %v3415_v44, %v3413_v5  ;;  %v3431_v15 = vmul.u32 14564, %v3428_v23  ;;  %v3432_v3 = vmul.u32 58254, %v3428_v23  ;;  %v6510_v30 = vmul.u32 14564, %v3429_v40 }
 0x235   : > { %v3022_v9 = vadd.f32 %v2920_v27, %v2720_v59  ;;  %2064 = vmatmul.f32.gmra.mxu1 %v6373_v39  ;;  %2366 = vmatmul.f32.gmra.mxu2 %v6477_v28  ;;  %v3392_v43 = vmul.u32 18, %v3391_v58  ;;  %v3434_v42 = vmul.u32 58254, %v3429_v40  ;;  %v3457_v5 = vand.u32 65535, %v6507_v32 }
 0x236   : > { %v3418_v55 = vadd.s32 %v3417_v1, %v3407_v17  ;;  %v3436_v58 = vshrl.u32 %v3432_v3, 16  ;;  %v2846_v1 = vld [vmem:[#allocation2 + $0xce] sm:$0xff]  ;;  %vm6569_vm1 = vcmp.lt.s32.totalorder %v4357_v0, 16 }
 0x237   : > { %v4427_v39 = vsel %vm6480_vm5, %v3022_v9, 0.0  ;;  %v5270_v26 = vpack.c.bf16 %v3022_v9, %v6444_v38  ;;  %2668 = vmatmul.f32.gmra.mxu3 %v2543_v47  ;;  %v6515_v47 = vadd.s32 18, %v6472_v63  ;;  %v3435_v9 = vshll.u32 %v3432_v3, 16 }
 0x238   : > { %v4534_v27 = vadd.f32 %v4533_v51, %v4427_v39  ;;  %v4577_v57 = vmul.f32 %v4427_v39, %v4427_v39  ;;  %v2319_v29 = vpop.f32.mrf.mxu2  ;;  %v2923_v16 = vpop.f32.mrf.mxu0  ;;  %v6518_v51 = vsub.s32 %v6360_v2, %v3392_v43  ;;  %v3437_v2 = vshll.u32 %v6510_v30, 16 }
 0x239   : > { %5442 = vst [vmem:[%s6399_s30 + $0x8] sm:$0xff] %v5270_v26   ;;  %v2419_v56 = vadd.f32 %v2319_v29, %v2117_v21  ;;  %v3419_v21 = vadd.s32 %v3418_v55, %v3409_v24  ;;  %vm3439_vm13 = vc.u32 %v3431_v15, %v3435_v9  ;;  %v3441_v26 = vadd.s32 %v3435_v9, %v3431_v15 }
 0x23a   : > { %v4612_v38 = vadd.f32 %v4611_v25, %v4577_v57  ;;  %v2020_v4 = vpop.f32.mrf.mxu1  ;;  %v2621_v59 = vpop.f32.mrf.mxu3  ;;  %v2544_v25 = vld [vmem:[#allocation2 + $0xcd] sm:$0xff]  ;;  %vm4215_vm11 = vcmp.ne.s32.totalorder %v6518_v51, 0  ;;  %vm4251_vm12 = vcmp.lt.s32.totalorder %v6518_v51, 0  ;;  %v6530_v17 = vadd.s32 18, %v6518_v51 }
 0x23b   : > { %v2721_v12 = vadd.f32 %v2621_v59, %v2419_v56  ;;  %2970 = vmatmul.f32.gmra.mxu0 %v2845_v45  ;;  %v2118_v23 = vadd.f32 %v2020_v4, %v6079_v22  ;;  %v3420_v22 = vshrl.u32 %v3419_v21, 4  ;;  %v3440_v40 = vsel %vm3439_vm13, 1, %v7219_v14  ;;  %vm6550_vm0 = vmand %vm4251_vm12, %vm4215_vm11 }
 0x23c   : > { %v3442_v44 = vadd.s32 %v3440_v40, %v3434_v42  ;;  %v3458_v57 = vshrl.u32 %v6507_v32, 16  ;;  %vm3443_vm15 = vc.u32 %v3441_v26, %v3437_v2  ;;  %v6555_v4 = vmul.u32 58254, %v3457_v5  ;;  %v6557_v42 = vld [vmem:[#allocation2 + $0xd4] sm:$0xff] }
 0x23d   : > { %v6523_v39 = vadd.f32 %v2923_v16, %v2721_v12  ;;  %2067 = vmatmul.f32.gmra.mxu1 %v6430_v53  ;;  %2369 = vmatmul.f32.gmra.mxu2 %v6512_v18  ;;  %v3438_v53 = vshrl.u32 %v6510_v30, 16  ;;  %v3421_v10 = vmul.u32 18, %v3420_v22  ;;  %v3444_v3 = vsel %vm3443_vm15, 1, %v7219_v14  ;;  %v2545_v2 = vld [vmem:[#allocation2 + $0xd5] sm:$0xff] }
 0x23e   : > { %v3460_v30 = vmul.u32 14564, %v3457_v5  ;;  %v4359_v8 = vsel %vm6550_vm0, %v6530_v17, %v6518_v51  ;;  %v3463_v13 = vmul.u32 58254, %v3458_v57 }
 0x23f   : > { %v4428_v24 = vsel %vm6488_vm7, %v6523_v39, 0.0  ;;  %2671 = vmatmul.f32.gmra.mxu3 %v2544_v25  ;;  %v6560_v9 = vsub.s32 %v6394_v41, %v3421_v10  ;;  %v6562_v25 = vmul.u32 14564, %v3458_v57  ;;  %v4358_v41 = vsel %vm6542_vm14, %v6515_v47, %v6472_v63  ;;  %v2847_v57 = vld [vmem:[#allocation2 + $0xd6] sm:$0xff] }
 0x240   : > { %v4535_v29 = vadd.f32 %v4534_v27, %v4428_v24  ;;  %v4578_v16 = vmul.f32 %v4428_v24, %v4428_v24  ;;  %v2322_v45 = vpop.f32.mrf.mxu2  ;;  %v2926_v43 = vpop.f32.mrf.mxu0  ;;  %vm4394_vm7 = vcmp.lt.s32.totalorder %v4358_v41, 16  ;;  %vm6616_vm8 = vcmp.lt.s32.totalorder %v4359_v8, 16 }
 0x241   : > { %v2420_v15 = vadd.f32 %v2322_v45, %v2118_v23  ;;  %v3446_v23 = vadd.s32 %v3444_v3, %v3442_v44  ;;  %vm4216_vm2 = vcmp.ne.s32.totalorder %v6560_v9, 0  ;;  %v3466_v40 = vshll.u32 %v6562_v25, 16 }
 0x242   : > { %v4613_v59 = vadd.f32 %v4612_v38, %v4578_v16  ;;  %v2023_v55 = vpop.f32.mrf.mxu1  ;;  %v2624_v12 = vpop.f32.mrf.mxu3  ;;  %v3464_v38 = vshll.u32 %v6555_v4, 16  ;;  %vm4252_vm3 = vcmp.lt.s32.totalorder %v6560_v9, 0 }
 0x243   : > { %v2722_v21 = vadd.f32 %v2624_v12, %v2420_v15  ;;  %2973 = vmatmul.f32.gmra.mxu0 %v2846_v1  ;;  %v3447_v22 = vadd.s32 %v3446_v23, %v3436_v58  ;;  %v2119_v33 = vadd.f32 %v2023_v55, %v6082_v37  ;;  %v6600_v15 = vld [vmem:[#allocation2 + $0xdc] sm:$0xff]  ;;  %vm6606_vm6 = vmand %vm4252_vm3, %vm4216_vm2 }
 0x244   : > { %vm3468_vm4 = vc.u32 %v3460_v30, %v3464_v38  ;;  %v3470_v47 = vadd.s32 %v3464_v38, %v3460_v30  ;;  %v6612_v30 = vadd.s32 96, %v6179_v34  ;;  %v2546_v23 = vld [vmem:[#allocation2 + $0xdd] sm:$0xff] }
 0x245   : > { %v3024_v0 = vadd.f32 %v2926_v43, %v2722_v21  ;;  %2070 = vmatmul.f32.gmra.mxu1 %v6477_v28  ;;  %2372 = vmatmul.f32.gmra.mxu2 %v6557_v42  ;;  %v3448_v63 = vadd.s32 %v3447_v22, %v3438_v53  ;;  %v6592_v28 = vadd.s32 18, %v6560_v9  ;;  %v3469_v58 = vsel %vm3468_vm4, 1, %v7219_v14 }
 0x246   : > { %v3471_v53 = vadd.s32 %v3469_v58, %v3463_v13  ;;  %v3465_v43 = vshrl.u32 %v6555_v4, 16  ;;  %vm3472_vm5 = vc.u32 %v3470_v47, %v3466_v40  ;;  %v2848_v58 = vld [vmem:[#allocation2 + $0xde] sm:$0xff] }
 0x247   : > { %v4429_v51 = vsel %vm6569_vm1, %v3024_v0, 0.0  ;;  %v5275_v37 = vpack.c.bf16 %v3024_v0, %v6523_v39  ;;  %2674 = vmatmul.f32.gmra.mxu3 %v2545_v2  ;;  %v3449_v16 = vshrl.u32 %v3448_v63, 4  ;;  %v6598_v39 = vadd.s32 88, %v6179_v34 }
 0x248   : > { %v4536_v17 = vadd.f32 %v4535_v29, %v4429_v51  ;;  %v4579_v26 = vmul.f32 %v4429_v51, %v4429_v51  ;;  %v2325_v24 = vpop.f32.mrf.mxu2  ;;  %v2929_v44 = vpop.f32.mrf.mxu0  ;;  %v3473_v3 = vsel %vm3472_vm5, 1, %v7219_v14 }
 0x249   : > { %5443 = vst [vmem:[%s6399_s30 + $0x10] sm:$0xff] %v5275_v37   ;;  %v2421_v45 = vadd.f32 %v2325_v24, %v2119_v33  ;;  %v3450_v27 = vmul.u32 18, %v3449_v16  ;;  %v3475_v55 = vadd.s32 %v3473_v3, %v3471_v53  ;;  %v3486_v12 = vand.u32 65535, %v6598_v39 }
 0x24a   : > { %v4614_v1 = vadd.f32 %v4613_v59, %v4579_v26  ;;  %v2026_v56 = vpop.f32.mrf.mxu1  ;;  %v2627_v10 = vpop.f32.mrf.mxu3  ;;  %v3467_v59 = vshrl.u32 %v6562_v25, 16  ;;  %v3487_v38 = vshrl.u32 %v6598_v39, 16  ;;  %v4360_v25 = vsel %vm6606_vm6, %v6592_v28, %v6560_v9 }
 0x24b   : > { %v2723_v4 = vadd.f32 %v2627_v10, %v2421_v45  ;;  %2976 = vmatmul.f32.gmra.mxu0 %v2847_v57  ;;  %v6621_v5 = vsub.s32 %v6475_v61, %v3450_v27  ;;  %v3476_v41 = vadd.s32 %v3475_v55, %v3465_v43  ;;  %v3490_v8 = vmul.u32 58254, %v3486_v12  ;;  %v6641_v43 = vld [vmem:[#allocation2 + $0xe4] sm:$0xff] }
 0x24c   : > { %v2120_v22 = vadd.f32 %v2026_v56, %v6094_v50  ;;  %v3489_v13 = vmul.u32 14564, %v3486_v12  ;;  %v6633_v61 = vmul.u32 14564, %v3487_v38  ;;  %v3515_v33 = vand.u32 65535, %v6612_v30 }
 0x24d   : > { %v6624_v2 = vadd.f32 %v2929_v44, %v2723_v4  ;;  %2073 = vmatmul.f32.gmra.mxu1 %v6512_v18  ;;  %2375 = vmatmul.f32.gmra.mxu2 %v6600_v15  ;;  %vm4217_vm9 = vcmp.ne.s32.totalorder %v6621_v5, 0  ;;  %v3477_v18 = vadd.s32 %v3476_v41, %v3467_v59  ;;  %v3493_v40 = vshll.u32 %v3490_v8, 16  ;;  %v2547_v59 = vld [vmem:[#allocation2 + $0xe5] sm:$0xff] }
 0x24e   : > { %vm4253_vm10 = vcmp.lt.s32.totalorder %v6621_v5, 0  ;;  %v3492_v50 = vmul.u32 58254, %v3487_v38  ;;  %v3495_v44 = vshll.u32 %v6633_v61, 16  ;;  %v3516_v57 = vshrl.u32 %v6612_v30, 16 }
 0x24f   : > { %v4430_v0 = vsel %vm4394_vm7, %v6624_v2, 0.0  ;;  %2677 = vmatmul.f32.gmra.mxu3 %v2546_v23  ;;  %v3478_v24 = vshrl.u32 %v3477_v18, 4  ;;  %vm3497_vm11 = vc.u32 %v3489_v13, %v3493_v40  ;;  %v3499_v56 = vadd.s32 %v3493_v40, %v3489_v13  ;;  %vm6648_vm12 = vmand %vm4253_vm10, %vm4217_vm9 }
 0x250   : > { %v4537_v63 = vadd.f32 %v4536_v17, %v4430_v0  ;;  %v4580_v47 = vmul.f32 %v4430_v0, %v4430_v0  ;;  %v2328_v51 = vpop.f32.mrf.mxu2  ;;  %v2932_v37 = vpop.f32.mrf.mxu0  ;;  %v4325_v17 = vadd.s32 18, %v6621_v5  ;;  %v3498_v4 = vsel %vm3497_vm11, 1, %v7219_v14 }
 0x251   : > { %v2422_v26 = vadd.f32 %v2328_v51, %v2120_v22  ;;  %v3479_v3 = vmul.u32 18, %v3478_v24  ;;  %v3500_v55 = vadd.s32 %v3498_v4, %v3492_v50  ;;  %vm3501_vm13 = vc.u32 %v3499_v56, %v3495_v44  ;;  %v6676_v44 = vld [vmem:[#allocation2 + $0xec] sm:$0xff] }
 0x252   : > { %v4615_v16 = vadd.f32 %v4614_v1, %v4580_v47  ;;  %v2029_v53 = vpop.f32.mrf.mxu1  ;;  %v2630_v45 = vpop.f32.mrf.mxu3  ;;  %v3494_v1 = vshrl.u32 %v3490_v8, 16  ;;  %v3518_v12 = vmul.u32 14564, %v3515_v33  ;;  %v6653_v23 = vmul.u32 58254, %v3515_v33  ;;  %v2548_v56 = vld [vmem:[#allocation2 + $0xed] sm:$0xff] }
 0x253   : > { %v2724_v10 = vadd.f32 %v2630_v45, %v2422_v26  ;;  %2979 = vmatmul.f32.gmra.mxu0 %v2848_v58  ;;  %v6658_v41 = vsub.s32 %v6507_v32, %v3479_v3  ;;  %v3502_v22 = vsel %vm3501_vm13, 1, %v7219_v14  ;;  %v6661_v13 = vmul.u32 14564, %v3516_v57 }
 0x254   : > { %v4361_v8 = vsel %vm6648_vm12, %v4325_v17, %v6621_v5  ;;  %v3496_v33 = vshrl.u32 %v6633_v61, 16  ;;  %v3504_v0 = vadd.s32 %v3502_v22, %v3500_v55  ;;  %v3522_v18 = vshll.u32 %v6653_v23, 16  ;;  %v2849_v5 = vld [vmem:[#allocation2 + $0xe6] sm:$0xff] }
 0x255   : > { %v3026_v38 = vadd.f32 %v2932_v37, %v2724_v10  ;;  %2076 = vmatmul.f32.gmra.mxu1 %v6557_v42  ;;  %2378 = vmatmul.f32.gmra.mxu2 %v6641_v43  ;;  %v2121_v42 = vadd.f32 %v2029_v53, %v6100_v36  ;;  %v3521_v47 = vmul.u32 58254, %v3516_v57  ;;  %vm4218_vm14 = vcmp.ne.s32.totalorder %v6658_v41, 0 }
 0x256   : > { %v3505_v61 = vadd.s32 %v3504_v0, %v3494_v1  ;;  %vm4254_vm15 = vcmp.lt.s32.totalorder %v6658_v41, 0  ;;  %v3524_v36 = vshll.u32 %v6661_v13, 16  ;;  %vm3526_vm0 = vc.u32 %v3518_v12, %v3522_v18 }
 0x257   : > { %v4431_v32 = vsel %vm6616_vm8, %v3026_v38, 0.0  ;;  %v5280_v40 = vpack.c.bf16 %v3026_v38, %v6624_v2  ;;  %2680 = vmatmul.f32.gmra.mxu3 %v2547_v59  ;;  %v3527_v57 = vsel %vm3526_vm0, 1, %v7219_v14  ;;  %vm6684_vm1 = vcmp.lt.s32.totalorder %v4360_v25, 16  ;;  %vm6697_vm3 = vmand %vm4254_vm15, %vm4218_vm14 }
 0x258   : > { %v4538_v51 = vadd.f32 %v4537_v63, %v4431_v32  ;;  %v4581_v37 = vmul.f32 %v4431_v32, %v4431_v32  ;;  %v2331_v58 = vpop.f32.mrf.mxu2  ;;  %v2935_v50 = vpop.f32.mrf.mxu0  ;;  %v3506_v63 = vadd.s32 %v3505_v61, %v3496_v33  ;;  %v3528_v17 = vadd.s32 %v3522_v18, %v3518_v12 }
 0x259   : > { %5444 = vst [vmem:[%s6399_s30 + $0x18] sm:$0xff] %v5280_v40   ;;  %v2423_v26 = vadd.f32 %v2331_v58, %v2121_v42  ;;  %vm6689_vm2 = vcmp.lt.s32.totalorder %v4361_v8, 16  ;;  %v3523_v28 = vshrl.u32 %v6653_v23, 16  ;;  %v3529_v25 = vadd.s32 %v3527_v57, %v3521_v47  ;;  %v2850_v42 = vld [vmem:[#allocation2 + $0xee] sm:$0xff] }
 0x25a   : > { %v4616_v21 = vadd.f32 %v4615_v16, %v4581_v37  ;;  %v2032_v24 = vpop.f32.mrf.mxu1  ;;  %v2633_v2 = vpop.f32.mrf.mxu3  ;;  %v4326_v16 = vadd.s32 18, %v6658_v41  ;;  %v3507_v9 = vshrl.u32 %v3506_v63, 4  ;;  %v6703_v27 = vadd.s32 104, %v6179_v34 }
 0x25b   : > { %v2725_v53 = vadd.f32 %v2633_v2, %v2423_v26  ;;  %2982 = vmatmul.f32.gmra.mxu0 %v2849_v5  ;;  %v3525_v1 = vshrl.u32 %v6661_v13, 16  ;;  %vm3530_vm4 = vc.u32 %v3528_v17, %v3524_v36  ;;  %v6711_v4 = vadd.s32 112, %v6179_v34  ;;  %v2549_v2 = vld [vmem:[#allocation2 + $0xf5] sm:$0xff] }
 0x25c   : > { %v3508_v59 = vmul.u32 18, %v3507_v9  ;;  %v3531_v55 = vsel %vm3530_vm4, 1, %v7219_v14  ;;  %v3544_v12 = vand.u32 65535, %v6703_v27  ;;  %v3545_v23 = vshrl.u32 %v6703_v27, 16 }
 0x25d   : > { %v6705_v3 = vadd.f32 %v2935_v50, %v2725_v53  ;;  %2079 = vmatmul.f32.gmra.mxu1 %v6600_v15  ;;  %2381 = vmatmul.f32.gmra.mxu2 %v6676_v44  ;;  %v2122_v38 = vadd.f32 %v2032_v24, %v6103_v11  ;;  %v4362_v22 = vsel %vm6697_vm3, %v4326_v16, %v6658_v41  ;;  %v6727_v11 = vadd.s32 120, %v6179_v34 }
 0x25e   : > { %v3533_v13 = vadd.s32 %v3531_v55, %v3529_v25  ;;  %v6724_v32 = vsub.s32 %v6598_v39, %v3508_v59  ;;  %v6729_v37 = vmul.u32 58254, %v3544_v12  ;;  %v6731_v58 = vmul.u32 14564, %v3545_v23 }
 0x25f   : > { %v4432_v15 = vsel %vm6684_vm1, %v6705_v3, 0.0  ;;  %2683 = vmatmul.f32.gmra.mxu3 %v2548_v56  ;;  %v3547_v61 = vmul.u32 14564, %v3544_v12  ;;  %v3573_v26 = vand.u32 65535, %v6711_v4  ;;  %v3574_v39 = vshrl.u32 %v6711_v4, 16 }
 0x260   : > { %v4539_v8 = vadd.f32 %v4538_v51, %v4432_v15  ;;  %v4582_v33 = vmul.f32 %v4432_v15, %v4432_v15  ;;  %v2334_v0 = vpop.f32.mrf.mxu2  ;;  %v2938_v18 = vpop.f32.mrf.mxu0  ;;  %v3534_v47 = vadd.s32 %v3533_v13, %v3523_v28  ;;  %v6733_v51 = vld [vmem:[#allocation2 + $0xf4] sm:$0xff]  ;;  %vm4219_vm5 = vcmp.ne.s32.totalorder %v6724_v32, 0 }
 0x261   : > { %v2424_v40 = vadd.f32 %v2334_v0, %v2122_v38  ;;  %vm4255_vm6 = vcmp.lt.s32.totalorder %v6724_v32, 0  ;;  %vm6739_vm7 = vcmp.lt.s32.totalorder %v4362_v22, 16  ;;  %v3550_v57 = vmul.u32 58254, %v3545_v23  ;;  %v2851_v15 = vld [vmem:[#allocation2 + $0xf6] sm:$0xff] }
 0x262   : > { %v4617_v50 = vadd.f32 %v4616_v21, %v4582_v33  ;;  %v2035_v41 = vpop.f32.mrf.mxu1  ;;  %v2636_v5 = vpop.f32.mrf.mxu3  ;;  %v3535_v24 = vadd.s32 %v3534_v47, %v3525_v1  ;;  %v6744_v21 = vadd.s32 18, %v6724_v32  ;;  %v3551_v53 = vshll.u32 %v6729_v37, 16  ;;  %vm6763_vm10 = vmand %vm4255_vm6, %vm4219_vm5 }
 0x263   : > { %v2726_v36 = vadd.f32 %v2636_v5, %v2424_v40  ;;  %2985 = vmatmul.f32.gmra.mxu0 %v2850_v42  ;;  %v3553_v45 = vshll.u32 %v6731_v58, 16  ;;  %v2123_v16 = vadd.f32 %v2035_v41, %v6106_v54  ;;  %v3552_v29 = vshrl.u32 %v6729_v37, 16  ;;  %v6771_v40 = vld [vmem:[#allocation2 + $0xfc] sm:$0xff] }
 0x264   : > { %v3536_v56 = vshrl.u32 %v3535_v24, 4  ;;  %vm3555_vm8 = vc.u32 %v3547_v61, %v3551_v53  ;;  %v3557_v9 = vadd.s32 %v3551_v53, %v3547_v61  ;;  %v3576_v28 = vmul.u32 14564, %v3573_v26 }
 0x265   : > { %v3028_v17 = vadd.f32 %v2938_v18, %v2726_v36  ;;  %2082 = vmatmul.f32.gmra.mxu1 %v6641_v43  ;;  %2384 = vmatmul.f32.gmra.mxu2 %v6733_v51  ;;  %v6752_v25 = vmul.u32 58254, %v3573_v26  ;;  %v3556_v43 = vsel %vm3555_vm8, 1, %v7219_v14  ;;  %v6769_v33 = vmul.u32 14564, %v3574_v39  ;;  %v2550_v26 = vld [vmem:[#allocation2 + $0xfd] sm:$0xff] }
 0x266   : > { %v3537_v54 = vmul.u32 18, %v3536_v56  ;;  %v3558_v22 = vadd.s32 %v3556_v43, %v3550_v57  ;;  %vm3559_vm9 = vc.u32 %v3557_v9, %v3553_v45  ;;  %v3554_v47 = vshrl.u32 %v6731_v58, 16 }
 0x267   : > { %v4433_v1 = vsel %vm6689_vm2, %v3028_v17, 0.0  ;;  %v5285_v59 = vpack.c.bf16 %v3028_v17, %v6705_v3  ;;  %2686 = vmatmul.f32.gmra.mxu3 %v2549_v2  ;;  %v3580_v41 = vshll.u32 %v6752_v25, 16  ;;  %v3579_v61 = vmul.u32 58254, %v3574_v39 }
 0x268   : > { %v4540_v55 = vadd.f32 %v4539_v8, %v4433_v1  ;;  %v4583_v12 = vmul.f32 %v4433_v1, %v4433_v1  ;;  %v2337_v23 = vpop.f32.mrf.mxu2  ;;  %v2941_v38 = vpop.f32.mrf.mxu0  ;;  %v3538_v3 = vsub.s32 %v6612_v30, %v3537_v54  ;;  %v3560_v8 = vsel %vm3559_vm9, 1, %v7219_v14 }
 0x269   : > { %5445 = vst [vmem:[%s6399_s30 + $0x20] sm:$0xff] %v5285_v59   ;;  %v2425_v13 = vadd.f32 %v2337_v23, %v2123_v16  ;;  %v3562_v37 = vadd.s32 %v3560_v8, %v3558_v22  ;;  %v3582_v24 = vshll.u32 %v6769_v33, 16  ;;  %vm3584_vm13 = vc.u32 %v3576_v28, %v3580_v41 }
 0x26a   : > { %v4618_v0 = vadd.f32 %v4617_v50, %v4583_v12  ;;  %v2038_v18 = vpop.f32.mrf.mxu1  ;;  %v2639_v42 = vpop.f32.mrf.mxu3  ;;  %vm4220_vm11 = vcmp.ne.s32.totalorder %v3538_v3, 0  ;;  %vm4256_vm12 = vcmp.lt.s32.totalorder %v3538_v3, 0  ;;  %v4363_v50 = vsel %vm6763_vm10, %v6744_v21, %v6724_v32 }
 0x26b   : > { %v2727_v5 = vadd.f32 %v2639_v42, %v2425_v13  ;;  %2988 = vmatmul.f32.gmra.mxu0 %v2851_v15  ;;  %v2124_v30 = vadd.f32 %v2038_v18, %v6116_v19  ;;  %v3563_v36 = vadd.s32 %v3562_v37, %v3552_v29  ;;  %v4328_v2 = vadd.s32 18, %v3538_v3  ;;  %vm6785_vm14 = vmand %vm4256_vm12, %vm4220_vm11  ;;  %v6800_v15 = vld [vmem:[#allocation2 + $0x104] sm:$0xff] }
 0x26c   : > { %v3586_v39 = vadd.s32 %v3580_v41, %v3576_v28  ;;  %v3581_v53 = vshrl.u32 %v6752_v25, 16  ;;  %v3585_v32 = vsel %vm3584_vm13, 1, %v7219_v14  ;;  %v3602_v21 = vand.u32 65535, %v6727_v11  ;;  %v2852_v28 = vld [vmem:[#allocation2 + $0xfe] sm:$0xff] }
 0x26d   : > { %v6781_v58 = vadd.f32 %v2941_v38, %v2727_v5  ;;  %2085 = vmatmul.f32.gmra.mxu1 %v6676_v44  ;;  %2387 = vmatmul.f32.gmra.mxu2 %v6771_v40  ;;  %v3564_v57 = vadd.s32 %v3563_v36, %v3554_v47  ;;  %v3583_v45 = vshrl.u32 %v6769_v33, 16  ;;  %v3587_v16 = vadd.s32 %v3585_v32, %v3579_v61 }
 0x26e   : > { %vm3588_vm15 = vc.u32 %v3586_v39, %v3582_v24  ;;  %v4364_v54 = vsel %vm6785_vm14, %v4328_v2, %v3538_v3  ;;  %v3603_v63 = vshrl.u32 %v6727_v11, 16  ;;  %v3605_v22 = vmul.u32 14564, %v3602_v21 }
 0x26f   : > { %v4434_v44 = vsel %vm6739_vm7, %v6781_v58, 0.0  ;;  %2689 = vmatmul.f32.gmra.mxu3 %v2550_v26  ;;  %v3565_v1 = vshrl.u32 %v3564_v57, 4  ;;  %v3589_v25 = vsel %vm3588_vm15, 1, %v7219_v14  ;;  %v6802_v13 = vmul.u32 58254, %v3602_v21  ;;  %v2853_v57 = vld [vmem:[#allocation2 + $0x106] sm:$0xff] }
 0x270   : > { %v4541_v17 = vadd.f32 %v4540_v55, %v4434_v44  ;;  %v4584_v56 = vmul.f32 %v4434_v44, %v4434_v44  ;;  %v2340_v29 = vpop.f32.mrf.mxu2  ;;  %v2944_v9 = vpop.f32.mrf.mxu0  ;;  %v3591_v43 = vadd.s32 %v3589_v25, %v3587_v16  ;;  %vm6804_vm0 = vcmp.lt.s32.totalorder %v4363_v50, 16 }
 0x271   : > { %v2426_v59 = vadd.f32 %v2340_v29, %v2124_v30  ;;  %v3566_v55 = vmul.u32 18, %v3565_v1  ;;  %v6808_v3 = vmul.u32 14564, %v3603_v63  ;;  %vm6811_vm1 = vcmp.lt.s32.totalorder %v4364_v54, 16 }
 0x272   : > { %v4619_v12 = vadd.f32 %v4618_v0, %v4584_v56  ;;  %v2041_v23 = vpop.f32.mrf.mxu1  ;;  %v2642_v38 = vpop.f32.mrf.mxu3  ;;  %v3592_v33 = vadd.s32 %v3591_v43, %v3581_v53  ;;  %v2551_v0 = vld [vmem:[#allocation2 + $0x105] sm:$0xff]  ;;  %v3609_v37 = vshll.u32 %v6802_v13, 16  ;;  %v6818_v41 = vadd.s32 128, %v6179_v34 }
 0x273   : > { %v2728_v10 = vadd.f32 %v2642_v38, %v2426_v59  ;;  %2991 = vmatmul.f32.gmra.mxu0 %v2852_v28  ;;  %v2125_v18 = vadd.f32 %v2041_v23, %v6125_v48  ;;  %v3567_v47 = vsub.s32 %v6703_v27, %v3566_v55  ;;  %v3608_v30 = vmul.u32 58254, %v3603_v63  ;;  %v2552_v63 = vld [vmem:[#allocation2 + $0x10d] sm:$0xff] }
 0x274   : > { %v3593_v61 = vadd.s32 %v3592_v33, %v3583_v45  ;;  %v3611_v48 = vshll.u32 %v6808_v3, 16  ;;  %vm3613_vm4 = vc.u32 %v3605_v22, %v3609_v37  ;;  %v3610_v32 = vshrl.u32 %v6802_v13, 16 }
 0x275   : > { %v3030_v5 = vadd.f32 %v2944_v9, %v2728_v10  ;;  %2088 = vmatmul.f32.gmra.mxu1 %v6733_v51  ;;  %2390 = vmatmul.f32.gmra.mxu2 %v6800_v15  ;;  %vm4221_vm2 = vcmp.ne.s32.totalorder %v3567_v47, 0  ;;  %vm4257_vm3 = vcmp.lt.s32.totalorder %v3567_v47, 0  ;;  %v4329_v26 = vadd.s32 18, %v3567_v47  ;;  %v6834_v9 = vld [vmem:[#allocation2 + $0x10c] sm:$0xff] }
 0x276   : > { %v3594_v36 = vshrl.u32 %v3593_v61, 4  ;;  %v3614_v51 = vsel %vm3613_vm4, 1, %v7219_v14  ;;  %vm6827_vm5 = vmand %vm4257_vm3, %vm4221_vm2  ;;  %v3615_v21 = vadd.s32 %v3609_v37, %v3605_v22  ;;  %v3631_v28 = vand.u32 65535, %v6818_v41 }
 0x277   : > { %v4435_v27 = vsel %vm6804_vm0, %v3030_v5, 0.0  ;;  %v5290_v50 = vpack.c.bf16 %v3030_v5, %v6781_v58  ;;  %2692 = vmatmul.f32.gmra.mxu3 %v2551_v0  ;;  %v3612_v58 = vshrl.u32 %v6808_v3, 16  ;;  %v3616_v16 = vadd.s32 %v3614_v51, %v3608_v30  ;;  %v2854_v30 = vld [vmem:[#allocation2 + $0x10e] sm:$0xff] }
 0x278   : > { %v4542_v24 = vadd.f32 %v4541_v17, %v4435_v27  ;;  %v4585_v2 = vmul.f32 %v4435_v27, %v4435_v27  ;;  %v2343_v39 = vpop.f32.mrf.mxu2  ;;  %v2947_v19 = vpop.f32.mrf.mxu0  ;;  %v3595_v45 = vmul.u32 18, %v3594_v36  ;;  %vm3617_vm6 = vc.u32 %v3615_v21, %v3611_v48 }
 0x279   : > { %5446 = vst [vmem:[%s6399_s30 + $0x28] sm:$0xff] %v5290_v50   ;;  %v2427_v44 = vadd.f32 %v2343_v39, %v2125_v18  ;;  %v3632_v1 = vshrl.u32 %v6818_v41, 16  ;;  %v4365_v59 = vsel %vm6827_vm5, %v4329_v26, %v3567_v47  ;;  %v3618_v43 = vsel %vm3617_vm6, 1, %v7219_v14 }
 0x27a   : > { %v4620_v56 = vadd.f32 %v4619_v12, %v4585_v2  ;;  %v2044_v29 = vpop.f32.mrf.mxu1  ;;  %v2645_v17 = vpop.f32.mrf.mxu3  ;;  %v3596_v54 = vsub.s32 %v6711_v4, %v3595_v45  ;;  %v3620_v12 = vadd.s32 %v3618_v43, %v3616_v16  ;;  %v3634_v23 = vmul.u32 14564, %v3631_v28 }
 0x27b   : > { %v2729_v25 = vadd.f32 %v2645_v17, %v2427_v44  ;;  %2994 = vmatmul.f32.gmra.mxu0 %v2853_v57  ;;  %v6842_v38 = vmul.u32 58254, %v3631_v28  ;;  %v6844_v55 = vmul.u32 14564, %v3632_v1  ;;  %v2126_v4 = vadd.f32 %v2044_v29, %v6129_v20  ;;  %v5518_v57 = vld [vmem:[%s5576_s26 + $0x98] sm:$0xff]  }
 0x27c   : > { %vm4222_vm7 = vcmp.ne.s32.totalorder %v3596_v54, 0  ;;  %vm4258_vm8 = vcmp.lt.s32.totalorder %v3596_v54, 0  ;;  %v4330_v13 = vadd.s32 18, %v3596_v54  ;;  %vm6851_vm9 = vcmp.lt.s32.totalorder %v4365_v59, 16 }
 0x27d   : > { %v6846_v22 = vadd.f32 %v2947_v19, %v2729_v25  ;;  %2091 = vmatmul.f32.gmra.mxu1 %v6771_v40  ;;  %2393 = vmatmul.f32.gmra.mxu2 %v6834_v9  ;;  %vm6855_vm10 = vmand %vm4258_vm8, %vm4222_vm7  ;;  %v3621_v33 = vadd.s32 %v3620_v12, %v3610_v32  ;;  %v3638_v3 = vshll.u32 %v6842_v38, 16  ;;  %v3637_v18 = vmul.u32 58254, %v3632_v1  ;;  %v255_v32 = vld [vmem:[%s5576_s26 + $0xa0] sm:$0xf] }
 0x27e   : > { %v3639_v0 = vshrl.u32 %v6842_v38, 16  ;;  %v3640_v20 = vshll.u32 %v6844_v55, 16  ;;  %v4366_v48 = vsel %vm6855_vm10, %v4330_v13, %v3596_v54  ;;  %v6868_v50 = vadd.s32 136, %v6179_v34 }
 0x27f   : > { %v4436_v40 = vsel %vm6811_vm1, %v6846_v22, 0.0  ;;  %2695 = vmatmul.f32.gmra.mxu3 %v2552_v63  ;;  %v3622_v26 = vadd.s32 %v3621_v33, %v3612_v58  ;;  %vm3642_vm11 = vc.u32 %v3634_v23, %v3638_v3  ;;  %v3644_v42 = vadd.s32 %v3638_v3, %v3634_v23  ;;  %v2553_v58 = vld [vmem:[#allocation2 + $0x115] sm:$0xff] }
 0x280   : > { %v4543_v47 = vadd.f32 %v4542_v24, %v4436_v40  ;;  %v4586_v37 = vmul.f32 %v4436_v40, %v4436_v40  ;;  %v2346_v5 = vpop.f32.mrf.mxu2  ;;  %v2950_v61 = vpop.f32.mrf.mxu0  ;;  %v6870_v24 = vld [vmem:[#allocation2 + $0x114] sm:$0xff]  ;;  %v3643_v19 = vsel %vm3642_vm11, 1, %v7219_v14  ;;  %v4973_v53 = vunpack.c.h.bf16 %v5518_v57 }
 0x281   : > { %v2428_v27 = vadd.f32 %v2346_v5, %v2126_v4  ;;  %v3623_v39 = vshrl.u32 %v3622_v26, 4  ;;  %v3641_v44 = vshrl.u32 %v6844_v55, 16  ;;  %v3645_v45 = vadd.s32 %v3643_v19, %v3637_v18  ;;  %v2855_v33 = vld [vmem:[#allocation2 + $0x116] sm:$0xff] }
 0x282   : > { %v4621_v36 = vadd.f32 %v4620_v56, %v4586_v37  ;;  %v2047_v51 = vpop.f32.mrf.mxu1  ;;  %v2648_v2 = vpop.f32.mrf.mxu3  ;;  %vm3646_vm12 = vc.u32 %v3644_v42, %v3640_v20  ;;  %vm6876_vm13 = vcmp.lt.s32.totalorder %v4366_v48, 16  ;;  %v3660_v17 = vand.u32 65535, %v6868_v50  ;;  %336 = vst [vmem:[#allocation2 + $0x138] sm:$0xff] %v4973_v53 }
 0x283   : > { %v2730_v21 = vadd.f32 %v2648_v2, %v2428_v27  ;;  %2997 = vmatmul.f32.gmra.mxu0 %v2854_v30  ;;  %v3624_v56 = vmul.u32 18, %v3623_v39  ;;  %v3647_v29 = vsel %vm3646_vm12, 1, %v7219_v14  ;;  %v3661_v28 = vshrl.u32 %v6868_v50, 16 }
 0x284   : > { %v2127_v1 = vadd.f32 %v2047_v51, %v6132_v7  ;;  %v3649_v59 = vadd.s32 %v3647_v29, %v3645_v45  ;;  %v296_v54 = vunpack.c.l.bf16 %v255_v32  ;;  %v6887_v63 = vmul.u32 58254, %v3660_v17 }
 0x285   : > { %v3032_v25 = vadd.f32 %v2950_v61, %v2730_v21  ;;  %2094 = vmatmul.f32.gmra.mxu1 %v6800_v15  ;;  %2396 = vmatmul.f32.gmra.mxu2 %v6870_v24  ;;  %v3625_v43 = vsub.s32 %v6727_v11, %v3624_v56  ;;  %v6889_v12 = vmul.u32 14564, %v3661_v28  ;;  %v6892_v23 = vadd.s32 144, %v6179_v34 }
 0x286   : > { %v3650_v15 = vadd.s32 %v3649_v59, %v3639_v0  ;;  %v3663_v55 = vmul.u32 14564, %v3660_v17  ;;  %337 = vst [vmem:[#allocation2 + $0x140] sm:$0xff] %v296_v54  ;;  %v3666_v5 = vmul.u32 58254, %v3661_v28  ;;  %v3668_v61 = vshrl.u32 %v6887_v63, 16 }
 0x287   : > { %v4437_v7 = vsel %vm6851_vm9, %v3032_v25, 0.0  ;;  %v5295_v38 = vpack.c.bf16 %v3032_v25, %v6846_v22  ;;  %2698 = vmatmul.f32.gmra.mxu3 %v2553_v58  ;;  %vm4223_vm14 = vcmp.ne.s32.totalorder %v3625_v43, 0  ;;  %vm4259_vm15 = vcmp.lt.s32.totalorder %v3625_v43, 0  ;;  %v2856_v25 = vld [vmem:[#allocation2 + $0x11e] sm:$0xff] }
 0x288   : > { %v4544_v13 = vadd.f32 %v4543_v47, %v4437_v7  ;;  %v4587_v4 = vmul.f32 %v4437_v7, %v4437_v7  ;;  %v2349_v11 = vpop.f32.mrf.mxu2  ;;  %v2953_v8 = vpop.f32.mrf.mxu0  ;;  %vm6898_vm0 = vmand %vm4259_vm15, %vm4223_vm14  ;;  %v4331_v10 = vadd.s32 18, %v3625_v43  ;;  %v3651_v18 = vadd.s32 %v3650_v15, %v3641_v44  ;;  %v6903_v47 = vld [vmem:[#allocation2 + $0x11c] sm:$0xff] }
 0x289   : > { %5447 = vst [vmem:[%s6399_s30 + $0x30] sm:$0xff] %v5295_v38   ;;  %v2429_v3 = vadd.f32 %v2349_v11, %v2127_v1  ;;  %v3667_v22 = vshll.u32 %v6887_v63, 16  ;;  %v3669_v30 = vshll.u32 %v6889_v12, 16  ;;  %v3670_v42 = vshrl.u32 %v6889_v12, 16  ;;  %v6931_v38 = vld [vmem:[#allocation2 + $0x124] sm:$0xff] }
 0x28a   : > { %v4622_v0 = vadd.f32 %v4621_v36, %v4587_v4  ;;  %v2050_v20 = vpop.f32.mrf.mxu1  ;;  %v2651_v37 = vpop.f32.mrf.mxu3  ;;  %v4367_v26 = vsel %vm6898_vm0, %v4331_v10, %v3625_v43  ;;  %v3652_v27 = vshrl.u32 %v3651_v18, 4  ;;  %v2554_v36 = vld [vmem:[#allocation2 + $0x11d] sm:$0xff]  ;;  %v3689_v39 = vand.u32 65535, %v6892_v23 }
 0x28b   : > { %v2731_v48 = vadd.f32 %v2651_v37, %v2429_v3  ;;  %3000 = vmatmul.f32.gmra.mxu0 %v2855_v33  ;;  %v2128_v51 = vadd.f32 %v2050_v20, %v6135_v49  ;;  %vm3671_vm1 = vc.u32 %v3663_v55, %v3667_v22  ;;  %v3673_v2 = vadd.s32 %v3667_v22, %v3663_v55  ;;  %v2555_v3 = vld [vmem:[#allocation2 + $0x125] sm:$0xff] }
 0x28c   : > { %v3653_v57 = vmul.u32 18, %v3652_v27  ;;  %v3672_v53 = vsel %vm3671_vm1, 1, %v7219_v14  ;;  %v3690_v32 = vshrl.u32 %v6892_v23, 16  ;;  %vm6918_vm2 = vcmp.lt.s32.totalorder %v4367_v26, 16 }
 0x28d   : > { %v6912_v19 = vadd.f32 %v2953_v8, %v2731_v48  ;;  %2097 = vmatmul.f32.gmra.mxu1 %v6834_v9  ;;  %2399 = vmatmul.f32.gmra.mxu2 %v6903_v47  ;;  %v3674_v49 = vadd.s32 %v3672_v53, %v3666_v5  ;;  %vm3675_vm3 = vc.u32 %v3673_v2, %v3669_v30  ;;  %v6922_v44 = vmul.u32 58254, %v3689_v39 }
 0x28e   : > { %v3654_v9 = vsub.s32 %v6818_v41, %v3653_v57  ;;  %v3676_v58 = vsel %vm3675_vm3, 1, %v7219_v14  ;;  %v6929_v56 = vmul.u32 14564, %v3690_v32  ;;  %v3692_v54 = vmul.u32 14564, %v3689_v39 }
 0x28f   : > { %v4438_v45 = vsel %vm6876_vm13, %v6912_v19, 0.0  ;;  %2701 = vmatmul.f32.gmra.mxu3 %v2554_v36  ;;  %v3678_v59 = vadd.s32 %v3676_v58, %v3674_v49  ;;  %v3695_v15 = vmul.u32 58254, %v3690_v32  ;;  %v3696_v55 = vshll.u32 %v6922_v44, 16  ;;  %v2857_v36 = vld [vmem:[#allocation2 + $0x126] sm:$0xff] }
 0x290   : > { %v4545_v29 = vadd.f32 %v4544_v13, %v4438_v45  ;;  %v4588_v17 = vmul.f32 %v4438_v45, %v4438_v45  ;;  %v2352_v28 = vpop.f32.mrf.mxu2  ;;  %v2956_v1 = vpop.f32.mrf.mxu0  ;;  %vm4224_vm4 = vcmp.ne.s32.totalorder %v3654_v9, 0  ;;  %vm4260_vm5 = vcmp.lt.s32.totalorder %v3654_v9, 0  ;;  %v6961_v45 = vld [vmem:[#allocation2 + $0x12c] sm:$0xff] }
 0x291   : > { %v2430_v43 = vadd.f32 %v2352_v28, %v2128_v51  ;;  %v4332_v63 = vadd.s32 18, %v3654_v9  ;;  %vm4296_vm6 = vmand %vm4260_vm5, %vm4224_vm4  ;;  %v3679_v41 = vadd.s32 %v3678_v59, %v3668_v61  ;;  %v3697_v11 = vshrl.u32 %v6922_v44, 16  ;;  %v2556_v59 = vld [vmem:[#allocation2 + $0x12d] sm:$0xff] }
 0x292   : > { %v4623_v16 = vadd.f32 %v4622_v0, %v4588_v17  ;;  %v2053_v12 = vpop.f32.mrf.mxu1  ;;  %v2654_v7 = vpop.f32.mrf.mxu3  ;;  %v3698_v8 = vshll.u32 %v6929_v56, 16  ;;  %vm3700_vm8 = vc.u32 %v3692_v54, %v3696_v55  ;;  %v3702_v0 = vadd.s32 %v3696_v55, %v3692_v54 }
 0x293   : > { %v2732_v13 = vadd.f32 %v2654_v7, %v2430_v43  ;;  %3003 = vmatmul.f32.gmra.mxu0 %v2856_v25  ;;  %v4368_v4 = vsel %vm4296_vm6, %v4332_v63, %v3654_v9  ;;  %v2129_v33 = vadd.f32 %v2053_v12, %v6138_v60  ;;  %v3680_v10 = vadd.s32 %v3679_v41, %v3670_v42 }
 0x294   : > { %vm6937_vm7 = vcmp.lt.s32.totalorder %v4368_v4, 16  ;;  %v3701_v22 = vsel %vm3700_vm8, 1, %v7219_v14  ;;  %v6945_v20 = vadd.s32 152, %v6179_v34  ;;  %v3699_v60 = vshrl.u32 %v6929_v56, 16 }
 0x295   : > { %v3034_v18 = vadd.f32 %v2956_v1, %v2732_v13  ;;  %2100 = vmatmul.f32.gmra.mxu1 %v6870_v24  ;;  %2402 = vmatmul.f32.gmra.mxu2 %v6931_v38  ;;  %v3681_v37 = vshrl.u32 %v3680_v10, 4  ;;  %v3703_v5 = vadd.s32 %v3701_v22, %v3695_v15  ;;  %v6949_v61 = vadd.s32 160, %v6179_v34 }
 0x296   : > { %vm3704_vm9 = vc.u32 %v3702_v0, %v3698_v8  ;;  %v3718_v48 = vand.u32 65535, %v6945_v20  ;;  %v3719_v32 = vshrl.u32 %v6945_v20, 16  ;;  %v6959_v21 = vadd.s32 168, %v6179_v34 }
 0x297   : > { %v4439_v30 = vsel %vm6918_vm2, %v3034_v18, 0.0  ;;  %v5300_v24 = vpack.c.bf16 %v3034_v18, %v6912_v19  ;;  %2704 = vmatmul.f32.gmra.mxu3 %v2555_v3  ;;  %v3682_v2 = vmul.u32 18, %v3681_v37  ;;  %v3705_v39 = vsel %vm3704_vm9, 1, %v7219_v14  ;;  %v2858_v3 = vld [vmem:[#allocation2 + $0x12e] sm:$0xff] }
 0x298   : > { %v4546_v26 = vadd.f32 %v4545_v29, %v4439_v30  ;;  %v4589_v27 = vmul.f32 %v4439_v30, %v4439_v30  ;;  %v2355_v42 = vpop.f32.mrf.mxu2  ;;  %v2959_v51 = vpop.f32.mrf.mxu0  ;;  %v3707_v53 = vadd.s32 %v3705_v39, %v3703_v5  ;;  %v3721_v58 = vmul.u32 14564, %v3718_v48  ;;  %v2557_v39 = vld [vmem:[#allocation2 + $0x135] sm:$0xff] }
 0x299   : > { %5448 = vst [vmem:[%s6399_s30 + $0x38] sm:$0xff] %v5300_v24   ;;  %v2431_v57 = vadd.f32 %v2355_v42, %v2129_v33  ;;  %v3683_v9 = vsub.s32 %v6868_v50, %v3682_v2  ;;  %v6964_v56 = vmul.u32 58254, %v3718_v48  ;;  %v6966_v28 = vmul.u32 14564, %v3719_v32  ;;  %v2255_v24 = vld [vmem:[#allocation2 + $0x134] sm:$0xff] }
 0x29a   : > { %v4624_v19 = vadd.f32 %v4623_v16, %v4589_v27  ;;  %v2056_v49 = vpop.f32.mrf.mxu1  ;;  %v2657_v44 = vpop.f32.mrf.mxu3  ;;  %v3708_v17 = vadd.s32 %v3707_v53, %v3697_v11  ;;  %v3747_v1 = vand.u32 65535, %v6949_v61  ;;  %v3724_v16 = vmul.u32 58254, %v3719_v32 }
 0x29b   : > { %v2733_v29 = vadd.f32 %v2657_v44, %v2431_v57  ;;  %3006 = vmatmul.f32.gmra.mxu0 %v2857_v36  ;;  %v2130_v25 = vadd.f32 %v2056_v49, %v6141_v35  ;;  %vm4225_vm10 = vcmp.ne.s32.totalorder %v3683_v9, 0  ;;  %vm4261_vm11 = vcmp.lt.s32.totalorder %v3683_v9, 0 }
 0x29c   : > { %v4333_v54 = vadd.s32 18, %v3683_v9  ;;  %vm6974_vm12 = vmand %vm4261_vm11, %vm4225_vm10  ;;  %v3709_v63 = vadd.s32 %v3708_v17, %v3699_v60  ;;  %v3725_v12 = vshll.u32 %v6964_v56, 16  ;;  %v3726_v7 = vshrl.u32 %v6964_v56, 16 }
 0x29d   : > { %v6970_v43 = vadd.f32 %v2959_v51, %v2733_v29  ;;  %2103 = vmatmul.f32.gmra.mxu1 %v6903_v47  ;;  %2405 = vmatmul.f32.gmra.mxu2 %v6961_v45  ;;  %v3727_v41 = vshll.u32 %v6966_v28, 16  ;;  %v3748_v15 = vshrl.u32 %v6949_v61, 16  ;;  %v3728_v13 = vshrl.u32 %v6966_v28, 16 }
 0x29e   : > { %v4369_v35 = vsel %vm6974_vm12, %v4333_v54, %v3683_v9  ;;  %v3710_v55 = vshrl.u32 %v3709_v63, 4  ;;  %vm3729_vm13 = vc.u32 %v3721_v58, %v3725_v12  ;;  %v3731_v18 = vadd.s32 %v3725_v12, %v3721_v58  ;;  %v2859_v54 = vld [vmem:[#allocation2 + $0x136] sm:$0xff] }
 0x29f   : > { %v4440_v47 = vsel %vm6937_vm7, %v6970_v43, 0.0  ;;  %2707 = vmatmul.f32.gmra.mxu3 %v2556_v59  ;;  %v3730_v10 = vsel %vm3729_vm13, 1, %v7219_v14  ;;  %v3750_v60 = vmul.u32 14564, %v3747_v1  ;;  %v6989_v48 = vmul.u32 58254, %v3747_v1 }
 0x2a0   : > { %v4547_v4 = vadd.f32 %v4546_v26, %v4440_v47  ;;  %v4590_v11 = vmul.f32 %v4440_v47, %v4440_v47  ;;  %v2358_v8 = vpop.f32.mrf.mxu2  ;;  %v2962_v33 = vpop.f32.mrf.mxu0  ;;  %v3711_v0 = vmul.u32 18, %v3710_v55  ;;  %v3732_v37 = vadd.s32 %v3730_v10, %v3724_v16 }
 0x2a1   : > { %v2432_v22 = vadd.f32 %v2358_v8, %v2130_v25  ;;  %vm3733_vm14 = vc.u32 %v3731_v18, %v3727_v41  ;;  %v6991_v27 = vmul.u32 14564, %v3748_v15  ;;  %vm6993_vm15 = vcmp.lt.s32.totalorder %v4369_v35, 16 }
 0x2a2   : > { %v4625_v5 = vadd.f32 %v4624_v19, %v4590_v11  ;;  %v2059_v40 = vpop.f32.mrf.mxu1  ;;  %v2660_v30 = vpop.f32.mrf.mxu3  ;;  %v3712_v51 = vsub.s32 %v6892_v23, %v3711_v0  ;;  %v3734_v36 = vsel %vm3733_vm14, 1, %v7219_v14  ;;  %v3753_v53 = vmul.u32 58254, %v3748_v15  ;;  %v2256_v15 = vld [vmem:[#allocation2 + $0x13c] sm:$0xff] }
 0x2a3   : > { %v2734_v26 = vadd.f32 %v2660_v30, %v2432_v22  ;;  %3009 = vmatmul.f32.gmra.mxu0 %v2858_v3  ;;  %v2131_v2 = vadd.f32 %v2059_v40, %v6144_v46  ;;  %v3736_v57 = vadd.s32 %v3734_v36, %v3732_v37  ;;  %v3754_v32 = vshll.u32 %v6989_v48, 16 }
 0x2a4   : > { %vm4226_vm0 = vcmp.ne.s32.totalorder %v3712_v51, 0  ;;  %vm4262_vm1 = vcmp.lt.s32.totalorder %v3712_v51, 0  ;;  %v4334_v49 = vadd.s32 18, %v3712_v51  ;;  %v3755_v46 = vshrl.u32 %v6989_v48, 16 }
 0x2a5   : > { %v3036_v19 = vadd.f32 %v2962_v33, %v2734_v26  ;;  %2106 = vmatmul.f32.gmra.mxu1 %v6931_v38  ;;  %2408 = vmatmul.f32.gmra.mxu2 %v2255_v24  ;;  %vm7002_vm2 = vmand %vm4262_vm1, %vm4226_vm0  ;;  %v3737_v23 = vadd.s32 %v3736_v57, %v3726_v7  ;;  %v3756_v9 = vshll.u32 %v6991_v27, 16  ;;  %vm3758_vm3 = vc.u32 %v3750_v60, %v3754_v32  ;;  %v2558_v33 = vld [vmem:[#allocation2 + $0x13d] sm:$0xff] }
 0x2a6   : > { %v3757_v56 = vshrl.u32 %v6991_v27, 16  ;;  %v3759_v29 = vsel %vm3758_vm3, 1, %v7219_v14  ;;  %v4370_v59 = vsel %vm7002_vm2, %v4334_v49, %v3712_v51  ;;  %v3760_v16 = vadd.s32 %v3754_v32, %v3750_v60 }
 0x2a7   : > { %v4441_v58 = vsel %vm6993_vm15, %v3036_v19, 0.0  ;;  %v5305_v38 = vpack.c.bf16 %v3036_v19, %v6970_v43  ;;  %2710 = vmatmul.f32.gmra.mxu3 %v2557_v39  ;;  %v3738_v50 = vadd.s32 %v3737_v23, %v3728_v13  ;;  %v3761_v12 = vadd.s32 %v3759_v29, %v3753_v53 }
 0x2a8   : > { %v4548_v17 = vadd.f32 %v4547_v4, %v4441_v58  ;;  %v4591_v28 = vmul.f32 %v4441_v58, %v4441_v58  ;;  %v2361_v1 = vpop.f32.mrf.mxu2  ;;  %v2965_v25 = vpop.f32.mrf.mxu0  ;;  %v3776_v43 = vand.u32 65535, %v6959_v21  ;;  %v3777_v55 = vshrl.u32 %v6959_v21, 16 }
 0x2a9   : > { %5449 = vst [vmem:[%s6399_s30 + $0x40] sm:$0xff] %v5305_v38   ;;  %v2433_v63 = vadd.f32 %v2361_v1, %v2131_v2  ;;  %v3739_v47 = vshrl.u32 %v3738_v50, 4  ;;  %v7019_v4 = vadd.s32 176, %v6179_v34  ;;  %vm7022_vm4 = vcmp.lt.s32.totalorder %v4370_v59, 16 }
 0x2aa   : > { %v4626_v35 = vadd.f32 %v4625_v5, %v4591_v28  ;;  %v2062_v7 = vpop.f32.mrf.mxu1  ;;  %v2663_v41 = vpop.f32.mrf.mxu3  ;;  %vm3762_vm5 = vc.u32 %v3760_v16, %v3756_v9  ;;  %v3780_v18 = vmul.u32 58254, %v3776_v43  ;;  %v7027_v22 = vmul.u32 14564, %v3777_v55 }
 0x2ab   : > { %v2132_v11 = vadd.f32 %v2062_v7, %v6147_v6  ;;  %v2735_v8 = vadd.f32 %v2663_v41, %v2433_v63  ;;  %3012 = vmatmul.f32.gmra.mxu0 %v2859_v54  ;;  %v3740_v3 = vmul.u32 18, %v3739_v47  ;;  %v3763_v10 = vsel %vm3762_vm5, 1, %v7219_v14 }
 0x2ac   : > { %v3765_v37 = vadd.s32 %v3763_v10, %v3761_v12  ;;  %v3779_v6 = vmul.u32 14564, %v3776_v43  ;;  %v3782_v60 = vmul.u32 58254, %v3777_v55  ;;  %v3783_v40 = vshll.u32 %v3780_v18, 16 }
 0x2ad   : > { %v3037_v0 = vadd.f32 %v2965_v25, %v2735_v8  ;;  %2109 = vmatmul.f32.gmra.mxu1 %v6961_v45  ;;  %2411 = vmatmul.f32.gmra.mxu2 %v2256_v15  ;;  %v3741_v5 = vsub.s32 %v6945_v20, %v3740_v3  ;;  %v3784_v30 = vshrl.u32 %v3780_v18, 16  ;;  %v3805_v24 = vand.u32 65535, %v7019_v4  ;;  %v2860_v20 = vld [vmem:[#allocation2 + $0x13e] sm:$0xff] }
 0x2ae   : > { %v3766_v27 = vadd.s32 %v3765_v37, %v3755_v46  ;;  %v3785_v26 = vshll.u32 %v7027_v22, 16  ;;  %v3806_v42 = vshrl.u32 %v7019_v4, 16  ;;  %vm3787_vm9 = vc.u32 %v3779_v6, %v3783_v40 }
 0x2af   : > { %v4442_v48 = vsel %vm7022_vm4, %v3037_v0, 0.0  ;;  %2713 = vmatmul.f32.gmra.mxu3 %v2558_v33  ;;  %vm4227_vm6 = vcmp.ne.s32.totalorder %v3741_v5, 0  ;;  %vm4263_vm7 = vcmp.lt.s32.totalorder %v3741_v5, 0  ;;  %v4335_v57 = vadd.s32 18, %v3741_v5 }
 0x2b0   : > { %v4549_v45 = vadd.f32 %v4548_v17, %v4442_v48  ;;  %v4592_v51 = vmul.f32 %v4442_v48, %v4442_v48  ;;  %v2364_v36 = vpop.f32.mrf.mxu2  ;;  %v2968_v2 = vpop.f32.mrf.mxu0  ;;  %vm4299_vm8 = vmand %vm4263_vm7, %vm4227_vm6  ;;  %v3767_v53 = vadd.s32 %v3766_v27, %v3757_v56  ;;  %v3786_v44 = vshrl.u32 %v7027_v22, 16 }
 0x2b1   : > { %v2434_v39 = vadd.f32 %v2364_v36, %v2132_v11  ;;  %v3788_v23 = vsel %vm3787_vm9, 1, %v7219_v14  ;;  %v3789_v46 = vadd.s32 %v3783_v40, %v3779_v6  ;;  %v4371_v58 = vsel %vm4299_vm8, %v4335_v57, %v3741_v5 }
 0x2b2   : > { %v4627_v32 = vadd.f32 %v4626_v35, %v4592_v51  ;;  %v2065_v19 = vpop.f32.mrf.mxu1  ;;  %v2666_v49 = vpop.f32.mrf.mxu3  ;;  %v3768_v38 = vshrl.u32 %v3767_v53, 4  ;;  %v3808_v29 = vmul.u32 14564, %v3805_v24  ;;  %vm4407_vm10 = vcmp.lt.s32.totalorder %v4371_v58, 16 }
 0x2b3   : > { %v2736_v9 = vadd.f32 %v2666_v49, %v2434_v39  ;;  %3015 = vmatmul.f32.gmra.mxu0 %v2860_v20  ;;  %v3790_v17 = vadd.s32 %v3788_v23, %v3782_v60  ;;  %vm3791_vm11 = vc.u32 %v3789_v46, %v3785_v26  ;;  %v3809_v28 = vmul.u32 58254, %v3805_v24 }
 0x2b4   : > { %v3769_v56 = vmul.u32 18, %v3768_v38  ;;  %v3792_v25 = vsel %vm3791_vm11, 1, %v7219_v14  ;;  %v7039_v59 = vmul.u32 14564, %v3806_v42  ;;  %v2133_v54 = vadd.f32 %v2065_v19, %v6150_v31 }
 0x2b5   : > { %v3038_v1 = vadd.f32 %v2968_v2, %v2736_v9  ;;  %v3794_v50 = vadd.s32 %v3792_v25, %v3790_v17  ;;  %v3811_v63 = vmul.u32 58254, %v3806_v42  ;;  %v3812_v16 = vshll.u32 %v3809_v28, 16 }
 0x2b6   : > { %v3770_v35 = vsub.s32 %v6949_v61, %v3769_v56  ;;  %v3813_v7 = vshrl.u32 %v3809_v28, 16  ;;  %v3814_v8 = vshll.u32 %v7039_v59, 16  ;;  %v3815_v37 = vshrl.u32 %v7039_v59, 16 }
 0x2b7   : > { %v4443_v12 = vsel %vm4407_vm10, %v3038_v1, 0.0  ;;  %v5310_v43 = vpack.c.bf16 %v3038_v1, %v3037_v0  ;;  %v3795_v11 = vadd.s32 %v3794_v50, %v3784_v30  ;;  %vm3816_vm15 = vc.u32 %v3808_v29, %v3812_v16 }
 0x2b8   : > { %v4550_v41 = vadd.f32 %v4549_v45, %v4443_v12  ;;  %v4593_v15 = vmul.f32 %v4443_v12, %v4443_v12  ;;  %v2367_v47 = vpop.f32.mrf.mxu2  ;;  %v2971_v55 = vpop.f32.mrf.mxu0  ;;  %vm4228_vm12 = vcmp.ne.s32.totalorder %v3770_v35, 0  ;;  %vm4264_vm13 = vcmp.lt.s32.totalorder %v3770_v35, 0 }
 0x2b9   : > { %5450 = vst [vmem:[%s6399_s30 + $0x48] sm:$0xff] %v5310_v43   ;;  %v2435_v13 = vadd.f32 %v2367_v47, %v2133_v54  ;;  %v4336_v31 = vadd.s32 18, %v3770_v35  ;;  %vm4300_vm14 = vmand %vm4264_vm13, %vm4228_vm12  ;;  %v3796_v18 = vadd.s32 %v3795_v11, %v3786_v44  ;;  %v3818_v61 = vadd.s32 %v3812_v16, %v3808_v29 }
 0x2ba   : > { %v4628_v33 = vadd.f32 %v4627_v32, %v4593_v15  ;;  %v2068_v3 = vpop.f32.mrf.mxu1  ;;  %v2669_v10 = vpop.f32.mrf.mxu3  ;;  %v3817_v6 = vsel %vm3816_vm15, 1, %v7219_v14  ;;  %v7050_v48 = vadd.s32 184, %v6179_v34  ;;  %v7053_v42 = vadd.s32 192, %v6179_v34 }
 0x2bb   : > { %v2737_v22 = vadd.f32 %v2669_v10, %v2435_v13  ;;  %v4372_v0 = vsel %vm4300_vm14, %v4336_v31, %v3770_v35  ;;  %v3797_v60 = vshrl.u32 %v3796_v18, 4  ;;  %v3819_v5 = vadd.s32 %v3817_v6, %v3811_v63 }
 0x2bc   : > { %vm4408_vm0 = vcmp.lt.s32.totalorder %v4372_v0, 16  ;;  %vm3820_vm1 = vc.u32 %v3818_v61, %v3814_v8  ;;  %v2134_v40 = vadd.f32 %v2068_v3, %v6153_v62  ;;  %v7056_v45 = vadd.s32 200, %v6179_v34 }
 0x2bd   : > { %v3039_v30 = vadd.f32 %v2971_v55, %v2737_v22  ;;  %v3821_v24 = vsel %vm3820_vm1, 1, %v7219_v14  ;;  %v3798_v27 = vmul.u32 18, %v3797_v60  ;;  %v3834_v36 = vand.u32 65535, %v7050_v48 }
 0x2be   : > { %v3823_v26 = vadd.s32 %v3821_v24, %v3819_v5  ;;  %v3835_v2 = vshrl.u32 %v7050_v48, 16  ;;  %v7061_v62 = vadd.s32 208, %v6179_v34  ;;  %v3863_v56 = vand.u32 65535, %v7053_v42 }
 0x2bf   : > { %v4444_v51 = vsel %vm4408_vm0, %v3039_v30, 0.0  ;;  %v3799_v32 = vsub.s32 %v6959_v21, %v3798_v27  ;;  %v3837_v44 = vmul.u32 14564, %v3834_v36  ;;  %v3838_v23 = vmul.u32 58254, %v3834_v36 }
 0x2c0   : > { %v4551_v20 = vadd.f32 %v4550_v41, %v4444_v51  ;;  %v4594_v39 = vmul.f32 %v4444_v51, %v4444_v51  ;;  %v2370_v57 = vpop.f32.mrf.mxu2  ;;  %v2974_v53 = vpop.f32.mrf.mxu0  ;;  %v3824_v19 = vadd.s32 %v3823_v26, %v3813_v7  ;;  %v3839_v46 = vmul.u32 14564, %v3835_v2 }
 0x2c1   : > { %v2436_v49 = vadd.f32 %v2370_v57, %v2134_v40  ;;  %vm4229_vm2 = vcmp.ne.s32.totalorder %v3799_v32, 0  ;;  %vm4265_vm3 = vcmp.lt.s32.totalorder %v3799_v32, 0  ;;  %v4337_v29 = vadd.s32 18, %v3799_v32  ;;  %v7296_v40 = vld [vmem:[#allocation4_spill] sm:$0xff] }
 0x2c2   : > { %v4629_v9 = vadd.f32 %v4628_v33, %v4594_v39  ;;  %v2071_v58 = vpop.f32.mrf.mxu1  ;;  %v2672_v38 = vpop.f32.mrf.mxu3  ;;  %vm4301_vm4 = vmand %vm4265_vm3, %vm4229_vm2  ;;  %v3825_v1 = vadd.s32 %v3824_v19, %v3815_v37  ;;  %v3840_v21 = vmul.u32 58254, %v3835_v2  ;;  %v3841_v59 = vshll.u32 %v3838_v23, 16 }
 0x2c3   : > { %v2135_v17 = vadd.f32 %v2071_v58, %v6156_v52  ;;  %v2738_v28 = vadd.f32 %v2672_v38, %v2436_v49  ;;  %v4373_v25 = vsel %vm4301_vm4, %v4337_v29, %v3799_v32  ;;  %v3843_v54 = vshll.u32 %v3839_v46, 16 }
 0x2c4   : > { %vm4409_vm5 = vcmp.lt.s32.totalorder %v4373_v25, 16  ;;  %v3826_v63 = vshrl.u32 %v3825_v1, 4  ;;  %v3842_v16 = vshrl.u32 %v3838_v23, 16  ;;  %v3844_v12 = vshrl.u32 %v3839_v46, 16 }
 0x2c5   : > { %v3040_v50 = vadd.f32 %v2974_v53, %v2738_v28  ;;  %vm3845_vm6 = vc.u32 %v3837_v44, %v3841_v59  ;;  %v3847_v43 = vadd.s32 %v3841_v59, %v3837_v44  ;;  %v3864_v35 = vshrl.u32 %v7053_v42, 16 }
 0x2c6   : > { %v3827_v41 = vmul.u32 18, %v3826_v63  ;;  %v3846_v15 = vsel %vm3845_vm6, 1, %v7219_v14  ;;  %v3867_v10 = vmul.u32 58254, %v3863_v56  ;;  %v3866_v37 = vmul.u32 14564, %v3863_v56 }
 0x2c7   : > { %v4445_v52 = vsel %vm4409_vm5, %v3040_v50, 0.0  ;;  %v5315_v7 = vpack.c.bf16 %v3040_v50, %v3039_v30  ;;  %v3848_v13 = vadd.s32 %v3846_v15, %v3840_v21  ;;  %vm3849_vm7 = vc.u32 %v3847_v43, %v3843_v54  ;;  %v7297_v50 = vld [vmem:[#allocation5_spill] sm:$0xff] }
 0x2c8   : > { %v4552_v47 = vadd.f32 %v4551_v20, %v4445_v52  ;;  %v4595_v55 = vmul.f32 %v4445_v52, %v4445_v52  ;;  %v2373_v11 = vpop.f32.mrf.mxu2  ;;  %v2977_v8 = vpop.f32.mrf.mxu0  ;;  %v3828_v33 = vsub.s32 %v7019_v4, %v3827_v41  ;;  %v3850_v3 = vsel %vm3849_vm7, 1, %v7219_v14 }
 0x2c9   : > { %5451 = vst [vmem:[%s6399_s30 + $0x50] sm:$0xff] %v5315_v7   ;;  %v2437_v31 = vadd.f32 %v2373_v11, %v2135_v17  ;;  %v3852_v0 = vadd.s32 %v3850_v3, %v3848_v13  ;;  %v3868_v6 = vmul.u32 14564, %v3864_v35  ;;  %v3869_v5 = vmul.u32 58254, %v3864_v35 }
 0x2ca   : > { %v4630_v18 = vadd.f32 %v4629_v9, %v4595_v55  ;;  %v2074_v61 = vpop.f32.mrf.mxu1  ;;  %v2675_v22 = vpop.f32.mrf.mxu3  ;;  %vm4230_vm8 = vcmp.ne.s32.totalorder %v3828_v33, 0  ;;  %vm4266_vm9 = vcmp.lt.s32.totalorder %v3828_v33, 0  ;;  %v4338_v24 = vadd.s32 18, %v3828_v33 }
 0x2cb   : > { %v2739_v60 = vadd.f32 %v2675_v22, %v2437_v31  ;;  %v2136_v30 = vadd.f32 %v2074_v61, %v7296_v40  ;;  %vm4302_vm10 = vmand %vm4266_vm9, %vm4230_vm8  ;;  %v3853_v27 = vadd.s32 %v3852_v0, %v3842_v16  ;;  %v3870_v26 = vshll.u32 %v3867_v10, 16 }
 0x2cc   : > { %v3871_v51 = vshrl.u32 %v3867_v10, 16  ;;  %v3872_v36 = vshll.u32 %v3868_v6, 16  ;;  %v3892_v2 = vand.u32 65535, %v7056_v45  ;;  %v4374_v20 = vsel %vm4302_vm10, %v4338_v24, %v3828_v33 }
 0x2cd   : > { %v3041_v4 = vadd.f32 %v2977_v8, %v2739_v60  ;;  %v3854_v39 = vadd.s32 %v3853_v27, %v3844_v12  ;;  %vm3874_vm11 = vc.u32 %v3866_v37, %v3870_v26  ;;  %v3876_v57 = vadd.s32 %v3870_v26, %v3866_v37 }
 0x2ce   : > { %vm4410_vm12 = vcmp.lt.s32.totalorder %v4374_v20, 16  ;;  %v3873_v53 = vshrl.u32 %v3868_v6, 16  ;;  %v3875_v32 = vsel %vm3874_vm11, 1, %v7219_v14  ;;  %v3893_v19 = vshrl.u32 %v7056_v45, 16 }
 0x2cf   : > { %v4446_v49 = vsel %vm4410_vm12, %v3041_v4, 0.0  ;;  %v3855_v46 = vshrl.u32 %v3854_v39, 4  ;;  %v3877_v9 = vadd.s32 %v3875_v32, %v3869_v5  ;;  %vm3878_vm13 = vc.u32 %v3876_v57, %v3872_v36  ;;  %v7298_v36 = vld [vmem:[#allocation6_spill] sm:$0xff] }
 0x2d0   : > { %v2376_v44 = vpop.f32.mrf.mxu2  ;;  %v2980_v23 = vpop.f32.mrf.mxu0  ;;  %v4553_v58 = vadd.f32 %v4552_v47, %v4446_v49  ;;  %v4596_v38 = vmul.f32 %v4446_v49, %v4446_v49  ;;  %v3879_v17 = vsel %vm3878_vm13, 1, %v7219_v14  ;;  %v3896_v21 = vmul.u32 58254, %v3892_v2 }
 0x2d1   : > { %v2438_v29 = vadd.f32 %v2376_v44, %v2136_v30  ;;  %v3856_v56 = vmul.u32 18, %v3855_v46  ;;  %v3881_v25 = vadd.s32 %v3879_v17, %v3877_v9  ;;  %v7076_v59 = vmul.u32 14564, %v3893_v19 }
 0x2d2   : > { %v2077_v28 = vpop.f32.mrf.mxu1  ;;  %v2678_v1 = vpop.f32.mrf.mxu3  ;;  %v4631_v54 = vadd.f32 %v4630_v18, %v4596_v38  ;;  %v3895_v12 = vmul.u32 14564, %v3892_v2  ;;  %v3898_v52 = vmul.u32 58254, %v3893_v19  ;;  %v3899_v7 = vshll.u32 %v3896_v21, 16 }
 0x2d3   : > { %v2137_v63 = vadd.f32 %v2077_v28, %v7297_v50  ;;  %v2740_v16 = vadd.f32 %v2678_v1, %v2438_v29  ;;  %v3857_v43 = vsub.s32 %v7050_v48, %v3856_v56  ;;  %v3882_v35 = vadd.s32 %v3881_v25, %v3871_v51 }
 0x2d4   : > { %v3900_v15 = vshrl.u32 %v3896_v21, 16  ;;  %v3901_v47 = vshll.u32 %v7076_v59, 16  ;;  %v3921_v55 = vand.u32 65535, %v7061_v62  ;;  %v3902_v31 = vshrl.u32 %v7076_v59, 16 }
 0x2d5   : > { %v3042_v41 = vadd.f32 %v2980_v23, %v2740_v16  ;;  %vm4231_vm14 = vcmp.ne.s32.totalorder %v3857_v43, 0  ;;  %vm4267_vm15 = vcmp.lt.s32.totalorder %v3857_v43, 0  ;;  %v4339_v11 = vadd.s32 18, %v3857_v43 }
 0x2d6   : > { %v3883_v8 = vadd.s32 %v3882_v35, %v3873_v53  ;;  %vm4303_vm0 = vmand %vm4267_vm15, %vm4231_vm14  ;;  %vm3903_vm1 = vc.u32 %v3895_v12, %v3899_v7  ;;  %v3905_v48 = vadd.s32 %v3899_v7, %v3895_v12  ;;  %v3922_v22 = vshrl.u32 %v7061_v62, 16 }
 0x2d7   : > { %v5320_v13 = vpack.c.bf16 %v3042_v41, %v3041_v4  ;;  %v4375_v33 = vsel %vm4303_vm0, %v4339_v11, %v3857_v43  ;;  %v3904_v61 = vsel %vm3903_vm1, 1, %v7219_v14  ;;  %v3925_v24 = vmul.u32 58254, %v3921_v55 }
 0x2d8   : > { %v2379_v3 = vpop.f32.mrf.mxu2  ;;  %v2983_v10 = vpop.f32.mrf.mxu0  ;;  %v3884_v18 = vshrl.u32 %v3883_v8, 4  ;;  %vm4411_vm2 = vcmp.lt.s32.totalorder %v4375_v33, 16  ;;  %v3906_v37 = vadd.s32 %v3904_v61, %v3898_v52  ;;  %vm3907_vm3 = vc.u32 %v3905_v48, %v3901_v47 }
 0x2d9   : > { %5452 = vst [vmem:[%s6399_s30 + $0x58] sm:$0xff] %v5320_v13   ;;  %v2439_v0 = vadd.f32 %v2379_v3, %v2137_v63  ;;  %v4447_v6 = vsel %vm4411_vm2, %v3042_v41, 0.0  ;;  %v3908_v30 = vsel %vm3907_vm3, 1, %v7219_v14  ;;  %v3924_v51 = vmul.u32 14564, %v3921_v55 }
 0x2da   : > { %v2080_v60 = vpop.f32.mrf.mxu1  ;;  %v2681_v5 = vpop.f32.mrf.mxu3  ;;  %v3885_v40 = vmul.u32 18, %v3884_v18  ;;  %v4554_v27 = vadd.f32 %v4553_v58, %v4447_v6  ;;  %v4597_v26 = vmul.f32 %v4447_v6, %v4447_v6  ;;  %v3910_v39 = vadd.s32 %v3908_v30, %v3906_v37 }
 0x2db   : > { %v2741_v4 = vadd.f32 %v2681_v5, %v2439_v0  ;;  %v2138_v2 = vadd.f32 %v2080_v60, %v7298_v36  ;;  %v3926_v57 = vmul.u32 14564, %v3922_v22  ;;  %v3927_v19 = vmul.u32 58254, %v3922_v22 }
 0x2dc   : > { %v3886_v20 = vsub.s32 %v7053_v42, %v3885_v40  ;;  %v4632_v53 = vadd.f32 %v4631_v54, %v4597_v26  ;;  %v3928_v49 = vshll.u32 %v3925_v24, 16  ;;  %v3911_v23 = vadd.s32 %v3910_v39, %v3900_v15 }
 0x2dd   : > { %v3043_v32 = vadd.f32 %v2983_v10, %v2741_v4  ;;  %v3929_v46 = vshrl.u32 %v3925_v24, 16  ;;  %v3930_v9 = vshll.u32 %v3926_v57, 16  ;;  %v7091_v1 = vadd.s32 216, %v6179_v34 }
 0x2de   : > { %vm4232_vm4 = vcmp.ne.s32.totalorder %v3886_v20, 0  ;;  %vm4268_vm5 = vcmp.lt.s32.totalorder %v3886_v20, 0  ;;  %v4340_v44 = vadd.s32 18, %v3886_v20  ;;  %vm3932_vm7 = vc.u32 %v3924_v51, %v3928_v49 }
 0x2df   : > { %vm4304_vm6 = vmand %vm4268_vm5, %vm4232_vm4  ;;  %v3934_v58 = vadd.s32 %v3928_v49, %v3924_v51  ;;  %v3912_v28 = vadd.s32 %v3911_v23, %v3902_v31  ;;  %v3933_v42 = vsel %vm3932_vm7, 1, %v7219_v14  ;;  %v3950_v16 = vand.u32 65535, %v7091_v1  ;;  %v7299_v31 = vld [vmem:[#allocation7_spill] sm:$0xff] }
 0x2e0   : > { %v4376_v38 = vsel %vm4304_vm6, %v4340_v44, %v3886_v20  ;;  %v2382_v29 = vpop.f32.mrf.mxu2  ;;  %v2986_v17 = vpop.f32.mrf.mxu0  ;;  %v3935_v25 = vadd.s32 %v3933_v42, %v3927_v19  ;;  %v3931_v52 = vshrl.u32 %v3926_v57, 16  ;;  %v3951_v15 = vshrl.u32 %v7091_v1, 16  ;;  %v7300_v44 = vld [vmem:[#allocation8_spill] sm:$0xff] }
 0x2e1   : > { %vm4412_vm8 = vcmp.lt.s32.totalorder %v4376_v38, 16  ;;  %v2440_v56 = vadd.f32 %v2382_v29, %v2138_v2  ;;  %vm3936_vm9 = vc.u32 %v3934_v58, %v3930_v9  ;;  %v3913_v50 = vshrl.u32 %v3912_v28, 4 }
 0x2e2   : > { %v4448_v21 = vsel %vm4412_vm8, %v3043_v32, 0.0  ;;  %v2083_v59 = vpop.f32.mrf.mxu1  ;;  %v2684_v54 = vpop.f32.mrf.mxu3  ;;  %v3937_v63 = vsel %vm3936_vm9, 1, %v7219_v14  ;;  %v3953_v47 = vmul.u32 14564, %v3950_v16  ;;  %v3954_v8 = vmul.u32 58254, %v3950_v16 }
 0x2e3   : > { %v4555_v12 = vadd.f32 %v4554_v27, %v4448_v21  ;;  %v4598_v43 = vmul.f32 %v4448_v21, %v4448_v21  ;;  %v2742_v35 = vadd.f32 %v2684_v54, %v2440_v56  ;;  %v3914_v7 = vmul.u32 18, %v3913_v50 }
 0x2e4   : > { %v3939_v41 = vadd.s32 %v3937_v63, %v3935_v25  ;;  %v7097_v13 = vadd.s32 224, %v6179_v34  ;;  %v2139_v48 = vadd.f32 %v2083_v59, %v7299_v31  ;;  %v3955_v10 = vmul.u32 14564, %v3951_v15 }
 0x2e5   : > { %v4633_v55 = vadd.f32 %v4632_v53, %v4598_v43  ;;  %v3044_v11 = vadd.f32 %v2986_v17, %v2742_v35  ;;  %v3915_v33 = vsub.s32 %v7056_v45, %v3914_v7  ;;  %v3956_v61 = vmul.u32 58254, %v3951_v15 }
 0x2e6   : > { %v3940_v3 = vadd.s32 %v3939_v41, %v3929_v46  ;;  %v3957_v22 = vshll.u32 %v3954_v8, 16  ;;  %v3958_v0 = vshrl.u32 %v3954_v8, 16  ;;  %v3959_v30 = vshll.u32 %v3955_v10, 16 }
 0x2e7   : > { %v5325_v18 = vpack.c.bf16 %v3044_v11, %v3043_v32  ;;  %vm4233_vm10 = vcmp.ne.s32.totalorder %v3915_v33, 0  ;;  %vm4269_vm11 = vcmp.lt.s32.totalorder %v3915_v33, 0  ;;  %v4341_v37 = vadd.s32 18, %v3915_v33 }
 0x2e8   : > { %v2385_v6 = vpop.f32.mrf.mxu2  ;;  %v2989_v60 = vpop.f32.mrf.mxu0  ;;  %v3941_v5 = vadd.s32 %v3940_v3, %v3931_v52  ;;  %vm4305_vm12 = vmand %vm4269_vm11, %vm4233_vm10  ;;  %vm3961_vm13 = vc.u32 %v3953_v47, %v3957_v22  ;;  %v3979_v24 = vand.u32 65535, %v7097_v13  ;;  %v3963_v36 = vadd.s32 %v3957_v22, %v3953_v47 }
 0x2e9   : > { %5453 = vst [vmem:[%s6399_s30 + $0x60] sm:$0xff] %v5325_v18   ;;  %v2441_v40 = vadd.f32 %v2385_v6, %v2139_v48  ;;  %v4377_v45 = vsel %vm4305_vm12, %v4341_v37, %v3915_v33  ;;  %v3962_v51 = vsel %vm3961_vm13, 1, %v7219_v14  ;;  %v3960_v20 = vshrl.u32 %v3955_v10, 16  ;;  %v7301_v18 = vld [vmem:[#allocation9_spill] sm:$0xff] }
 0x2ea   : > { %v2086_v27 = vpop.f32.mrf.mxu1  ;;  %v2687_v26 = vpop.f32.mrf.mxu3  ;;  %v3942_v4 = vshrl.u32 %v3941_v5, 4  ;;  %vm4413_vm14 = vcmp.lt.s32.totalorder %v4377_v45, 16  ;;  %v3964_v39 = vadd.s32 %v3962_v51, %v3956_v61  ;;  %vm3965_vm15 = vc.u32 %v3963_v36, %v3959_v30 }
 0x2eb   : > { %v2743_v2 = vadd.f32 %v2687_v26, %v2441_v40  ;;  %v4449_v57 = vsel %vm4413_vm14, %v3044_v11, 0.0  ;;  %v3980_v32 = vshrl.u32 %v7097_v13, 16  ;;  %v2140_v23 = vadd.f32 %v2086_v27, %v7300_v44 }
 0x2ec   : > { %v3943_v53 = vmul.u32 18, %v3942_v4  ;;  %v4556_v19 = vadd.f32 %v4555_v12, %v4449_v57  ;;  %v4599_v49 = vmul.f32 %v4449_v57, %v4449_v57  ;;  %v3966_v46 = vsel %vm3965_vm15, 1, %v7219_v14 }
 0x2ed   : > { %v3045_v9 = vadd.f32 %v2989_v60, %v2743_v2  ;;  %v3968_v38 = vadd.s32 %v3966_v46, %v3964_v39  ;;  %v3983_v29 = vmul.u32 58254, %v3979_v24  ;;  %v3982_v28 = vmul.u32 14564, %v3979_v24 }
 0x2ee   : > { %v3944_v58 = vsub.s32 %v7061_v62, %v3943_v53  ;;  %v4634_v17 = vadd.f32 %v4633_v55, %v4599_v49  ;;  %v7108_v42 = vmul.u32 14564, %v3980_v32  ;;  %v7111_v56 = vadd.s32 232, %v6179_v34 }
 0x2ef   : > { %v3969_v54 = vadd.s32 %v3968_v38, %v3958_v0  ;;  %v3985_v63 = vmul.u32 58254, %v3980_v32  ;;  %v3986_v16 = vshll.u32 %v3983_v29, 16  ;;  %v3987_v62 = vshrl.u32 %v3983_v29, 16 }
 0x2f0   : > { %vm4234_vm0 = vcmp.ne.s32.totalorder %v3944_v58, 0  ;;  %vm4270_vm1 = vcmp.lt.s32.totalorder %v3944_v58, 0  ;;  %v4342_v25 = vadd.s32 18, %v3944_v58  ;;  %v2388_v21 = vpop.f32.mrf.mxu2  ;;  %v2992_v59 = vpop.f32.mrf.mxu0  ;;  %v3988_v7 = vshll.u32 %v7108_v42, 16 }
 0x2f1   : > { %vm4306_vm2 = vmand %vm4270_vm1, %vm4234_vm0  ;;  %v2442_v50 = vadd.f32 %v2388_v21, %v2140_v23  ;;  %v3970_v52 = vadd.s32 %v3969_v54, %v3960_v20  ;;  %v3989_v41 = vshrl.u32 %v7108_v42, 16  ;;  %vm3990_vm4 = vc.u32 %v3982_v28, %v3986_v16 }
 0x2f2   : > { %v4378_v12 = vsel %vm4306_vm2, %v4342_v25, %v3944_v58  ;;  %v2089_v43 = vpop.f32.mrf.mxu1  ;;  %v2690_v35 = vpop.f32.mrf.mxu3  ;;  %v4008_v47 = vand.u32 65535, %v7111_v56  ;;  %v3991_v8 = vsel %vm3990_vm4, 1, %v7219_v14  ;;  %v3992_v31 = vadd.s32 %v3986_v16, %v3982_v28 }
 0x2f3   : > { %vm4414_vm3 = vcmp.lt.s32.totalorder %v4378_v12, 16  ;;  %v2744_v15 = vadd.f32 %v2690_v35, %v2442_v50  ;;  %v3971_v11 = vshrl.u32 %v3970_v52, 4  ;;  %v3993_v10 = vadd.s32 %v3991_v8, %v3985_v63 }
 0x2f4   : > { %v4450_v55 = vsel %vm4414_vm3, %v3045_v9, 0.0  ;;  %v2141_v61 = vadd.f32 %v2089_v43, %v7301_v18  ;;  %vm3994_vm5 = vc.u32 %v3992_v31, %v3988_v7  ;;  %v4009_v0 = vshrl.u32 %v7111_v56, 16 }
 0x2f5   : > { %v4557_v48 = vadd.f32 %v4556_v19, %v4450_v55  ;;  %v4600_v33 = vmul.f32 %v4450_v55, %v4450_v55  ;;  %v3046_v3 = vadd.f32 %v2992_v59, %v2744_v15  ;;  %v3972_v22 = vmul.u32 18, %v3971_v11 }
 0x2f6   : > { %v3995_v60 = vsel %vm3994_vm5, 1, %v7219_v14  ;;  %v4012_v5 = vmul.u32 58254, %v4008_v47  ;;  %v4011_v27 = vmul.u32 14564, %v4008_v47  ;;  %v4013_v26 = vmul.u32 14564, %v4009_v0 }
 0x2f7   : > { %v4635_v37 = vadd.f32 %v4634_v17, %v4600_v33  ;;  %v5330_v6 = vpack.c.bf16 %v3046_v3, %v3045_v9  ;;  %v3973_v40 = vsub.s32 %v7091_v1, %v3972_v22  ;;  %v3997_v45 = vadd.s32 %v3995_v60, %v3993_v10  ;;  %v7302_v1 = vld [vmem:[#allocation10_spill] sm:$0xff] }
 0x2f8   : > { %v2391_v30 = vpop.f32.mrf.mxu2  ;;  %v2995_v24 = vpop.f32.mrf.mxu0  ;;  %v4014_v51 = vmul.u32 58254, %v4009_v0  ;;  %v4015_v36 = vshll.u32 %v4012_v5, 16  ;;  %v7123_v2 = vadd.s32 240, %v6179_v34  ;;  %v4016_v49 = vshrl.u32 %v4012_v5, 16 }
 0x2f9   : > { %5454 = vst [vmem:[%s6399_s30 + $0x68] sm:$0xff] %v5330_v6   ;;  %v2443_v4 = vadd.f32 %v2391_v30, %v2141_v61  ;;  %vm4235_vm6 = vcmp.ne.s32.totalorder %v3973_v40, 0  ;;  %vm4271_vm7 = vcmp.lt.s32.totalorder %v3973_v40, 0  ;;  %v4343_v20 = vadd.s32 18, %v3973_v40 }
 0x2fa   : > { %v2092_v39 = vpop.f32.mrf.mxu1  ;;  %v2693_v57 = vpop.f32.mrf.mxu3  ;;  %v3998_v53 = vadd.s32 %v3997_v45, %v3987_v62  ;;  %vm4307_vm8 = vmand %vm4271_vm7, %vm4235_vm6  ;;  %v4017_v44 = vshll.u32 %v4013_v26, 16  ;;  %vm4019_vm9 = vc.u32 %v4011_v27, %v4015_v36  ;;  %v4021_v9 = vadd.s32 %v4015_v36, %v4011_v27 }
 0x2fb   : > { %v2142_v32 = vadd.f32 %v2092_v39, %v7302_v1  ;;  %v2745_v19 = vadd.f32 %v2693_v57, %v2443_v4  ;;  %v4379_v23 = vsel %vm4307_vm8, %v4343_v20, %v3973_v40  ;;  %v4018_v58 = vshrl.u32 %v4013_v26, 16 }
 0x2fc   : > { %v3999_v46 = vadd.s32 %v3998_v53, %v3989_v41  ;;  %vm4415_vm10 = vcmp.lt.s32.totalorder %v4379_v23, 16  ;;  %v4020_v38 = vsel %vm4019_vm9, 1, %v7219_v14  ;;  %v4037_v29 = vand.u32 65535, %v7123_v2 }
 0x2fd   : > { %v4451_v17 = vsel %vm4415_vm10, %v3046_v3, 0.0  ;;  %v4022_v42 = vadd.s32 %v4020_v38, %v4014_v51  ;;  %vm4023_vm11 = vc.u32 %v4021_v9, %v4017_v44  ;;  %v4038_v54 = vshrl.u32 %v7123_v2, 16 }
 0x2fe   : > { %v4000_v28 = vshrl.u32 %v3999_v46, 4  ;;  %v4558_v25 = vadd.f32 %v4557_v48, %v4451_v17  ;;  %v4601_v21 = vmul.f32 %v4451_v17, %v4451_v17  ;;  %v4024_v59 = vsel %vm4023_vm11, 1, %v7219_v14  ;;  %v7303_v48 = vld [vmem:[#allocation11_spill] sm:$0xff] }
 0x2ff   : > { %v3047_v50 = vadd.f32 %v2995_v24, %v2745_v19  ;;  %v4026_v12 = vadd.s32 %v4024_v59, %v4022_v42  ;;  %v4041_v43 = vmul.u32 58254, %v4037_v29  ;;  %v4040_v7 = vmul.u32 14564, %v4037_v29 }
 0x300   : > { %v4001_v63 = vmul.u32 18, %v4000_v28  ;;  %v2394_v16 = vpop.f32.mrf.mxu2  ;;  %v2998_v62 = vpop.f32.mrf.mxu0  ;;  %v4636_v35 = vadd.f32 %v4635_v37, %v4601_v21  ;;  %v4042_v41 = vmul.u32 14564, %v4038_v54  ;;  %v4043_v8 = vmul.u32 58254, %v4038_v54  ;;  %v7304_v28 = vld [vmem:[#allocation12_spill] sm:$0xff] }
 0x301   : > { %v2444_v52 = vadd.f32 %v2394_v16, %v2142_v32  ;;  %v4027_v11 = vadd.s32 %v4026_v12, %v4016_v49  ;;  %v4044_v31 = vshll.u32 %v4041_v43, 16  ;;  %v4045_v10 = vshrl.u32 %v4041_v43, 16 }
 0x302   : > { %v4002_v15 = vsub.s32 %v7097_v13, %v4001_v63  ;;  %v2095_v47 = vpop.f32.mrf.mxu1  ;;  %v2696_v55 = vpop.f32.mrf.mxu3  ;;  %v4046_v18 = vshll.u32 %v4042_v41, 16  ;;  %v7133_v13 = vadd.s32 248, %v6179_v34  ;;  %v4047_v5 = vshrl.u32 %v4042_v41, 16 }
 0x303   : > { %v2143_v33 = vadd.f32 %v2095_v47, %v7303_v48  ;;  %v2746_v3 = vadd.f32 %v2696_v55, %v2444_v52  ;;  %v4028_v22 = vadd.s32 %v4027_v11, %v4018_v58  ;;  %vm4048_vm15 = vc.u32 %v4040_v7, %v4044_v31 }
 0x304   : > { %vm4236_vm12 = vcmp.ne.s32.totalorder %v4002_v15, 0  ;;  %vm4272_vm13 = vcmp.lt.s32.totalorder %v4002_v15, 0  ;;  %v4344_v61 = vadd.s32 18, %v4002_v15  ;;  %v4050_v37 = vadd.s32 %v4044_v31, %v4040_v7 }
 0x305   : > { %vm4308_vm14 = vmand %vm4272_vm13, %vm4236_vm12  ;;  %v3048_v0 = vadd.f32 %v2998_v62, %v2746_v3  ;;  %v4029_v60 = vshrl.u32 %v4028_v22, 4  ;;  %v4049_v40 = vsel %vm4048_vm15, 1, %v7219_v14  ;;  %v4066_v36 = vand.u32 65535, %v7133_v13 }
 0x306   : > { %v4380_v6 = vsel %vm4308_vm14, %v4344_v61, %v4002_v15  ;;  %v4051_v24 = vadd.s32 %v4049_v40, %v4043_v8  ;;  %vm4052_vm1 = vc.u32 %v4050_v37, %v4046_v18  ;;  %v4067_v49 = vshrl.u32 %v7133_v13, 16 }
 0x307   : > { %vm4416_vm0 = vcmp.lt.s32.totalorder %v4380_v6, 16  ;;  %v5335_v30 = vpack.c.bf16 %v3048_v0, %v3047_v50  ;;  %v4030_v27 = vmul.u32 18, %v4029_v60  ;;  %v4053_v51 = vsel %vm4052_vm1, 1, %v7219_v14 }
 0x308   : > { %v4452_v45 = vsel %vm4416_vm0, %v3047_v50, 0.0  ;;  %v2397_v26 = vpop.f32.mrf.mxu2  ;;  %v3001_v4 = vpop.f32.mrf.mxu0  ;;  %v4055_v53 = vadd.s32 %v4053_v51, %v4051_v24  ;;  %v4070_v44 = vmul.u32 58254, %v4066_v36  ;;  %v7142_v23 = vadd.s32 256, %v6179_v34 }
 0x309   : > { %v4559_v20 = vadd.f32 %v4558_v25, %v4452_v45  ;;  %v4602_v39 = vmul.f32 %v4452_v45, %v4452_v45  ;;  %5455 = vst [vmem:[%s6399_s30 + $0x70] sm:$0xff] %v5335_v30   ;;  %v2445_v57 = vadd.f32 %v2397_v26, %v2143_v33  ;;  %v4031_v1 = vsub.s32 %v7111_v56, %v4030_v27  ;;  %v7305_v30 = vld [vmem:[#allocation13_spill] sm:$0xff] }
 0x30a   : > { %v2098_v32 = vpop.f32.mrf.mxu1  ;;  %v2699_v19 = vpop.f32.mrf.mxu3  ;;  %v4056_v58 = vadd.s32 %v4055_v53, %v4045_v10  ;;  %v4069_v38 = vmul.u32 14564, %v4066_v36  ;;  %v7144_v17 = vmul.u32 14564, %v4067_v49  ;;  %v4073_v21 = vshll.u32 %v4070_v44, 16 }
 0x30b   : > { %v4637_v46 = vadd.f32 %v4636_v35, %v4602_v39  ;;  %v2747_v9 = vadd.f32 %v2699_v19, %v2445_v57  ;;  %vm4237_vm2 = vcmp.ne.s32.totalorder %v4031_v1, 0  ;;  %vm4273_vm3 = vcmp.lt.s32.totalorder %v4031_v1, 0 }
 0x30c   : > { %v4345_v29 = vadd.s32 18, %v4031_v1  ;;  %vm4309_vm4 = vmand %vm4273_vm3, %vm4237_vm2  ;;  %v2144_v56 = vadd.f32 %v2098_v32, %v7304_v28  ;;  %v4057_v25 = vadd.s32 %v4056_v58, %v4047_v5  ;;  %v4072_v54 = vmul.u32 58254, %v4067_v49 }
 0x30d   : > { %v3049_v42 = vadd.f32 %v3001_v4, %v2747_v9  ;;  %v4074_v50 = vshrl.u32 %v4070_v44, 16  ;;  %v4075_v63 = vshll.u32 %v7144_v17, 16  ;;  %vm4077_vm6 = vc.u32 %v4069_v38, %v4073_v21 }
 0x30e   : > { %v4381_v59 = vsel %vm4309_vm4, %v4345_v29, %v4031_v1  ;;  %v4058_v16 = vshrl.u32 %v4057_v25, 4  ;;  %v4079_v62 = vadd.s32 %v4073_v21, %v4069_v38  ;;  %v4078_v52 = vsel %vm4077_vm6, 1, %v7219_v14 }
 0x30f   : > { %vm4417_vm5 = vcmp.lt.s32.totalorder %v4381_v59, 16  ;;  %v4095_v7 = vand.u32 65535, %v7142_v23  ;;  %v4096_v41 = vshrl.u32 %v7142_v23, 16  ;;  %v4076_v48 = vshrl.u32 %v7144_v17, 16 }
 0x310   : > { %v4453_v12 = vsel %vm4417_vm5, %v3048_v0, 0.0  ;;  %v2400_v43 = vpop.f32.mrf.mxu2  ;;  %v3004_v35 = vpop.f32.mrf.mxu0  ;;  %v4059_v55 = vmul.u32 18, %v4058_v16  ;;  %v4080_v33 = vadd.s32 %v4078_v52, %v4072_v54  ;;  %vm4081_vm7 = vc.u32 %v4079_v62, %v4075_v63  ;;  %v7306_v62 = vld [vmem:[#allocation14_spill] sm:$0xff] }
 0x311   : > { %v4560_v15 = vadd.f32 %v4559_v20, %v4453_v12  ;;  %v4603_v47 = vmul.f32 %v4453_v12, %v4453_v12  ;;  %v2446_v11 = vadd.f32 %v2400_v43, %v2144_v56  ;;  %v4099_v3 = vmul.u32 58254, %v4095_v7 }
 0x312   : > { %v2101_v8 = vpop.f32.mrf.mxu1  ;;  %v2702_v31 = vpop.f32.mrf.mxu3  ;;  %v4060_v18 = vsub.s32 %v7123_v2, %v4059_v55  ;;  %v4098_v22 = vmul.u32 14564, %v4095_v7  ;;  %v4082_v0 = vsel %vm4081_vm7, 1, %v7219_v14  ;;  %v4100_v37 = vmul.u32 14564, %v4096_v41 }
 0x313   : > { %v4638_v10 = vadd.f32 %v4637_v46, %v4603_v47  ;;  %v2748_v61 = vadd.f32 %v2702_v31, %v2446_v11  ;;  %v4101_v6 = vmul.u32 58254, %v4096_v41  ;;  %v4102_v60 = vshll.u32 %v4099_v3, 16 }
 0x314   : > { %vm4238_vm8 = vcmp.ne.s32.totalorder %v4060_v18, 0  ;;  %vm4274_vm9 = vcmp.lt.s32.totalorder %v4060_v18, 0  ;;  %v4346_v5 = vadd.s32 18, %v4060_v18  ;;  %v2145_v24 = vadd.f32 %v2101_v8, %v7305_v30 }
 0x315   : > { %v7154_v40 = vadd.f32 %v3004_v35, %v2748_v61  ;;  %vm4310_vm10 = vmand %vm4274_vm9, %vm4238_vm8  ;;  %v4084_v45 = vadd.s32 %v4082_v0, %v4080_v33  ;;  %v4103_v27 = vshrl.u32 %v4099_v3, 16  ;;  %v4104_v26 = vshll.u32 %v4100_v37, 16 }
 0x316   : > { %v4382_v2 = vsel %vm4310_vm10, %v4346_v5, %v4060_v18  ;;  %vm4106_vm11 = vc.u32 %v4098_v22, %v4102_v60  ;;  %v4108_v51 = vadd.s32 %v4102_v60, %v4098_v22  ;;  %v7160_v53 = vadd.s32 264, %v6179_v34 }
 0x317   : > { %v5340_v4 = vpack.c.bf16 %v7154_v40, %v3049_v42  ;;  %vm4418_vm12 = vcmp.lt.s32.totalorder %v4382_v2, 16  ;;  %v4085_v36 = vadd.s32 %v4084_v45, %v4074_v50  ;;  %v4107_v57 = vsel %vm4106_vm11, 1, %v7219_v14 }
 0x318   : > { %v2403_v20 = vpop.f32.mrf.mxu2  ;;  %v3007_v39 = vpop.f32.mrf.mxu0  ;;  %v4454_v1 = vsel %vm4418_vm12, %v3049_v42, 0.0  ;;  %v4109_v19 = vadd.s32 %v4107_v57, %v4101_v6  ;;  %vm4110_vm13 = vc.u32 %v4108_v51, %v4104_v26  ;;  %v4105_v17 = vshrl.u32 %v4100_v37, 16 }
 0x319   : > { %5456 = vst [vmem:[%s6399_s30 + $0x78] sm:$0xff] %v5340_v4   ;;  %v2447_v32 = vadd.f32 %v2403_v20, %v2145_v24  ;;  %v4561_v49 = vadd.f32 %v4560_v15, %v4454_v1  ;;  %v4604_v44 = vmul.f32 %v4454_v1, %v4454_v1  ;;  %v4086_v46 = vadd.s32 %v4085_v36, %v4076_v48 }
 0x31a   : > { %v2104_v9 = vpop.f32.mrf.mxu1  ;;  %v2705_v58 = vpop.f32.mrf.mxu3  ;;  %v4111_v38 = vsel %vm4110_vm13, 1, %v7219_v14  ;;  %v4124_v56 = vand.u32 65535, %v7160_v53  ;;  %v4125_v42 = vshrl.u32 %v7160_v53, 16  ;;  %v7167_v59 = vadd.s32 272, %v6179_v34 }
 0x31b   : > { %v2749_v29 = vadd.f32 %v2705_v58, %v2447_v32  ;;  %v4113_v28 = vadd.s32 %v4111_v38, %v4109_v19  ;;  %v4639_v25 = vadd.f32 %v4638_v10, %v4604_v44  ;;  %v4087_v21 = vshrl.u32 %v4086_v46, 4 }
 0x31c   : > { %v4127_v50 = vmul.u32 14564, %v4124_v56  ;;  %v4128_v63 = vmul.u32 58254, %v4124_v56  ;;  %v2146_v12 = vadd.f32 %v2104_v9, %v7306_v62  ;;  %v4129_v35 = vmul.u32 14564, %v4125_v42 }
 0x31d   : > { %v4114_v54 = vadd.s32 %v4113_v28, %v4103_v27  ;;  %v4088_v16 = vmul.u32 18, %v4087_v21  ;;  %v3051_v43 = vadd.f32 %v3007_v39, %v2749_v29  ;;  %v4130_v7 = vmul.u32 58254, %v4125_v42 }
 0x31e   : > { %v4131_v41 = vshll.u32 %v4128_v63, 16  ;;  %v4153_v15 = vand.u32 65535, %v7167_v59  ;;  %v4132_v8 = vshrl.u32 %v4128_v63, 16  ;;  %v4133_v31 = vshll.u32 %v4129_v35, 16 }
 0x31f   : > { %v4115_v52 = vadd.s32 %v4114_v54, %v4105_v17  ;;  %v4089_v47 = vsub.s32 %v7133_v13, %v4088_v16  ;;  %v4154_v48 = vshrl.u32 %v7167_v59, 16  ;;  %v4134_v6 = vshrl.u32 %v4129_v35, 16 }
 0x320   : > { %v2406_v55 = vpop.f32.mrf.mxu2  ;;  %v3010_v11 = vpop.f32.mrf.mxu0  ;;  %vm4135_vm14 = vc.u32 %v4127_v50, %v4131_v41  ;;  %v4137_v10 = vadd.s32 %v4131_v41, %v4127_v50  ;;  %v4157_v30 = vmul.u32 58254, %v4153_v15  ;;  %v4156_v51 = vmul.u32 14564, %v4153_v15  ;;  %v7308_v15 = vld [vmem:[#allocation16_spill] sm:$0xff] }
 0x321   : > { %v4116_v33 = vshrl.u32 %v4115_v52, 4  ;;  %v2448_v3 = vadd.f32 %v2406_v55, %v2146_v12  ;;  %vm4239_vm15 = vcmp.ne.s32.totalorder %v4089_v47, 0  ;;  %vm4275_vm0 = vcmp.lt.s32.totalorder %v4089_v47, 0 }
 0x322   : > { %v4347_v18 = vadd.s32 18, %v4089_v47  ;;  %v2107_v61 = vpop.f32.mrf.mxu1  ;;  %v2708_v22 = vpop.f32.mrf.mxu3  ;;  %v4136_v0 = vsel %vm4135_vm14, 1, %v7219_v14  ;;  %vm4311_vm1 = vmand %vm4275_vm0, %vm4239_vm15  ;;  %vm4139_vm2 = vc.u32 %v4137_v10, %v4133_v31  ;;  %v4158_v24 = vmul.u32 14564, %v4154_v48 }
 0x323   : > { %v4117_v37 = vmul.u32 18, %v4116_v33  ;;  %v2750_v13 = vadd.f32 %v2708_v22, %v2448_v3  ;;  %v4138_v60 = vadd.s32 %v4136_v0, %v4130_v7  ;;  %v4140_v26 = vsel %vm4139_vm2, 1, %v7219_v14 }
 0x324   : > { %v4383_v5 = vsel %vm4311_vm1, %v4347_v18, %v4089_v47  ;;  %v4160_v36 = vshll.u32 %v4157_v30, 16  ;;  %v4159_v44 = vmul.u32 58254, %v4154_v48  ;;  %v4162_v9 = vshll.u32 %v4158_v24, 16 }
 0x325   : > { %vm4419_vm3 = vcmp.lt.s32.totalorder %v4383_v5, 16  ;;  %v4118_v45 = vsub.s32 %v7142_v23, %v4117_v37  ;;  %v7175_v27 = vadd.f32 %v3010_v11, %v2750_v13  ;;  %v4142_v4 = vadd.s32 %v4140_v26, %v4138_v60 }
 0x326   : > { %v4455_v2 = vsel %vm4419_vm3, %v7154_v40, 0.0  ;;  %vm4164_vm7 = vc.u32 %v4156_v51, %v4160_v36  ;;  %v4166_v29 = vadd.s32 %v4160_v36, %v4156_v51  ;;  %v4161_v28 = vshrl.u32 %v4157_v30, 16 }
 0x327   : > { %v4562_v20 = vadd.f32 %v4561_v49, %v4455_v2  ;;  %v4605_v39 = vmul.f32 %v4455_v2, %v4455_v2  ;;  %vm4240_vm4 = vcmp.ne.s32.totalorder %v4118_v45, 0  ;;  %vm4276_vm5 = vcmp.lt.s32.totalorder %v4118_v45, 0  ;;  %v7307_v49 = vld [vmem:[#allocation15_spill] sm:$0xff] }
 0x328   : > { %vm4312_vm6 = vmand %vm4276_vm5, %vm4240_vm4  ;;  %v4348_v57 = vadd.s32 18, %v4118_v45  ;;  %v4143_v1 = vadd.s32 %v4142_v4, %v4132_v8  ;;  %v5345_v32 = vpack.c.bf16 %v7175_v27, %v3051_v43  ;;  %v2409_v23 = vpop.f32.mrf.mxu2  ;;  %v3013_v19 = vpop.f32.mrf.mxu0  ;;  %v2147_v17 = vadd.f32 %v2107_v61, %v7307_v49 }
 0x329   : > { %v4640_v46 = vadd.f32 %v4639_v25, %v4605_v39  ;;  %v4165_v56 = vsel %vm4164_vm7, 1, %v7219_v14  ;;  %vm4168_vm9 = vc.u32 %v4166_v29, %v4162_v9  ;;  %v4163_v35 = vshrl.u32 %v4158_v24, 16 }
 0x32a   : > { %v4384_v58 = vsel %vm4312_vm6, %v4348_v57, %v4118_v45  ;;  %v4144_v40 = vadd.s32 %v4143_v1, %v4134_v6  ;;  %5457 = vst [vmem:[%s6399_s30 + $0x80] sm:$0xff] %v5345_v32   ;;  %v2711_v38 = vpop.f32.mrf.mxu3  ;;  %v2110_v54 = vpop.f32.mrf.mxu1  ;;  %v4167_v50 = vadd.s32 %v4165_v56, %v4159_v44  ;;  %v2449_v16 = vadd.f32 %v2409_v23, %v2147_v17 }
 0x32b   : > { %vm4420_vm8 = vcmp.lt.s32.totalorder %v4384_v58, 16  ;;  %v4169_v62 = vsel %vm4168_vm9, 1, %v7219_v14  ;;  %v3163_v7 = vadd.s32 280, %v6179_v34  ;;  %v2148_v47 = vadd.f32 %v2110_v54, %v7308_v15 }
 0x32c   : > { %v4456_v21 = vsel %vm4420_vm8, %v3051_v43, 0.0  ;;  %v4145_v42 = vshrl.u32 %v4144_v40, 4  ;;  %v4171_v52 = vadd.s32 %v4169_v62, %v4167_v50  ;;  %v2751_v48 = vadd.f32 %v2711_v38, %v2449_v16 }
 0x32d   : > { %v4563_v63 = vadd.f32 %v4562_v20, %v4456_v21  ;;  %v4606_v25 = vmul.f32 %v4456_v21, %v4456_v21  ;;  %v4182_v8 = vand.u32 65535, %v3163_v7  ;;  %v4183_v31 = vshrl.u32 %v3163_v7, 16 }
 0x32e   : > { %v4146_v12 = vmul.u32 18, %v4145_v42  ;;  %v4172_v43 = vadd.s32 %v4171_v52, %v4161_v28  ;;  %v3053_v24 = vadd.f32 %v3013_v19, %v2751_v48 }
 0x32f   : > { %v4641_v41 = vadd.f32 %v4640_v46, %v4606_v25  ;;  %v4185_v34 = vmul.u32 14564, %v4182_v8  ;;  %v4186_v0 = vmul.u32 58254, %v4182_v8  ;;  %v4187_v37 = vmul.u32 14564, %v4183_v31 }
 0x330   : > { %v4147_v55 = vsub.s32 %v7160_v53, %v4146_v12  ;;  %v2412_v11 = vpop.f32.mrf.mxu2  ;;  %v4173_v10 = vadd.s32 %v4172_v43, %v4163_v35  ;;  %v3016_v61 = vpop.f32.mrf.mxu0  ;;  %v4188_v60 = vmul.u32 58254, %v4183_v31 }
 0x331   : > { %v2450_v33 = vadd.f32 %v2412_v11, %v2148_v47  ;;  %v4189_v5 = vshll.u32 %v4186_v0, 16  ;;  %v4191_v26 = vshll.u32 %v4187_v37, 16  ;;  %v4190_v1 = vshrl.u32 %v4186_v0, 16 }
 0x332   : > { %vm4241_vm10 = vcmp.ne.s32.totalorder %v4147_v55, 0  ;;  %vm4277_vm11 = vcmp.lt.s32.totalorder %v4147_v55, 0  ;;  %v4349_v3 = vadd.s32 18, %v4147_v55  ;;  %v2714_v18 = vpop.f32.mrf.mxu3  ;;  %v4174_v6 = vshrl.u32 %v4173_v10, 4 }
 0x333   : > { %vm4313_vm12 = vmand %vm4277_vm11, %vm4241_vm10  ;;  %v2752_v22 = vadd.f32 %v2714_v18, %v2450_v33  ;;  %vm4193_vm14 = vc.u32 %v4185_v34, %v4189_v5  ;;  %v4195_v51 = vadd.s32 %v4189_v5, %v4185_v34  ;;  %v4192_v19 = vshrl.u32 %v4187_v37, 16 }
 0x334   : > { %v4385_v13 = vsel %vm4313_vm12, %v4349_v3, %v4147_v55  ;;  %v4175_v45 = vmul.u32 18, %v4174_v6  ;;  %v4194_v20 = vsel %vm4193_vm14, 1, %v7219_v14 }
 0x335   : > { %vm4421_vm13 = vcmp.lt.s32.totalorder %v4385_v13, 16  ;;  %v3054_v53 = vadd.f32 %v3016_v61, %v2752_v22  ;;  %v4196_v32 = vadd.s32 %v4194_v20, %v4188_v60  ;;  %vm4197_vm15 = vc.u32 %v4195_v51, %v4191_v26 }
 0x336   : > { %v4457_v30 = vsel %vm4421_vm13, %v7175_v27, 0.0  ;;  %v4176_v36 = vsub.s32 %v7167_v59, %v4175_v45  ;;  %v4198_v23 = vsel %vm4197_vm15, 1, %v7219_v14 }
 0x337   : > { %v4564_v2 = vadd.f32 %v4563_v63, %v4457_v30  ;;  %v4607_v4 = vmul.f32 %v4457_v30, %v4457_v30  ;;  %v5350_v39 = vpack.c.bf16 %v3054_v53, %v3053_v24  ;;  %v4200_v44 = vadd.s32 %v4198_v23, %v4196_v32 }
 0x338   : > { %vm4242_vm0 = vcmp.ne.s32.totalorder %v4176_v36, 0  ;;  %vm4278_vm1 = vcmp.lt.s32.totalorder %v4176_v36, 0  ;;  %v4350_v27 = vadd.s32 18, %v4176_v36 }
 0x339   : > { %v4642_v57 = vadd.f32 %v4641_v41, %v4607_v4  ;;  %5458 = vst [vmem:[%s6399_s30 + $0x88] sm:$0xff] %v5350_v39   ;;  %vm4314_vm2 = vmand %vm4278_vm1, %vm4242_vm0  ;;  %v4201_v9 = vadd.s32 %v4200_v44, %v4190_v1 }
 0x33a   : > { %v4386_v46 = vsel %vm4314_vm2, %v4350_v27, %v4176_v36 }
 0x33b   : > { %vm4422_vm3 = vcmp.lt.s32.totalorder %v4386_v46, 16  ;;  %v4202_v38 = vadd.s32 %v4201_v9, %v4192_v19 }
 0x33c   : > { %v4458_v59 = vsel %vm4422_vm3, %v3053_v24, 0.0 }
 0x33d   : > { %v4565_v58 = vadd.f32 %v4564_v2, %v4458_v59  ;;  %v4608_v40 = vmul.f32 %v4458_v59, %v4458_v59  ;;  %v4203_v49 = vshrl.u32 %v4202_v38, 4 }
 0x33f   : > { %v4643_v29 = vadd.f32 %v4642_v57, %v4608_v40  ;;  %v4204_v17 = vmul.u32 18, %v4203_v49 }
 0x341   : > { %v4205_v28 = vsub.s32 %v3163_v7, %v4204_v17 }
 0x343   : > { %vm4243_vm4 = vcmp.ne.s32.totalorder %v4205_v28, 0  ;;  %vm4279_vm5 = vcmp.lt.s32.totalorder %v4205_v28, 0  ;;  %v4351_v56 = vadd.s32 18, %v4205_v28 }
 0x344   : > { %vm4315_vm6 = vmand %vm4279_vm5, %vm4243_vm4 }
 0x345   : > { %v4387_v14 = vsel %vm4315_vm6, %v4351_v56, %v4205_v28 }
 0x346   : > { %vm4423_vm7 = vcmp.lt.s32.totalorder %v4387_v14, 16 }
 0x347   : > { %v4459_v21 = vsel %vm4423_vm7, %v3054_v53, 0.0 }
 0x348   : > { %v4566_v42 = vadd.f32 %v4565_v58, %v4459_v21  ;;  %v4609_v54 = vmul.f32 %v4459_v21, %v4459_v21 }
 0x34a   : > { %v4567_v50 = vrot.slane %v4566_v42, 4  ;;  %v4644_v63 = vadd.f32 %v4643_v29, %v4609_v54 }
 0x34c   : > { %v4568_v25 = vadd.f32 %v4567_v50, %v4566_v42  ;;  %v4645_v16 = vrot.slane %v4644_v63, 4 }
 0x34e   : > { %v4569_v62 = vrot.slane %v4568_v25, 2  ;;  %v4646_v12 = vadd.f32 %v4645_v16, %v4644_v63 }
 0x350   : > { %v4570_v35 = vadd.f32 %v4569_v62, %v4568_v25  ;;  %v4647_v52 = vrot.slane %v4646_v12, 2 }
 0x352   : > { %v4571_v7 = vrot.slane %v4570_v35, 1  ;;  %v4648_v41 = vadd.f32 %v4647_v52, %v4646_v12 }
 0x354   : > { %v4572_v15 = vadd.f32 %v4571_v7, %v4570_v35  ;;  %v4649_v47 = vrot.slane %v4648_v41, 1 }
 0x356   : > { %4573 = vst [vmem:[%s211_s6] sm:$0x1] %v4572_v15  ;;  %v4650_v55 = vadd.f32 %v4649_v47, %v4648_v41 }
 0x358   : > { %4651 = vst [vmem:[%s214_s9] sm:$0x1] %v4650_v55 }
 0x359 PF: > { %s15_s15 = sadd.s32 1, %s5525_s15  }
 0x35a   : > { %p12_p4 = scmp.ge.s32.totalorder %s15_s15, 4  }
 0x35c   :  { %14 = sbr.rel (!%p12_p4) target bundleno = 1 (0x1), region = 90 }

</bundles_post_ra>
